<compile_context>
chip_gen: v7x
topology: tpu7x:2x2x1
jax: 0.10.0
libtpu: 0.0.40
codegen_flags: <defaults>
</compile_context>

<pallas_src>
import numpy as np
import jax
import jax.numpy as jnp
from jax.experimental import pallas as pl
from jax.experimental.pallas import tpu as pltpu

_EPS = 1e-5
_BF16 = jnp.bfloat16


# --------------------- host-side constants: 3x3 tap selections ---------------------

def _make_sel(H, W, stride):
    """Stacked (9, HW, HWo) 0/1 selection matrices for a 3x3 conv with padding=1.

    Tap t = 3*ky + kx of output pixel (oh, ow) reads input pixel
    (stride*oh + ky - 1, stride*ow + kx - 1); out-of-image taps select nothing
    (zero padding).  Built once on the host (numpy) and passed to the kernel as a
    bf16 constant with a constant index_map.
    """
    HW = H * W
    Ho, Wo = H // stride, W // stride
    HWo = Ho * Wo
    p = np.arange(HW)[:, None]                       # input flat index
    q = np.arange(HWo)[None, :]                      # output flat index
    oh = (q // Wo) * stride
    ow = (q % Wo) * stride
    sels = []
    for t in range(9):
        ky, kx = t // 3, t % 3
        ih, iw = oh + ky - 1, ow + kx - 1
        valid = (ih >= 0) & (ih < H) & (iw >= 0) & (iw < W)
        sels.append(((p == ih * W + iw) & valid).astype(np.float32))
    return jnp.asarray(np.stack(sels, axis=0), dtype=_BF16)


# ------------------------------- in-kernel helpers ---------------------------------

def _silu(x):
    return x * jax.nn.sigmoid(x)


def _depthwise3x3(xcat, sel_ref, kdw_ref, shdw):
    """Depthwise 3x3 conv (+ folded BatchNorm) of the (cc, HW) channel stack.

    sel_ref : (9, HW, HWo) bf16 precomputed tap selections (handles pad + stride).
    kdw_ref : (9, cc, 1)   f32 depthwise weights with the BN scale folded in.
    shdw    : (cc, 1)      f32 BN shift (conv bias folded in).
    Returns (cc, HWo) f32.  Taps are accumulated directly - no im2col buffer.
    """
    xb = xcat.astype(_BF16)
    acc = None
    for t in range(9):
        tap = jnp.dot(xb, sel_ref[t], preferred_element_type=jnp.float32)   # (cc, HWo)
        term = kdw_ref[t] * tap
        acc = term if acc is None else acc + term
    return acc + shdw


def _init_conv(x, sel_ref, w_ref, b):
    """Dense 3x3 conv (pad 1) + BN + SiLU.  w_ref: (9, cout, cin_pad) f32, b: (cout, 1)."""
    xb = x.astype(_BF16)
    acc = None
    for t in range(9):
        tap = jnp.dot(xb, sel_ref[t], preferred_element_type=jnp.float32)   # (cin, HW)
        term = jnp.dot(w_ref[t], tap, preferred_element_type=jnp.float32)   # (cout, HW)
        acc = term if acc is None else acc + term
    return _silu(acc + b)


def _shuffle_block(x, sel_ref, w1, b1, kdw_ref, shdw, wfin, bfin, *, split):
    """One fused ResidualBottleneck (split=True, stride=1) or ResidualDownsample
    (split=False, stride=2; the stride is baked into sel_ref).

      branch1: [x or x[:C//2]]                 -> dw3x3+BN ----\
      branch2: [x or x[C//2:]] -> 1x1+BN+SiLU  -> dw3x3+BN ----+--> 1x1+BN+SiLU
                                                 (+ concat + ChannelShuffle(2),
                                                  folded into wfin / bfin)
    """
    C = x.shape[0]
    if split:
        xa, xb = x[: C // 2, :], x[C // 2:, :]
    else:
        xa, xb = x, x
    # branch-2 first pointwise conv + folded BN + SiLU (full input resolution)
    h2 = _silu(jnp.dot(w1, xb, preferred_element_type=jnp.float32) + b1)
    # joint depthwise 3x3 + BN on [branch1 input ; branch2 hidden]
    xcat = jnp.concatenate([xa, h2], axis=0)                 # (cc, HW) f32
    d = _depthwise3x3(xcat, sel_ref, kdw_ref, shdw)          # (cc, HWo) f32
    # both final 1x1 convs + BN + channel concat + ChannelShuffle folded into one matmul
    y = jnp.dot(wfin, d, preferred_element_type=jnp.float32) + bfin
    return _silu(y)


def _head(y, wfc, bfc):
    """AdaptiveAvgPool2d(1) + Flatten + Linear + Sigmoid (mean first, then tiny dot)."""
    pooled = jnp.mean(y, axis=1, keepdims=True)              # (C, 1)  cross-lane reduce
    logit = jnp.sum(wfc * pooled, axis=0, keepdims=True) + bfc
    return jax.nn.sigmoid(logit)                             # (1, 1)


# ------------------------------- fused forward pass --------------------------------

def unet_forward(x_nchw, params):
    """Whole Unet_t forward as a single fused pallas_call (grid over the batch)."""
    N, Cin, H, W = x_nchw.shape
    cin_pad = params["cin_pad"]
    HW = H * W
    # NCHW -> (N, C, H*W) is a free reshape; pad channels so the bf16 tap matmul
    # operand has a 16-row (packed-sublane) aligned shape.
    x = x_nchw.reshape(N, Cin, HW)
    x = jnp.pad(x, ((0, 0), (0, cin_pad - Cin), (0, 0)))

    # Flatten all constant operands (tap selections + packed weights) in a fixed order.
    consts = []

    def add(a):
        consts.append(a)
        return len(consts) - 1

    sel_idx = {k: add(v) for k, v in params["sels"].items()}
    init_sel = sel_idx[params["init"]["sel"]]
    init_w = add(params["init"]["w"])
    init_b = add(params["init"]["b"])
    blocks = []
    for bp in params["blocks"]:
        blocks.append(dict(
            sel=sel_idx[bp["sel"]], split=bp["split"],
            w1=add(bp["w1"]), b1=add(bp["b1"]),
            kdw=add(bp["kdw"]), shdw=add(bp["shdw"]),
            wfin=add(bp["wfin"]), bfin=add(bp["bfin"])))
    fc_w = add(params["fc"]["w"])
    fc_b = add(params["fc"]["b"])

    def kernel(x_ref, *rest):
        c = rest[:-1]            # constant-operand refs (fetched into VMEM once)
        o_ref = rest[-1]
        h = _init_conv(x_ref[...], c[init_sel], c[init_w], c[init_b][...])
        for b in blocks:
            h = _shuffle_block(h, c[b["sel"]],
                               c[b["w1"]][...], c[b["b1"]][...],
                               c[b["kdw"]], c[b["shdw"]][...],
                               c[b["wfin"]][...], c[b["bfin"]][...],
                               split=b["split"])
        o_ref[...] = _head(h, c[fc_w][...], c[fc_b][...])

    in_specs = [pl.BlockSpec((None, cin_pad, HW), lambda n: (n, 0, 0))]
    for a in consts:
        nd = a.ndim
        in_specs.append(pl.BlockSpec(a.shape, lambda n, _nd=nd: (0,) * _nd))

    out = pl.pallas_call(
        kernel,
        out_shape=jax.ShapeDtypeStruct((N, 1, 1), jnp.float32),
        grid=(N,),
        in_specs=in_specs,
        out_specs=pl.BlockSpec((None, 1, 1), lambda n: (n, 0, 0)),
        compiler_params=pltpu.CompilerParams(
            dimension_semantics=("parallel",),
            vmem_limit_bytes=32 * 1024 * 1024),
    )(x, *consts)
    return out[:, 0, 0]                                      # matches x.squeeze(1)


# ------------------------ parameter generation & host-side packing -----------------

def _make_bn(key, c):
    k1, k2, k3, k4 = jax.random.split(key, 4)
    gamma = 1.0 + 0.1 * jax.random.normal(k1, (c,), jnp.float32)
    beta = 0.1 * jax.random.normal(k2, (c,), jnp.float32)
    mean = 0.1 * jax.random.normal(k3, (c,), jnp.float32)
    var = 1.0 + 0.1 * jnp.abs(jax.random.normal(k4, (c,), jnp.float32))
    return gamma, beta, mean, var


def _fold_bn(bias, bn):
    # eval-mode BatchNorm folded with the preceding conv bias:
    #   BN(conv(x)) = scale * conv_nobias(x) + shift
    gamma, beta, mean, var = bn
    scale = gamma / jnp.sqrt(var + _EPS)
    shift = beta + scale * (bias - mean)
    return scale, shift


def _pw_nat(key, cin, cout):
    """ConvBnSiLu(1x1): (weight (cout,cin), BN scale (cout,), BN shift (cout,))."""
    kw, kb, kbn = jax.random.split(key, 3)
    w = 0.3 * jax.random.normal(kw, (cout, cin), jnp.float32)
    b = 0.1 * jax.random.normal(kb, (cout,), jnp.float32)
    scale, shift = _fold_bn(b, _make_bn(kbn, cout))
    return w, scale, shift


def _dw_nat(key, c):
    """Depthwise Conv2d(3x3, groups=c) + BatchNorm: (weight (c, 9), scale, shift),
    weight flattened with t = 3*ky + kx."""
    kw, kb, kbn = jax.random.split(key, 3)
    w = 0.3 * jax.random.normal(kw, (c, 9), jnp.float32)
    b = 0.1 * jax.random.normal(kb, (c,), jnp.float32)
    scale, shift = _fold_bn(b, _make_bn(kbn, c))
    return w, scale, shift


def _pack_block(pw1, dw, pw_a, pw_b, ca):
    """Fold a ResidualBottleneck / ResidualDownsample into fused-kernel params.

    pw1  : branch-2 first 1x1 ConvBnSiLu (applied in-kernel at full resolution).
    dw   : joint depthwise conv + BN of [branch1-input ; branch2-hidden]
           (first `ca` channels = branch 1, rest = branch 2).
    pw_a / pw_b : final 1x1 ConvBnSiLu of branch 1 / branch 2.
    BN scales/shifts, conv biases, the channel concat and the ChannelShuffle(2)
    interleave (out ch 2i <- branch1 i, 2i+1 <- branch2 i) are folded into wfin/bfin.
    """
    w1, s1, sh1 = pw1
    kdw, sdw, shdw = dw
    va, sa, sha = pw_a
    vb, sb, shb = pw_b
    cc = kdw.shape[0]
    com = va.shape[0]
    cout = 2 * com

    w1f = s1[:, None] * w1                                   # fold BN scale into rows
    b1 = sh1[:, None]

    kdw_s = sdw[:, None] * kdw                               # fold BN scale, (cc, 9)
    kdw_t = jnp.transpose(kdw_s, (1, 0))[:, :, None]         # (9, cc, 1) tap-major
    shdw_c = shdw[:, None]

    wm = jnp.zeros((cout, cc), jnp.float32)
    wm = wm.at[0::2, :ca].set(sa[:, None] * va)
    wm = wm.at[1::2, ca:].set(sb[:, None] * vb)
    bfin = jnp.zeros((cout,), jnp.float32).at[0::2].set(sha).at[1::2].set(shb)

    return dict(w1=w1f, b1=b1, kdw=kdw_t, shdw=shdw_c, wfin=wm, bfin=bfin[:, None])


def _pack_bottleneck(key, cin, cout):
    """ResidualBottleneck(cin, cout)  (channel split, stride=1)."""
    cm, com = cin // 2, cout // 2
    k1, k2, k3, k4, k5 = jax.random.split(key, 5)
    dw1 = _dw_nat(k1, cm)            # branch1: depthwise + BN
    pwa = _pw_nat(k2, cm, com)       # branch1: final 1x1 ConvBnSiLu
    pw1 = _pw_nat(k3, cm, cm)        # branch2: first 1x1 ConvBnSiLu
    dw2 = _dw_nat(k4, cm)            # branch2: depthwise + BN
    pwb = _pw_nat(k5, cm, com)       # branch2: final 1x1 ConvBnSiLu
    dw = tuple(jnp.concatenate([a, b], axis=0) for a, b in zip(dw1, dw2))
    p = _pack_block(pw1, dw, pwa, pwb, ca=cm)
    p["split"] = True
    return p


def _pack_downsample(key, cin, cout):
    """ResidualDownsample(cin, cout)  (no split, stride=2)."""
    com = cout // 2
    k1, k2, k3, k4, k5 = jax.random.split(key, 5)
    dw1 = _dw_nat(k1, cin)           # branch1: depthwise(stride 2) + BN on x
    pwa = _pw_nat(k2, cin, com)      # branch1: final 1x1 ConvBnSiLu
    pw1 = _pw_nat(k3, cin, com)      # branch2: first 1x1 ConvBnSiLu (full resolution)
    dw2 = _dw_nat(k4, com)           # branch2: depthwise(stride 2) + BN
    pwb = _pw_nat(k5, com, com)      # branch2: final 1x1 ConvBnSiLu
    dw = tuple(jnp.concatenate([a, b], axis=0) for a, b in zip(dw1, dw2))
    p = _pack_block(pw1, dw, pwa, pwb, ca=cin)
    p["split"] = False
    return p


def _pack_init(key, cin, cout, cin_pad):
    """ConvBnSiLu(cin, cout, 3, padding=1) packed as per-tap (cout, cin_pad) matrices."""
    kw, kb, kbn = jax.random.split(key, 3)
    w = 0.3 * jax.random.normal(kw, (cout, cin, 3, 3), jnp.float32)
    b = 0.1 * jax.random.normal(kb, (cout,), jnp.float32)
    scale, shift = _fold_bn(b, _make_bn(kbn, cout))
    wf = scale[:, None, None] * w.reshape(cout, cin, 9)      # fold BN scale, t = 3*ky+kx
    wf = jnp.transpose(wf, (2, 0, 1))                        # (9, cout, cin) tap-major
    wf = jnp.pad(wf, ((0, 0), (0, 0), (0, cin_pad - cin)))   # pad cin -> packed sublanes
    return dict(w=wf, b=shift[:, None])


def _cal_channels(base_dim, dim_mults):
    dims = [base_dim * m for m in dim_mults]
    dims.insert(0, base_dim)
    return [(dims[i], dims[i + 1]) for i in range(len(dims) - 1)]


def make_unet_params(key, in_channels, base_dim, dim_mults, H, W):
    channels = _cal_channels(base_dim, dim_mults)
    k_init, k_enc, k_mid, k_fc = jax.random.split(key, 4)

    sels = {}

    def sel_for(h, w, s):
        cfg = (h, w, s)
        if cfg not in sels:
            sels[cfg] = _make_sel(h, w, s)
        return cfg

    params = {"cin_pad": 16, "sels": sels}
    init = _pack_init(k_init, in_channels, base_dim, cin_pad=16)
    init["sel"] = sel_for(H, W, 1)
    params["init"] = init

    # Encoder blocks: only conv1 (ResidualDownsample, applied to the raw block input)
    # feeds the output path; conv0's x_shortcut is discarded by Unet_t.forward, so no
    # params are needed for it.  Like the PyTorch module itself, applying conv1
    # (= ResidualDownsample(cout//2, cout)) to the block input requires cin == cout//2,
    # i.e. doubling dim_mults.
    blocks = []
    h, w = H, W
    for ek, (cin, cout) in zip(jax.random.split(k_enc, len(channels)), channels):
        assert cin == cout // 2, "Unet_t EncoderBlock requires doubling dim_mults"
        b = _pack_downsample(ek, cout // 2, cout)
        b["sel"] = sel_for(h, w, 2)
        blocks.append(b)
        h, w = h // 2, w // 2

    c_last = channels[-1][1]
    mk = jax.random.split(k_mid, 3)
    mid_cfg = [(c_last, c_last), (c_last, c_last), (c_last, c_last // 2)]
    for kk, (ci, co) in zip(mk, mid_cfg):
        b = _pack_bottleneck(kk, ci, co)
        b["sel"] = sel_for(h, w, 1)
        blocks.append(b)
    params["blocks"] = blocks

    kfw, kfb = jax.random.split(k_fc)
    params["fc"] = dict(
        w=0.3 * jax.random.normal(kfw, (c_last // 2, 1), jnp.float32),   # Linear weight^T
        b=0.1 * jax.random.normal(kfb, (1, 1), jnp.float32),
    )
    return params


# ------------------------------------- main -----------------------------------------

if __name__ == "__main__":
    # small config consistent with the module: in_channels=3, base_dim=8, dim_mults=[2, 4]
    in_channels, base_dim, dim_mults = 3, 8, [2, 4]
    N, H, W = 2, 16, 16

    params = make_unet_params(jax.random.PRNGKey(42), in_channels, base_dim, dim_mults, H, W)
    x = jax.random.normal(jax.random.PRNGKey(0), (N, in_channels, H, W), jnp.float32)

    fwd = jax.jit(lambda inp: unet_forward(inp, params))
    out = jax.block_until_ready(fwd(x))

    assert out.shape == (N,), out.shape
    assert bool(jnp.all(jnp.isfinite(out)))
    assert bool(jnp.all((out > 0.0) & (out < 1.0)))          # sigmoid output range
    print("KERNEL_OK")
</pallas_src>

<mosaic_0001>
module attributes {stable_mosaic.version = 11 : i64} {
  func.func @kernel(%arg0: i32, %arg1: memref<1x16x256xf32, #tpu.memory_space<vmem>>, %arg2: memref<9x256x256xbf16, #tpu.memory_space<vmem>>, %arg3: memref<9x256x64xbf16, #tpu.memory_space<vmem>>, %arg4: memref<9x64x16xbf16, #tpu.memory_space<vmem>>, %arg5: memref<9x16x16xbf16, #tpu.memory_space<vmem>>, %arg6: memref<9x8x16xf32, #tpu.memory_space<vmem>>, %arg7: memref<8x1xf32, #tpu.memory_space<vmem>>, %arg8: memref<8x8xf32, #tpu.memory_space<vmem>>, %arg9: memref<8x1xf32, #tpu.memory_space<vmem>>, %arg10: memref<9x16x1xf32, #tpu.memory_space<vmem>>, %arg11: memref<16x1xf32, #tpu.memory_space<vmem>>, %arg12: memref<16x16xf32, #tpu.memory_space<vmem>>, %arg13: memref<16x1xf32, #tpu.memory_space<vmem>>, %arg14: memref<16x16xf32, #tpu.memory_space<vmem>>, %arg15: memref<16x1xf32, #tpu.memory_space<vmem>>, %arg16: memref<9x32x1xf32, #tpu.memory_space<vmem>>, %arg17: memref<32x1xf32, #tpu.memory_space<vmem>>, %arg18: memref<32x32xf32, #tpu.memory_space<vmem>>, %arg19: memref<32x1xf32, #tpu.memory_space<vmem>>, %arg20: memref<16x16xf32, #tpu.memory_space<vmem>>, %arg21: memref<16x1xf32, #tpu.memory_space<vmem>>, %arg22: memref<9x32x1xf32, #tpu.memory_space<vmem>>, %arg23: memref<32x1xf32, #tpu.memory_space<vmem>>, %arg24: memref<32x32xf32, #tpu.memory_space<vmem>>, %arg25: memref<32x1xf32, #tpu.memory_space<vmem>>, %arg26: memref<16x16xf32, #tpu.memory_space<vmem>>, %arg27: memref<16x1xf32, #tpu.memory_space<vmem>>, %arg28: memref<9x32x1xf32, #tpu.memory_space<vmem>>, %arg29: memref<32x1xf32, #tpu.memory_space<vmem>>, %arg30: memref<32x32xf32, #tpu.memory_space<vmem>>, %arg31: memref<32x1xf32, #tpu.memory_space<vmem>>, %arg32: memref<16x16xf32, #tpu.memory_space<vmem>>, %arg33: memref<16x1xf32, #tpu.memory_space<vmem>>, %arg34: memref<9x32x1xf32, #tpu.memory_space<vmem>>, %arg35: memref<32x1xf32, #tpu.memory_space<vmem>>, %arg36: memref<16x32xf32, #tpu.memory_space<vmem>>, %arg37: memref<16x1xf32, #tpu.memory_space<vmem>>, %arg38: memref<16x1xf32, #tpu.memory_space<vmem>>, %arg39: memref<1x1xf32, #tpu.memory_space<vmem>>, %arg40: memref<1x1x1xf32, #tpu.memory_space<vmem>>) attributes {dimension_semantics = [#tpu.dimension_semantics<parallel>], iteration_bounds = array<i64: 2>, scalar_prefetch = 0 : i64, scratch_operands = 0 : i64, tpu.core_type = #tpu.core_type<tc>, window_params = [{transform_indices = @transform_0, window_bounds = array<i64: 1, 16, 256>}, {pipeline_mode = #tpu.pipeline_mode<synchronous>, transform_indices = @transform_1, window_bounds = array<i64: 9, 256, 256>}, {pipeline_mode = #tpu.pipeline_mode<synchronous>, transform_indices = @transform_2, window_bounds = array<i64: 9, 256, 64>}, {pipeline_mode = #tpu.pipeline_mode<synchronous>, transform_indices = @transform_3, window_bounds = array<i64: 9, 64, 16>}, {pipeline_mode = #tpu.pipeline_mode<synchronous>, transform_indices = @transform_4, window_bounds = array<i64: 9, 16, 16>}, {pipeline_mode = #tpu.pipeline_mode<synchronous>, transform_indices = @transform_5, window_bounds = array<i64: 9, 8, 16>}, {pipeline_mode = #tpu.pipeline_mode<synchronous>, transform_indices = @transform_6, window_bounds = array<i64: 8, 1>}, {pipeline_mode = #tpu.pipeline_mode<synchronous>, transform_indices = @transform_7, window_bounds = array<i64: 8, 8>}, {pipeline_mode = #tpu.pipeline_mode<synchronous>, transform_indices = @transform_8, window_bounds = array<i64: 8, 1>}, {pipeline_mode = #tpu.pipeline_mode<synchronous>, transform_indices = @transform_9, window_bounds = array<i64: 9, 16, 1>}, {pipeline_mode = #tpu.pipeline_mode<synchronous>, transform_indices = @transform_10, window_bounds = array<i64: 16, 1>}, {pipeline_mode = #tpu.pipeline_mode<synchronous>, transform_indices = @transform_11, window_bounds = array<i64: 16, 16>}, {pipeline_mode = #tpu.pipeline_mode<synchronous>, transform_indices = @transform_12, window_bounds = array<i64: 16, 1>}, {pipeline_mode = #tpu.pipeline_mode<synchronous>, transform_indices = @transform_13, window_bounds = array<i64: 16, 16>}, {pipeline_mode = #tpu.pipeline_mode<synchronous>, transform_indices = @transform_14, window_bounds = array<i64: 16, 1>}, {pipeline_mode = #tpu.pipeline_mode<synchronous>, transform_indices = @transform_15, window_bounds = array<i64: 9, 32, 1>}, {pipeline_mode = #tpu.pipeline_mode<synchronous>, transform_indices = @transform_16, window_bounds = array<i64: 32, 1>}, {pipeline_mode = #tpu.pipeline_mode<synchronous>, transform_indices = @transform_17, window_bounds = array<i64: 32, 32>}, {pipeline_mode = #tpu.pipeline_mode<synchronous>, transform_indices = @transform_18, window_bounds = array<i64: 32, 1>}, {pipeline_mode = #tpu.pipeline_mode<synchronous>, transform_indices = @transform_19, window_bounds = array<i64: 16, 16>}, {pipeline_mode = #tpu.pipeline_mode<synchronous>, transform_indices = @transform_20, window_bounds = array<i64: 16, 1>}, {pipeline_mode = #tpu.pipeline_mode<synchronous>, transform_indices = @transform_21, window_bounds = array<i64: 9, 32, 1>}, {pipeline_mode = #tpu.pipeline_mode<synchronous>, transform_indices = @transform_22, window_bounds = array<i64: 32, 1>}, {pipeline_mode = #tpu.pipeline_mode<synchronous>, transform_indices = @transform_23, window_bounds = array<i64: 32, 32>}, {pipeline_mode = #tpu.pipeline_mode<synchronous>, transform_indices = @transform_24, window_bounds = array<i64: 32, 1>}, {pipeline_mode = #tpu.pipeline_mode<synchronous>, transform_indices = @transform_25, window_bounds = array<i64: 16, 16>}, {pipeline_mode = #tpu.pipeline_mode<synchronous>, transform_indices = @transform_26, window_bounds = array<i64: 16, 1>}, {pipeline_mode = #tpu.pipeline_mode<synchronous>, transform_indices = @transform_27, window_bounds = array<i64: 9, 32, 1>}, {pipeline_mode = #tpu.pipeline_mode<synchronous>, transform_indices = @transform_28, window_bounds = array<i64: 32, 1>}, {pipeline_mode = #tpu.pipeline_mode<synchronous>, transform_indices = @transform_29, window_bounds = array<i64: 32, 32>}, {pipeline_mode = #tpu.pipeline_mode<synchronous>, transform_indices = @transform_30, window_bounds = array<i64: 32, 1>}, {pipeline_mode = #tpu.pipeline_mode<synchronous>, transform_indices = @transform_31, window_bounds = array<i64: 16, 16>}, {pipeline_mode = #tpu.pipeline_mode<synchronous>, transform_indices = @transform_32, window_bounds = array<i64: 16, 1>}, {pipeline_mode = #tpu.pipeline_mode<synchronous>, transform_indices = @transform_33, window_bounds = array<i64: 9, 32, 1>}, {pipeline_mode = #tpu.pipeline_mode<synchronous>, transform_indices = @transform_34, window_bounds = array<i64: 32, 1>}, {pipeline_mode = #tpu.pipeline_mode<synchronous>, transform_indices = @transform_35, window_bounds = array<i64: 16, 32>}, {pipeline_mode = #tpu.pipeline_mode<synchronous>, transform_indices = @transform_36, window_bounds = array<i64: 16, 1>}, {pipeline_mode = #tpu.pipeline_mode<synchronous>, transform_indices = @transform_37, window_bounds = array<i64: 16, 1>}, {pipeline_mode = #tpu.pipeline_mode<synchronous>, transform_indices = @transform_38, window_bounds = array<i64: 1, 1>}, {transform_indices = @transform_39, window_bounds = array<i64: 1, 1, 1>}]} {
    %c0 = arith.constant 0 : index
    %c0_0 = arith.constant 0 : index
    %c0_1 = arith.constant 0 : index
    %0 = vector.load %arg1[%c0, %c0_0, %c0_1] : memref<1x16x256xf32, #tpu.memory_space<vmem>>, vector<1x16x256xf32>
    %1 = vector.shape_cast %0 : vector<1x16x256xf32> to vector<16x256xf32>
    %c0_2 = arith.constant 0 : index
    %c0_3 = arith.constant 0 : index
    %2 = vector.load %arg7[%c0_2, %c0_3] : memref<8x1xf32, #tpu.memory_space<vmem>>, vector<8x1xf32>
    %3 = arith.truncf %1 : vector<16x256xf32> to vector<16x256xbf16>
    %c0_4 = arith.constant 0 : index
    %c0_5 = arith.constant 0 : index
    %c0_6 = arith.constant 0 : index
    %4 = vector.load %arg2[%c0_4, %c0_5, %c0_6] : memref<9x256x256xbf16, #tpu.memory_space<vmem>>, vector<1x256x256xbf16>
    %5 = vector.shape_cast %4 : vector<1x256x256xbf16> to vector<256x256xbf16>
    %cst = arith.constant dense<0.000000e+00> : vector<16x256xf32>
    %6 = tpu.matmul %3, %5, %cst {dimension_numbers = #tpu.dot_dimension_numbers<[1], [0], [0], [1], [0, 0, 1, 1], [], []>} : vector<16x256xbf16>, vector<256x256xbf16>, vector<16x256xf32> -> vector<16x256xf32>
    %c0_7 = arith.constant 0 : index
    %c0_8 = arith.constant 0 : index
    %c0_9 = arith.constant 0 : index
    %7 = vector.load %arg6[%c0_7, %c0_8, %c0_9] : memref<9x8x16xf32, #tpu.memory_space<vmem>>, vector<1x8x16xf32>
    %8 = vector.shape_cast %7 : vector<1x8x16xf32> to vector<8x16xf32>
    %cst_10 = arith.constant dense<0.000000e+00> : vector<8x256xf32>
    %9 = tpu.matmul %8, %6, %cst_10 {dimension_numbers = #tpu.dot_dimension_numbers<[1], [0], [0], [1], [0, 0, 1, 1], [], []>} : vector<8x16xf32>, vector<16x256xf32>, vector<8x256xf32> -> vector<8x256xf32>
    %c1 = arith.constant 1 : index
    %c0_11 = arith.constant 0 : index
    %c0_12 = arith.constant 0 : index
    %10 = vector.load %arg2[%c1, %c0_11, %c0_12] : memref<9x256x256xbf16, #tpu.memory_space<vmem>>, vector<1x256x256xbf16>
    %11 = vector.shape_cast %10 : vector<1x256x256xbf16> to vector<256x256xbf16>
    %cst_13 = arith.constant dense<0.000000e+00> : vector<16x256xf32>
    %12 = tpu.matmul %3, %11, %cst_13 {dimension_numbers = #tpu.dot_dimension_numbers<[1], [0], [0], [1], [0, 0, 1, 1], [], []>} : vector<16x256xbf16>, vector<256x256xbf16>, vector<16x256xf32> -> vector<16x256xf32>
    %c1_14 = arith.constant 1 : index
    %c0_15 = arith.constant 0 : index
    %c0_16 = arith.constant 0 : index
    %13 = vector.load %arg6[%c1_14, %c0_15, %c0_16] : memref<9x8x16xf32, #tpu.memory_space<vmem>>, vector<1x8x16xf32>
    %14 = vector.shape_cast %13 : vector<1x8x16xf32> to vector<8x16xf32>
    %cst_17 = arith.constant dense<0.000000e+00> : vector<8x256xf32>
    %15 = tpu.matmul %14, %12, %cst_17 {dimension_numbers = #tpu.dot_dimension_numbers<[1], [0], [0], [1], [0, 0, 1, 1], [], []>} : vector<8x16xf32>, vector<16x256xf32>, vector<8x256xf32> -> vector<8x256xf32>
    %16 = arith.addf %9, %15 : vector<8x256xf32>
    %c2 = arith.constant 2 : index
    %c0_18 = arith.constant 0 : index
    %c0_19 = arith.constant 0 : index
    %17 = vector.load %arg2[%c2, %c0_18, %c0_19] : memref<9x256x256xbf16, #tpu.memory_space<vmem>>, vector<1x256x256xbf16>
    %18 = vector.shape_cast %17 : vector<1x256x256xbf16> to vector<256x256xbf16>
    %cst_20 = arith.constant dense<0.000000e+00> : vector<16x256xf32>
    %19 = tpu.matmul %3, %18, %cst_20 {dimension_numbers = #tpu.dot_dimension_numbers<[1], [0], [0], [1], [0, 0, 1, 1], [], []>} : vector<16x256xbf16>, vector<256x256xbf16>, vector<16x256xf32> -> vector<16x256xf32>
    %c2_21 = arith.constant 2 : index
    %c0_22 = arith.constant 0 : index
    %c0_23 = arith.constant 0 : index
    %20 = vector.load %arg6[%c2_21, %c0_22, %c0_23] : memref<9x8x16xf32, #tpu.memory_space<vmem>>, vector<1x8x16xf32>
    %21 = vector.shape_cast %20 : vector<1x8x16xf32> to vector<8x16xf32>
    %cst_24 = arith.constant dense<0.000000e+00> : vector<8x256xf32>
    %22 = tpu.matmul %21, %19, %cst_24 {dimension_numbers = #tpu.dot_dimension_numbers<[1], [0], [0], [1], [0, 0, 1, 1], [], []>} : vector<8x16xf32>, vector<16x256xf32>, vector<8x256xf32> -> vector<8x256xf32>
    %23 = arith.addf %16, %22 : vector<8x256xf32>
    %c3 = arith.constant 3 : index
    %c0_25 = arith.constant 0 : index
    %c0_26 = arith.constant 0 : index
    %24 = vector.load %arg2[%c3, %c0_25, %c0_26] : memref<9x256x256xbf16, #tpu.memory_space<vmem>>, vector<1x256x256xbf16>
    %25 = vector.shape_cast %24 : vector<1x256x256xbf16> to vector<256x256xbf16>
    %cst_27 = arith.constant dense<0.000000e+00> : vector<16x256xf32>
    %26 = tpu.matmul %3, %25, %cst_27 {dimension_numbers = #tpu.dot_dimension_numbers<[1], [0], [0], [1], [0, 0, 1, 1], [], []>} : vector<16x256xbf16>, vector<256x256xbf16>, vector<16x256xf32> -> vector<16x256xf32>
    %c3_28 = arith.constant 3 : index
    %c0_29 = arith.constant 0 : index
    %c0_30 = arith.constant 0 : index
    %27 = vector.load %arg6[%c3_28, %c0_29, %c0_30] : memref<9x8x16xf32, #tpu.memory_space<vmem>>, vector<1x8x16xf32>
    %28 = vector.shape_cast %27 : vector<1x8x16xf32> to vector<8x16xf32>
    %cst_31 = arith.constant dense<0.000000e+00> : vector<8x256xf32>
    %29 = tpu.matmul %28, %26, %cst_31 {dimension_numbers = #tpu.dot_dimension_numbers<[1], [0], [0], [1], [0, 0, 1, 1], [], []>} : vector<8x16xf32>, vector<16x256xf32>, vector<8x256xf32> -> vector<8x256xf32>
    %30 = arith.addf %23, %29 : vector<8x256xf32>
    %c4 = arith.constant 4 : index
    %c0_32 = arith.constant 0 : index
    %c0_33 = arith.constant 0 : index
    %31 = vector.load %arg2[%c4, %c0_32, %c0_33] : memref<9x256x256xbf16, #tpu.memory_space<vmem>>, vector<1x256x256xbf16>
    %32 = vector.shape_cast %31 : vector<1x256x256xbf16> to vector<256x256xbf16>
    %cst_34 = arith.constant dense<0.000000e+00> : vector<16x256xf32>
    %33 = tpu.matmul %3, %32, %cst_34 {dimension_numbers = #tpu.dot_dimension_numbers<[1], [0], [0], [1], [0, 0, 1, 1], [], []>} : vector<16x256xbf16>, vector<256x256xbf16>, vector<16x256xf32> -> vector<16x256xf32>
    %c4_35 = arith.constant 4 : index
    %c0_36 = arith.constant 0 : index
    %c0_37 = arith.constant 0 : index
    %34 = vector.load %arg6[%c4_35, %c0_36, %c0_37] : memref<9x8x16xf32, #tpu.memory_space<vmem>>, vector<1x8x16xf32>
    %35 = vector.shape_cast %34 : vector<1x8x16xf32> to vector<8x16xf32>
    %cst_38 = arith.constant dense<0.000000e+00> : vector<8x256xf32>
    %36 = tpu.matmul %35, %33, %cst_38 {dimension_numbers = #tpu.dot_dimension_numbers<[1], [0], [0], [1], [0, 0, 1, 1], [], []>} : vector<8x16xf32>, vector<16x256xf32>, vector<8x256xf32> -> vector<8x256xf32>
    %37 = arith.addf %30, %36 : vector<8x256xf32>
    %c5 = arith.constant 5 : index
    %c0_39 = arith.constant 0 : index
    %c0_40 = arith.constant 0 : index
    %38 = vector.load %arg2[%c5, %c0_39, %c0_40] : memref<9x256x256xbf16, #tpu.memory_space<vmem>>, vector<1x256x256xbf16>
    %39 = vector.shape_cast %38 : vector<1x256x256xbf16> to vector<256x256xbf16>
    %cst_41 = arith.constant dense<0.000000e+00> : vector<16x256xf32>
    %40 = tpu.matmul %3, %39, %cst_41 {dimension_numbers = #tpu.dot_dimension_numbers<[1], [0], [0], [1], [0, 0, 1, 1], [], []>} : vector<16x256xbf16>, vector<256x256xbf16>, vector<16x256xf32> -> vector<16x256xf32>
    %c5_42 = arith.constant 5 : index
    %c0_43 = arith.constant 0 : index
    %c0_44 = arith.constant 0 : index
    %41 = vector.load %arg6[%c5_42, %c0_43, %c0_44] : memref<9x8x16xf32, #tpu.memory_space<vmem>>, vector<1x8x16xf32>
    %42 = vector.shape_cast %41 : vector<1x8x16xf32> to vector<8x16xf32>
    %cst_45 = arith.constant dense<0.000000e+00> : vector<8x256xf32>
    %43 = tpu.matmul %42, %40, %cst_45 {dimension_numbers = #tpu.dot_dimension_numbers<[1], [0], [0], [1], [0, 0, 1, 1], [], []>} : vector<8x16xf32>, vector<16x256xf32>, vector<8x256xf32> -> vector<8x256xf32>
    %44 = arith.addf %37, %43 : vector<8x256xf32>
    %c6 = arith.constant 6 : index
    %c0_46 = arith.constant 0 : index
    %c0_47 = arith.constant 0 : index
    %45 = vector.load %arg2[%c6, %c0_46, %c0_47] : memref<9x256x256xbf16, #tpu.memory_space<vmem>>, vector<1x256x256xbf16>
    %46 = vector.shape_cast %45 : vector<1x256x256xbf16> to vector<256x256xbf16>
    %cst_48 = arith.constant dense<0.000000e+00> : vector<16x256xf32>
    %47 = tpu.matmul %3, %46, %cst_48 {dimension_numbers = #tpu.dot_dimension_numbers<[1], [0], [0], [1], [0, 0, 1, 1], [], []>} : vector<16x256xbf16>, vector<256x256xbf16>, vector<16x256xf32> -> vector<16x256xf32>
    %c6_49 = arith.constant 6 : index
    %c0_50 = arith.constant 0 : index
    %c0_51 = arith.constant 0 : index
    %48 = vector.load %arg6[%c6_49, %c0_50, %c0_51] : memref<9x8x16xf32, #tpu.memory_space<vmem>>, vector<1x8x16xf32>
    %49 = vector.shape_cast %48 : vector<1x8x16xf32> to vector<8x16xf32>
    %cst_52 = arith.constant dense<0.000000e+00> : vector<8x256xf32>
    %50 = tpu.matmul %49, %47, %cst_52 {dimension_numbers = #tpu.dot_dimension_numbers<[1], [0], [0], [1], [0, 0, 1, 1], [], []>} : vector<8x16xf32>, vector<16x256xf32>, vector<8x256xf32> -> vector<8x256xf32>
    %51 = arith.addf %44, %50 : vector<8x256xf32>
    %c7 = arith.constant 7 : index
    %c0_53 = arith.constant 0 : index
    %c0_54 = arith.constant 0 : index
    %52 = vector.load %arg2[%c7, %c0_53, %c0_54] : memref<9x256x256xbf16, #tpu.memory_space<vmem>>, vector<1x256x256xbf16>
    %53 = vector.shape_cast %52 : vector<1x256x256xbf16> to vector<256x256xbf16>
    %cst_55 = arith.constant dense<0.000000e+00> : vector<16x256xf32>
    %54 = tpu.matmul %3, %53, %cst_55 {dimension_numbers = #tpu.dot_dimension_numbers<[1], [0], [0], [1], [0, 0, 1, 1], [], []>} : vector<16x256xbf16>, vector<256x256xbf16>, vector<16x256xf32> -> vector<16x256xf32>
    %c7_56 = arith.constant 7 : index
    %c0_57 = arith.constant 0 : index
    %c0_58 = arith.constant 0 : index
    %55 = vector.load %arg6[%c7_56, %c0_57, %c0_58] : memref<9x8x16xf32, #tpu.memory_space<vmem>>, vector<1x8x16xf32>
    %56 = vector.shape_cast %55 : vector<1x8x16xf32> to vector<8x16xf32>
    %cst_59 = arith.constant dense<0.000000e+00> : vector<8x256xf32>
    %57 = tpu.matmul %56, %54, %cst_59 {dimension_numbers = #tpu.dot_dimension_numbers<[1], [0], [0], [1], [0, 0, 1, 1], [], []>} : vector<8x16xf32>, vector<16x256xf32>, vector<8x256xf32> -> vector<8x256xf32>
    %58 = arith.addf %51, %57 : vector<8x256xf32>
    %c8 = arith.constant 8 : index
    %c0_60 = arith.constant 0 : index
    %c0_61 = arith.constant 0 : index
    %59 = vector.load %arg2[%c8, %c0_60, %c0_61] : memref<9x256x256xbf16, #tpu.memory_space<vmem>>, vector<1x256x256xbf16>
    %60 = vector.shape_cast %59 : vector<1x256x256xbf16> to vector<256x256xbf16>
    %cst_62 = arith.constant dense<0.000000e+00> : vector<16x256xf32>
    %61 = tpu.matmul %3, %60, %cst_62 {dimension_numbers = #tpu.dot_dimension_numbers<[1], [0], [0], [1], [0, 0, 1, 1], [], []>} : vector<16x256xbf16>, vector<256x256xbf16>, vector<16x256xf32> -> vector<16x256xf32>
    %c8_63 = arith.constant 8 : index
    %c0_64 = arith.constant 0 : index
    %c0_65 = arith.constant 0 : index
    %62 = vector.load %arg6[%c8_63, %c0_64, %c0_65] : memref<9x8x16xf32, #tpu.memory_space<vmem>>, vector<1x8x16xf32>
    %63 = vector.shape_cast %62 : vector<1x8x16xf32> to vector<8x16xf32>
    %cst_66 = arith.constant dense<0.000000e+00> : vector<8x256xf32>
    %64 = tpu.matmul %63, %61, %cst_66 {dimension_numbers = #tpu.dot_dimension_numbers<[1], [0], [0], [1], [0, 0, 1, 1], [], []>} : vector<8x16xf32>, vector<16x256xf32>, vector<8x256xf32> -> vector<8x256xf32>
    %65 = arith.addf %58, %64 : vector<8x256xf32>
    %66 = vector.broadcast %2 : vector<8x1xf32> to vector<8x256xf32>
    %67 = arith.addf %65, %66 : vector<8x256xf32>
    %68 = arith.negf %67 : vector<8x256xf32>
    %69 = math.exp %68 : vector<8x256xf32>
    %cst_67 = arith.constant 1.000000e+00 : f32
    %70 = vector.broadcast %cst_67 : f32 to vector<8x256xf32>
    %71 = arith.addf %70, %69 : vector<8x256xf32>
    %72 = arith.divf %70, %71 : vector<8x256xf32>
    %73 = arith.mulf %67, %72 : vector<8x256xf32>
    %c0_68 = arith.constant 0 : index
    %c0_69 = arith.constant 0 : index
    %74 = vector.load %arg8[%c0_68, %c0_69] : memref<8x8xf32, #tpu.memory_space<vmem>>, vector<8x8xf32>
    %c0_70 = arith.constant 0 : index
    %c0_71 = arith.constant 0 : index
    %75 = vector.load %arg9[%c0_70, %c0_71] : memref<8x1xf32, #tpu.memory_space<vmem>>, vector<8x1xf32>
    %c0_72 = arith.constant 0 : index
    %c0_73 = arith.constant 0 : index
    %76 = vector.load %arg11[%c0_72, %c0_73] : memref<16x1xf32, #tpu.memory_space<vmem>>, vector<16x1xf32>
    %c0_74 = arith.constant 0 : index
    %c0_75 = arith.constant 0 : index
    %77 = vector.load %arg12[%c0_74, %c0_75] : memref<16x16xf32, #tpu.memory_space<vmem>>, vector<16x16xf32>
    %c0_76 = arith.constant 0 : index
    %c0_77 = arith.constant 0 : index
    %78 = vector.load %arg13[%c0_76, %c0_77] : memref<16x1xf32, #tpu.memory_space<vmem>>, vector<16x1xf32>
    %cst_78 = arith.constant dense<0.000000e+00> : vector<8x256xf32>
    %79 = tpu.matmul %74, %73, %cst_78 {dimension_numbers = #tpu.dot_dimension_numbers<[1], [0], [0], [1], [0, 0, 1, 1], [], []>} : vector<8x8xf32>, vector<8x256xf32>, vector<8x256xf32> -> vector<8x256xf32>
    %80 = vector.broadcast %75 : vector<8x1xf32> to vector<8x256xf32>
    %81 = arith.addf %79, %80 : vector<8x256xf32>
    %82 = arith.negf %81 : vector<8x256xf32>
    %83 = math.exp %82 : vector<8x256xf32>
    %cst_79 = arith.constant 1.000000e+00 : f32
    %84 = vector.broadcast %cst_79 : f32 to vector<8x256xf32>
    %85 = arith.addf %84, %83 : vector<8x256xf32>
    %86 = arith.divf %84, %85 : vector<8x256xf32>
    %87 = arith.mulf %81, %86 : vector<8x256xf32>
    %88 = tpu.concatenate %73, %87 in 0 : vector<8x256xf32>, vector<8x256xf32> -> vector<16x256xf32>
    %89 = arith.truncf %88 : vector<16x256xf32> to vector<16x256xbf16>
    %c0_80 = arith.constant 0 : index
    %c0_81 = arith.constant 0 : index
    %c0_82 = arith.constant 0 : index
    %90 = vector.load %arg3[%c0_80, %c0_81, %c0_82] : memref<9x256x64xbf16, #tpu.memory_space<vmem>>, vector<1x256x64xbf16>
    %91 = vector.shape_cast %90 : vector<1x256x64xbf16> to vector<256x64xbf16>
    %cst_83 = arith.constant dense<0.000000e+00> : vector<16x64xf32>
    %92 = tpu.matmul %89, %91, %cst_83 {dimension_numbers = #tpu.dot_dimension_numbers<[1], [0], [0], [1], [0, 0, 1, 1], [], []>} : vector<16x256xbf16>, vector<256x64xbf16>, vector<16x64xf32> -> vector<16x64xf32>
    %c0_84 = arith.constant 0 : index
    %c0_85 = arith.constant 0 : index
    %c0_86 = arith.constant 0 : index
    %93 = vector.load %arg10[%c0_84, %c0_85, %c0_86] : memref<9x16x1xf32, #tpu.memory_space<vmem>>, vector<1x16x1xf32>
    %94 = vector.shape_cast %93 : vector<1x16x1xf32> to vector<16x1xf32>
    %95 = vector.broadcast %94 : vector<16x1xf32> to vector<16x64xf32>
    %96 = arith.mulf %95, %92 : vector<16x64xf32>
    %c1_87 = arith.constant 1 : index
    %c0_88 = arith.constant 0 : index
    %c0_89 = arith.constant 0 : index
    %97 = vector.load %arg3[%c1_87, %c0_88, %c0_89] : memref<9x256x64xbf16, #tpu.memory_space<vmem>>, vector<1x256x64xbf16>
    %98 = vector.shape_cast %97 : vector<1x256x64xbf16> to vector<256x64xbf16>
    %cst_90 = arith.constant dense<0.000000e+00> : vector<16x64xf32>
    %99 = tpu.matmul %89, %98, %cst_90 {dimension_numbers = #tpu.dot_dimension_numbers<[1], [0], [0], [1], [0, 0, 1, 1], [], []>} : vector<16x256xbf16>, vector<256x64xbf16>, vector<16x64xf32> -> vector<16x64xf32>
    %c1_91 = arith.constant 1 : index
    %c0_92 = arith.constant 0 : index
    %c0_93 = arith.constant 0 : index
    %100 = vector.load %arg10[%c1_91, %c0_92, %c0_93] : memref<9x16x1xf32, #tpu.memory_space<vmem>>, vector<1x16x1xf32>
    %101 = vector.shape_cast %100 : vector<1x16x1xf32> to vector<16x1xf32>
    %102 = vector.broadcast %101 : vector<16x1xf32> to vector<16x64xf32>
    %103 = arith.mulf %102, %99 : vector<16x64xf32>
    %104 = arith.addf %96, %103 : vector<16x64xf32>
    %c2_94 = arith.constant 2 : index
    %c0_95 = arith.constant 0 : index
    %c0_96 = arith.constant 0 : index
    %105 = vector.load %arg3[%c2_94, %c0_95, %c0_96] : memref<9x256x64xbf16, #tpu.memory_space<vmem>>, vector<1x256x64xbf16>
    %106 = vector.shape_cast %105 : vector<1x256x64xbf16> to vector<256x64xbf16>
    %cst_97 = arith.constant dense<0.000000e+00> : vector<16x64xf32>
    %107 = tpu.matmul %89, %106, %cst_97 {dimension_numbers = #tpu.dot_dimension_numbers<[1], [0], [0], [1], [0, 0, 1, 1], [], []>} : vector<16x256xbf16>, vector<256x64xbf16>, vector<16x64xf32> -> vector<16x64xf32>
    %c2_98 = arith.constant 2 : index
    %c0_99 = arith.constant 0 : index
    %c0_100 = arith.constant 0 : index
    %108 = vector.load %arg10[%c2_98, %c0_99, %c0_100] : memref<9x16x1xf32, #tpu.memory_space<vmem>>, vector<1x16x1xf32>
    %109 = vector.shape_cast %108 : vector<1x16x1xf32> to vector<16x1xf32>
    %110 = vector.broadcast %109 : vector<16x1xf32> to vector<16x64xf32>
    %111 = arith.mulf %110, %107 : vector<16x64xf32>
    %112 = arith.addf %104, %111 : vector<16x64xf32>
    %c3_101 = arith.constant 3 : index
    %c0_102 = arith.constant 0 : index
    %c0_103 = arith.constant 0 : index
    %113 = vector.load %arg3[%c3_101, %c0_102, %c0_103] : memref<9x256x64xbf16, #tpu.memory_space<vmem>>, vector<1x256x64xbf16>
    %114 = vector.shape_cast %113 : vector<1x256x64xbf16> to vector<256x64xbf16>
    %cst_104 = arith.constant dense<0.000000e+00> : vector<16x64xf32>
    %115 = tpu.matmul %89, %114, %cst_104 {dimension_numbers = #tpu.dot_dimension_numbers<[1], [0], [0], [1], [0, 0, 1, 1], [], []>} : vector<16x256xbf16>, vector<256x64xbf16>, vector<16x64xf32> -> vector<16x64xf32>
    %c3_105 = arith.constant 3 : index
    %c0_106 = arith.constant 0 : index
    %c0_107 = arith.constant 0 : index
    %116 = vector.load %arg10[%c3_105, %c0_106, %c0_107] : memref<9x16x1xf32, #tpu.memory_space<vmem>>, vector<1x16x1xf32>
    %117 = vector.shape_cast %116 : vector<1x16x1xf32> to vector<16x1xf32>
    %118 = vector.broadcast %117 : vector<16x1xf32> to vector<16x64xf32>
    %119 = arith.mulf %118, %115 : vector<16x64xf32>
    %120 = arith.addf %112, %119 : vector<16x64xf32>
    %c4_108 = arith.constant 4 : index
    %c0_109 = arith.constant 0 : index
    %c0_110 = arith.constant 0 : index
    %121 = vector.load %arg3[%c4_108, %c0_109, %c0_110] : memref<9x256x64xbf16, #tpu.memory_space<vmem>>, vector<1x256x64xbf16>
    %122 = vector.shape_cast %121 : vector<1x256x64xbf16> to vector<256x64xbf16>
    %cst_111 = arith.constant dense<0.000000e+00> : vector<16x64xf32>
    %123 = tpu.matmul %89, %122, %cst_111 {dimension_numbers = #tpu.dot_dimension_numbers<[1], [0], [0], [1], [0, 0, 1, 1], [], []>} : vector<16x256xbf16>, vector<256x64xbf16>, vector<16x64xf32> -> vector<16x64xf32>
    %c4_112 = arith.constant 4 : index
    %c0_113 = arith.constant 0 : index
    %c0_114 = arith.constant 0 : index
    %124 = vector.load %arg10[%c4_112, %c0_113, %c0_114] : memref<9x16x1xf32, #tpu.memory_space<vmem>>, vector<1x16x1xf32>
    %125 = vector.shape_cast %124 : vector<1x16x1xf32> to vector<16x1xf32>
    %126 = vector.broadcast %125 : vector<16x1xf32> to vector<16x64xf32>
    %127 = arith.mulf %126, %123 : vector<16x64xf32>
    %128 = arith.addf %120, %127 : vector<16x64xf32>
    %c5_115 = arith.constant 5 : index
    %c0_116 = arith.constant 0 : index
    %c0_117 = arith.constant 0 : index
    %129 = vector.load %arg3[%c5_115, %c0_116, %c0_117] : memref<9x256x64xbf16, #tpu.memory_space<vmem>>, vector<1x256x64xbf16>
    %130 = vector.shape_cast %129 : vector<1x256x64xbf16> to vector<256x64xbf16>
    %cst_118 = arith.constant dense<0.000000e+00> : vector<16x64xf32>
    %131 = tpu.matmul %89, %130, %cst_118 {dimension_numbers = #tpu.dot_dimension_numbers<[1], [0], [0], [1], [0, 0, 1, 1], [], []>} : vector<16x256xbf16>, vector<256x64xbf16>, vector<16x64xf32> -> vector<16x64xf32>
    %c5_119 = arith.constant 5 : index
    %c0_120 = arith.constant 0 : index
    %c0_121 = arith.constant 0 : index
    %132 = vector.load %arg10[%c5_119, %c0_120, %c0_121] : memref<9x16x1xf32, #tpu.memory_space<vmem>>, vector<1x16x1xf32>
    %133 = vector.shape_cast %132 : vector<1x16x1xf32> to vector<16x1xf32>
    %134 = vector.broadcast %133 : vector<16x1xf32> to vector<16x64xf32>
    %135 = arith.mulf %134, %131 : vector<16x64xf32>
    %136 = arith.addf %128, %135 : vector<16x64xf32>
    %c6_122 = arith.constant 6 : index
    %c0_123 = arith.constant 0 : index
    %c0_124 = arith.constant 0 : index
    %137 = vector.load %arg3[%c6_122, %c0_123, %c0_124] : memref<9x256x64xbf16, #tpu.memory_space<vmem>>, vector<1x256x64xbf16>
    %138 = vector.shape_cast %137 : vector<1x256x64xbf16> to vector<256x64xbf16>
    %cst_125 = arith.constant dense<0.000000e+00> : vector<16x64xf32>
    %139 = tpu.matmul %89, %138, %cst_125 {dimension_numbers = #tpu.dot_dimension_numbers<[1], [0], [0], [1], [0, 0, 1, 1], [], []>} : vector<16x256xbf16>, vector<256x64xbf16>, vector<16x64xf32> -> vector<16x64xf32>
    %c6_126 = arith.constant 6 : index
    %c0_127 = arith.constant 0 : index
    %c0_128 = arith.constant 0 : index
    %140 = vector.load %arg10[%c6_126, %c0_127, %c0_128] : memref<9x16x1xf32, #tpu.memory_space<vmem>>, vector<1x16x1xf32>
    %141 = vector.shape_cast %140 : vector<1x16x1xf32> to vector<16x1xf32>
    %142 = vector.broadcast %141 : vector<16x1xf32> to vector<16x64xf32>
    %143 = arith.mulf %142, %139 : vector<16x64xf32>
    %144 = arith.addf %136, %143 : vector<16x64xf32>
    %c7_129 = arith.constant 7 : index
    %c0_130 = arith.constant 0 : index
    %c0_131 = arith.constant 0 : index
    %145 = vector.load %arg3[%c7_129, %c0_130, %c0_131] : memref<9x256x64xbf16, #tpu.memory_space<vmem>>, vector<1x256x64xbf16>
    %146 = vector.shape_cast %145 : vector<1x256x64xbf16> to vector<256x64xbf16>
    %cst_132 = arith.constant dense<0.000000e+00> : vector<16x64xf32>
    %147 = tpu.matmul %89, %146, %cst_132 {dimension_numbers = #tpu.dot_dimension_numbers<[1], [0], [0], [1], [0, 0, 1, 1], [], []>} : vector<16x256xbf16>, vector<256x64xbf16>, vector<16x64xf32> -> vector<16x64xf32>
    %c7_133 = arith.constant 7 : index
    %c0_134 = arith.constant 0 : index
    %c0_135 = arith.constant 0 : index
    %148 = vector.load %arg10[%c7_133, %c0_134, %c0_135] : memref<9x16x1xf32, #tpu.memory_space<vmem>>, vector<1x16x1xf32>
    %149 = vector.shape_cast %148 : vector<1x16x1xf32> to vector<16x1xf32>
    %150 = vector.broadcast %149 : vector<16x1xf32> to vector<16x64xf32>
    %151 = arith.mulf %150, %147 : vector<16x64xf32>
    %152 = arith.addf %144, %151 : vector<16x64xf32>
    %c8_136 = arith.constant 8 : index
    %c0_137 = arith.constant 0 : index
    %c0_138 = arith.constant 0 : index
    %153 = vector.load %arg3[%c8_136, %c0_137, %c0_138] : memref<9x256x64xbf16, #tpu.memory_space<vmem>>, vector<1x256x64xbf16>
    %154 = vector.shape_cast %153 : vector<1x256x64xbf16> to vector<256x64xbf16>
    %cst_139 = arith.constant dense<0.000000e+00> : vector<16x64xf32>
    %155 = tpu.matmul %89, %154, %cst_139 {dimension_numbers = #tpu.dot_dimension_numbers<[1], [0], [0], [1], [0, 0, 1, 1], [], []>} : vector<16x256xbf16>, vector<256x64xbf16>, vector<16x64xf32> -> vector<16x64xf32>
    %c8_140 = arith.constant 8 : index
    %c0_141 = arith.constant 0 : index
    %c0_142 = arith.constant 0 : index
    %156 = vector.load %arg10[%c8_140, %c0_141, %c0_142] : memref<9x16x1xf32, #tpu.memory_space<vmem>>, vector<1x16x1xf32>
    %157 = vector.shape_cast %156 : vector<1x16x1xf32> to vector<16x1xf32>
    %158 = vector.broadcast %157 : vector<16x1xf32> to vector<16x64xf32>
    %159 = arith.mulf %158, %155 : vector<16x64xf32>
    %160 = arith.addf %152, %159 : vector<16x64xf32>
    %161 = vector.broadcast %76 : vector<16x1xf32> to vector<16x64xf32>
    %162 = arith.addf %160, %161 : vector<16x64xf32>
    %cst_143 = arith.constant dense<0.000000e+00> : vector<16x64xf32>
    %163 = tpu.matmul %77, %162, %cst_143 {dimension_numbers = #tpu.dot_dimension_numbers<[1], [0], [0], [1], [0, 0, 1, 1], [], []>} : vector<16x16xf32>, vector<16x64xf32>, vector<16x64xf32> -> vector<16x64xf32>
    %164 = vector.broadcast %78 : vector<16x1xf32> to vector<16x64xf32>
    %165 = arith.addf %163, %164 : vector<16x64xf32>
    %166 = arith.negf %165 : vector<16x64xf32>
    %167 = math.exp %166 : vector<16x64xf32>
    %cst_144 = arith.constant 1.000000e+00 : f32
    %168 = vector.broadcast %cst_144 : f32 to vector<16x64xf32>
    %169 = arith.addf %168, %167 : vector<16x64xf32>
    %170 = arith.divf %168, %169 : vector<16x64xf32>
    %171 = arith.mulf %165, %170 : vector<16x64xf32>
    %c0_145 = arith.constant 0 : index
    %c0_146 = arith.constant 0 : index
    %172 = vector.load %arg14[%c0_145, %c0_146] : memref<16x16xf32, #tpu.memory_space<vmem>>, vector<16x16xf32>
    %c0_147 = arith.constant 0 : index
    %c0_148 = arith.constant 0 : index
    %173 = vector.load %arg15[%c0_147, %c0_148] : memref<16x1xf32, #tpu.memory_space<vmem>>, vector<16x1xf32>
    %c0_149 = arith.constant 0 : index
    %c0_150 = arith.constant 0 : index
    %174 = vector.load %arg17[%c0_149, %c0_150] : memref<32x1xf32, #tpu.memory_space<vmem>>, vector<32x1xf32>
    %c0_151 = arith.constant 0 : index
    %c0_152 = arith.constant 0 : index
    %175 = vector.load %arg18[%c0_151, %c0_152] : memref<32x32xf32, #tpu.memory_space<vmem>>, vector<32x32xf32>
    %c0_153 = arith.constant 0 : index
    %c0_154 = arith.constant 0 : index
    %176 = vector.load %arg19[%c0_153, %c0_154] : memref<32x1xf32, #tpu.memory_space<vmem>>, vector<32x1xf32>
    %cst_155 = arith.constant dense<0.000000e+00> : vector<16x64xf32>
    %177 = tpu.matmul %172, %171, %cst_155 {dimension_numbers = #tpu.dot_dimension_numbers<[1], [0], [0], [1], [0, 0, 1, 1], [], []>} : vector<16x16xf32>, vector<16x64xf32>, vector<16x64xf32> -> vector<16x64xf32>
    %178 = vector.broadcast %173 : vector<16x1xf32> to vector<16x64xf32>
    %179 = arith.addf %177, %178 : vector<16x64xf32>
    %180 = arith.negf %179 : vector<16x64xf32>
    %181 = math.exp %180 : vector<16x64xf32>
    %cst_156 = arith.constant 1.000000e+00 : f32
    %182 = vector.broadcast %cst_156 : f32 to vector<16x64xf32>
    %183 = arith.addf %182, %181 : vector<16x64xf32>
    %184 = arith.divf %182, %183 : vector<16x64xf32>
    %185 = arith.mulf %179, %184 : vector<16x64xf32>
    %186 = tpu.concatenate %171, %185 in 0 : vector<16x64xf32>, vector<16x64xf32> -> vector<32x64xf32>
    %187 = arith.truncf %186 : vector<32x64xf32> to vector<32x64xbf16>
    %c0_157 = arith.constant 0 : index
    %c0_158 = arith.constant 0 : index
    %c0_159 = arith.constant 0 : index
    %188 = vector.load %arg4[%c0_157, %c0_158, %c0_159] : memref<9x64x16xbf16, #tpu.memory_space<vmem>>, vector<1x64x16xbf16>
    %189 = vector.shape_cast %188 : vector<1x64x16xbf16> to vector<64x16xbf16>
    %cst_160 = arith.constant dense<0.000000e+00> : vector<32x16xf32>
    %190 = tpu.matmul %187, %189, %cst_160 {dimension_numbers = #tpu.dot_dimension_numbers<[1], [0], [0], [1], [0, 0, 1, 1], [], []>} : vector<32x64xbf16>, vector<64x16xbf16>, vector<32x16xf32> -> vector<32x16xf32>
    %c0_161 = arith.constant 0 : index
    %c0_162 = arith.constant 0 : index
    %c0_163 = arith.constant 0 : index
    %191 = vector.load %arg16[%c0_161, %c0_162, %c0_163] : memref<9x32x1xf32, #tpu.memory_space<vmem>>, vector<1x32x1xf32>
    %192 = vector.shape_cast %191 : vector<1x32x1xf32> to vector<32x1xf32>
    %193 = vector.broadcast %192 : vector<32x1xf32> to vector<32x16xf32>
    %194 = arith.mulf %193, %190 : vector<32x16xf32>
    %c1_164 = arith.constant 1 : index
    %c0_165 = arith.constant 0 : index
    %c0_166 = arith.constant 0 : index
    %195 = vector.load %arg4[%c1_164, %c0_165, %c0_166] : memref<9x64x16xbf16, #tpu.memory_space<vmem>>, vector<1x64x16xbf16>
    %196 = vector.shape_cast %195 : vector<1x64x16xbf16> to vector<64x16xbf16>
    %cst_167 = arith.constant dense<0.000000e+00> : vector<32x16xf32>
    %197 = tpu.matmul %187, %196, %cst_167 {dimension_numbers = #tpu.dot_dimension_numbers<[1], [0], [0], [1], [0, 0, 1, 1], [], []>} : vector<32x64xbf16>, vector<64x16xbf16>, vector<32x16xf32> -> vector<32x16xf32>
    %c1_168 = arith.constant 1 : index
    %c0_169 = arith.constant 0 : index
    %c0_170 = arith.constant 0 : index
    %198 = vector.load %arg16[%c1_168, %c0_169, %c0_170] : memref<9x32x1xf32, #tpu.memory_space<vmem>>, vector<1x32x1xf32>
    %199 = vector.shape_cast %198 : vector<1x32x1xf32> to vector<32x1xf32>
    %200 = vector.broadcast %199 : vector<32x1xf32> to vector<32x16xf32>
    %201 = arith.mulf %200, %197 : vector<32x16xf32>
    %202 = arith.addf %194, %201 : vector<32x16xf32>
    %c2_171 = arith.constant 2 : index
    %c0_172 = arith.constant 0 : index
    %c0_173 = arith.constant 0 : index
    %203 = vector.load %arg4[%c2_171, %c0_172, %c0_173] : memref<9x64x16xbf16, #tpu.memory_space<vmem>>, vector<1x64x16xbf16>
    %204 = vector.shape_cast %203 : vector<1x64x16xbf16> to vector<64x16xbf16>
    %cst_174 = arith.constant dense<0.000000e+00> : vector<32x16xf32>
    %205 = tpu.matmul %187, %204, %cst_174 {dimension_numbers = #tpu.dot_dimension_numbers<[1], [0], [0], [1], [0, 0, 1, 1], [], []>} : vector<32x64xbf16>, vector<64x16xbf16>, vector<32x16xf32> -> vector<32x16xf32>
    %c2_175 = arith.constant 2 : index
    %c0_176 = arith.constant 0 : index
    %c0_177 = arith.constant 0 : index
    %206 = vector.load %arg16[%c2_175, %c0_176, %c0_177] : memref<9x32x1xf32, #tpu.memory_space<vmem>>, vector<1x32x1xf32>
    %207 = vector.shape_cast %206 : vector<1x32x1xf32> to vector<32x1xf32>
    %208 = vector.broadcast %207 : vector<32x1xf32> to vector<32x16xf32>
    %209 = arith.mulf %208, %205 : vector<32x16xf32>
    %210 = arith.addf %202, %209 : vector<32x16xf32>
    %c3_178 = arith.constant 3 : index
    %c0_179 = arith.constant 0 : index
    %c0_180 = arith.constant 0 : index
    %211 = vector.load %arg4[%c3_178, %c0_179, %c0_180] : memref<9x64x16xbf16, #tpu.memory_space<vmem>>, vector<1x64x16xbf16>
    %212 = vector.shape_cast %211 : vector<1x64x16xbf16> to vector<64x16xbf16>
    %cst_181 = arith.constant dense<0.000000e+00> : vector<32x16xf32>
    %213 = tpu.matmul %187, %212, %cst_181 {dimension_numbers = #tpu.dot_dimension_numbers<[1], [0], [0], [1], [0, 0, 1, 1], [], []>} : vector<32x64xbf16>, vector<64x16xbf16>, vector<32x16xf32> -> vector<32x16xf32>
    %c3_182 = arith.constant 3 : index
    %c0_183 = arith.constant 0 : index
    %c0_184 = arith.constant 0 : index
    %214 = vector.load %arg16[%c3_182, %c0_183, %c0_184] : memref<9x32x1xf32, #tpu.memory_space<vmem>>, vector<1x32x1xf32>
    %215 = vector.shape_cast %214 : vector<1x32x1xf32> to vector<32x1xf32>
    %216 = vector.broadcast %215 : vector<32x1xf32> to vector<32x16xf32>
    %217 = arith.mulf %216, %213 : vector<32x16xf32>
    %218 = arith.addf %210, %217 : vector<32x16xf32>
    %c4_185 = arith.constant 4 : index
    %c0_186 = arith.constant 0 : index
    %c0_187 = arith.constant 0 : index
    %219 = vector.load %arg4[%c4_185, %c0_186, %c0_187] : memref<9x64x16xbf16, #tpu.memory_space<vmem>>, vector<1x64x16xbf16>
    %220 = vector.shape_cast %219 : vector<1x64x16xbf16> to vector<64x16xbf16>
    %cst_188 = arith.constant dense<0.000000e+00> : vector<32x16xf32>
    %221 = tpu.matmul %187, %220, %cst_188 {dimension_numbers = #tpu.dot_dimension_numbers<[1], [0], [0], [1], [0, 0, 1, 1], [], []>} : vector<32x64xbf16>, vector<64x16xbf16>, vector<32x16xf32> -> vector<32x16xf32>
    %c4_189 = arith.constant 4 : index
    %c0_190 = arith.constant 0 : index
    %c0_191 = arith.constant 0 : index
    %222 = vector.load %arg16[%c4_189, %c0_190, %c0_191] : memref<9x32x1xf32, #tpu.memory_space<vmem>>, vector<1x32x1xf32>
    %223 = vector.shape_cast %222 : vector<1x32x1xf32> to vector<32x1xf32>
    %224 = vector.broadcast %223 : vector<32x1xf32> to vector<32x16xf32>
    %225 = arith.mulf %224, %221 : vector<32x16xf32>
    %226 = arith.addf %218, %225 : vector<32x16xf32>
    %c5_192 = arith.constant 5 : index
    %c0_193 = arith.constant 0 : index
    %c0_194 = arith.constant 0 : index
    %227 = vector.load %arg4[%c5_192, %c0_193, %c0_194] : memref<9x64x16xbf16, #tpu.memory_space<vmem>>, vector<1x64x16xbf16>
    %228 = vector.shape_cast %227 : vector<1x64x16xbf16> to vector<64x16xbf16>
    %cst_195 = arith.constant dense<0.000000e+00> : vector<32x16xf32>
    %229 = tpu.matmul %187, %228, %cst_195 {dimension_numbers = #tpu.dot_dimension_numbers<[1], [0], [0], [1], [0, 0, 1, 1], [], []>} : vector<32x64xbf16>, vector<64x16xbf16>, vector<32x16xf32> -> vector<32x16xf32>
    %c5_196 = arith.constant 5 : index
    %c0_197 = arith.constant 0 : index
    %c0_198 = arith.constant 0 : index
    %230 = vector.load %arg16[%c5_196, %c0_197, %c0_198] : memref<9x32x1xf32, #tpu.memory_space<vmem>>, vector<1x32x1xf32>
    %231 = vector.shape_cast %230 : vector<1x32x1xf32> to vector<32x1xf32>
    %232 = vector.broadcast %231 : vector<32x1xf32> to vector<32x16xf32>
    %233 = arith.mulf %232, %229 : vector<32x16xf32>
    %234 = arith.addf %226, %233 : vector<32x16xf32>
    %c6_199 = arith.constant 6 : index
    %c0_200 = arith.constant 0 : index
    %c0_201 = arith.constant 0 : index
    %235 = vector.load %arg4[%c6_199, %c0_200, %c0_201] : memref<9x64x16xbf16, #tpu.memory_space<vmem>>, vector<1x64x16xbf16>
    %236 = vector.shape_cast %235 : vector<1x64x16xbf16> to vector<64x16xbf16>
    %cst_202 = arith.constant dense<0.000000e+00> : vector<32x16xf32>
    %237 = tpu.matmul %187, %236, %cst_202 {dimension_numbers = #tpu.dot_dimension_numbers<[1], [0], [0], [1], [0, 0, 1, 1], [], []>} : vector<32x64xbf16>, vector<64x16xbf16>, vector<32x16xf32> -> vector<32x16xf32>
    %c6_203 = arith.constant 6 : index
    %c0_204 = arith.constant 0 : index
    %c0_205 = arith.constant 0 : index
    %238 = vector.load %arg16[%c6_203, %c0_204, %c0_205] : memref<9x32x1xf32, #tpu.memory_space<vmem>>, vector<1x32x1xf32>
    %239 = vector.shape_cast %238 : vector<1x32x1xf32> to vector<32x1xf32>
    %240 = vector.broadcast %239 : vector<32x1xf32> to vector<32x16xf32>
    %241 = arith.mulf %240, %237 : vector<32x16xf32>
    %242 = arith.addf %234, %241 : vector<32x16xf32>
    %c7_206 = arith.constant 7 : index
    %c0_207 = arith.constant 0 : index
    %c0_208 = arith.constant 0 : index
    %243 = vector.load %arg4[%c7_206, %c0_207, %c0_208] : memref<9x64x16xbf16, #tpu.memory_space<vmem>>, vector<1x64x16xbf16>
    %244 = vector.shape_cast %243 : vector<1x64x16xbf16> to vector<64x16xbf16>
    %cst_209 = arith.constant dense<0.000000e+00> : vector<32x16xf32>
    %245 = tpu.matmul %187, %244, %cst_209 {dimension_numbers = #tpu.dot_dimension_numbers<[1], [0], [0], [1], [0, 0, 1, 1], [], []>} : vector<32x64xbf16>, vector<64x16xbf16>, vector<32x16xf32> -> vector<32x16xf32>
    %c7_210 = arith.constant 7 : index
    %c0_211 = arith.constant 0 : index
    %c0_212 = arith.constant 0 : index
    %246 = vector.load %arg16[%c7_210, %c0_211, %c0_212] : memref<9x32x1xf32, #tpu.memory_space<vmem>>, vector<1x32x1xf32>
    %247 = vector.shape_cast %246 : vector<1x32x1xf32> to vector<32x1xf32>
    %248 = vector.broadcast %247 : vector<32x1xf32> to vector<32x16xf32>
    %249 = arith.mulf %248, %245 : vector<32x16xf32>
    %250 = arith.addf %242, %249 : vector<32x16xf32>
    %c8_213 = arith.constant 8 : index
    %c0_214 = arith.constant 0 : index
    %c0_215 = arith.constant 0 : index
    %251 = vector.load %arg4[%c8_213, %c0_214, %c0_215] : memref<9x64x16xbf16, #tpu.memory_space<vmem>>, vector<1x64x16xbf16>
    %252 = vector.shape_cast %251 : vector<1x64x16xbf16> to vector<64x16xbf16>
    %cst_216 = arith.constant dense<0.000000e+00> : vector<32x16xf32>
    %253 = tpu.matmul %187, %252, %cst_216 {dimension_numbers = #tpu.dot_dimension_numbers<[1], [0], [0], [1], [0, 0, 1, 1], [], []>} : vector<32x64xbf16>, vector<64x16xbf16>, vector<32x16xf32> -> vector<32x16xf32>
    %c8_217 = arith.constant 8 : index
    %c0_218 = arith.constant 0 : index
    %c0_219 = arith.constant 0 : index
    %254 = vector.load %arg16[%c8_217, %c0_218, %c0_219] : memref<9x32x1xf32, #tpu.memory_space<vmem>>, vector<1x32x1xf32>
    %255 = vector.shape_cast %254 : vector<1x32x1xf32> to vector<32x1xf32>
    %256 = vector.broadcast %255 : vector<32x1xf32> to vector<32x16xf32>
    %257 = arith.mulf %256, %253 : vector<32x16xf32>
    %258 = arith.addf %250, %257 : vector<32x16xf32>
    %259 = vector.broadcast %174 : vector<32x1xf32> to vector<32x16xf32>
    %260 = arith.addf %258, %259 : vector<32x16xf32>
    %cst_220 = arith.constant dense<0.000000e+00> : vector<32x16xf32>
    %261 = tpu.matmul %175, %260, %cst_220 {dimension_numbers = #tpu.dot_dimension_numbers<[1], [0], [0], [1], [0, 0, 1, 1], [], []>} : vector<32x32xf32>, vector<32x16xf32>, vector<32x16xf32> -> vector<32x16xf32>
    %262 = vector.broadcast %176 : vector<32x1xf32> to vector<32x16xf32>
    %263 = arith.addf %261, %262 : vector<32x16xf32>
    %264 = arith.negf %263 : vector<32x16xf32>
    %265 = math.exp %264 : vector<32x16xf32>
    %cst_221 = arith.constant 1.000000e+00 : f32
    %266 = vector.broadcast %cst_221 : f32 to vector<32x16xf32>
    %267 = arith.addf %266, %265 : vector<32x16xf32>
    %268 = arith.divf %266, %267 : vector<32x16xf32>
    %269 = arith.mulf %263, %268 : vector<32x16xf32>
    %c0_222 = arith.constant 0 : index
    %c0_223 = arith.constant 0 : index
    %270 = vector.load %arg20[%c0_222, %c0_223] : memref<16x16xf32, #tpu.memory_space<vmem>>, vector<16x16xf32>
    %c0_224 = arith.constant 0 : index
    %c0_225 = arith.constant 0 : index
    %271 = vector.load %arg21[%c0_224, %c0_225] : memref<16x1xf32, #tpu.memory_space<vmem>>, vector<16x1xf32>
    %c0_226 = arith.constant 0 : index
    %c0_227 = arith.constant 0 : index
    %272 = vector.load %arg23[%c0_226, %c0_227] : memref<32x1xf32, #tpu.memory_space<vmem>>, vector<32x1xf32>
    %c0_228 = arith.constant 0 : index
    %c0_229 = arith.constant 0 : index
    %273 = vector.load %arg24[%c0_228, %c0_229] : memref<32x32xf32, #tpu.memory_space<vmem>>, vector<32x32xf32>
    %c0_230 = arith.constant 0 : index
    %c0_231 = arith.constant 0 : index
    %274 = vector.load %arg25[%c0_230, %c0_231] : memref<32x1xf32, #tpu.memory_space<vmem>>, vector<32x1xf32>
    %275 = vector.extract_strided_slice %269 {offsets = [0, 0], sizes = [16, 16], strides = [1, 1]} : vector<32x16xf32> to vector<16x16xf32>
    %276 = vector.extract_strided_slice %269 {offsets = [16, 0], sizes = [16, 16], strides = [1, 1]} : vector<32x16xf32> to vector<16x16xf32>
    %cst_232 = arith.constant dense<0.000000e+00> : vector<16x16xf32>
    %277 = tpu.matmul %270, %276, %cst_232 {dimension_numbers = #tpu.dot_dimension_numbers<[1], [0], [0], [1], [0, 0, 1, 1], [], []>} : vector<16x16xf32>, vector<16x16xf32>, vector<16x16xf32> -> vector<16x16xf32>
    %278 = vector.broadcast %271 : vector<16x1xf32> to vector<16x16xf32>
    %279 = arith.addf %277, %278 : vector<16x16xf32>
    %280 = arith.negf %279 : vector<16x16xf32>
    %281 = math.exp %280 : vector<16x16xf32>
    %cst_233 = arith.constant 1.000000e+00 : f32
    %282 = vector.broadcast %cst_233 : f32 to vector<16x16xf32>
    %283 = arith.addf %282, %281 : vector<16x16xf32>
    %284 = arith.divf %282, %283 : vector<16x16xf32>
    %285 = arith.mulf %279, %284 : vector<16x16xf32>
    %286 = tpu.concatenate %275, %285 in 0 : vector<16x16xf32>, vector<16x16xf32> -> vector<32x16xf32>
    %287 = arith.truncf %286 : vector<32x16xf32> to vector<32x16xbf16>
    %c0_234 = arith.constant 0 : index
    %c0_235 = arith.constant 0 : index
    %c0_236 = arith.constant 0 : index
    %288 = vector.load %arg5[%c0_234, %c0_235, %c0_236] : memref<9x16x16xbf16, #tpu.memory_space<vmem>>, vector<1x16x16xbf16>
    %289 = vector.shape_cast %288 : vector<1x16x16xbf16> to vector<16x16xbf16>
    %cst_237 = arith.constant dense<0.000000e+00> : vector<32x16xf32>
    %290 = tpu.matmul %287, %289, %cst_237 {dimension_numbers = #tpu.dot_dimension_numbers<[1], [0], [0], [1], [0, 0, 1, 1], [], []>} : vector<32x16xbf16>, vector<16x16xbf16>, vector<32x16xf32> -> vector<32x16xf32>
    %c0_238 = arith.constant 0 : index
    %c0_239 = arith.constant 0 : index
    %c0_240 = arith.constant 0 : index
    %291 = vector.load %arg22[%c0_238, %c0_239, %c0_240] : memref<9x32x1xf32, #tpu.memory_space<vmem>>, vector<1x32x1xf32>
    %292 = vector.shape_cast %291 : vector<1x32x1xf32> to vector<32x1xf32>
    %293 = vector.broadcast %292 : vector<32x1xf32> to vector<32x16xf32>
    %294 = arith.mulf %293, %290 : vector<32x16xf32>
    %c1_241 = arith.constant 1 : index
    %c0_242 = arith.constant 0 : index
    %c0_243 = arith.constant 0 : index
    %295 = vector.load %arg5[%c1_241, %c0_242, %c0_243] : memref<9x16x16xbf16, #tpu.memory_space<vmem>>, vector<1x16x16xbf16>
    %296 = vector.shape_cast %295 : vector<1x16x16xbf16> to vector<16x16xbf16>
    %cst_244 = arith.constant dense<0.000000e+00> : vector<32x16xf32>
    %297 = tpu.matmul %287, %296, %cst_244 {dimension_numbers = #tpu.dot_dimension_numbers<[1], [0], [0], [1], [0, 0, 1, 1], [], []>} : vector<32x16xbf16>, vector<16x16xbf16>, vector<32x16xf32> -> vector<32x16xf32>
    %c1_245 = arith.constant 1 : index
    %c0_246 = arith.constant 0 : index
    %c0_247 = arith.constant 0 : index
    %298 = vector.load %arg22[%c1_245, %c0_246, %c0_247] : memref<9x32x1xf32, #tpu.memory_space<vmem>>, vector<1x32x1xf32>
    %299 = vector.shape_cast %298 : vector<1x32x1xf32> to vector<32x1xf32>
    %300 = vector.broadcast %299 : vector<32x1xf32> to vector<32x16xf32>
    %301 = arith.mulf %300, %297 : vector<32x16xf32>
    %302 = arith.addf %294, %301 : vector<32x16xf32>
    %c2_248 = arith.constant 2 : index
    %c0_249 = arith.constant 0 : index
    %c0_250 = arith.constant 0 : index
    %303 = vector.load %arg5[%c2_248, %c0_249, %c0_250] : memref<9x16x16xbf16, #tpu.memory_space<vmem>>, vector<1x16x16xbf16>
    %304 = vector.shape_cast %303 : vector<1x16x16xbf16> to vector<16x16xbf16>
    %cst_251 = arith.constant dense<0.000000e+00> : vector<32x16xf32>
    %305 = tpu.matmul %287, %304, %cst_251 {dimension_numbers = #tpu.dot_dimension_numbers<[1], [0], [0], [1], [0, 0, 1, 1], [], []>} : vector<32x16xbf16>, vector<16x16xbf16>, vector<32x16xf32> -> vector<32x16xf32>
    %c2_252 = arith.constant 2 : index
    %c0_253 = arith.constant 0 : index
    %c0_254 = arith.constant 0 : index
    %306 = vector.load %arg22[%c2_252, %c0_253, %c0_254] : memref<9x32x1xf32, #tpu.memory_space<vmem>>, vector<1x32x1xf32>
    %307 = vector.shape_cast %306 : vector<1x32x1xf32> to vector<32x1xf32>
    %308 = vector.broadcast %307 : vector<32x1xf32> to vector<32x16xf32>
    %309 = arith.mulf %308, %305 : vector<32x16xf32>
    %310 = arith.addf %302, %309 : vector<32x16xf32>
    %c3_255 = arith.constant 3 : index
    %c0_256 = arith.constant 0 : index
    %c0_257 = arith.constant 0 : index
    %311 = vector.load %arg5[%c3_255, %c0_256, %c0_257] : memref<9x16x16xbf16, #tpu.memory_space<vmem>>, vector<1x16x16xbf16>
    %312 = vector.shape_cast %311 : vector<1x16x16xbf16> to vector<16x16xbf16>
    %cst_258 = arith.constant dense<0.000000e+00> : vector<32x16xf32>
    %313 = tpu.matmul %287, %312, %cst_258 {dimension_numbers = #tpu.dot_dimension_numbers<[1], [0], [0], [1], [0, 0, 1, 1], [], []>} : vector<32x16xbf16>, vector<16x16xbf16>, vector<32x16xf32> -> vector<32x16xf32>
    %c3_259 = arith.constant 3 : index
    %c0_260 = arith.constant 0 : index
    %c0_261 = arith.constant 0 : index
    %314 = vector.load %arg22[%c3_259, %c0_260, %c0_261] : memref<9x32x1xf32, #tpu.memory_space<vmem>>, vector<1x32x1xf32>
    %315 = vector.shape_cast %314 : vector<1x32x1xf32> to vector<32x1xf32>
    %316 = vector.broadcast %315 : vector<32x1xf32> to vector<32x16xf32>
    %317 = arith.mulf %316, %313 : vector<32x16xf32>
    %318 = arith.addf %310, %317 : vector<32x16xf32>
    %c4_262 = arith.constant 4 : index
    %c0_263 = arith.constant 0 : index
    %c0_264 = arith.constant 0 : index
    %319 = vector.load %arg5[%c4_262, %c0_263, %c0_264] : memref<9x16x16xbf16, #tpu.memory_space<vmem>>, vector<1x16x16xbf16>
    %320 = vector.shape_cast %319 : vector<1x16x16xbf16> to vector<16x16xbf16>
    %cst_265 = arith.constant dense<0.000000e+00> : vector<32x16xf32>
    %321 = tpu.matmul %287, %320, %cst_265 {dimension_numbers = #tpu.dot_dimension_numbers<[1], [0], [0], [1], [0, 0, 1, 1], [], []>} : vector<32x16xbf16>, vector<16x16xbf16>, vector<32x16xf32> -> vector<32x16xf32>
    %c4_266 = arith.constant 4 : index
    %c0_267 = arith.constant 0 : index
    %c0_268 = arith.constant 0 : index
    %322 = vector.load %arg22[%c4_266, %c0_267, %c0_268] : memref<9x32x1xf32, #tpu.memory_space<vmem>>, vector<1x32x1xf32>
    %323 = vector.shape_cast %322 : vector<1x32x1xf32> to vector<32x1xf32>
    %324 = vector.broadcast %323 : vector<32x1xf32> to vector<32x16xf32>
    %325 = arith.mulf %324, %321 : vector<32x16xf32>
    %326 = arith.addf %318, %325 : vector<32x16xf32>
    %c5_269 = arith.constant 5 : index
    %c0_270 = arith.constant 0 : index
    %c0_271 = arith.constant 0 : index
    %327 = vector.load %arg5[%c5_269, %c0_270, %c0_271] : memref<9x16x16xbf16, #tpu.memory_space<vmem>>, vector<1x16x16xbf16>
    %328 = vector.shape_cast %327 : vector<1x16x16xbf16> to vector<16x16xbf16>
    %cst_272 = arith.constant dense<0.000000e+00> : vector<32x16xf32>
    %329 = tpu.matmul %287, %328, %cst_272 {dimension_numbers = #tpu.dot_dimension_numbers<[1], [0], [0], [1], [0, 0, 1, 1], [], []>} : vector<32x16xbf16>, vector<16x16xbf16>, vector<32x16xf32> -> vector<32x16xf32>
    %c5_273 = arith.constant 5 : index
    %c0_274 = arith.constant 0 : index
    %c0_275 = arith.constant 0 : index
    %330 = vector.load %arg22[%c5_273, %c0_274, %c0_275] : memref<9x32x1xf32, #tpu.memory_space<vmem>>, vector<1x32x1xf32>
    %331 = vector.shape_cast %330 : vector<1x32x1xf32> to vector<32x1xf32>
    %332 = vector.broadcast %331 : vector<32x1xf32> to vector<32x16xf32>
    %333 = arith.mulf %332, %329 : vector<32x16xf32>
    %334 = arith.addf %326, %333 : vector<32x16xf32>
    %c6_276 = arith.constant 6 : index
    %c0_277 = arith.constant 0 : index
    %c0_278 = arith.constant 0 : index
    %335 = vector.load %arg5[%c6_276, %c0_277, %c0_278] : memref<9x16x16xbf16, #tpu.memory_space<vmem>>, vector<1x16x16xbf16>
    %336 = vector.shape_cast %335 : vector<1x16x16xbf16> to vector<16x16xbf16>
    %cst_279 = arith.constant dense<0.000000e+00> : vector<32x16xf32>
    %337 = tpu.matmul %287, %336, %cst_279 {dimension_numbers = #tpu.dot_dimension_numbers<[1], [0], [0], [1], [0, 0, 1, 1], [], []>} : vector<32x16xbf16>, vector<16x16xbf16>, vector<32x16xf32> -> vector<32x16xf32>
    %c6_280 = arith.constant 6 : index
    %c0_281 = arith.constant 0 : index
    %c0_282 = arith.constant 0 : index
    %338 = vector.load %arg22[%c6_280, %c0_281, %c0_282] : memref<9x32x1xf32, #tpu.memory_space<vmem>>, vector<1x32x1xf32>
    %339 = vector.shape_cast %338 : vector<1x32x1xf32> to vector<32x1xf32>
    %340 = vector.broadcast %339 : vector<32x1xf32> to vector<32x16xf32>
    %341 = arith.mulf %340, %337 : vector<32x16xf32>
    %342 = arith.addf %334, %341 : vector<32x16xf32>
    %c7_283 = arith.constant 7 : index
    %c0_284 = arith.constant 0 : index
    %c0_285 = arith.constant 0 : index
    %343 = vector.load %arg5[%c7_283, %c0_284, %c0_285] : memref<9x16x16xbf16, #tpu.memory_space<vmem>>, vector<1x16x16xbf16>
    %344 = vector.shape_cast %343 : vector<1x16x16xbf16> to vector<16x16xbf16>
    %cst_286 = arith.constant dense<0.000000e+00> : vector<32x16xf32>
    %345 = tpu.matmul %287, %344, %cst_286 {dimension_numbers = #tpu.dot_dimension_numbers<[1], [0], [0], [1], [0, 0, 1, 1], [], []>} : vector<32x16xbf16>, vector<16x16xbf16>, vector<32x16xf32> -> vector<32x16xf32>
    %c7_287 = arith.constant 7 : index
    %c0_288 = arith.constant 0 : index
    %c0_289 = arith.constant 0 : index
    %346 = vector.load %arg22[%c7_287, %c0_288, %c0_289] : memref<9x32x1xf32, #tpu.memory_space<vmem>>, vector<1x32x1xf32>
    %347 = vector.shape_cast %346 : vector<1x32x1xf32> to vector<32x1xf32>
    %348 = vector.broadcast %347 : vector<32x1xf32> to vector<32x16xf32>
    %349 = arith.mulf %348, %345 : vector<32x16xf32>
    %350 = arith.addf %342, %349 : vector<32x16xf32>
    %c8_290 = arith.constant 8 : index
    %c0_291 = arith.constant 0 : index
    %c0_292 = arith.constant 0 : index
    %351 = vector.load %arg5[%c8_290, %c0_291, %c0_292] : memref<9x16x16xbf16, #tpu.memory_space<vmem>>, vector<1x16x16xbf16>
    %352 = vector.shape_cast %351 : vector<1x16x16xbf16> to vector<16x16xbf16>
    %cst_293 = arith.constant dense<0.000000e+00> : vector<32x16xf32>
    %353 = tpu.matmul %287, %352, %cst_293 {dimension_numbers = #tpu.dot_dimension_numbers<[1], [0], [0], [1], [0, 0, 1, 1], [], []>} : vector<32x16xbf16>, vector<16x16xbf16>, vector<32x16xf32> -> vector<32x16xf32>
    %c8_294 = arith.constant 8 : index
    %c0_295 = arith.constant 0 : index
    %c0_296 = arith.constant 0 : index
    %354 = vector.load %arg22[%c8_294, %c0_295, %c0_296] : memref<9x32x1xf32, #tpu.memory_space<vmem>>, vector<1x32x1xf32>
    %355 = vector.shape_cast %354 : vector<1x32x1xf32> to vector<32x1xf32>
    %356 = vector.broadcast %355 : vector<32x1xf32> to vector<32x16xf32>
    %357 = arith.mulf %356, %353 : vector<32x16xf32>
    %358 = arith.addf %350, %357 : vector<32x16xf32>
    %359 = vector.broadcast %272 : vector<32x1xf32> to vector<32x16xf32>
    %360 = arith.addf %358, %359 : vector<32x16xf32>
    %cst_297 = arith.constant dense<0.000000e+00> : vector<32x16xf32>
    %361 = tpu.matmul %273, %360, %cst_297 {dimension_numbers = #tpu.dot_dimension_numbers<[1], [0], [0], [1], [0, 0, 1, 1], [], []>} : vector<32x32xf32>, vector<32x16xf32>, vector<32x16xf32> -> vector<32x16xf32>
    %362 = vector.broadcast %274 : vector<32x1xf32> to vector<32x16xf32>
    %363 = arith.addf %361, %362 : vector<32x16xf32>
    %364 = arith.negf %363 : vector<32x16xf32>
    %365 = math.exp %364 : vector<32x16xf32>
    %cst_298 = arith.constant 1.000000e+00 : f32
    %366 = vector.broadcast %cst_298 : f32 to vector<32x16xf32>
    %367 = arith.addf %366, %365 : vector<32x16xf32>
    %368 = arith.divf %366, %367 : vector<32x16xf32>
    %369 = arith.mulf %363, %368 : vector<32x16xf32>
    %c0_299 = arith.constant 0 : index
    %c0_300 = arith.constant 0 : index
    %370 = vector.load %arg26[%c0_299, %c0_300] : memref<16x16xf32, #tpu.memory_space<vmem>>, vector<16x16xf32>
    %c0_301 = arith.constant 0 : index
    %c0_302 = arith.constant 0 : index
    %371 = vector.load %arg27[%c0_301, %c0_302] : memref<16x1xf32, #tpu.memory_space<vmem>>, vector<16x1xf32>
    %c0_303 = arith.constant 0 : index
    %c0_304 = arith.constant 0 : index
    %372 = vector.load %arg29[%c0_303, %c0_304] : memref<32x1xf32, #tpu.memory_space<vmem>>, vector<32x1xf32>
    %c0_305 = arith.constant 0 : index
    %c0_306 = arith.constant 0 : index
    %373 = vector.load %arg30[%c0_305, %c0_306] : memref<32x32xf32, #tpu.memory_space<vmem>>, vector<32x32xf32>
    %c0_307 = arith.constant 0 : index
    %c0_308 = arith.constant 0 : index
    %374 = vector.load %arg31[%c0_307, %c0_308] : memref<32x1xf32, #tpu.memory_space<vmem>>, vector<32x1xf32>
    %375 = vector.extract_strided_slice %369 {offsets = [0, 0], sizes = [16, 16], strides = [1, 1]} : vector<32x16xf32> to vector<16x16xf32>
    %376 = vector.extract_strided_slice %369 {offsets = [16, 0], sizes = [16, 16], strides = [1, 1]} : vector<32x16xf32> to vector<16x16xf32>
    %cst_309 = arith.constant dense<0.000000e+00> : vector<16x16xf32>
    %377 = tpu.matmul %370, %376, %cst_309 {dimension_numbers = #tpu.dot_dimension_numbers<[1], [0], [0], [1], [0, 0, 1, 1], [], []>} : vector<16x16xf32>, vector<16x16xf32>, vector<16x16xf32> -> vector<16x16xf32>
    %378 = vector.broadcast %371 : vector<16x1xf32> to vector<16x16xf32>
    %379 = arith.addf %377, %378 : vector<16x16xf32>
    %380 = arith.negf %379 : vector<16x16xf32>
    %381 = math.exp %380 : vector<16x16xf32>
    %cst_310 = arith.constant 1.000000e+00 : f32
    %382 = vector.broadcast %cst_310 : f32 to vector<16x16xf32>
    %383 = arith.addf %382, %381 : vector<16x16xf32>
    %384 = arith.divf %382, %383 : vector<16x16xf32>
    %385 = arith.mulf %379, %384 : vector<16x16xf32>
    %386 = tpu.concatenate %375, %385 in 0 : vector<16x16xf32>, vector<16x16xf32> -> vector<32x16xf32>
    %387 = arith.truncf %386 : vector<32x16xf32> to vector<32x16xbf16>
    %c0_311 = arith.constant 0 : index
    %c0_312 = arith.constant 0 : index
    %c0_313 = arith.constant 0 : index
    %388 = vector.load %arg5[%c0_311, %c0_312, %c0_313] : memref<9x16x16xbf16, #tpu.memory_space<vmem>>, vector<1x16x16xbf16>
    %389 = vector.shape_cast %388 : vector<1x16x16xbf16> to vector<16x16xbf16>
    %cst_314 = arith.constant dense<0.000000e+00> : vector<32x16xf32>
    %390 = tpu.matmul %387, %389, %cst_314 {dimension_numbers = #tpu.dot_dimension_numbers<[1], [0], [0], [1], [0, 0, 1, 1], [], []>} : vector<32x16xbf16>, vector<16x16xbf16>, vector<32x16xf32> -> vector<32x16xf32>
    %c0_315 = arith.constant 0 : index
    %c0_316 = arith.constant 0 : index
    %c0_317 = arith.constant 0 : index
    %391 = vector.load %arg28[%c0_315, %c0_316, %c0_317] : memref<9x32x1xf32, #tpu.memory_space<vmem>>, vector<1x32x1xf32>
    %392 = vector.shape_cast %391 : vector<1x32x1xf32> to vector<32x1xf32>
    %393 = vector.broadcast %392 : vector<32x1xf32> to vector<32x16xf32>
    %394 = arith.mulf %393, %390 : vector<32x16xf32>
    %c1_318 = arith.constant 1 : index
    %c0_319 = arith.constant 0 : index
    %c0_320 = arith.constant 0 : index
    %395 = vector.load %arg5[%c1_318, %c0_319, %c0_320] : memref<9x16x16xbf16, #tpu.memory_space<vmem>>, vector<1x16x16xbf16>
    %396 = vector.shape_cast %395 : vector<1x16x16xbf16> to vector<16x16xbf16>
    %cst_321 = arith.constant dense<0.000000e+00> : vector<32x16xf32>
    %397 = tpu.matmul %387, %396, %cst_321 {dimension_numbers = #tpu.dot_dimension_numbers<[1], [0], [0], [1], [0, 0, 1, 1], [], []>} : vector<32x16xbf16>, vector<16x16xbf16>, vector<32x16xf32> -> vector<32x16xf32>
    %c1_322 = arith.constant 1 : index
    %c0_323 = arith.constant 0 : index
    %c0_324 = arith.constant 0 : index
    %398 = vector.load %arg28[%c1_322, %c0_323, %c0_324] : memref<9x32x1xf32, #tpu.memory_space<vmem>>, vector<1x32x1xf32>
    %399 = vector.shape_cast %398 : vector<1x32x1xf32> to vector<32x1xf32>
    %400 = vector.broadcast %399 : vector<32x1xf32> to vector<32x16xf32>
    %401 = arith.mulf %400, %397 : vector<32x16xf32>
    %402 = arith.addf %394, %401 : vector<32x16xf32>
    %c2_325 = arith.constant 2 : index
    %c0_326 = arith.constant 0 : index
    %c0_327 = arith.constant 0 : index
    %403 = vector.load %arg5[%c2_325, %c0_326, %c0_327] : memref<9x16x16xbf16, #tpu.memory_space<vmem>>, vector<1x16x16xbf16>
    %404 = vector.shape_cast %403 : vector<1x16x16xbf16> to vector<16x16xbf16>
    %cst_328 = arith.constant dense<0.000000e+00> : vector<32x16xf32>
    %405 = tpu.matmul %387, %404, %cst_328 {dimension_numbers = #tpu.dot_dimension_numbers<[1], [0], [0], [1], [0, 0, 1, 1], [], []>} : vector<32x16xbf16>, vector<16x16xbf16>, vector<32x16xf32> -> vector<32x16xf32>
    %c2_329 = arith.constant 2 : index
    %c0_330 = arith.constant 0 : index
    %c0_331 = arith.constant 0 : index
    %406 = vector.load %arg28[%c2_329, %c0_330, %c0_331] : memref<9x32x1xf32, #tpu.memory_space<vmem>>, vector<1x32x1xf32>
    %407 = vector.shape_cast %406 : vector<1x32x1xf32> to vector<32x1xf32>
    %408 = vector.broadcast %407 : vector<32x1xf32> to vector<32x16xf32>
    %409 = arith.mulf %408, %405 : vector<32x16xf32>
    %410 = arith.addf %402, %409 : vector<32x16xf32>
    %c3_332 = arith.constant 3 : index
    %c0_333 = arith.constant 0 : index
    %c0_334 = arith.constant 0 : index
    %411 = vector.load %arg5[%c3_332, %c0_333, %c0_334] : memref<9x16x16xbf16, #tpu.memory_space<vmem>>, vector<1x16x16xbf16>
    %412 = vector.shape_cast %411 : vector<1x16x16xbf16> to vector<16x16xbf16>
    %cst_335 = arith.constant dense<0.000000e+00> : vector<32x16xf32>
    %413 = tpu.matmul %387, %412, %cst_335 {dimension_numbers = #tpu.dot_dimension_numbers<[1], [0], [0], [1], [0, 0, 1, 1], [], []>} : vector<32x16xbf16>, vector<16x16xbf16>, vector<32x16xf32> -> vector<32x16xf32>
    %c3_336 = arith.constant 3 : index
    %c0_337 = arith.constant 0 : index
    %c0_338 = arith.constant 0 : index
    %414 = vector.load %arg28[%c3_336, %c0_337, %c0_338] : memref<9x32x1xf32, #tpu.memory_space<vmem>>, vector<1x32x1xf32>
    %415 = vector.shape_cast %414 : vector<1x32x1xf32> to vector<32x1xf32>
    %416 = vector.broadcast %415 : vector<32x1xf32> to vector<32x16xf32>
    %417 = arith.mulf %416, %413 : vector<32x16xf32>
    %418 = arith.addf %410, %417 : vector<32x16xf32>
    %c4_339 = arith.constant 4 : index
    %c0_340 = arith.constant 0 : index
    %c0_341 = arith.constant 0 : index
    %419 = vector.load %arg5[%c4_339, %c0_340, %c0_341] : memref<9x16x16xbf16, #tpu.memory_space<vmem>>, vector<1x16x16xbf16>
    %420 = vector.shape_cast %419 : vector<1x16x16xbf16> to vector<16x16xbf16>
    %cst_342 = arith.constant dense<0.000000e+00> : vector<32x16xf32>
    %421 = tpu.matmul %387, %420, %cst_342 {dimension_numbers = #tpu.dot_dimension_numbers<[1], [0], [0], [1], [0, 0, 1, 1], [], []>} : vector<32x16xbf16>, vector<16x16xbf16>, vector<32x16xf32> -> vector<32x16xf32>
    %c4_343 = arith.constant 4 : index
    %c0_344 = arith.constant 0 : index
    %c0_345 = arith.constant 0 : index
    %422 = vector.load %arg28[%c4_343, %c0_344, %c0_345] : memref<9x32x1xf32, #tpu.memory_space<vmem>>, vector<1x32x1xf32>
    %423 = vector.shape_cast %422 : vector<1x32x1xf32> to vector<32x1xf32>
    %424 = vector.broadcast %423 : vector<32x1xf32> to vector<32x16xf32>
    %425 = arith.mulf %424, %421 : vector<32x16xf32>
    %426 = arith.addf %418, %425 : vector<32x16xf32>
    %c5_346 = arith.constant 5 : index
    %c0_347 = arith.constant 0 : index
    %c0_348 = arith.constant 0 : index
    %427 = vector.load %arg5[%c5_346, %c0_347, %c0_348] : memref<9x16x16xbf16, #tpu.memory_space<vmem>>, vector<1x16x16xbf16>
    %428 = vector.shape_cast %427 : vector<1x16x16xbf16> to vector<16x16xbf16>
    %cst_349 = arith.constant dense<0.000000e+00> : vector<32x16xf32>
    %429 = tpu.matmul %387, %428, %cst_349 {dimension_numbers = #tpu.dot_dimension_numbers<[1], [0], [0], [1], [0, 0, 1, 1], [], []>} : vector<32x16xbf16>, vector<16x16xbf16>, vector<32x16xf32> -> vector<32x16xf32>
    %c5_350 = arith.constant 5 : index
    %c0_351 = arith.constant 0 : index
    %c0_352 = arith.constant 0 : index
    %430 = vector.load %arg28[%c5_350, %c0_351, %c0_352] : memref<9x32x1xf32, #tpu.memory_space<vmem>>, vector<1x32x1xf32>
    %431 = vector.shape_cast %430 : vector<1x32x1xf32> to vector<32x1xf32>
    %432 = vector.broadcast %431 : vector<32x1xf32> to vector<32x16xf32>
    %433 = arith.mulf %432, %429 : vector<32x16xf32>
    %434 = arith.addf %426, %433 : vector<32x16xf32>
    %c6_353 = arith.constant 6 : index
    %c0_354 = arith.constant 0 : index
    %c0_355 = arith.constant 0 : index
    %435 = vector.load %arg5[%c6_353, %c0_354, %c0_355] : memref<9x16x16xbf16, #tpu.memory_space<vmem>>, vector<1x16x16xbf16>
    %436 = vector.shape_cast %435 : vector<1x16x16xbf16> to vector<16x16xbf16>
    %cst_356 = arith.constant dense<0.000000e+00> : vector<32x16xf32>
    %437 = tpu.matmul %387, %436, %cst_356 {dimension_numbers = #tpu.dot_dimension_numbers<[1], [0], [0], [1], [0, 0, 1, 1], [], []>} : vector<32x16xbf16>, vector<16x16xbf16>, vector<32x16xf32> -> vector<32x16xf32>
    %c6_357 = arith.constant 6 : index
    %c0_358 = arith.constant 0 : index
    %c0_359 = arith.constant 0 : index
    %438 = vector.load %arg28[%c6_357, %c0_358, %c0_359] : memref<9x32x1xf32, #tpu.memory_space<vmem>>, vector<1x32x1xf32>
    %439 = vector.shape_cast %438 : vector<1x32x1xf32> to vector<32x1xf32>
    %440 = vector.broadcast %439 : vector<32x1xf32> to vector<32x16xf32>
    %441 = arith.mulf %440, %437 : vector<32x16xf32>
    %442 = arith.addf %434, %441 : vector<32x16xf32>
    %c7_360 = arith.constant 7 : index
    %c0_361 = arith.constant 0 : index
    %c0_362 = arith.constant 0 : index
    %443 = vector.load %arg5[%c7_360, %c0_361, %c0_362] : memref<9x16x16xbf16, #tpu.memory_space<vmem>>, vector<1x16x16xbf16>
    %444 = vector.shape_cast %443 : vector<1x16x16xbf16> to vector<16x16xbf16>
    %cst_363 = arith.constant dense<0.000000e+00> : vector<32x16xf32>
    %445 = tpu.matmul %387, %444, %cst_363 {dimension_numbers = #tpu.dot_dimension_numbers<[1], [0], [0], [1], [0, 0, 1, 1], [], []>} : vector<32x16xbf16>, vector<16x16xbf16>, vector<32x16xf32> -> vector<32x16xf32>
    %c7_364 = arith.constant 7 : index
    %c0_365 = arith.constant 0 : index
    %c0_366 = arith.constant 0 : index
    %446 = vector.load %arg28[%c7_364, %c0_365, %c0_366] : memref<9x32x1xf32, #tpu.memory_space<vmem>>, vector<1x32x1xf32>
    %447 = vector.shape_cast %446 : vector<1x32x1xf32> to vector<32x1xf32>
    %448 = vector.broadcast %447 : vector<32x1xf32> to vector<32x16xf32>
    %449 = arith.mulf %448, %445 : vector<32x16xf32>
    %450 = arith.addf %442, %449 : vector<32x16xf32>
    %c8_367 = arith.constant 8 : index
    %c0_368 = arith.constant 0 : index
    %c0_369 = arith.constant 0 : index
    %451 = vector.load %arg5[%c8_367, %c0_368, %c0_369] : memref<9x16x16xbf16, #tpu.memory_space<vmem>>, vector<1x16x16xbf16>
    %452 = vector.shape_cast %451 : vector<1x16x16xbf16> to vector<16x16xbf16>
    %cst_370 = arith.constant dense<0.000000e+00> : vector<32x16xf32>
    %453 = tpu.matmul %387, %452, %cst_370 {dimension_numbers = #tpu.dot_dimension_numbers<[1], [0], [0], [1], [0, 0, 1, 1], [], []>} : vector<32x16xbf16>, vector<16x16xbf16>, vector<32x16xf32> -> vector<32x16xf32>
    %c8_371 = arith.constant 8 : index
    %c0_372 = arith.constant 0 : index
    %c0_373 = arith.constant 0 : index
    %454 = vector.load %arg28[%c8_371, %c0_372, %c0_373] : memref<9x32x1xf32, #tpu.memory_space<vmem>>, vector<1x32x1xf32>
    %455 = vector.shape_cast %454 : vector<1x32x1xf32> to vector<32x1xf32>
    %456 = vector.broadcast %455 : vector<32x1xf32> to vector<32x16xf32>
    %457 = arith.mulf %456, %453 : vector<32x16xf32>
    %458 = arith.addf %450, %457 : vector<32x16xf32>
    %459 = vector.broadcast %372 : vector<32x1xf32> to vector<32x16xf32>
    %460 = arith.addf %458, %459 : vector<32x16xf32>
    %cst_374 = arith.constant dense<0.000000e+00> : vector<32x16xf32>
    %461 = tpu.matmul %373, %460, %cst_374 {dimension_numbers = #tpu.dot_dimension_numbers<[1], [0], [0], [1], [0, 0, 1, 1], [], []>} : vector<32x32xf32>, vector<32x16xf32>, vector<32x16xf32> -> vector<32x16xf32>
    %462 = vector.broadcast %374 : vector<32x1xf32> to vector<32x16xf32>
    %463 = arith.addf %461, %462 : vector<32x16xf32>
    %464 = arith.negf %463 : vector<32x16xf32>
    %465 = math.exp %464 : vector<32x16xf32>
    %cst_375 = arith.constant 1.000000e+00 : f32
    %466 = vector.broadcast %cst_375 : f32 to vector<32x16xf32>
    %467 = arith.addf %466, %465 : vector<32x16xf32>
    %468 = arith.divf %466, %467 : vector<32x16xf32>
    %469 = arith.mulf %463, %468 : vector<32x16xf32>
    %c0_376 = arith.constant 0 : index
    %c0_377 = arith.constant 0 : index
    %470 = vector.load %arg32[%c0_376, %c0_377] : memref<16x16xf32, #tpu.memory_space<vmem>>, vector<16x16xf32>
    %c0_378 = arith.constant 0 : index
    %c0_379 = arith.constant 0 : index
    %471 = vector.load %arg33[%c0_378, %c0_379] : memref<16x1xf32, #tpu.memory_space<vmem>>, vector<16x1xf32>
    %c0_380 = arith.constant 0 : index
    %c0_381 = arith.constant 0 : index
    %472 = vector.load %arg35[%c0_380, %c0_381] : memref<32x1xf32, #tpu.memory_space<vmem>>, vector<32x1xf32>
    %c0_382 = arith.constant 0 : index
    %c0_383 = arith.constant 0 : index
    %473 = vector.load %arg36[%c0_382, %c0_383] : memref<16x32xf32, #tpu.memory_space<vmem>>, vector<16x32xf32>
    %c0_384 = arith.constant 0 : index
    %c0_385 = arith.constant 0 : index
    %474 = vector.load %arg37[%c0_384, %c0_385] : memref<16x1xf32, #tpu.memory_space<vmem>>, vector<16x1xf32>
    %475 = vector.extract_strided_slice %469 {offsets = [0, 0], sizes = [16, 16], strides = [1, 1]} : vector<32x16xf32> to vector<16x16xf32>
    %476 = vector.extract_strided_slice %469 {offsets = [16, 0], sizes = [16, 16], strides = [1, 1]} : vector<32x16xf32> to vector<16x16xf32>
    %cst_386 = arith.constant dense<0.000000e+00> : vector<16x16xf32>
    %477 = tpu.matmul %470, %476, %cst_386 {dimension_numbers = #tpu.dot_dimension_numbers<[1], [0], [0], [1], [0, 0, 1, 1], [], []>} : vector<16x16xf32>, vector<16x16xf32>, vector<16x16xf32> -> vector<16x16xf32>
    %478 = vector.broadcast %471 : vector<16x1xf32> to vector<16x16xf32>
    %479 = arith.addf %477, %478 : vector<16x16xf32>
    %480 = arith.negf %479 : vector<16x16xf32>
    %481 = math.exp %480 : vector<16x16xf32>
    %cst_387 = arith.constant 1.000000e+00 : f32
    %482 = vector.broadcast %cst_387 : f32 to vector<16x16xf32>
    %483 = arith.addf %482, %481 : vector<16x16xf32>
    %484 = arith.divf %482, %483 : vector<16x16xf32>
    %485 = arith.mulf %479, %484 : vector<16x16xf32>
    %486 = tpu.concatenate %475, %485 in 0 : vector<16x16xf32>, vector<16x16xf32> -> vector<32x16xf32>
    %487 = arith.truncf %486 : vector<32x16xf32> to vector<32x16xbf16>
    %c0_388 = arith.constant 0 : index
    %c0_389 = arith.constant 0 : index
    %c0_390 = arith.constant 0 : index
    %488 = vector.load %arg5[%c0_388, %c0_389, %c0_390] : memref<9x16x16xbf16, #tpu.memory_space<vmem>>, vector<1x16x16xbf16>
    %489 = vector.shape_cast %488 : vector<1x16x16xbf16> to vector<16x16xbf16>
    %cst_391 = arith.constant dense<0.000000e+00> : vector<32x16xf32>
    %490 = tpu.matmul %487, %489, %cst_391 {dimension_numbers = #tpu.dot_dimension_numbers<[1], [0], [0], [1], [0, 0, 1, 1], [], []>} : vector<32x16xbf16>, vector<16x16xbf16>, vector<32x16xf32> -> vector<32x16xf32>
    %c0_392 = arith.constant 0 : index
    %c0_393 = arith.constant 0 : index
    %c0_394 = arith.constant 0 : index
    %491 = vector.load %arg34[%c0_392, %c0_393, %c0_394] : memref<9x32x1xf32, #tpu.memory_space<vmem>>, vector<1x32x1xf32>
    %492 = vector.shape_cast %491 : vector<1x32x1xf32> to vector<32x1xf32>
    %493 = vector.broadcast %492 : vector<32x1xf32> to vector<32x16xf32>
    %494 = arith.mulf %493, %490 : vector<32x16xf32>
    %c1_395 = arith.constant 1 : index
    %c0_396 = arith.constant 0 : index
    %c0_397 = arith.constant 0 : index
    %495 = vector.load %arg5[%c1_395, %c0_396, %c0_397] : memref<9x16x16xbf16, #tpu.memory_space<vmem>>, vector<1x16x16xbf16>
    %496 = vector.shape_cast %495 : vector<1x16x16xbf16> to vector<16x16xbf16>
    %cst_398 = arith.constant dense<0.000000e+00> : vector<32x16xf32>
    %497 = tpu.matmul %487, %496, %cst_398 {dimension_numbers = #tpu.dot_dimension_numbers<[1], [0], [0], [1], [0, 0, 1, 1], [], []>} : vector<32x16xbf16>, vector<16x16xbf16>, vector<32x16xf32> -> vector<32x16xf32>
    %c1_399 = arith.constant 1 : index
    %c0_400 = arith.constant 0 : index
    %c0_401 = arith.constant 0 : index
    %498 = vector.load %arg34[%c1_399, %c0_400, %c0_401] : memref<9x32x1xf32, #tpu.memory_space<vmem>>, vector<1x32x1xf32>
    %499 = vector.shape_cast %498 : vector<1x32x1xf32> to vector<32x1xf32>
    %500 = vector.broadcast %499 : vector<32x1xf32> to vector<32x16xf32>
    %501 = arith.mulf %500, %497 : vector<32x16xf32>
    %502 = arith.addf %494, %501 : vector<32x16xf32>
    %c2_402 = arith.constant 2 : index
    %c0_403 = arith.constant 0 : index
    %c0_404 = arith.constant 0 : index
    %503 = vector.load %arg5[%c2_402, %c0_403, %c0_404] : memref<9x16x16xbf16, #tpu.memory_space<vmem>>, vector<1x16x16xbf16>
    %504 = vector.shape_cast %503 : vector<1x16x16xbf16> to vector<16x16xbf16>
    %cst_405 = arith.constant dense<0.000000e+00> : vector<32x16xf32>
    %505 = tpu.matmul %487, %504, %cst_405 {dimension_numbers = #tpu.dot_dimension_numbers<[1], [0], [0], [1], [0, 0, 1, 1], [], []>} : vector<32x16xbf16>, vector<16x16xbf16>, vector<32x16xf32> -> vector<32x16xf32>
    %c2_406 = arith.constant 2 : index
    %c0_407 = arith.constant 0 : index
    %c0_408 = arith.constant 0 : index
    %506 = vector.load %arg34[%c2_406, %c0_407, %c0_408] : memref<9x32x1xf32, #tpu.memory_space<vmem>>, vector<1x32x1xf32>
    %507 = vector.shape_cast %506 : vector<1x32x1xf32> to vector<32x1xf32>
    %508 = vector.broadcast %507 : vector<32x1xf32> to vector<32x16xf32>
    %509 = arith.mulf %508, %505 : vector<32x16xf32>
    %510 = arith.addf %502, %509 : vector<32x16xf32>
    %c3_409 = arith.constant 3 : index
    %c0_410 = arith.constant 0 : index
    %c0_411 = arith.constant 0 : index
    %511 = vector.load %arg5[%c3_409, %c0_410, %c0_411] : memref<9x16x16xbf16, #tpu.memory_space<vmem>>, vector<1x16x16xbf16>
    %512 = vector.shape_cast %511 : vector<1x16x16xbf16> to vector<16x16xbf16>
    %cst_412 = arith.constant dense<0.000000e+00> : vector<32x16xf32>
    %513 = tpu.matmul %487, %512, %cst_412 {dimension_numbers = #tpu.dot_dimension_numbers<[1], [0], [0], [1], [0, 0, 1, 1], [], []>} : vector<32x16xbf16>, vector<16x16xbf16>, vector<32x16xf32> -> vector<32x16xf32>
    %c3_413 = arith.constant 3 : index
    %c0_414 = arith.constant 0 : index
    %c0_415 = arith.constant 0 : index
    %514 = vector.load %arg34[%c3_413, %c0_414, %c0_415] : memref<9x32x1xf32, #tpu.memory_space<vmem>>, vector<1x32x1xf32>
    %515 = vector.shape_cast %514 : vector<1x32x1xf32> to vector<32x1xf32>
    %516 = vector.broadcast %515 : vector<32x1xf32> to vector<32x16xf32>
    %517 = arith.mulf %516, %513 : vector<32x16xf32>
    %518 = arith.addf %510, %517 : vector<32x16xf32>
    %c4_416 = arith.constant 4 : index
    %c0_417 = arith.constant 0 : index
    %c0_418 = arith.constant 0 : index
    %519 = vector.load %arg5[%c4_416, %c0_417, %c0_418] : memref<9x16x16xbf16, #tpu.memory_space<vmem>>, vector<1x16x16xbf16>
    %520 = vector.shape_cast %519 : vector<1x16x16xbf16> to vector<16x16xbf16>
    %cst_419 = arith.constant dense<0.000000e+00> : vector<32x16xf32>
    %521 = tpu.matmul %487, %520, %cst_419 {dimension_numbers = #tpu.dot_dimension_numbers<[1], [0], [0], [1], [0, 0, 1, 1], [], []>} : vector<32x16xbf16>, vector<16x16xbf16>, vector<32x16xf32> -> vector<32x16xf32>
    %c4_420 = arith.constant 4 : index
    %c0_421 = arith.constant 0 : index
    %c0_422 = arith.constant 0 : index
    %522 = vector.load %arg34[%c4_420, %c0_421, %c0_422] : memref<9x32x1xf32, #tpu.memory_space<vmem>>, vector<1x32x1xf32>
    %523 = vector.shape_cast %522 : vector<1x32x1xf32> to vector<32x1xf32>
    %524 = vector.broadcast %523 : vector<32x1xf32> to vector<32x16xf32>
    %525 = arith.mulf %524, %521 : vector<32x16xf32>
    %526 = arith.addf %518, %525 : vector<32x16xf32>
    %c5_423 = arith.constant 5 : index
    %c0_424 = arith.constant 0 : index
    %c0_425 = arith.constant 0 : index
    %527 = vector.load %arg5[%c5_423, %c0_424, %c0_425] : memref<9x16x16xbf16, #tpu.memory_space<vmem>>, vector<1x16x16xbf16>
    %528 = vector.shape_cast %527 : vector<1x16x16xbf16> to vector<16x16xbf16>
    %cst_426 = arith.constant dense<0.000000e+00> : vector<32x16xf32>
    %529 = tpu.matmul %487, %528, %cst_426 {dimension_numbers = #tpu.dot_dimension_numbers<[1], [0], [0], [1], [0, 0, 1, 1], [], []>} : vector<32x16xbf16>, vector<16x16xbf16>, vector<32x16xf32> -> vector<32x16xf32>
    %c5_427 = arith.constant 5 : index
    %c0_428 = arith.constant 0 : index
    %c0_429 = arith.constant 0 : index
    %530 = vector.load %arg34[%c5_427, %c0_428, %c0_429] : memref<9x32x1xf32, #tpu.memory_space<vmem>>, vector<1x32x1xf32>
    %531 = vector.shape_cast %530 : vector<1x32x1xf32> to vector<32x1xf32>
    %532 = vector.broadcast %531 : vector<32x1xf32> to vector<32x16xf32>
    %533 = arith.mulf %532, %529 : vector<32x16xf32>
    %534 = arith.addf %526, %533 : vector<32x16xf32>
    %c6_430 = arith.constant 6 : index
    %c0_431 = arith.constant 0 : index
    %c0_432 = arith.constant 0 : index
    %535 = vector.load %arg5[%c6_430, %c0_431, %c0_432] : memref<9x16x16xbf16, #tpu.memory_space<vmem>>, vector<1x16x16xbf16>
    %536 = vector.shape_cast %535 : vector<1x16x16xbf16> to vector<16x16xbf16>
    %cst_433 = arith.constant dense<0.000000e+00> : vector<32x16xf32>
    %537 = tpu.matmul %487, %536, %cst_433 {dimension_numbers = #tpu.dot_dimension_numbers<[1], [0], [0], [1], [0, 0, 1, 1], [], []>} : vector<32x16xbf16>, vector<16x16xbf16>, vector<32x16xf32> -> vector<32x16xf32>
    %c6_434 = arith.constant 6 : index
    %c0_435 = arith.constant 0 : index
    %c0_436 = arith.constant 0 : index
    %538 = vector.load %arg34[%c6_434, %c0_435, %c0_436] : memref<9x32x1xf32, #tpu.memory_space<vmem>>, vector<1x32x1xf32>
    %539 = vector.shape_cast %538 : vector<1x32x1xf32> to vector<32x1xf32>
    %540 = vector.broadcast %539 : vector<32x1xf32> to vector<32x16xf32>
    %541 = arith.mulf %540, %537 : vector<32x16xf32>
    %542 = arith.addf %534, %541 : vector<32x16xf32>
    %c7_437 = arith.constant 7 : index
    %c0_438 = arith.constant 0 : index
    %c0_439 = arith.constant 0 : index
    %543 = vector.load %arg5[%c7_437, %c0_438, %c0_439] : memref<9x16x16xbf16, #tpu.memory_space<vmem>>, vector<1x16x16xbf16>
    %544 = vector.shape_cast %543 : vector<1x16x16xbf16> to vector<16x16xbf16>
    %cst_440 = arith.constant dense<0.000000e+00> : vector<32x16xf32>
    %545 = tpu.matmul %487, %544, %cst_440 {dimension_numbers = #tpu.dot_dimension_numbers<[1], [0], [0], [1], [0, 0, 1, 1], [], []>} : vector<32x16xbf16>, vector<16x16xbf16>, vector<32x16xf32> -> vector<32x16xf32>
    %c7_441 = arith.constant 7 : index
    %c0_442 = arith.constant 0 : index
    %c0_443 = arith.constant 0 : index
    %546 = vector.load %arg34[%c7_441, %c0_442, %c0_443] : memref<9x32x1xf32, #tpu.memory_space<vmem>>, vector<1x32x1xf32>
    %547 = vector.shape_cast %546 : vector<1x32x1xf32> to vector<32x1xf32>
    %548 = vector.broadcast %547 : vector<32x1xf32> to vector<32x16xf32>
    %549 = arith.mulf %548, %545 : vector<32x16xf32>
    %550 = arith.addf %542, %549 : vector<32x16xf32>
    %c8_444 = arith.constant 8 : index
    %c0_445 = arith.constant 0 : index
    %c0_446 = arith.constant 0 : index
    %551 = vector.load %arg5[%c8_444, %c0_445, %c0_446] : memref<9x16x16xbf16, #tpu.memory_space<vmem>>, vector<1x16x16xbf16>
    %552 = vector.shape_cast %551 : vector<1x16x16xbf16> to vector<16x16xbf16>
    %cst_447 = arith.constant dense<0.000000e+00> : vector<32x16xf32>
    %553 = tpu.matmul %487, %552, %cst_447 {dimension_numbers = #tpu.dot_dimension_numbers<[1], [0], [0], [1], [0, 0, 1, 1], [], []>} : vector<32x16xbf16>, vector<16x16xbf16>, vector<32x16xf32> -> vector<32x16xf32>
    %c8_448 = arith.constant 8 : index
    %c0_449 = arith.constant 0 : index
    %c0_450 = arith.constant 0 : index
    %554 = vector.load %arg34[%c8_448, %c0_449, %c0_450] : memref<9x32x1xf32, #tpu.memory_space<vmem>>, vector<1x32x1xf32>
    %555 = vector.shape_cast %554 : vector<1x32x1xf32> to vector<32x1xf32>
    %556 = vector.broadcast %555 : vector<32x1xf32> to vector<32x16xf32>
    %557 = arith.mulf %556, %553 : vector<32x16xf32>
    %558 = arith.addf %550, %557 : vector<32x16xf32>
    %559 = vector.broadcast %472 : vector<32x1xf32> to vector<32x16xf32>
    %560 = arith.addf %558, %559 : vector<32x16xf32>
    %cst_451 = arith.constant dense<0.000000e+00> : vector<16x16xf32>
    %561 = tpu.matmul %473, %560, %cst_451 {dimension_numbers = #tpu.dot_dimension_numbers<[1], [0], [0], [1], [0, 0, 1, 1], [], []>} : vector<16x32xf32>, vector<32x16xf32>, vector<16x16xf32> -> vector<16x16xf32>
    %562 = vector.broadcast %474 : vector<16x1xf32> to vector<16x16xf32>
    %563 = arith.addf %561, %562 : vector<16x16xf32>
    %564 = arith.negf %563 : vector<16x16xf32>
    %565 = math.exp %564 : vector<16x16xf32>
    %cst_452 = arith.constant 1.000000e+00 : f32
    %566 = vector.broadcast %cst_452 : f32 to vector<16x16xf32>
    %567 = arith.addf %566, %565 : vector<16x16xf32>
    %568 = arith.divf %566, %567 : vector<16x16xf32>
    %569 = arith.mulf %563, %568 : vector<16x16xf32>
    %c0_453 = arith.constant 0 : index
    %c0_454 = arith.constant 0 : index
    %570 = vector.load %arg38[%c0_453, %c0_454] : memref<16x1xf32, #tpu.memory_space<vmem>>, vector<16x1xf32>
    %c0_455 = arith.constant 0 : index
    %c0_456 = arith.constant 0 : index
    %571 = vector.load %arg39[%c0_455, %c0_456] : memref<1x1xf32, #tpu.memory_space<vmem>>, vector<1x1xf32>
    %cst_457 = arith.constant dense<0.000000e+00> : vector<16xf32>
    %572 = vector.multi_reduction <add>, %569, %cst_457 [1] : vector<16x16xf32> to vector<16xf32>
    %573 = vector.shape_cast %572 : vector<16xf32> to vector<16x1xf32>
    %cst_458 = arith.constant 1.600000e+01 : f32
    %574 = vector.broadcast %cst_458 : f32 to vector<16x1xf32>
    %575 = arith.divf %573, %574 : vector<16x1xf32>
    %576 = arith.mulf %570, %575 : vector<16x1xf32>
    %cst_459 = arith.constant dense<0.000000e+00> : vector<1xf32>
    %577 = vector.multi_reduction <add>, %576, %cst_459 [0] : vector<16x1xf32> to vector<1xf32>
    %578 = vector.shape_cast %577 : vector<1xf32> to vector<1x1xf32>
    %579 = arith.addf %578, %571 : vector<1x1xf32>
    %580 = arith.negf %579 : vector<1x1xf32>
    %581 = math.exp %580 : vector<1x1xf32>
    %cst_460 = arith.constant 1.000000e+00 : f32
    %582 = vector.broadcast %cst_460 : f32 to vector<1x1xf32>
    %583 = arith.addf %582, %581 : vector<1x1xf32>
    %584 = arith.divf %582, %583 : vector<1x1xf32>
    %c0_461 = arith.constant 0 : index
    %c0_462 = arith.constant 0 : index
    %c0_463 = arith.constant 0 : index
    %585 = vector.load %arg40[%c0_461, %c0_462, %c0_463] : memref<1x1x1xf32, #tpu.memory_space<vmem>>, vector<1x1x1xf32>
    %586 = vector.shape_cast %585 : vector<1x1x1xf32> to vector<1x1xf32>
    %587 = vector.shape_cast %584 : vector<1x1xf32> to vector<1x1x1xf32>
    tpu.vector_store %arg40[%c0_461, %c0_462, %c0_463], %587 {strides = array<i32>} : memref<1x1x1xf32, #tpu.memory_space<vmem>>, vector<1x1x1xf32>,
    return
  }
  func.func @transform_0(%arg0: i32) -> (i32, i32, i32) {
    %c0_i32 = arith.constant 0 : i32
    %c0_i32_0 = arith.constant 0 : i32
    %c0_i32_1 = arith.constant 0 : i32
    return %arg0, %c0_i32, %c0_i32_0 : i32, i32, i32
  }
  func.func @transform_1(%arg0: i32) -> (i32, i32, i32) {
    %c0_i32 = arith.constant 0 : i32
    %c0_i32_0 = arith.constant 0 : i32
    %c0_i32_1 = arith.constant 0 : i32
    %c0_i32_2 = arith.constant 0 : i32
    return %c0_i32, %c0_i32_0, %c0_i32_1 : i32, i32, i32
  }
  func.func @transform_2(%arg0: i32) -> (i32, i32, i32) {
    %c0_i32 = arith.constant 0 : i32
    %c0_i32_0 = arith.constant 0 : i32
    %c0_i32_1 = arith.constant 0 : i32
    %c0_i32_2 = arith.constant 0 : i32
    return %c0_i32, %c0_i32_0, %c0_i32_1 : i32, i32, i32
  }
  func.func @transform_3(%arg0: i32) -> (i32, i32, i32) {
    %c0_i32 = arith.constant 0 : i32
    %c0_i32_0 = arith.constant 0 : i32
    %c0_i32_1 = arith.constant 0 : i32
    %c0_i32_2 = arith.constant 0 : i32
    return %c0_i32, %c0_i32_0, %c0_i32_1 : i32, i32, i32
  }
  func.func @transform_4(%arg0: i32) -> (i32, i32, i32) {
    %c0_i32 = arith.constant 0 : i32
    %c0_i32_0 = arith.constant 0 : i32
    %c0_i32_1 = arith.constant 0 : i32
    %c0_i32_2 = arith.constant 0 : i32
    return %c0_i32, %c0_i32_0, %c0_i32_1 : i32, i32, i32
  }
  func.func @transform_5(%arg0: i32) -> (i32, i32, i32) {
    %c0_i32 = arith.constant 0 : i32
    %c0_i32_0 = arith.constant 0 : i32
    %c0_i32_1 = arith.constant 0 : i32
    %c0_i32_2 = arith.constant 0 : i32
    return %c0_i32, %c0_i32_0, %c0_i32_1 : i32, i32, i32
  }
  func.func @transform_6(%arg0: i32) -> (i32, i32) {
    %c0_i32 = arith.constant 0 : i32
    %c0_i32_0 = arith.constant 0 : i32
    %c0_i32_1 = arith.constant 0 : i32
    return %c0_i32, %c0_i32_0 : i32, i32
  }
  func.func @transform_7(%arg0: i32) -> (i32, i32) {
    %c0_i32 = arith.constant 0 : i32
    %c0_i32_0 = arith.constant 0 : i32
    %c0_i32_1 = arith.constant 0 : i32
    return %c0_i32, %c0_i32_0 : i32, i32
  }
  func.func @transform_8(%arg0: i32) -> (i32, i32) {
    %c0_i32 = arith.constant 0 : i32
    %c0_i32_0 = arith.constant 0 : i32
    %c0_i32_1 = arith.constant 0 : i32
    return %c0_i32, %c0_i32_0 : i32, i32
  }
  func.func @transform_9(%arg0: i32) -> (i32, i32, i32) {
    %c0_i32 = arith.constant 0 : i32
    %c0_i32_0 = arith.constant 0 : i32
    %c0_i32_1 = arith.constant 0 : i32
    %c0_i32_2 = arith.constant 0 : i32
    return %c0_i32, %c0_i32_0, %c0_i32_1 : i32, i32, i32
  }
  func.func @transform_10(%arg0: i32) -> (i32, i32) {
    %c0_i32 = arith.constant 0 : i32
    %c0_i32_0 = arith.constant 0 : i32
    %c0_i32_1 = arith.constant 0 : i32
    return %c0_i32, %c0_i32_0 : i32, i32
  }
  func.func @transform_11(%arg0: i32) -> (i32, i32) {
    %c0_i32 = arith.constant 0 : i32
    %c0_i32_0 = arith.constant 0 : i32
    %c0_i32_1 = arith.constant 0 : i32
    return %c0_i32, %c0_i32_0 : i32, i32
  }
  func.func @transform_12(%arg0: i32) -> (i32, i32) {
    %c0_i32 = arith.constant 0 : i32
    %c0_i32_0 = arith.constant 0 : i32
    %c0_i32_1 = arith.constant 0 : i32
    return %c0_i32, %c0_i32_0 : i32, i32
  }
  func.func @transform_13(%arg0: i32) -> (i32, i32) {
    %c0_i32 = arith.constant 0 : i32
    %c0_i32_0 = arith.constant 0 : i32
    %c0_i32_1 = arith.constant 0 : i32
    return %c0_i32, %c0_i32_0 : i32, i32
  }
  func.func @transform_14(%arg0: i32) -> (i32, i32) {
    %c0_i32 = arith.constant 0 : i32
    %c0_i32_0 = arith.constant 0 : i32
    %c0_i32_1 = arith.constant 0 : i32
    return %c0_i32, %c0_i32_0 : i32, i32
  }
  func.func @transform_15(%arg0: i32) -> (i32, i32, i32) {
    %c0_i32 = arith.constant 0 : i32
    %c0_i32_0 = arith.constant 0 : i32
    %c0_i32_1 = arith.constant 0 : i32
    %c0_i32_2 = arith.constant 0 : i32
    return %c0_i32, %c0_i32_0, %c0_i32_1 : i32, i32, i32
  }
  func.func @transform_16(%arg0: i32) -> (i32, i32) {
    %c0_i32 = arith.constant 0 : i32
    %c0_i32_0 = arith.constant 0 : i32
    %c0_i32_1 = arith.constant 0 : i32
    return %c0_i32, %c0_i32_0 : i32, i32
  }
  func.func @transform_17(%arg0: i32) -> (i32, i32) {
    %c0_i32 = arith.constant 0 : i32
    %c0_i32_0 = arith.constant 0 : i32
    %c0_i32_1 = arith.constant 0 : i32
    return %c0_i32, %c0_i32_0 : i32, i32
  }
  func.func @transform_18(%arg0: i32) -> (i32, i32) {
    %c0_i32 = arith.constant 0 : i32
    %c0_i32_0 = arith.constant 0 : i32
    %c0_i32_1 = arith.constant 0 : i32
    return %c0_i32, %c0_i32_0 : i32, i32
  }
  func.func @transform_19(%arg0: i32) -> (i32, i32) {
    %c0_i32 = arith.constant 0 : i32
    %c0_i32_0 = arith.constant 0 : i32
    %c0_i32_1 = arith.constant 0 : i32
    return %c0_i32, %c0_i32_0 : i32, i32
  }
  func.func @transform_20(%arg0: i32) -> (i32, i32) {
    %c0_i32 = arith.constant 0 : i32
    %c0_i32_0 = arith.constant 0 : i32
    %c0_i32_1 = arith.constant 0 : i32
    return %c0_i32, %c0_i32_0 : i32, i32
  }
  func.func @transform_21(%arg0: i32) -> (i32, i32, i32) {
    %c0_i32 = arith.constant 0 : i32
    %c0_i32_0 = arith.constant 0 : i32
    %c0_i32_1 = arith.constant 0 : i32
    %c0_i32_2 = arith.constant 0 : i32
    return %c0_i32, %c0_i32_0, %c0_i32_1 : i32, i32, i32
  }
  func.func @transform_22(%arg0: i32) -> (i32, i32) {
    %c0_i32 = arith.constant 0 : i32
    %c0_i32_0 = arith.constant 0 : i32
    %c0_i32_1 = arith.constant 0 : i32
    return %c0_i32, %c0_i32_0 : i32, i32
  }
  func.func @transform_23(%arg0: i32) -> (i32, i32) {
    %c0_i32 = arith.constant 0 : i32
    %c0_i32_0 = arith.constant 0 : i32
    %c0_i32_1 = arith.constant 0 : i32
    return %c0_i32, %c0_i32_0 : i32, i32
  }
  func.func @transform_24(%arg0: i32) -> (i32, i32) {
    %c0_i32 = arith.constant 0 : i32
    %c0_i32_0 = arith.constant 0 : i32
    %c0_i32_1 = arith.constant 0 : i32
    return %c0_i32, %c0_i32_0 : i32, i32
  }
  func.func @transform_25(%arg0: i32) -> (i32, i32) {
    %c0_i32 = arith.constant 0 : i32
    %c0_i32_0 = arith.constant 0 : i32
    %c0_i32_1 = arith.constant 0 : i32
    return %c0_i32, %c0_i32_0 : i32, i32
  }
  func.func @transform_26(%arg0: i32) -> (i32, i32) {
    %c0_i32 = arith.constant 0 : i32
    %c0_i32_0 = arith.constant 0 : i32
    %c0_i32_1 = arith.constant 0 : i32
    return %c0_i32, %c0_i32_0 : i32, i32
  }
  func.func @transform_27(%arg0: i32) -> (i32, i32, i32) {
    %c0_i32 = arith.constant 0 : i32
    %c0_i32_0 = arith.constant 0 : i32
    %c0_i32_1 = arith.constant 0 : i32
    %c0_i32_2 = arith.constant 0 : i32
    return %c0_i32, %c0_i32_0, %c0_i32_1 : i32, i32, i32
  }
  func.func @transform_28(%arg0: i32) -> (i32, i32) {
    %c0_i32 = arith.constant 0 : i32
    %c0_i32_0 = arith.constant 0 : i32
    %c0_i32_1 = arith.constant 0 : i32
    return %c0_i32, %c0_i32_0 : i32, i32
  }
  func.func @transform_29(%arg0: i32) -> (i32, i32) {
    %c0_i32 = arith.constant 0 : i32
    %c0_i32_0 = arith.constant 0 : i32
    %c0_i32_1 = arith.constant 0 : i32
    return %c0_i32, %c0_i32_0 : i32, i32
  }
  func.func @transform_30(%arg0: i32) -> (i32, i32) {
    %c0_i32 = arith.constant 0 : i32
    %c0_i32_0 = arith.constant 0 : i32
    %c0_i32_1 = arith.constant 0 : i32
    return %c0_i32, %c0_i32_0 : i32, i32
  }
  func.func @transform_31(%arg0: i32) -> (i32, i32) {
    %c0_i32 = arith.constant 0 : i32
    %c0_i32_0 = arith.constant 0 : i32
    %c0_i32_1 = arith.constant 0 : i32
    return %c0_i32, %c0_i32_0 : i32, i32
  }
  func.func @transform_32(%arg0: i32) -> (i32, i32) {
    %c0_i32 = arith.constant 0 : i32
    %c0_i32_0 = arith.constant 0 : i32
    %c0_i32_1 = arith.constant 0 : i32
    return %c0_i32, %c0_i32_0 : i32, i32
  }
  func.func @transform_33(%arg0: i32) -> (i32, i32, i32) {
    %c0_i32 = arith.constant 0 : i32
    %c0_i32_0 = arith.constant 0 : i32
    %c0_i32_1 = arith.constant 0 : i32
    %c0_i32_2 = arith.constant 0 : i32
    return %c0_i32, %c0_i32_0, %c0_i32_1 : i32, i32, i32
  }
  func.func @transform_34(%arg0: i32) -> (i32, i32) {
    %c0_i32 = arith.constant 0 : i32
    %c0_i32_0 = arith.constant 0 : i32
    %c0_i32_1 = arith.constant 0 : i32
    return %c0_i32, %c0_i32_0 : i32, i32
  }
  func.func @transform_35(%arg0: i32) -> (i32, i32) {
    %c0_i32 = arith.constant 0 : i32
    %c0_i32_0 = arith.constant 0 : i32
    %c0_i32_1 = arith.constant 0 : i32
    return %c0_i32, %c0_i32_0 : i32, i32
  }
  func.func @transform_36(%arg0: i32) -> (i32, i32) {
    %c0_i32 = arith.constant 0 : i32
    %c0_i32_0 = arith.constant 0 : i32
    %c0_i32_1 = arith.constant 0 : i32
    return %c0_i32, %c0_i32_0 : i32, i32
  }
  func.func @transform_37(%arg0: i32) -> (i32, i32) {
    %c0_i32 = arith.constant 0 : i32
    %c0_i32_0 = arith.constant 0 : i32
    %c0_i32_1 = arith.constant 0 : i32
    return %c0_i32, %c0_i32_0 : i32, i32
  }
  func.func @transform_38(%arg0: i32) -> (i32, i32) {
    %c0_i32 = arith.constant 0 : i32
    %c0_i32_0 = arith.constant 0 : i32
    %c0_i32_1 = arith.constant 0 : i32
    return %c0_i32, %c0_i32_0 : i32, i32
  }
  func.func @transform_39(%arg0: i32) -> (i32, i32, i32) {
    %c0_i32 = arith.constant 0 : i32
    %c0_i32_0 = arith.constant 0 : i32
    %c0_i32_1 = arith.constant 0 : i32
    return %arg0, %c0_i32, %c0_i32_0 : i32, i32, i32
  }
}

</mosaic_0001>

<bundles_post_ra>
// kernel: _lambda_.1
= control target key start
LH: loop header
LB: loop body
LE: loop exit
PB: predicated region body
PF: predicated region fallthrough
CT: control target
= control target key end

     0   :  { %s13521_s6 = smov 1   ;;  %s13522_s10 = smov 2   ;;  %s15264_s0 = inlined_call_operand.smem [shape: u32[40], index: -1, kind: input, shape index: {}] }
   0x1   :  { %s13570_s5 = sld [smem:[%s15264_s0]]   ;;  %s13523_s14 = smov 3  }
   0x2   :  { %s13575_s9 = sld [smem:[%s15264_s0 + %s13521_s6]]   ;;  %s13524_s18 = smov 4  }
   0x3   :  { %s13580_s13 = sld [smem:[%s15264_s0 + %s13522_s10]]   ;;  %s13525_s22 = smov 5  }
   0x4   :  { %s13585_s17 = sld [smem:[%s15264_s0 + %s13523_s14]]   ;;  %s13526_s26 = smov 6  }
   0x5   :  { %s13590_s21 = sld [smem:[%s15264_s0 + %s13524_s18]]   ;;  %s13527_s30 = smov 7  }
   0x6   :  { %s13595_s25 = sld [smem:[%s15264_s0 + %s13525_s22]]   ;;  %s13528_s4 = smov 8  }
   0x7   :  { %s13600_s29 = sld [smem:[%s15264_s0 + %s13526_s26]]   ;;  %s13529_s10 = smov 9  }
   0x8   :  { %s13605_s3 = sld [smem:[%s15264_s0 + %s13527_s30]]   ;;  %s13530_s15 = smov 10  }
   0x9   :  { %15298 = sst [smem:[#allocation3_spill]] %s13580_s13  ;;  %s13531_s20 = smov 11  }
   0xa   :  { %15299 = sst [smem:[#allocation4_spill]] %s13585_s17  ;;  %s13532_s26 = smov 12  }
   0xb   :  { %15300 = sst [smem:[#allocation5_spill]] %s13590_s21  ;;  %s13533_s1 = smov 13  }
   0xc   :  { %s13610_s8 = sld [smem:[%s15264_s0 + %s13528_s4]]   ;;  %s13534_s7 = smov 14  }
   0xd   :  { %s13615_s14 = sld [smem:[%s15264_s0 + %s13529_s10]]   ;;  %s13536_s22 = smov 16  }
   0xe   :  { %15301 = sst [smem:[#allocation6_spill]] %s13605_s3  ;;  %s13537_s28 = smov 17  }
   0xf   :  { %s13620_s19 = sld [smem:[%s15264_s0 + %s13530_s15]]   ;;  %s13535_s15 = smov 15  }
  0x10   :  { %s13625_s24 = sld [smem:[%s15264_s0 + %s13531_s20]]   ;;  %s13559_s16 = smov 39  }
  0x11   :  { %s13630_s30 = sld [smem:[%s15264_s0 + %s13532_s26]]  }
  0x12   :  { %s13635_s6 = sld [smem:[%s15264_s0 + %s13533_s1]]  }
  0x13   :  { %s13640_s12 = sld [smem:[%s15264_s0 + %s13534_s7]]   ;;  %s13538_s7 = smov 18  }
  0x14   :  { %s13645_s20 = sld [smem:[%s15264_s0 + %s13535_s15]]   ;;  %s13539_s15 = smov 19  }
  0x15   :  { %s13650_s27 = sld [smem:[%s15264_s0 + %s13536_s22]]   ;;  %s13540_s22 = smov 20  }
  0x16   :  { %15302 = sst [smem:[#allocation7_spill]] %s13625_s24 }
  0x17   :  { %s13655_s4 = sld [smem:[%s15264_s0 + %s13537_s28]]   ;;  %s13541_s28 = smov 21  }
  0x18   :  { %15303 = sst [smem:[#allocation8_spill]] %s13635_s6 }
  0x19   :  { %s13660_s21 = sld [smem:[%s15264_s0 + %s13538_s7]]   ;;  %s13542_s7 = smov 22  }
  0x1a   :  { %s13665_s17 = sld [smem:[%s15264_s0 + %s13539_s15]]   ;;  %s13543_s15 = smov 23  }
  0x1b   :  { %s13670_s6 = sld [smem:[%s15264_s0 + %s13540_s22]]   ;;  %s13544_s22 = smov 24  }
  0x1c   :  { %s13680_s24 = sld [smem:[%s15264_s0 + %s13542_s7]]   ;;  %s13546_s7 = smov 26  }
  0x1d   :  { %15304 = sst [smem:[#allocation9_spill]] %s13655_s4 }
  0x1e   :  { %s13675_s4 = sld [smem:[%s15264_s0 + %s13541_s28]]   ;;  %s13545_s28 = smov 25  }
  0x1f   :  { %s13690_s13 = sld [smem:[%s15264_s0 + %s13544_s22]]   ;;  %s13548_s22 = smov 28  }
  0x20   :  { %15305 = sst [smem:[#allocation10_spill]] %s13665_s17 }
  0x21   :  { %s13685_s17 = sld [smem:[%s15264_s0 + %s13543_s15]]   ;;  %s13547_s15 = smov 27  }
  0x22   :  { %15306 = sst [smem:[#allocation11_spill]] %s13680_s24 }
  0x23   :  { %s13695_s3 = sld [smem:[%s15264_s0 + %s13545_s28]]   ;;  %s13549_s28 = smov 29  }
  0x24   :  { %s13700_s24 = sld [smem:[%s15264_s0 + %s13546_s7]]   ;;  %s13550_s7 = smov 30  }
  0x25   :  { %15308 = sst [smem:[#allocation13_spill]] %s13690_s13 }
  0x26   :  { %s13710_s13 = sld [smem:[%s15264_s0 + %s13548_s22]]   ;;  %s13552_s22 = smov 32  }
  0x27   :  { %15307 = sst [smem:[#allocation12_spill]] %s13685_s17 }
  0x28   :  { %s13705_s17 = sld [smem:[%s15264_s0 + %s13547_s15]]   ;;  %s13551_s15 = smov 31  }
  0x29   :  { %15309 = sst [smem:[#allocation14_spill]] %s13695_s3 }
  0x2a   :  { %15310 = sst [smem:[#allocation15_spill]] %s13700_s24 }
  0x2b   :  { %s13715_s3 = sld [smem:[%s15264_s0 + %s13549_s28]]   ;;  %s13553_s28 = smov 33  }
  0x2c   :  { %15312 = sst [smem:[#allocation17_spill]] %s13710_s13 }
  0x2d   :  { %s13720_s24 = sld [smem:[%s15264_s0 + %s13550_s7]]   ;;  %s13554_s7 = smov 34  }
  0x2e   :  { %15311 = sst [smem:[#allocation16_spill]] %s13705_s17 }
  0x2f   :  { %s13725_s17 = sld [smem:[%s15264_s0 + %s13551_s15]]   ;;  %s13555_s15 = smov 35  }
  0x30   :  { %s13730_s13 = sld [smem:[%s15264_s0 + %s13552_s22]]   ;;  %s13556_s22 = smov 36  }
  0x31   :  { %15313 = sst [smem:[#allocation18_spill]] %s13715_s3 }
  0x32   :  { %s13735_s3 = sld [smem:[%s15264_s0 + %s13553_s28]]   ;;  %s13557_s28 = smov 37  }
  0x33   :  { %15314 = sst [smem:[#allocation19_spill]] %s13720_s24 }
  0x34   :  { %s13740_s24 = sld [smem:[%s15264_s0 + %s13554_s7]]   ;;  %s13558_s7 = smov 38  }
  0x35   :  { %15315 = sst [smem:[#allocation20_spill]] %s13725_s17 }
  0x36   :  { %15316 = sst [smem:[#allocation21_spill]] %s13730_s13 }
  0x37   :  { %s13745_s17 = sld [smem:[%s15264_s0 + %s13555_s15]]  }
  0x38   :  { %15317 = sst [smem:[#allocation22_spill]] %s13735_s3 }
  0x39   :  { %s13750_s13 = sld [smem:[%s15264_s0 + %s13556_s22]]   ;;  %s13765_s22 = smov 0  }
  0x3a   :  { %15318 = sst [smem:[#allocation23_spill]] %s13740_s24 }
  0x3b   :  { %s13755_s3 = sld [smem:[%s15264_s0 + %s13557_s28]]  }
  0x3c   :  { %s10506_s24 = sld [smem:[%s15264_s0 + %s13558_s7]]  }
  0x3d   :  { %15319 = sst [smem:[#allocation24_spill]] %s13745_s17 }
  0x3e   :  { %s13763_s17 = sld [smem:[%s15264_s0 + %s13559_s16]]  }
  0x42   :  { %v84_v0 = vstv %s10506_s24 }
  0x43   :  { %85 = vst [vmem:[#allocation2] sm:$0x1] %v84_v0 }
  0x44 LB: > { %s10508_s23 = sadd.s32 4294967295, %s13519_s22   ;;  %p10512_p0 = scmp.ge.s32.totalorder %s13519_s22, 1  ;;  %s13519_s22 = sphi %s13765_s22, %s91_s22  }
  0x45   : > { %p1079_p1 = scmp.lt.s32.totalorder %s13519_s22, 3 }
  0x47   : > { %p1080_p2 = pnand %p10512_p0, %p1079_p1 }
  0x49   : > { %1083 = sbr.rel (%p1080_p2) target bundleno = 5663 (0x161f), region = 176 }
  0x50   : > { %v12770_v1 = vld [vmem:[%s13575_s9 + $0x104] ss:$8 sps:$4 sm:$0xff]   ;;  %v12772_v2 = vld [vmem:[%s13575_s9 + $0x100] ss:$8 sps:$4 sm:$0xff]   ;;  %v12773_v3 = vld [vmem:[%s13575_s9 + $0x114] ss:$8 sps:$4 sm:$0xff]  }
  0x51   : > { %1618 = vmatprep.subr.bf16.mxu1 %v12770_v1  ;;  %v12775_v4 = vld [vmem:[%s13575_s9 + $0x110] ss:$8 sps:$4 sm:$0xff]   ;;  %v12776_v5 = vld [vmem:[%s13575_s9 + $0x124] ss:$8 sps:$4 sm:$0xff]   ;;  %v12778_v6 = vld [vmem:[%s13575_s9 + $0x120] ss:$8 sps:$4 sm:$0xff]  }
  0x52   : > { %1619 = vmatpush1.bf16.msra.mxu1 %v12772_v2  ;;  %v12779_v7 = vld [vmem:[%s13575_s9 + $0x134] ss:$8 sps:$4 sm:$0xff]   ;;  %p1173_p3 = scmp.lt.s32.totalorder %s10508_s23, 1  ;;  %v12781_v8 = vld [vmem:[%s13575_s9 + $0x130] ss:$8 sps:$4 sm:$0xff]   ;;  %vm1663_vm0 = vcmask 130048  }
  0x53   : > { %1620 = vmatprep.subr.bf16.mxu1 %v12773_v3  ;;  %v12782_v9 = vld [vmem:[%s13575_s9 + $0x144] ss:$8 sps:$4 sm:$0xff]   ;;  %v12784_v10 = vld [vmem:[%s13575_s9 + $0x140] ss:$8 sps:$4 sm:$0xff]   ;;  %v12785_v11 = vld [vmem:[%s13575_s9 + $0x154] ss:$8 sps:$4 sm:$0xff]  }
  0x54   : > { %s15472_s23 = smov (!%p1173_p3, %s10508_s23), 1  ;;  %v12787_v12 = vld [vmem:[%s13575_s9 + $0x150] ss:$8 sps:$4 sm:$0xff]   ;;  %v12811_v13 = vld [vmem:[%s13575_s9 + $0x4] ss:$8 sps:$4 sm:$0xff]   ;;  %s15320_s26 = sld [smem:[#allocation11_spill]] }
  0x55   : > { %s11873_s0 = sshll.u32 %s15472_s23, 5  ;;  %v12814_v14 = vld [vmem:[%s13575_s9] ss:$8 sps:$4 sm:$0xff]   ;;  %v12788_v15 = vld [vmem:[%s13575_s9 + $0x164] ss:$8 sps:$4 sm:$0xff]   ;;  %1381 = vmatprep.subr.bf16.mxu0 %v12811_v13  ;;  %s15321_s28 = sld [smem:[#allocation13_spill]] }
  0x56   : > { %1621 = vmatpush1.bf16.msra.mxu1 %v12775_v4  ;;  %v12817_v16 = vld [vmem:[%s13575_s9 + $0x14] ss:$8 sps:$4 sm:$0xff]   ;;  %1382 = vmatpush1.bf16.msra.mxu0 %v12814_v14  ;;  %v12820_v17 = vld [vmem:[%s13575_s9 + $0x10] ss:$8 sps:$4 sm:$0xff]   ;;  %s13794_s24 = scalar_lea.vmem %s13570_s5, %s11873_s0  ;;  %v12790_v18 = vld [vmem:[%s13575_s9 + $0x160] ss:$8 sps:$4 sm:$0xff]  }
  0x57   : > { %1622 = vmatprep.subr.bf16.mxu1 %v12776_v5  ;;  %1383 = vmatprep.subr.bf16.mxu0 %v12817_v16  ;;  %v12791_v19 = vld [vmem:[%s13575_s9 + $0x174] ss:$8 sps:$4 sm:$0xff]   ;;  %v12823_v20 = vld [vmem:[%s13575_s9 + $0x24] ss:$8 sps:$4 sm:$0xff]   ;;  %v12826_v23 = vld [vmem:[%s13575_s9 + $0x20] ss:$8 sps:$4 sm:$0xff]  }
  0x58   : > { %v1183_v21 = vld [vmem:[%s13794_s24 + $0x8] sm:$0xff]  ;;  %v1185_v22 = vld [vmem:[%s13794_s24 + $0x18] sm:$0xff]  ;;  %v1182_v57 = vld [vmem:[%s13794_s24] sm:$0xff]  ;;  %s15322_s1 = sld [smem:[#allocation15_spill]]  ;;  %s15323_s2 = sld [smem:[#allocation16_spill]]  ;;  %vm4044_vm1 = vcmask 64512  }
  0x59   : > { %v13802_v24 = vpack.c.bf16 %v1185_v22, %v1183_v21  ;;  %v12793_v25 = vld [vmem:[%s13575_s9 + $0x170] ss:$8 sps:$4 sm:$0xff]   ;;  %v12794_v26 = vld [vmem:[%s13575_s9 + $0x184] ss:$8 sps:$4 sm:$0xff]   ;;  %v12830_v27 = vld [vmem:[%s13575_s9 + $0x34] ss:$8 sps:$4 sm:$0xff]  }
  0x5a   : > { %1623 = vmatpush1.bf16.msra.mxu1 %v12778_v6  ;;  %1384 = vmatpush1.bf16.msra.mxu0 %v12820_v17  ;;  %v12832_v28 = vld [vmem:[%s13575_s9 + $0x30] ss:$8 sps:$4 sm:$0xff]   ;;  %v12796_v29 = vld [vmem:[%s13575_s9 + $0x180] ss:$8 sps:$4 sm:$0xff]   ;;  %v12836_v30 = vld [vmem:[%s13575_s9 + $0x44] ss:$8 sps:$4 sm:$0xff]  }
  0x5b   : > { %1624 = vmatprep.subr.bf16.mxu1 %v12779_v7  ;;  %1385 = vmatprep.subr.bf16.mxu0 %v12823_v20  ;;  %v12797_v31 = vld [vmem:[%s13575_s9 + $0x194] ss:$8 sps:$4 sm:$0xff]   ;;  %v12838_v32 = vld [vmem:[%s13575_s9 + $0x40] ss:$8 sps:$4 sm:$0xff]   ;;  %v12799_v33 = vld [vmem:[%s13575_s9 + $0x190] ss:$8 sps:$4 sm:$0xff]  }
  0x5c   : > { %1650 = vmatprep.mubr.bf16.mxu1 %v13802_v24  ;;  %1413 = vmatprep.mubr.bf16.mxu0 %v13802_v24  ;;  %v12842_v34 = vld [vmem:[%s13575_s9 + $0x54] ss:$8 sps:$4 sm:$0xff]   ;;  %v12800_v35 = vld [vmem:[%s13575_s9 + $0x1a4] ss:$8 sps:$4 sm:$0xff]   ;;  %v12844_v36 = vld [vmem:[%s13575_s9 + $0x50] ss:$8 sps:$4 sm:$0xff]  }
  0x5d   : > { %v12802_v37 = vld [vmem:[%s13575_s9 + $0x1a0] ss:$8 sps:$4 sm:$0xff]   ;;  %v12848_v38 = vld [vmem:[%s13575_s9 + $0x64] ss:$8 sps:$4 sm:$0xff]   ;;  %v12803_v39 = vld [vmem:[%s13575_s9 + $0x1b4] ss:$8 sps:$4 sm:$0xff]  }
  0x5e   : > { %1625 = vmatpush1.bf16.msra.mxu1 %v12781_v8  ;;  %1386 = vmatpush1.bf16.msra.mxu0 %v12826_v23  ;;  %v12850_v40 = vld [vmem:[%s13575_s9 + $0x60] ss:$8 sps:$4 sm:$0xff]   ;;  %v12805_v41 = vld [vmem:[%s13575_s9 + $0x1b0] ss:$8 sps:$4 sm:$0xff]   ;;  %v12854_v42 = vld [vmem:[%s13575_s9 + $0x74] ss:$8 sps:$4 sm:$0xff]  }
  0x5f   : > { %1626 = vmatprep.subr.bf16.mxu1 %v12782_v9  ;;  %1387 = vmatprep.subr.bf16.mxu0 %v12830_v27  ;;  %v12806_v43 = vld [vmem:[%s13575_s9 + $0x1c4] ss:$8 sps:$4 sm:$0xff]   ;;  %v12856_v44 = vld [vmem:[%s13575_s9 + $0x70] ss:$8 sps:$4 sm:$0xff]   ;;  %v12808_v45 = vld [vmem:[%s13575_s9 + $0x1c0] ss:$8 sps:$4 sm:$0xff]  }
  0x60   : > { %v12860_v46 = vld [vmem:[%s13575_s9 + $0x84] ss:$8 sps:$4 sm:$0xff]   ;;  %v12809_v47 = vld [vmem:[%s13575_s9 + $0x1d4] ss:$8 sps:$4 sm:$0xff]   ;;  %v12862_v48 = vld [vmem:[%s13575_s9 + $0x80] ss:$8 sps:$4 sm:$0xff]  }
  0x61   : > { %v12813_v49 = vld [vmem:[%s13575_s9 + $0x1d0] ss:$8 sps:$4 sm:$0xff]   ;;  %v12866_v50 = vld [vmem:[%s13575_s9 + $0x94] ss:$8 sps:$4 sm:$0xff]   ;;  %v12815_v51 = vld [vmem:[%s13575_s9 + $0x1e4] ss:$8 sps:$4 sm:$0xff]  }
  0x62   : > { %1627 = vmatpush1.bf16.msra.mxu1 %v12784_v10  ;;  %1388 = vmatpush1.bf16.msra.mxu0 %v12832_v28  ;;  %v12868_v52 = vld [vmem:[%s13575_s9 + $0x90] ss:$8 sps:$4 sm:$0xff]   ;;  %v12819_v53 = vld [vmem:[%s13575_s9 + $0x1e0] ss:$8 sps:$4 sm:$0xff]   ;;  %v12872_v54 = vld [vmem:[%s13575_s9 + $0xa4] ss:$8 sps:$4 sm:$0xff]  }
  0x63   : > { %1628 = vmatprep.subr.bf16.mxu1 %v12785_v11  ;;  %1389 = vmatprep.subr.bf16.mxu0 %v12836_v30  ;;  %v12821_v55 = vld [vmem:[%s13575_s9 + $0x1f4] ss:$8 sps:$4 sm:$0xff]   ;;  %v12825_v56 = vld [vmem:[%s13575_s9 + $0x1f0] ss:$8 sps:$4 sm:$0xff]   ;;  %v12874_v58 = vld [vmem:[%s13575_s9 + $0xa0] ss:$8 sps:$4 sm:$0xff]  }
  0x64   : > { %v1184_v59 = vld [vmem:[%s13794_s24 + $0x10] sm:$0xff]  ;;  %v12829_v61 = vld [vmem:[%s13575_s9 + $0x204] ss:$8 sps:$4 sm:$0xff]   ;;  %v12827_v63 = vld [vmem:[%s13575_s9 + $0x200] ss:$8 sps:$4 sm:$0xff]   ;;  %s15333_s7 = sld [smem:[#allocation17_spill]] }
  0x65   : > { %v12878_v60 = vld [vmem:[%s13575_s9 + $0xb4] ss:$8 sps:$4 sm:$0xff]   ;;  %v13843_v62 = vpack.c.bf16 %v1184_v59, %v1182_v57  ;;  %v12880_v0 = vld [vmem:[%s13575_s9 + $0xb0] ss:$8 sps:$4 sm:$0xff]   ;;  %v12884_v2 = vld [vmem:[%s13575_s9 + $0xc4] ss:$8 sps:$4 sm:$0xff]  }
  0x66   : > { %1629 = vmatpush1.bf16.msra.mxu1 %v12787_v12  ;;  %1390 = vmatpush1.bf16.msra.mxu0 %v12838_v32  ;;  %v12835_v1 = vld [vmem:[%s13575_s9 + $0x214] ss:$8 sps:$4 sm:$0xff]   ;;  %v12886_v3 = vld [vmem:[%s13575_s9 + $0xc0] ss:$8 sps:$4 sm:$0xff]   ;;  %v12833_v4 = vld [vmem:[%s13575_s9 + $0x210] ss:$8 sps:$4 sm:$0xff]  }
  0x67   : > { %1630 = vmatprep.subr.bf16.mxu1 %v12788_v15  ;;  %1391 = vmatprep.subr.bf16.mxu0 %v12842_v34  ;;  %v12890_v5 = vld [vmem:[%s13575_s9 + $0xd4] ss:$8 sps:$4 sm:$0xff]   ;;  %v12841_v6 = vld [vmem:[%s13575_s9 + $0x224] ss:$8 sps:$4 sm:$0xff]   ;;  %v12892_v7 = vld [vmem:[%s13575_s9 + $0xd0] ss:$8 sps:$4 sm:$0xff]  }
  0x68   : > { %v12839_v8 = vld [vmem:[%s13575_s9 + $0x220] ss:$8 sps:$4 sm:$0xff]   ;;  %v12896_v9 = vld [vmem:[%s13575_s9 + $0xe4] ss:$8 sps:$4 sm:$0xff]   ;;  %v12847_v10 = vld [vmem:[%s13575_s9 + $0x234] ss:$8 sps:$4 sm:$0xff]  }
  0x69   : > { %v12898_v11 = vld [vmem:[%s13575_s9 + $0xe0] ss:$8 sps:$4 sm:$0xff]   ;;  %v12845_v12 = vld [vmem:[%s13575_s9 + $0x230] ss:$8 sps:$4 sm:$0xff]   ;;  %v12902_v13 = vld [vmem:[%s13575_s9 + $0xf4] ss:$8 sps:$4 sm:$0xff]  }
  0x6a   : > { %1631 = vmatpush1.bf16.msra.mxu1 %v12790_v18  ;;  %1392 = vmatpush1.bf16.msra.mxu0 %v12844_v36  ;;  %v12853_v14 = vld [vmem:[%s13575_s9 + $0x244] ss:$8 sps:$4 sm:$0xff]   ;;  %v12904_v15 = vld [vmem:[%s13575_s9 + $0xf0] ss:$8 sps:$4 sm:$0xff]   ;;  %v12851_v16 = vld [vmem:[%s13575_s9 + $0x240] ss:$8 sps:$4 sm:$0xff]  }
  0x6b   : > { %1632 = vmatprep.subr.bf16.mxu1 %v12791_v19  ;;  %1393 = vmatprep.subr.bf16.mxu0 %v12848_v38  ;;  %v12859_v17 = vld [vmem:[%s13575_s9 + $0x254] ss:$8 sps:$4 sm:$0xff]   ;;  %v12857_v18 = vld [vmem:[%s13575_s9 + $0x250] ss:$8 sps:$4 sm:$0xff]   ;;  %v12865_v19 = vld [vmem:[%s13575_s9 + $0x264] ss:$8 sps:$4 sm:$0xff]  }
  0x6c   : > { %v12863_v20 = vld [vmem:[%s13575_s9 + $0x260] ss:$8 sps:$4 sm:$0xff]   ;;  %v12871_v21 = vld [vmem:[%s13575_s9 + $0x274] ss:$8 sps:$4 sm:$0xff]   ;;  %v12869_v22 = vld [vmem:[%s13575_s9 + $0x270] ss:$8 sps:$4 sm:$0xff]  }
  0x6d   : > { %v12877_v23 = vld [vmem:[%s13575_s9 + $0x284] ss:$8 sps:$4 sm:$0xff]   ;;  %v12881_v27 = vld [vmem:[%s13575_s9 + $0x290] ss:$8 sps:$4 sm:$0xff]   ;;  %v12895_v30 = vld [vmem:[%s13575_s9 + $0x2b4] ss:$8 sps:$4 sm:$0xff]  }
  0x6e   : > { %1633 = vmatpush1.bf16.msra.mxu1 %v12793_v25  ;;  %1394 = vmatpush1.bf16.msra.mxu0 %v12850_v40  ;;  %v12875_v25 = vld [vmem:[%s13575_s9 + $0x280] ss:$8 sps:$4 sm:$0xff]   ;;  %v12889_v28 = vld [vmem:[%s13575_s9 + $0x2a4] ss:$8 sps:$4 sm:$0xff]   ;;  %v12907_v34 = vld [vmem:[%s13575_s9 + $0x2d4] ss:$8 sps:$4 sm:$0xff]  }
  0x6f   : > { %1634 = vmatprep.subr.bf16.mxu1 %v12794_v26  ;;  %1395 = vmatprep.subr.bf16.mxu0 %v12854_v42  ;;  %v12883_v26 = vld [vmem:[%s13575_s9 + $0x294] ss:$8 sps:$4 sm:$0xff]   ;;  %v12901_v32 = vld [vmem:[%s13575_s9 + $0x2c4] ss:$8 sps:$4 sm:$0xff]   ;;  %v15286_v40 = vmov 0.0   ;;  %s15337_s10 = sld [smem:[#allocation19_spill]] }
  0x70   : > { %v12910_v36 = vld [vmem:[%s13575_s9 + $0x2e4] ss:$8 sps:$4 sm:$0xff]   ;;  %v12913_v38 = vld [vmem:[%s13575_s9 + $0x2f4] ss:$8 sps:$4 sm:$0xff]   ;;  %v12968_v57 = vld [vmem:[%s13575_s9 + $0x480] ss:$8 sps:$4 sm:$0xff]  }
  0x71   : > { %v12922_v42 = vld [vmem:[%s13575_s9 + $0x404] ss:$8 sps:$4 sm:$0xff]   ;;  %v12974_v59 = vld [vmem:[%s13575_s9 + $0x490] ss:$8 sps:$4 sm:$0xff]   ;;  %s15339_s11 = sld [smem:[#allocation21_spill]]  ;;  %s15340_s16 = sld [smem:[#allocation22_spill]] }
  0x72   : > { %1635 = vmatpush1.bf16.msra.mxu1 %v12796_v29  ;;  %1396 = vmatpush1.bf16.msra.mxu0 %v12856_v44  ;;  %v12887_v29 = vld [vmem:[%s13575_s9 + $0x2a0] ss:$8 sps:$4 sm:$0xff]   ;;  %v12928_v44 = vld [vmem:[%s13575_s9 + $0x414] ss:$8 sps:$4 sm:$0xff]   ;;  %s15352_s15 = sld [smem:[#allocation23_spill]]  ;;  %s15362_s18 = sld [smem:[#allocation6_spill]] }
  0x73   : > { %1636 = vmatprep.subr.bf16.mxu1 %v12797_v31  ;;  %1397 = vmatprep.subr.bf16.mxu0 %v12860_v46  ;;  %v12893_v31 = vld [vmem:[%s13575_s9 + $0x2b0] ss:$8 sps:$4 sm:$0xff]   ;;  %v12934_v46 = vld [vmem:[%s13575_s9 + $0x424] ss:$8 sps:$4 sm:$0xff]   ;;  %s15363_s0 = sld [smem:[#allocation3_spill]]  ;;  %s15397_s24 = sld [smem:[#allocation7_spill]] }
  0x74   : > { %vm6086_vm2 = vcmask 523264   ;;  %vm7134_vm3 = vcmask 261120   ;;  %vm10403_vm4 = vcmask 7168   ;;  %vm10420_vm5 = vcmask 0  }
  0x76   : > { %1637 = vmatpush1.bf16.msra.mxu1 %v12799_v33  ;;  %1398 = vmatpush1.bf16.msra.mxu0 %v12862_v48  ;;  %v12899_v33 = vld [vmem:[%s13575_s9 + $0x2c0] ss:$8 sps:$4 sm:$0xff]   ;;  %v12940_v48 = vld [vmem:[%s13575_s9 + $0x434] ss:$8 sps:$4 sm:$0xff]  }
  0x77   : > { %1638 = vmatprep.subr.bf16.mxu1 %v12800_v35  ;;  %1399 = vmatprep.subr.bf16.mxu0 %v12866_v50  ;;  %v12905_v35 = vld [vmem:[%s13575_s9 + $0x2d0] ss:$8 sps:$4 sm:$0xff]   ;;  %v12946_v50 = vld [vmem:[%s13575_s9 + $0x444] ss:$8 sps:$4 sm:$0xff]  }
  0x7a   : > { %1639 = vmatpush1.bf16.msra.mxu1 %v12802_v37  ;;  %1400 = vmatpush1.bf16.msra.mxu0 %v12868_v52  ;;  %v12908_v37 = vld [vmem:[%s13575_s9 + $0x2e0] ss:$8 sps:$4 sm:$0xff]   ;;  %v12952_v52 = vld [vmem:[%s13575_s9 + $0x454] ss:$8 sps:$4 sm:$0xff]  }
  0x7b   : > { %1640 = vmatprep.subr.bf16.mxu1 %v12803_v39  ;;  %1401 = vmatprep.subr.bf16.mxu0 %v12872_v54  ;;  %v12911_v39 = vld [vmem:[%s13575_s9 + $0x2f0] ss:$8 sps:$4 sm:$0xff]   ;;  %v12958_v54 = vld [vmem:[%s13575_s9 + $0x464] ss:$8 sps:$4 sm:$0xff]  }
  0x7e   : > { %1641 = vmatpush1.bf16.msra.mxu1 %v12805_v41  ;;  %1402 = vmatpush1.bf16.msra.mxu0 %v12874_v58  ;;  %v12920_v41 = vld [vmem:[%s13575_s9 + $0x400] ss:$8 sps:$4 sm:$0xff]   ;;  %v12970_v58 = vld [vmem:[%s13575_s9 + $0x484] ss:$8 sps:$4 sm:$0xff]  }
  0x7f   : > { %1642 = vmatprep.subr.bf16.mxu1 %v12806_v43  ;;  %1403 = vmatprep.subr.bf16.mxu0 %v12878_v60  ;;  %v12926_v43 = vld [vmem:[%s13575_s9 + $0x410] ss:$8 sps:$4 sm:$0xff]   ;;  %v12976_v60 = vld [vmem:[%s13575_s9 + $0x494] ss:$8 sps:$4 sm:$0xff]  }
  0x82   : > { %1643 = vmatpush1.bf16.msra.mxu1 %v12808_v45  ;;  %1404 = vmatpush1.bf16.msra.mxu0 %v12880_v0  ;;  %v12932_v45 = vld [vmem:[%s13575_s9 + $0x420] ss:$8 sps:$4 sm:$0xff]   ;;  %v12986_v0 = vld [vmem:[%s13575_s9 + $0x4b0] ss:$8 sps:$4 sm:$0xff]  }
  0x83   : > { %1644 = vmatprep.subr.bf16.mxu1 %v12809_v47  ;;  %1405 = vmatprep.subr.bf16.mxu0 %v12884_v2  ;;  %v12938_v47 = vld [vmem:[%s13575_s9 + $0x430] ss:$8 sps:$4 sm:$0xff]   ;;  %v12992_v2 = vld [vmem:[%s13575_s9 + $0x4c0] ss:$8 sps:$4 sm:$0xff]  }
  0x86   : > { %1645 = vmatpush1.bf16.msra.mxu1 %v12813_v49  ;;  %1406 = vmatpush1.bf16.msra.mxu0 %v12886_v3  ;;  %v12944_v49 = vld [vmem:[%s13575_s9 + $0x440] ss:$8 sps:$4 sm:$0xff]   ;;  %v12994_v3 = vld [vmem:[%s13575_s9 + $0x4c4] ss:$8 sps:$4 sm:$0xff]  }
  0x87   : > { %1646 = vmatprep.subr.bf16.mxu1 %v12815_v51  ;;  %1407 = vmatprep.subr.bf16.mxu0 %v12890_v5  ;;  %v12950_v51 = vld [vmem:[%s13575_s9 + $0x450] ss:$8 sps:$4 sm:$0xff]  }
  0x88   : > { %v12998_v5 = vld [vmem:[%s13575_s9 + $0x4d0] ss:$8 sps:$4 sm:$0xff]  }
  0x8a   : > { %1647 = vmatpush1.bf16.msra.mxu1 %v12819_v53  ;;  %1408 = vmatpush1.bf16.msra.mxu0 %v12892_v7  ;;  %v12956_v53 = vld [vmem:[%s13575_s9 + $0x460] ss:$8 sps:$4 sm:$0xff]  }
  0x8b   : > { %1648 = vmatprep.subr.bf16.mxu1 %v12821_v55  ;;  %1409 = vmatprep.subr.bf16.mxu0 %v12896_v9  ;;  %v12962_v55 = vld [vmem:[%s13575_s9 + $0x470] ss:$8 sps:$4 sm:$0xff]  }
  0x8e   : > { %1649 = vmatpush1.bf16.msra.mxu1 %v12825_v56  ;;  %1410 = vmatpush1.bf16.msra.mxu0 %v12898_v11  ;;  %v12964_v56 = vld [vmem:[%s13575_s9 + $0x474] ss:$8 sps:$4 sm:$0xff]  }
  0x8f   : > { %2005 = vmatprep.subr.bf16.mxu1 %v12829_v61  ;;  %1411 = vmatprep.subr.bf16.mxu0 %v12902_v13  ;;  %v12980_v61 = vld [vmem:[%s13575_s9 + $0x4a0] ss:$8 sps:$4 sm:$0xff]   ;;  %v13006_v13 = vld [vmem:[%s13575_s9 + $0x4e4] ss:$8 sps:$4 sm:$0xff]  }
  0x91   : > { %1651 = vmatmul.mubr.bf16.vlgmr.msra.gmra.mrb[0].mxu1 %v13843_v62 }
  0x92   : > { %2006 = vmatpush1.bf16.msra.mxu1 %v12827_v63  ;;  %2037 = vmatprep.mubr.bf16.mxu1 %v13802_v24  ;;  %v12982_v63 = vld [vmem:[%s13575_s9 + $0x4a4] ss:$8 sps:$4 sm:$0xff]  }
  0x93   : > { %2007 = vmatprep.subr.bf16.mxu1 %v12835_v1  ;;  %1412 = vmatpush1.bf16.msra.mxu0 %v12904_v15  ;;  %v12988_v1 = vld [vmem:[%s13575_s9 + $0x4b4] ss:$8 sps:$4 sm:$0xff]  }
  0x94   : > { %v13009_v15 = vld [vmem:[%s13575_s9 + $0x4f4] ss:$8 sps:$4 sm:$0xff]  }
  0x96   : > { %2008 = vmatpush1.bf16.msra.mxu1 %v12833_v4  ;;  %1414 = vmatmul.mubr.bf16.vlgmr.msra.gmra.mrb[0].mxu0 %v13843_v62 }
  0x97   : > { %2009 = vmatprep.subr.bf16.mxu1 %v12841_v6  ;;  %1731 = vmatprep.mubr.f32.mxu0 %v15286_v40  ;;  %v13000_v6 = vld [vmem:[%s13575_s9 + $0x4d4] ss:$8 sps:$4 sm:$0xff]  }
  0x9a   : > { %2010 = vmatpush1.bf16.msra.mxu1 %v12839_v8 }
  0x9b   : > { %2011 = vmatprep.subr.bf16.mxu1 %v12847_v10 }
  0x9e   : > { %2012 = vmatpush1.bf16.msra.mxu1 %v12845_v12  ;;  %v13004_v12 = vld [vmem:[%s13575_s9 + $0x4e0] ss:$8 sps:$4 sm:$0xff]  }
  0x9f   : > { %2013 = vmatprep.subr.bf16.mxu1 %v12853_v14  ;;  %v10611_v14 = vld [vmem:[%s13595_s25 + $0x8] sm:$0xff] }
  0xa2   : > { %2014 = vmatpush1.bf16.msra.mxu1 %v12851_v16  ;;  %v13007_v16 = vld [vmem:[%s13575_s9 + $0x4f0] ss:$8 sps:$4 sm:$0xff]  }
  0xa3   : > { %2015 = vmatprep.subr.bf16.mxu1 %v12859_v17 }
  0xa6   : > { %2016 = vmatpush1.bf16.msra.mxu1 %v12857_v18 }
  0xa7   : > { %2017 = vmatprep.subr.bf16.mxu1 %v12865_v19 }
  0xaa   : > { %2018 = vmatpush1.bf16.msra.mxu1 %v12863_v20 }
  0xab   : > { %2019 = vmatprep.subr.bf16.mxu1 %v12871_v21 }
  0xae   : > { %2020 = vmatpush1.bf16.msra.mxu1 %v12869_v22 }
  0xaf   : > { %2021 = vmatprep.subr.bf16.mxu1 %v12877_v23  ;;  %v1424_v23 = vld [vmem:[%s13595_s25] sm:$0xff] }
  0xb2   : > { %2022 = vmatpush1.bf16.msra.mxu1 %v12875_v25 }
  0xb3   : > { %2023 = vmatprep.subr.bf16.mxu1 %v12883_v26 }
  0xb6   : > { %2024 = vmatpush1.bf16.msra.mxu1 %v12881_v27 }
  0xb7   : > { %2025 = vmatprep.subr.bf16.mxu1 %v12889_v28 }
  0xba   : > { %2026 = vmatpush1.bf16.msra.mxu1 %v12887_v29 }
  0xbb   : > { %2027 = vmatprep.subr.bf16.mxu1 %v12895_v30 }
  0xbe   : > { %2028 = vmatpush1.bf16.msra.mxu1 %v12893_v31  ;;  %v12916_v31 = vld [vmem:[%s13575_s9 + $0x304] ss:$8 sps:$4 sm:$0xff]  }
  0xbf   : > { %2029 = vmatprep.subr.bf16.mxu1 %v12901_v32  ;;  %v12914_v32 = vld [vmem:[%s13575_s9 + $0x300] ss:$8 sps:$4 sm:$0xff]  }
  0xc2   : > { %2030 = vmatpush1.bf16.msra.mxu1 %v12899_v33  ;;  %v10678_v33 = vld [vmem:[%s13595_s25 + $0x10] sm:$0xff] }
  0xc3   : > { %2031 = vmatprep.subr.bf16.mxu1 %v12907_v34  ;;  %v12919_v34 = vld [vmem:[%s13575_s9 + $0x314] ss:$8 sps:$4 sm:$0xff]  }
  0xc6   : > { %2032 = vmatpush1.bf16.msra.mxu1 %v12905_v35  ;;  %v12917_v35 = vld [vmem:[%s13575_s9 + $0x310] ss:$8 sps:$4 sm:$0xff]  }
  0xc7   : > { %2033 = vmatprep.subr.bf16.mxu1 %v12910_v36  ;;  %v12925_v36 = vld [vmem:[%s13575_s9 + $0x324] ss:$8 sps:$4 sm:$0xff]  }
  0xca   : > { %2034 = vmatpush1.bf16.msra.mxu1 %v12908_v37  ;;  %v12923_v37 = vld [vmem:[%s13575_s9 + $0x320] ss:$8 sps:$4 sm:$0xff]  }
  0xcb   : > { %2035 = vmatprep.subr.bf16.mxu1 %v12913_v38  ;;  %v12931_v38 = vld [vmem:[%s13575_s9 + $0x334] ss:$8 sps:$4 sm:$0xff]  }
  0xce   : > { %2036 = vmatpush1.bf16.msra.mxu1 %v12911_v39  ;;  %v12929_v39 = vld [vmem:[%s13575_s9 + $0x330] ss:$8 sps:$4 sm:$0xff]  }
  0xcf   : > { %2633 = vmatprep.subr.bf16.mxu1 %v12922_v42  ;;  %v12935_v42 = vld [vmem:[%s13575_s9 + $0x340] ss:$8 sps:$4 sm:$0xff]  }
  0xd1   : > { %2038 = vmatmul.mubr.bf16.vlgmr.msra.gmra.mrb[4].mxu1 %v13843_v62 }
  0xd2   : > { %2665 = vmatprep.mubr.bf16.mxu1 %v13802_v24  ;;  %2634 = vmatpush1.bf16.msra.mxu1 %v12920_v41  ;;  %v12937_v41 = vld [vmem:[%s13575_s9 + $0x344] ss:$8 sps:$4 sm:$0xff]  }
  0xd3   : > { %2635 = vmatprep.subr.bf16.mxu1 %v12928_v44  ;;  %v12941_v44 = vld [vmem:[%s13575_s9 + $0x350] ss:$8 sps:$4 sm:$0xff]  }
  0xd6   : > { %2636 = vmatpush1.bf16.msra.mxu1 %v12926_v43  ;;  %v12943_v43 = vld [vmem:[%s13575_s9 + $0x354] ss:$8 sps:$4 sm:$0xff]  }
  0xd7   : > { %2637 = vmatprep.subr.bf16.mxu1 %v12934_v46  ;;  %v12947_v46 = vld [vmem:[%s13575_s9 + $0x360] ss:$8 sps:$4 sm:$0xff]  }
  0xda   : > { %2638 = vmatpush1.bf16.msra.mxu1 %v12932_v45  ;;  %v12949_v45 = vld [vmem:[%s13575_s9 + $0x364] ss:$8 sps:$4 sm:$0xff]  }
  0xdb   : > { %2639 = vmatprep.subr.bf16.mxu1 %v12940_v48  ;;  %v12953_v48 = vld [vmem:[%s13575_s9 + $0x370] ss:$8 sps:$4 sm:$0xff]  }
  0xde   : > { %2640 = vmatpush1.bf16.msra.mxu1 %v12938_v47  ;;  %v12955_v47 = vld [vmem:[%s13575_s9 + $0x374] ss:$8 sps:$4 sm:$0xff]  }
  0xdf   : > { %2641 = vmatprep.subr.bf16.mxu1 %v12946_v50  ;;  %v12959_v50 = vld [vmem:[%s13575_s9 + $0x380] ss:$8 sps:$4 sm:$0xff]  }
  0xe2   : > { %2642 = vmatpush1.bf16.msra.mxu1 %v12944_v49  ;;  %v12961_v49 = vld [vmem:[%s13575_s9 + $0x384] ss:$8 sps:$4 sm:$0xff]  }
  0xe3   : > { %2643 = vmatprep.subr.bf16.mxu1 %v12952_v52  ;;  %v12965_v52 = vld [vmem:[%s13575_s9 + $0x390] ss:$8 sps:$4 sm:$0xff]  }
  0xe6   : > { %2644 = vmatpush1.bf16.msra.mxu1 %v12950_v51  ;;  %v12967_v51 = vld [vmem:[%s13575_s9 + $0x394] ss:$8 sps:$4 sm:$0xff]  }
  0xe7   : > { %2645 = vmatprep.subr.bf16.mxu1 %v12958_v54  ;;  %v12971_v54 = vld [vmem:[%s13575_s9 + $0x3a0] ss:$8 sps:$4 sm:$0xff]  }
  0xea   : > { %2646 = vmatpush1.bf16.msra.mxu1 %v12956_v53  ;;  %v12973_v53 = vld [vmem:[%s13575_s9 + $0x3a4] ss:$8 sps:$4 sm:$0xff]  }
  0xeb   : > { %2647 = vmatprep.subr.bf16.mxu1 %v12964_v56  ;;  %v12977_v56 = vld [vmem:[%s13575_s9 + $0x3b0] ss:$8 sps:$4 sm:$0xff]  }
  0xee   : > { %2648 = vmatpush1.bf16.msra.mxu1 %v12962_v55  ;;  %v12979_v55 = vld [vmem:[%s13575_s9 + $0x3b4] ss:$8 sps:$4 sm:$0xff]  }
  0xef   : > { %2649 = vmatprep.subr.bf16.mxu1 %v12970_v58  ;;  %v12983_v58 = vld [vmem:[%s13575_s9 + $0x3c0] ss:$8 sps:$4 sm:$0xff]  }
  0xf2   : > { %2650 = vmatpush1.bf16.msra.mxu1 %v12968_v57  ;;  %v12985_v57 = vld [vmem:[%s13575_s9 + $0x3c4] ss:$8 sps:$4 sm:$0xff]  }
  0xf3   : > { %2651 = vmatprep.subr.bf16.mxu1 %v12976_v60  ;;  %v12989_v60 = vld [vmem:[%s13575_s9 + $0x3d0] ss:$8 sps:$4 sm:$0xff]  }
  0xf6   : > { %2652 = vmatpush1.bf16.msra.mxu1 %v12974_v59  ;;  %v12991_v59 = vld [vmem:[%s13575_s9 + $0x3d4] ss:$8 sps:$4 sm:$0xff]  }
  0xf7   : > { %2653 = vmatprep.subr.bf16.mxu1 %v12982_v63  ;;  %v12995_v63 = vld [vmem:[%s13575_s9 + $0x3e0] ss:$8 sps:$4 sm:$0xff]  }
  0xfa   : > { %2654 = vmatpush1.bf16.msra.mxu1 %v12980_v61  ;;  %v12997_v61 = vld [vmem:[%s13575_s9 + $0x3e4] ss:$8 sps:$4 sm:$0xff]  }
  0xfb   : > { %2655 = vmatprep.subr.bf16.mxu1 %v12988_v1  ;;  %v13001_v1 = vld [vmem:[%s13575_s9 + $0x3f0] ss:$8 sps:$4 sm:$0xff]  }
  0xfe   : > { %2656 = vmatpush1.bf16.msra.mxu1 %v12986_v0  ;;  %v13003_v0 = vld [vmem:[%s13575_s9 + $0x3f4] ss:$8 sps:$4 sm:$0xff]  }
  0xff   : > { %2657 = vmatprep.subr.bf16.mxu1 %v12994_v3 }
 0x102   : > { %2658 = vmatpush1.bf16.msra.mxu1 %v12992_v2 }
 0x103   : > { %2659 = vmatprep.subr.bf16.mxu1 %v13000_v6 }
 0x106   : > { %2660 = vmatpush1.bf16.msra.mxu1 %v12998_v5 }
 0x107   : > { %2661 = vmatprep.subr.bf16.mxu1 %v13006_v13  ;;  %v13030_v13 = vld [vmem:[%s13575_s9 + $0x624] ss:$8 sps:$4 sm:$0xff]  }
 0x10a   : > { %2662 = vmatpush1.bf16.msra.mxu1 %v13004_v12  ;;  %v13028_v12 = vld [vmem:[%s13575_s9 + $0x620] ss:$8 sps:$4 sm:$0xff]  }
 0x10b   : > { %2663 = vmatprep.subr.bf16.mxu1 %v13009_v15  ;;  %v13036_v15 = vld [vmem:[%s13575_s9 + $0x634] ss:$8 sps:$4 sm:$0xff]  }
 0x10e   : > { %2664 = vmatpush1.bf16.msra.mxu1 %v13007_v16  ;;  %v13040_v16 = vld [vmem:[%s13575_s9 + $0x640] ss:$8 sps:$4 sm:$0xff]  }
 0x111   : > { %2666 = vmatmul.mubr.bf16.vlgmr.msra.gmra.mrb[8].mxu1 %v13843_v62 }
 0x112   : > { %3293 = vmatprep.mubr.bf16.mxu1 %v13802_v24 }
 0x164   : > { %v1652_v4 = vpop.f32.mrb[0].mxu1 }
 0x165   : > { %v1654_v7 = vpop.f32.mrb[1].mxu1 }
 0x166   : > { %v1656_v8 = vpop.f32.mrb[2].mxu1 }
 0x167   : > { %v12617_v9 = vpack.c.bf16 %v1656_v8, %v1652_v4  ;;  %v1658_v10 = vpop.f32.mrb[3].mxu1  ;;  %v13016_v8 = vld [vmem:[%s13575_s9 + $0x600] ss:$8 sps:$4 sm:$0xff]  }
 0x168   : > { %v12615_v11 = vpack.c.bf16 %v1658_v10, %v1654_v7  ;;  %v13022_v10 = vld [vmem:[%s13575_s9 + $0x610] ss:$8 sps:$4 sm:$0xff]  }
 0x169   : > { %v1415_v17 = vpop.f32.mrb[0].mxu0 }
 0x16a   : > { %12616 = vmatprep.subr.bf16.mxu0 %v12615_v11  ;;  %v1417_v18 = vpop.f32.mrb[1].mxu0  ;;  %v13024_v11 = vld [vmem:[%s13575_s9 + $0x614] ss:$8 sps:$4 sm:$0xff]  }
 0x16b   : > { %12618 = vmatpush1.bf16.msra.mxu0 %v12617_v9  ;;  %v1419_v19 = vpop.f32.mrb[2].mxu0  ;;  %v13018_v9 = vld [vmem:[%s13575_s9 + $0x604] ss:$8 sps:$4 sm:$0xff]  }
 0x16c   : > { %v12621_v20 = vpack.c.bf16 %v1419_v19, %v1415_v17  ;;  %v1421_v21 = vpop.f32.mrb[3].mxu0  ;;  %3261 = vmatprep.subr.bf16.mxu1 %v13018_v9  ;;  %v13042_v17 = vld [vmem:[%s13575_s9 + $0x644] ss:$8 sps:$4 sm:$0xff]   ;;  %v13048_v19 = vld [vmem:[%s13575_s9 + $0x654] ss:$8 sps:$4 sm:$0xff]  }
 0x16d   : > { %v12619_v22 = vpack.c.bf16 %v1421_v21, %v1417_v18  ;;  %3262 = vmatpush1.bf16.msra.mxu1 %v13016_v8  ;;  %v13046_v18 = vld [vmem:[%s13575_s9 + $0x650] ss:$8 sps:$4 sm:$0xff]   ;;  %v13054_v21 = vld [vmem:[%s13575_s9 + $0x664] ss:$8 sps:$4 sm:$0xff]   ;;  %v13055_v9 = vld [vmem:[%s13575_s9 + $0x580] ss:$8 sps:$4 sm:$0xff]  }
 0x16e   : > { %10612 = vmatmul.mubr.msk.f32.vlgmr.msra.gmra.mrb[4].mxu0 %vm1663_vm0, %v10611_v14  ;;  %3263 = vmatprep.subr.bf16.mxu1 %v13024_v11  ;;  %v13034_v14 = vld [vmem:[%s13575_s9 + $0x630] ss:$8 sps:$4 sm:$0xff]   ;;  %v13057_v8 = vld [vmem:[%s13575_s9 + $0x584] ss:$8 sps:$4 sm:$0xff]  }
 0x16f   : > { %1805 = vmatprep.mubr.f32.mxu0 %v15286_v40  ;;  %12620 = vmatprep.subr.bf16.mxu0 %v12619_v22  ;;  %v13058_v22 = vld [vmem:[%s13575_s9 + $0x670] ss:$8 sps:$4 sm:$0xff]  }
 0x170   : > { %12622 = vmatpush1.bf16.msra.mxu0 %v12621_v20  ;;  %v13052_v20 = vld [vmem:[%s13575_s9 + $0x660] ss:$8 sps:$4 sm:$0xff]   ;;  %v13061_v11 = vld [vmem:[%s13575_s9 + $0x590] ss:$8 sps:$4 sm:$0xff]  }
 0x171   : > { %3264 = vmatpush1.bf16.msra.mxu1 %v13022_v10  ;;  %v13063_v10 = vld [vmem:[%s13575_s9 + $0x594] ss:$8 sps:$4 sm:$0xff]  }
 0x172   : > { %3265 = vmatprep.subr.bf16.mxu1 %v13030_v13  ;;  %v13067_v13 = vld [vmem:[%s13575_s9 + $0x5a0] ss:$8 sps:$4 sm:$0xff]  }
 0x175   : > { %3266 = vmatpush1.bf16.msra.mxu1 %v13028_v12  ;;  %v13069_v12 = vld [vmem:[%s13575_s9 + $0x5a4] ss:$8 sps:$4 sm:$0xff]  }
 0x176   : > { %10613 = vmatmul.mubr.msk.f32.vlgmr.msra.gmra.mrb[4].mxu0 %vm1663_vm0, %v1424_v23  ;;  %3267 = vmatprep.subr.bf16.mxu1 %v13036_v15  ;;  %v13060_v23 = vld [vmem:[%s13575_s9 + $0x674] ss:$8 sps:$4 sm:$0xff]   ;;  %v13073_v15 = vld [vmem:[%s13575_s9 + $0x5b0] ss:$8 sps:$4 sm:$0xff]  }
 0x177   : > { %2117 = vmatprep.mubr.f32.mxu0 %v15286_v40 }
 0x179   : > { %3268 = vmatpush1.bf16.msra.mxu1 %v13034_v14  ;;  %v13075_v14 = vld [vmem:[%s13575_s9 + $0x5b4] ss:$8 sps:$4 sm:$0xff]  }
 0x17a   : > { %3269 = vmatprep.subr.bf16.mxu1 %v13042_v17  ;;  %v13079_v17 = vld [vmem:[%s13575_s9 + $0x5c0] ss:$8 sps:$4 sm:$0xff]  }
 0x17d   : > { %3270 = vmatpush1.bf16.msra.mxu1 %v13040_v16  ;;  %v13081_v16 = vld [vmem:[%s13575_s9 + $0x5c4] ss:$8 sps:$4 sm:$0xff]  }
 0x17e   : > { %3271 = vmatprep.subr.bf16.mxu1 %v13048_v19  ;;  %v13085_v19 = vld [vmem:[%s13575_s9 + $0x5d0] ss:$8 sps:$4 sm:$0xff]  }
 0x181   : > { %3272 = vmatpush1.bf16.msra.mxu1 %v13046_v18  ;;  %v13087_v18 = vld [vmem:[%s13575_s9 + $0x5d4] ss:$8 sps:$4 sm:$0xff]  }
 0x182   : > { %3273 = vmatprep.subr.bf16.mxu1 %v13054_v21  ;;  %v13091_v21 = vld [vmem:[%s13575_s9 + $0x5e0] ss:$8 sps:$4 sm:$0xff]  }
 0x185   : > { %3274 = vmatpush1.bf16.msra.mxu1 %v13052_v20  ;;  %v13093_v20 = vld [vmem:[%s13575_s9 + $0x5e4] ss:$8 sps:$4 sm:$0xff]  }
 0x186   : > { %3275 = vmatprep.subr.bf16.mxu1 %v13060_v23  ;;  %v13097_v23 = vld [vmem:[%s13575_s9 + $0x5f0] ss:$8 sps:$4 sm:$0xff]  }
 0x189   : > { %3276 = vmatpush1.bf16.msra.mxu1 %v13058_v22  ;;  %v13099_v22 = vld [vmem:[%s13575_s9 + $0x5f4] ss:$8 sps:$4 sm:$0xff]  }
 0x1a4   : > { %v2039_v25 = vpop.f32.mrb[4].mxu1 }
 0x1a5   : > { %v2041_v26 = vpop.f32.mrb[5].mxu1 }
 0x1a6   : > { %v2043_v27 = vpop.f32.mrb[6].mxu1 }
 0x1a7   : > { %v12625_v28 = vpack.c.bf16 %v2043_v27, %v2039_v25  ;;  %v2045_v29 = vpop.f32.mrb[7].mxu1  ;;  %v13064_v25 = vld [vmem:[%s13575_s9 + $0x680] ss:$8 sps:$4 sm:$0xff]   ;;  %v13070_v27 = vld [vmem:[%s13575_s9 + $0x690] ss:$8 sps:$4 sm:$0xff]  }
 0x1a8   : > { %v12623_v30 = vpack.c.bf16 %v2045_v29, %v2041_v26  ;;  %v13066_v26 = vld [vmem:[%s13575_s9 + $0x684] ss:$8 sps:$4 sm:$0xff]   ;;  %v13076_v29 = vld [vmem:[%s13575_s9 + $0x6a0] ss:$8 sps:$4 sm:$0xff]  }
 0x1a9   : > { %3277 = vmatprep.subr.bf16.mxu1 %v13066_v26 }
 0x1aa   : > { %12624 = vmatprep.subr.bf16.mxu0 %v12623_v30  ;;  %3278 = vmatpush1.bf16.msra.mxu1 %v13064_v25  ;;  %v13078_v30 = vld [vmem:[%s13575_s9 + $0x6a4] ss:$8 sps:$4 sm:$0xff]   ;;  %v11245_v25 = vld [vmem:[%s13615_s14 + $0x30] sm:$0xff] }
 0x1ab   : > { %12626 = vmatpush1.bf16.msra.mxu0 %v12625_v28  ;;  %v13072_v28 = vld [vmem:[%s13575_s9 + $0x694] ss:$8 sps:$4 sm:$0xff]  }
 0x1ac   : > { %2319 = vmatprep.subr.bf16.mxu0 %v12916_v31  ;;  %3279 = vmatprep.subr.bf16.mxu1 %v13072_v28  ;;  %v13082_v31 = vld [vmem:[%s13575_s9 + $0x6b0] ss:$8 sps:$4 sm:$0xff]  }
 0x1ae   : > { %10679 = vmatmul.mubr.msk.f32.vlgmr.msra.gmra.mrb[4].mxu0 %vm1663_vm0, %v10678_v33  ;;  %3280 = vmatpush1.bf16.msra.mxu1 %v13070_v27  ;;  %v13088_v33 = vld [vmem:[%s13575_s9 + $0x6c0] ss:$8 sps:$4 sm:$0xff]  }
 0x1af   : > { %2320 = vmatpush1.bf16.msra.mxu0 %v12914_v32  ;;  %2351 = vmatprep.mubr.bf16.mxu0 %v13802_v24  ;;  %v13084_v32 = vld [vmem:[%s13575_s9 + $0x6b4] ss:$8 sps:$4 sm:$0xff]  }
 0x1b0   : > { %2321 = vmatprep.subr.bf16.mxu0 %v12919_v34  ;;  %3281 = vmatprep.subr.bf16.mxu1 %v13078_v30  ;;  %v13090_v34 = vld [vmem:[%s13575_s9 + $0x6c4] ss:$8 sps:$4 sm:$0xff]  }
 0x1b2   : > { %3282 = vmatpush1.bf16.msra.mxu1 %v13076_v29  ;;  %v11295_v29 = vld [vmem:[%s13615_s14 + $0x40] sm:$0xff] }
 0x1b3   : > { %2322 = vmatpush1.bf16.msra.mxu0 %v12917_v35  ;;  %3283 = vmatprep.subr.bf16.mxu1 %v13084_v32  ;;  %v13094_v35 = vld [vmem:[%s13575_s9 + $0x6d0] ss:$8 sps:$4 sm:$0xff]  }
 0x1b4   : > { %2323 = vmatprep.subr.bf16.mxu0 %v12925_v36  ;;  %v13096_v36 = vld [vmem:[%s13575_s9 + $0x6d4] ss:$8 sps:$4 sm:$0xff]  }
 0x1b6   : > { %3284 = vmatpush1.bf16.msra.mxu1 %v13082_v31 }
 0x1b7   : > { %2324 = vmatpush1.bf16.msra.mxu0 %v12923_v37  ;;  %3285 = vmatprep.subr.bf16.mxu1 %v13090_v34  ;;  %v13100_v37 = vld [vmem:[%s13575_s9 + $0x6e0] ss:$8 sps:$4 sm:$0xff]  }
 0x1b8   : > { %2325 = vmatprep.subr.bf16.mxu0 %v12931_v38  ;;  %v13102_v38 = vld [vmem:[%s13575_s9 + $0x6e4] ss:$8 sps:$4 sm:$0xff]  }
 0x1b9   : > { %v11395_v34 = vld [vmem:[%s13615_s14 + $0x60] sm:$0xff] }
 0x1ba   : > { %3286 = vmatpush1.bf16.msra.mxu1 %v13088_v33  ;;  %v11345_v33 = vld [vmem:[%s13615_s14 + $0x50] sm:$0xff] }
 0x1bb   : > { %2326 = vmatpush1.bf16.msra.mxu0 %v12929_v39  ;;  %3287 = vmatprep.subr.bf16.mxu1 %v13096_v36  ;;  %v13105_v39 = vld [vmem:[%s13575_s9 + $0x6f4] ss:$8 sps:$4 sm:$0xff]   ;;  %v13112_v36 = vld [vmem:[%s13575_s9 + $0x800] ss:$8 sps:$4 sm:$0xff]  }
 0x1bc   : > { %2327 = vmatprep.subr.bf16.mxu0 %v12937_v41  ;;  %v13103_v41 = vld [vmem:[%s13575_s9 + $0x6f0] ss:$8 sps:$4 sm:$0xff]  }
 0x1be   : > { %3288 = vmatpush1.bf16.msra.mxu1 %v13094_v35  ;;  %v11445_v35 = vld [vmem:[%s13615_s14 + $0x70] sm:$0xff] }
 0x1bf   : > { %2328 = vmatpush1.bf16.msra.mxu0 %v12935_v42  ;;  %3289 = vmatprep.subr.bf16.mxu1 %v13102_v38  ;;  %v1186_v42 = vld [vmem:[%s13600_s29] sm:$0xff] }
 0x1c0   : > { %2329 = vmatprep.subr.bf16.mxu0 %v12943_v43  ;;  %v13561_v43 = vmov 0   ;;  %v11495_v38 = vld [vmem:[%s13615_s14 + $0x80] sm:$0xff] }
 0x1c1   : > { %12768 = vset.pattern.permute.xlu0 %v13561_v43  ;;  %12769 = vset.pattern.permute.xlu1 %v13561_v43  ;;  %v13124_v43 = vld [vmem:[%s13575_s9 + $0x820] ss:$8 sps:$4 sm:$0xff]  }
 0x1c2   : > { %3290 = vmatpush1.bf16.msra.mxu1 %v13100_v37  ;;  %4012 = vperm.xlu0 %12768, %v1186_v42   ;;  %v13114_v37 = vld [vmem:[%s13575_s9 + $0x804] ss:$8 sps:$4 sm:$0xff]  }
 0x1c3   : > { %2330 = vmatpush1.bf16.msra.mxu0 %v12941_v44  ;;  %3291 = vmatprep.subr.bf16.mxu1 %v13105_v39  ;;  %v4032_v44 = vld [vmem:[%s13610_s8] sm:$0xff]  ;;  %v13118_v39 = vld [vmem:[%s13575_s9 + $0x810] ss:$8 sps:$4 sm:$0xff]  }
 0x1c4   : > { %2331 = vmatprep.subr.bf16.mxu0 %v12949_v45  ;;  %v11145_v45 = vld [vmem:[%s13615_s14 + $0x10] sm:$0xff]  ;;  %v4033_v42 = vld [vmem:[%s13620_s19] sm:$0xff] }
 0x1c6   : > { %3292 = vmatpush1.bf16.msra.mxu1 %v13103_v41  ;;  %4041 = vperm.xlu0 %12768, %v4032_v44   ;;  %v13120_v41 = vld [vmem:[%s13575_s9 + $0x814] ss:$8 sps:$4 sm:$0xff]   ;;  %v13126_v44 = vld [vmem:[%s13575_s9 + $0x824] ss:$8 sps:$4 sm:$0xff]  }
 0x1c7   : > { %2332 = vmatpush1.bf16.msra.mxu0 %v12947_v46  ;;  %v11195_v46 = vld [vmem:[%s13615_s14 + $0x20] sm:$0xff]  ;;  %3889 = vmatprep.subr.bf16.mxu1 %v13114_v37 }
 0x1c8   : > { %2333 = vmatprep.subr.bf16.mxu0 %v12955_v47 }
 0x1c9   : > { %3294 = vmatmul.mubr.bf16.vlgmr.msra.gmra.mrb[12].mxu1 %v13843_v62 }
 0x1ca   : > { %3921 = vmatprep.mubr.bf16.mxu1 %v13802_v24  ;;  %4493 = vperm.xlu0 %12768, %v11145_v45   ;;  %v4037_v45 = vld [vmem:[%s13630_s30] sm:$0xff] }
 0x1cb   : > { %2334 = vmatpush1.bf16.msra.mxu0 %v12953_v48  ;;  %3890 = vmatpush1.bf16.msra.mxu1 %v13112_v36  ;;  %v5935_v36 = vld [vmem:[%s13650_s27] sm:$0xff] }
 0x1cc   : > { %2335 = vmatprep.subr.bf16.mxu0 %v12961_v49  ;;  %3891 = vmatprep.subr.bf16.mxu1 %v13120_v41 }
 0x1ce   : > { %4680 = vperm.xlu0 %12768, %v11195_v46   ;;  %v13130_v46 = vld [vmem:[%s13575_s9 + $0x830] ss:$8 sps:$4 sm:$0xff]  }
 0x1cf   : > { %2336 = vmatpush1.bf16.msra.mxu0 %v12959_v50  ;;  %3892 = vmatpush1.bf16.msra.mxu1 %v13118_v39  ;;  %v5945_v39 = vld [vmem:[%s13660_s21 + $0x10] sm:$0xff] }
 0x1d0   : > { %2337 = vmatprep.subr.bf16.mxu0 %v12967_v51  ;;  %3893 = vmatprep.subr.bf16.mxu1 %v13126_v44  ;;  %v7262_v44 = vld [vmem:[%s13670_s6] sm:$0xff] }
 0x1d2   : > { %4867 = vperm.xlu0 %12768, %v11245_v25   ;;  %v11617_v25 = vld [vmem:[%s13645_s20 + $0xd0] sm:$0xff] }
 0x1d3   : > { %2338 = vmatpush1.bf16.msra.mxu0 %v12965_v52  ;;  %3894 = vmatpush1.bf16.msra.mxu1 %v13124_v43 }
 0x1d4   : > { %2339 = vmatprep.subr.bf16.mxu0 %v12973_v53  ;;  %v10744_v53 = vld [vmem:[%s13595_s25 + $0x18] sm:$0xff] }
 0x1d6   : > { %5054 = vperm.xlu0 %12768, %v11295_v29   ;;  %v11651_v29 = vld [vmem:[%s13645_s20 + $0x100] sm:$0xff] }
 0x1d7   : > { %2340 = vmatpush1.bf16.msra.mxu0 %v12971_v54  ;;  %v13012_v54 = vld [vmem:[%s13575_s9 + $0x504] ss:$8 sps:$4 sm:$0xff]  }
 0x1d8   : > { %2341 = vmatprep.subr.bf16.mxu0 %v12979_v55  ;;  %v13010_v55 = vld [vmem:[%s13575_s9 + $0x500] ss:$8 sps:$4 sm:$0xff]  }
 0x1da   : > { %5241 = vperm.xlu0 %12768, %v11345_v33   ;;  %v11635_v33 = vld [vmem:[%s13645_s20 + $0xf0] sm:$0xff] }
 0x1db   : > { %2342 = vmatpush1.bf16.msra.mxu0 %v12977_v56  ;;  %v10810_v56 = vld [vmem:[%s13595_s25 + $0x20] sm:$0xff] }
 0x1dc   : > { %2343 = vmatprep.subr.bf16.mxu0 %v12985_v57  ;;  %v13015_v57 = vld [vmem:[%s13575_s9 + $0x514] ss:$8 sps:$4 sm:$0xff]  }
 0x1de   : > { %5428 = vperm.xlu0 %12768, %v11395_v34   ;;  %v11653_v34 = vld [vmem:[%s13645_s20 + $0x110] sm:$0xff] }
 0x1df   : > { %2344 = vmatpush1.bf16.msra.mxu0 %v12983_v58  ;;  %v13013_v58 = vld [vmem:[%s13575_s9 + $0x510] ss:$8 sps:$4 sm:$0xff]  }
 0x1e0   : > { %2345 = vmatprep.subr.bf16.mxu0 %v12991_v59  ;;  %v13021_v59 = vld [vmem:[%s13575_s9 + $0x524] ss:$8 sps:$4 sm:$0xff]  }
 0x1e2   : > { %5615 = vperm.xlu0 %12768, %v11445_v35  }
 0x1e3   : > { %2346 = vmatpush1.bf16.msra.mxu0 %v12989_v60  ;;  %v13019_v60 = vld [vmem:[%s13575_s9 + $0x520] ss:$8 sps:$4 sm:$0xff]  }
 0x1e4   : > { %2347 = vmatprep.subr.bf16.mxu0 %v12997_v61  ;;  %v13968_v2 = vpop.f32.mrb[8].mxu1  ;;  %v13027_v61 = vld [vmem:[%s13575_s9 + $0x534] ss:$8 sps:$4 sm:$0xff]  }
 0x1e5   : > { %v13970_v3 = vpop.f32.mrb[9].mxu1 }
 0x1e6   : > { %v13972_v4 = vpop.f32.mrb[10].mxu1  ;;  %5802 = vperm.xlu0 %12768, %v11495_v38   ;;  %v5937_v38 = vld [vmem:[%s13650_s27 + $0x10] sm:$0xff] }
 0x1e7   : > { %2348 = vmatpush1.bf16.msra.mxu0 %v12995_v63  ;;  %v12633_v5 = vpack.c.bf16 %v13972_v4, %v13968_v2  ;;  %v13976_v6 = vpop.f32.mrb[11].mxu1  ;;  %v13025_v63 = vld [vmem:[%s13575_s9 + $0x530] ss:$8 sps:$4 sm:$0xff]   ;;  %v13039_v2 = vld [vmem:[%s13575_s9 + $0x554] ss:$8 sps:$4 sm:$0xff]  }
 0x1e8   : > { %2349 = vmatprep.subr.bf16.mxu0 %v13003_v0  ;;  %v12631_v7 = vpack.c.bf16 %v13976_v6, %v13970_v3  ;;  %v13033_v0 = vld [vmem:[%s13575_s9 + $0x544] ss:$8 sps:$4 sm:$0xff]   ;;  %v13037_v3 = vld [vmem:[%s13575_s9 + $0x550] ss:$8 sps:$4 sm:$0xff]   ;;  %v13051_v6 = vld [vmem:[%s13575_s9 + $0x574] ss:$8 sps:$4 sm:$0xff]  }
 0x1e9   : > { %v13045_v4 = vld [vmem:[%s13575_s9 + $0x564] ss:$8 sps:$4 sm:$0xff]  }
 0x1ea   : > { %5816 = vperm.xlu0 %12768, %v4033_v42   ;;  %v5943_v42 = vld [vmem:[%s13660_s21] sm:$0xff] }
 0x1eb   : > { %2350 = vmatpush1.bf16.msra.mxu0 %v13001_v1  ;;  %v13031_v1 = vld [vmem:[%s13575_s9 + $0x540] ss:$8 sps:$4 sm:$0xff]  }
 0x1ee   : > { %2352 = vmatmul.mubr.bf16.vlgmr.msra.gmra.mrb[8].mxu0 %v13843_v62  ;;  %5828 = vperm.xlu0 %12768, %v4037_v45  }
 0x1ef   : > { %2431 = vmatprep.mubr.f32.mxu0 %v15286_v40 }
 0x241   : > { %v14136_v35 = vpop.permute.xlu0 %4012 }
 0x245   : > { %v14139_v37 = vpop.permute.xlu0 %4041 }
 0x249   : > { %v14143_v41 = vpop.permute.xlu0 %4493 }
 0x24d   : > { %v14146_v43 = vpop.permute.xlu0 %4680 }
 0x29c   : > { %v14065_v26 = vpop.f32.mrb[12].mxu1 }
 0x29d   : > { %v14067_v27 = vpop.f32.mrb[13].mxu1 }
 0x29e   : > { %v14069_v28 = vpop.f32.mrb[14].mxu1 }
 0x29f   : > { %v12641_v30 = vpack.c.bf16 %v14069_v28, %v14065_v26  ;;  %v14074_v31 = vpop.f32.mrb[15].mxu1  ;;  %v13109_v26 = vld [vmem:[%s13575_s9 + $0x710] ss:$8 sps:$4 sm:$0xff]  }
 0x2a0   : > { %v12639_v32 = vpack.c.bf16 %v14074_v31, %v14067_v27  ;;  %v7448_v27 = vld [vmem:[%s13675_s4 + $0x10] sm:$0xff] }
 0x2c1   : > { %v2353_v47 = vpop.f32.mrb[8].mxu0 }
 0x2c2   : > { %v2355_v48 = vpop.f32.mrb[9].mxu0 }
 0x2c3   : > { %v2357_v49 = vpop.f32.mrb[10].mxu0 }
 0x2c4   : > { %v12629_v50 = vpack.c.bf16 %v2357_v49, %v2353_v47  ;;  %v2359_v51 = vpop.f32.mrb[11].mxu0  ;;  %v13132_v47 = vld [vmem:[%s13575_s9 + $0x834] ss:$8 sps:$4 sm:$0xff]   ;;  %v13136_v49 = vld [vmem:[%s13575_s9 + $0x840] ss:$8 sps:$4 sm:$0xff]  }
 0x2c5   : > { %v12627_v52 = vpack.c.bf16 %v2359_v51, %v2355_v48  ;;  %3895 = vmatprep.subr.bf16.mxu1 %v13132_v47  ;;  %v5933_v48 = vld [vmem:[%s13640_s12] sm:$0xff] }
 0x2c6   : > { %3896 = vmatpush1.bf16.msra.mxu1 %v13130_v46  ;;  %5949 = vperm.xlu0 %12768, %v5933_v48   ;;  %v6142_v51 = vld [vmem:[%s13645_s20] sm:$0xff] }
 0x2c7   : > { %12628 = vmatprep.subr.bf16.mxu0 %v12627_v52  ;;  %v13142_v52 = vld [vmem:[%s13575_s9 + $0x850] ss:$8 sps:$4 sm:$0xff]   ;;  %v7446_v47 = vld [vmem:[%s13675_s4] sm:$0xff] }
 0x2c8   : > { %12630 = vmatpush1.bf16.msra.mxu0 %v12629_v50  ;;  %v13138_v50 = vld [vmem:[%s13575_s9 + $0x844] ss:$8 sps:$4 sm:$0xff]  }
 0x2c9   : > { %12632 = vmatprep.subr.bf16.mxu0 %v12631_v7  ;;  %v13049_v7 = vld [vmem:[%s13575_s9 + $0x570] ss:$8 sps:$4 sm:$0xff]   ;;  %3897 = vmatprep.subr.bf16.mxu1 %v13138_v50 }
 0x2ca   : > { %3898 = vmatpush1.bf16.msra.mxu1 %v13136_v49  ;;  %6148 = vperm.xlu0 %12768, %v6142_v51   ;;  %v14150_v49 = vpop.permute.xlu0 %4867 }
 0x2cb   : > { %10745 = vmatmul.mubr.msk.f32.vlgmr.msra.gmra.mrb[4].mxu0 %vm1663_vm0, %v10744_v53  ;;  %v13144_v53 = vld [vmem:[%s13575_s9 + $0x854] ss:$8 sps:$4 sm:$0xff]  }
 0x2cc   : > { %12634 = vmatpush1.bf16.msra.mxu0 %v12633_v5  ;;  %2745 = vmatprep.mubr.f32.mxu0 %v15286_v40  ;;  %v13043_v5 = vld [vmem:[%s13575_s9 + $0x560] ss:$8 sps:$4 sm:$0xff]  }
 0x2cd   : > { %2947 = vmatprep.subr.bf16.mxu0 %v13012_v54  ;;  %3899 = vmatprep.subr.bf16.mxu1 %v13144_v53  ;;  %v11525_v54 = vld [vmem:[%s13645_s20 + $0x20] sm:$0xff] }
 0x2ce   : > { %3900 = vmatpush1.bf16.msra.mxu1 %v13142_v52  ;;  %6259 = vperm.xlu0 %12768, %v11525_v54   ;;  %v11675_v53 = vld [vmem:[%s13675_s4 + $0x20] sm:$0xff]  ;;  %v14153_v54 = vpop.permute.xlu0 %5054 }
 0x2d3   : > { %10811 = vmatmul.mubr.msk.f32.vlgmr.msra.gmra.mrb[4].mxu0 %vm1663_vm0, %v10810_v56  ;;  %v13150_v56 = vld [vmem:[%s13575_s9 + $0x864] ss:$8 sps:$4 sm:$0xff]  }
 0x2d4   : > { %2948 = vmatpush1.bf16.msra.mxu0 %v13010_v55  ;;  %2979 = vmatprep.mubr.bf16.mxu0 %v13802_v24  ;;  %v13148_v55 = vld [vmem:[%s13575_s9 + $0x860] ss:$8 sps:$4 sm:$0xff]  }
 0x2d5   : > { %2949 = vmatprep.subr.bf16.mxu0 %v13015_v57  ;;  %3901 = vmatprep.subr.bf16.mxu1 %v13150_v56  ;;  %v11543_v57 = vld [vmem:[%s13645_s20 + $0x40] sm:$0xff] }
 0x2d6   : > { %3902 = vmatpush1.bf16.msra.mxu1 %v13148_v55  ;;  %6374 = vperm.xlu0 %12768, %v11543_v57   ;;  %v10876_v55 = vld [vmem:[%s13595_s25 + $0x28] sm:$0xff]  ;;  %v11684_v57 = vld [vmem:[%s13675_s4 + $0x40] sm:$0xff] }
 0x2d7   : > { %v13108_v56 = vld [vmem:[%s13575_s9 + $0x704] ss:$8 sps:$4 sm:$0xff]  }
 0x2d8   : > { %2950 = vmatpush1.bf16.msra.mxu0 %v13013_v58  ;;  %v13154_v58 = vld [vmem:[%s13575_s9 + $0x870] ss:$8 sps:$4 sm:$0xff]  }
 0x2d9   : > { %2951 = vmatprep.subr.bf16.mxu0 %v13021_v59  ;;  %v13156_v59 = vld [vmem:[%s13575_s9 + $0x874] ss:$8 sps:$4 sm:$0xff]  }
 0x2da   : > { %3903 = vmatprep.subr.bf16.mxu1 %v13156_v59  ;;  %v10942_v59 = vld [vmem:[%s13595_s25 + $0x30] sm:$0xff] }
 0x2db   : > { %3904 = vmatpush1.bf16.msra.mxu1 %v13154_v58  ;;  %v14162_v58 = vpop.permute.xlu0 %5241 }
 0x2dc   : > { %2952 = vmatpush1.bf16.msra.mxu0 %v13019_v60  ;;  %v6144_v60 = vld [vmem:[%s13645_s20 + $0x10] sm:$0xff] }
 0x2dd   : > { %2953 = vmatprep.subr.bf16.mxu0 %v13027_v61  ;;  %6158 = vperm.xlu0 %12768, %v6144_v60   ;;  %v13160_v61 = vld [vmem:[%s13575_s9 + $0x880] ss:$8 sps:$4 sm:$0xff]   ;;  %v13111_v60 = vld [vmem:[%s13575_s9 + $0x714] ss:$8 sps:$4 sm:$0xff]  }
 0x2df   : > { %v14169_v31 = vpop.permute.xlu0 %5428 }
 0x2e0   : > { %2954 = vmatpush1.bf16.msra.mxu0 %v13025_v63  ;;  %v13162_v63 = vld [vmem:[%s13575_s9 + $0x884] ss:$8 sps:$4 sm:$0xff]  }
 0x2e1   : > { %2955 = vmatprep.subr.bf16.mxu0 %v13033_v0  ;;  %3905 = vmatprep.subr.bf16.mxu1 %v13162_v63  ;;  %v11527_v0 = vld [vmem:[%s13645_s20 + $0x30] sm:$0xff]  ;;  %v11693_v63 = vld [vmem:[%s13675_s4 + $0x60] sm:$0xff] }
 0x2e2   : > { %3906 = vmatpush1.bf16.msra.mxu1 %v13160_v61  ;;  %6269 = vperm.xlu0 %12768, %v11527_v0   ;;  %v11677_v61 = vld [vmem:[%s13675_s4 + $0x30] sm:$0xff]  ;;  %v13115_v0 = vld [vmem:[%s13575_s9 + $0x720] ss:$8 sps:$4 sm:$0xff]  }
 0x2e3   : > { %v14178_v28 = vpop.permute.xlu0 %5615 }
 0x2e4   : > { %2956 = vmatpush1.bf16.msra.mxu0 %v13031_v1  ;;  %v13166_v1 = vld [vmem:[%s13575_s9 + $0x890] ss:$8 sps:$4 sm:$0xff]  }
 0x2e5   : > { %2957 = vmatprep.subr.bf16.mxu0 %v13039_v2  ;;  %v13168_v2 = vld [vmem:[%s13575_s9 + $0x894] ss:$8 sps:$4 sm:$0xff]  }
 0x2e6   : > { %3907 = vmatprep.subr.bf16.mxu1 %v13168_v2  ;;  %v13123_v2 = vld [vmem:[%s13575_s9 + $0x734] ss:$8 sps:$4 sm:$0xff]  }
 0x2e7   : > { %3908 = vmatpush1.bf16.msra.mxu1 %v13166_v1  ;;  %v14183_v1 = vpop.permute.xlu0 %5802 }
 0x2e8   : > { %2958 = vmatpush1.bf16.msra.mxu0 %v13037_v3  ;;  %v11561_v3 = vld [vmem:[%s13645_s20 + $0x60] sm:$0xff] }
 0x2e9   : > { %2959 = vmatprep.subr.bf16.mxu0 %v13045_v4  ;;  %6489 = vperm.xlu0 %12768, %v11561_v3   ;;  %v13172_v4 = vld [vmem:[%s13575_s9 + $0x8a0] ss:$8 sps:$4 sm:$0xff]   ;;  %v11686_v3 = vld [vmem:[%s13675_s4 + $0x50] sm:$0xff] }
 0x2ec   : > { %2960 = vmatpush1.bf16.msra.mxu0 %v13043_v5  ;;  %v13174_v5 = vld [vmem:[%s13575_s9 + $0x8a4] ss:$8 sps:$4 sm:$0xff]  }
 0x2ed   : > { %2961 = vmatprep.subr.bf16.mxu0 %v13051_v6  ;;  %3909 = vmatprep.subr.bf16.mxu1 %v13174_v5  ;;  %v11545_v6 = vld [vmem:[%s13645_s20 + $0x50] sm:$0xff]  ;;  %v13129_v5 = vld [vmem:[%s13575_s9 + $0x744] ss:$8 sps:$4 sm:$0xff]  }
 0x2ee   : > { %3910 = vmatpush1.bf16.msra.mxu1 %v13172_v4  ;;  %6384 = vperm.xlu0 %12768, %v11545_v6   ;;  %v14188_v4 = vpop.permute.xlu0 %5816  ;;  %v11702_v6 = vld [vmem:[%s13675_s4 + $0x80] sm:$0xff] }
 0x2f0   : > { %2962 = vmatpush1.bf16.msra.mxu0 %v13049_v7  ;;  %v13178_v7 = vld [vmem:[%s13575_s9 + $0x8b0] ss:$8 sps:$4 sm:$0xff]  }
 0x2f1   : > { %2963 = vmatprep.subr.bf16.mxu0 %v13057_v8  ;;  %v13180_v8 = vld [vmem:[%s13575_s9 + $0x8b4] ss:$8 sps:$4 sm:$0xff]  }
 0x2f2   : > { %3911 = vmatprep.subr.bf16.mxu1 %v13180_v8  ;;  %v14193_v8 = vpop.permute.xlu0 %5828 }
 0x2f3   : > { %3912 = vmatpush1.bf16.msra.mxu1 %v13178_v7  ;;  %v13127_v7 = vld [vmem:[%s13575_s9 + $0x740] ss:$8 sps:$4 sm:$0xff]  }
 0x2f4   : > { %2964 = vmatpush1.bf16.msra.mxu0 %v13055_v9  ;;  %v11579_v9 = vld [vmem:[%s13645_s20 + $0x80] sm:$0xff] }
 0x2f5   : > { %2965 = vmatprep.subr.bf16.mxu0 %v13063_v10  ;;  %6604 = vperm.xlu0 %12768, %v11579_v9   ;;  %v13184_v10 = vld [vmem:[%s13575_s9 + $0x8c0] ss:$8 sps:$4 sm:$0xff]   ;;  %v13135_v9 = vld [vmem:[%s13575_s9 + $0x754] ss:$8 sps:$4 sm:$0xff]  }
 0x2f8   : > { %2966 = vmatpush1.bf16.msra.mxu0 %v13061_v11  ;;  %v13186_v11 = vld [vmem:[%s13575_s9 + $0x8c4] ss:$8 sps:$4 sm:$0xff]  }
 0x2f9   : > { %2967 = vmatprep.subr.bf16.mxu0 %v13069_v12  ;;  %3913 = vmatprep.subr.bf16.mxu1 %v13186_v11  ;;  %v11563_v12 = vld [vmem:[%s13645_s20 + $0x70] sm:$0xff] }
 0x2fa   : > { %3914 = vmatpush1.bf16.msra.mxu1 %v13184_v10  ;;  %6499 = vperm.xlu0 %12768, %v11563_v12   ;;  %v11695_v10 = vld [vmem:[%s13675_s4 + $0x70] sm:$0xff] }
 0x2fb   : > { %v13133_v11 = vld [vmem:[%s13575_s9 + $0x750] ss:$8 sps:$4 sm:$0xff]  }
 0x2fc   : > { %2968 = vmatpush1.bf16.msra.mxu0 %v13067_v13  ;;  %v13190_v13 = vld [vmem:[%s13575_s9 + $0x8d0] ss:$8 sps:$4 sm:$0xff]  }
 0x2fd   : > { %2969 = vmatprep.subr.bf16.mxu0 %v13075_v14  ;;  %v13192_v14 = vld [vmem:[%s13575_s9 + $0x8d4] ss:$8 sps:$4 sm:$0xff]  }
 0x2fe   : > { %3915 = vmatprep.subr.bf16.mxu1 %v13192_v14  ;;  %v11711_v14 = vld [vmem:[%s13675_s4 + $0xa0] sm:$0xff] }
 0x2ff   : > { %3916 = vmatpush1.bf16.msra.mxu1 %v13190_v13  ;;  %v13141_v13 = vld [vmem:[%s13575_s9 + $0x764] ss:$8 sps:$4 sm:$0xff]  }
 0x300   : > { %2970 = vmatpush1.bf16.msra.mxu0 %v13073_v15  ;;  %v11597_v15 = vld [vmem:[%s13645_s20 + $0xa0] sm:$0xff] }
 0x301   : > { %2971 = vmatprep.subr.bf16.mxu0 %v13081_v16  ;;  %6719 = vperm.xlu0 %12768, %v11597_v15   ;;  %v13196_v16 = vld [vmem:[%s13575_s9 + $0x8e0] ss:$8 sps:$4 sm:$0xff]  }
 0x302   : > { %v13139_v15 = vld [vmem:[%s13575_s9 + $0x760] ss:$8 sps:$4 sm:$0xff]  }
 0x304   : > { %2972 = vmatpush1.bf16.msra.mxu0 %v13079_v17  ;;  %v13198_v17 = vld [vmem:[%s13575_s9 + $0x8e4] ss:$8 sps:$4 sm:$0xff]  }
 0x305   : > { %2973 = vmatprep.subr.bf16.mxu0 %v13087_v18  ;;  %3917 = vmatprep.subr.bf16.mxu1 %v13198_v17  ;;  %v11581_v18 = vld [vmem:[%s13645_s20 + $0x90] sm:$0xff] }
 0x306   : > { %3918 = vmatpush1.bf16.msra.mxu1 %v13196_v16  ;;  %6614 = vperm.xlu0 %12768, %v11581_v18   ;;  %v13147_v17 = vld [vmem:[%s13575_s9 + $0x774] ss:$8 sps:$4 sm:$0xff]  }
 0x307   : > { %v11704_v18 = vld [vmem:[%s13675_s4 + $0x90] sm:$0xff] }
 0x308   : > { %2974 = vmatpush1.bf16.msra.mxu0 %v13085_v19  ;;  %v13201_v19 = vld [vmem:[%s13575_s9 + $0x8f4] ss:$8 sps:$4 sm:$0xff]  }
 0x309   : > { %2975 = vmatprep.subr.bf16.mxu0 %v13093_v20  ;;  %v13199_v20 = vld [vmem:[%s13575_s9 + $0x8f0] ss:$8 sps:$4 sm:$0xff]   ;;  %3919 = vmatprep.subr.bf16.mxu1 %v13201_v19 }
 0x30a   : > { %3920 = vmatpush1.bf16.msra.mxu1 %v13199_v20  ;;  %v13145_v19 = vld [vmem:[%s13575_s9 + $0x770] ss:$8 sps:$4 sm:$0xff]  }
 0x30c   : > { %2976 = vmatpush1.bf16.msra.mxu0 %v13091_v21  ;;  %v11615_v21 = vld [vmem:[%s13645_s20 + $0xc0] sm:$0xff] }
 0x30d   : > { %2977 = vmatprep.subr.bf16.mxu0 %v13099_v22  ;;  %6834 = vperm.xlu0 %12768, %v11615_v21   ;;  %v11599_v22 = vld [vmem:[%s13645_s20 + $0xb0] sm:$0xff]  ;;  %v13153_v21 = vld [vmem:[%s13575_s9 + $0x784] ss:$8 sps:$4 sm:$0xff]  }
 0x30e   : > { %3922 = vmatmul.mubr.bf16.vlgmr.msra.gmra.mrb[16].mxu1 %v13843_v62 }
 0x310   : > { %2978 = vmatpush1.bf16.msra.mxu0 %v13097_v23  ;;  %v11633_v23 = vld [vmem:[%s13645_s20 + $0xe0] sm:$0xff] }
 0x311   : > { %6729 = vperm.xlu0 %12768, %v11599_v22   ;;  %v11720_v22 = vld [vmem:[%s13675_s4 + $0xc0] sm:$0xff] }
 0x313   : > { %2980 = vmatmul.mubr.bf16.vlgmr.msra.gmra.mrb[12].mxu0 %v13843_v62 }
 0x314   : > { %3059 = vmatprep.mubr.f32.mxu0 %v15286_v40 }
 0x315   : > { %6949 = vperm.xlu0 %12768, %v11633_v23   ;;  %v13151_v23 = vld [vmem:[%s13575_s9 + $0x780] ss:$8 sps:$4 sm:$0xff]  }
 0x319   : > { %6844 = vperm.xlu0 %12768, %v11617_v25  }
 0x31d   : > { %7064 = vperm.xlu0 %12768, %v11651_v29   ;;  %v13159_v29 = vld [vmem:[%s13575_s9 + $0x794] ss:$8 sps:$4 sm:$0xff]  }
 0x321   : > { %6959 = vperm.xlu0 %12768, %v11635_v33   ;;  %v11713_v33 = vld [vmem:[%s13675_s4 + $0xb0] sm:$0xff] }
 0x325   : > { %7074 = vperm.xlu0 %12768, %v11653_v34   ;;  %v13157_v34 = vld [vmem:[%s13575_s9 + $0x790] ss:$8 sps:$4 sm:$0xff]  }
 0x329   : > { %7092 = vperm.xlu0 %12768, %v5935_v36  }
 0x32d   : > { %7102 = vperm.xlu0 %12768, %v5937_v38   ;;  %v13165_v38 = vld [vmem:[%s13575_s9 + $0x7a4] ss:$8 sps:$4 sm:$0xff]  }
 0x331   : > { %7126 = vperm.xlu0 %12768, %v5945_v39   ;;  %v11729_v39 = vld [vmem:[%s13675_s4 + $0xe0] sm:$0xff] }
 0x335   : > { %7116 = vperm.xlu0 %12768, %v5943_v42   ;;  %v13163_v42 = vld [vmem:[%s13575_s9 + $0x7a0] ss:$8 sps:$4 sm:$0xff]  }
 0x339   : > { %7278 = vperm.xlu0 %12768, %v7262_v44  }
 0x33d   : > { %7452 = vperm.xlu0 %12768, %v7446_v47   ;;  %v13169_v47 = vld [vmem:[%s13575_s9 + $0x7b0] ss:$8 sps:$4 sm:$0xff]  }
 0x341   : > { %7539 = vperm.xlu0 %12768, %v11675_v53   ;;  %v13183_v53 = vld [vmem:[%s13575_s9 + $0x7d4] ss:$8 sps:$4 sm:$0xff]  }
 0x345   : > { %7630 = vperm.xlu0 %12768, %v11684_v57   ;;  %v14198_v12 = vpop.permute.xlu0 %5949  ;;  %v13181_v57 = vld [vmem:[%s13575_s9 + $0x7d0] ss:$8 sps:$4 sm:$0xff]  }
 0x349   : > { %7462 = vperm.xlu0 %12768, %v7448_v27   ;;  %v14203_v16 = vpop.permute.xlu0 %6148  ;;  %v13189_v27 = vld [vmem:[%s13575_s9 + $0x7e4] ss:$8 sps:$4 sm:$0xff]  }
 0x34d   : > { %7549 = vperm.xlu0 %12768, %v11677_v61   ;;  %v14208_v20 = vpop.permute.xlu0 %6259  ;;  %v13195_v61 = vld [vmem:[%s13575_s9 + $0x7f4] ss:$8 sps:$4 sm:$0xff]  }
 0x351   : > { %7721 = vperm.xlu0 %12768, %v11693_v63  }
 0x355   : > { %7640 = vperm.xlu0 %12768, %v11686_v3   ;;  %v14213_v25 = vpop.permute.xlu0 %6374 }
 0x359   : > { %7812 = vperm.xlu0 %12768, %v11702_v6   ;;  %v8373_v6 = vld [vmem:[%s15322_s1] sm:$0xff] }
 0x35c   : > { %v14218_v36 = vpop.permute.xlu0 %6158 }
 0x35d   : > { %7731 = vperm.xlu0 %12768, %v11695_v10  }
 0x361   : > { %7903 = vperm.xlu0 %12768, %v11711_v14   ;;  %v14223_v44 = vpop.permute.xlu0 %6269 }
 0x365   : > { %7822 = vperm.xlu0 %12768, %v11704_v18   ;;  %v11770_v18 = vld [vmem:[%s15323_s2 + $0x60] sm:$0xff] }
 0x369   : > { %7994 = vperm.xlu0 %12768, %v11720_v22   ;;  %v11776_v22 = vld [vmem:[%s15323_s2 + $0x80] sm:$0xff] }
 0x36d   : > { %7913 = vperm.xlu0 %12768, %v11713_v33   ;;  %v11782_v33 = vld [vmem:[%s15323_s2 + $0xa0] sm:$0xff] }
 0x371   : > { %8085 = vperm.xlu0 %12768, %v11729_v39  }
 0x3e6   : > { %v2981_v45 = vpop.f32.mrb[12].mxu0 }
 0x3e7   : > { %v2983_v46 = vpop.f32.mrb[13].mxu0 }
 0x3e8   : > { %v2985_v48 = vpop.f32.mrb[14].mxu0 }
 0x3e9   : > { %v12637_v50 = vpack.c.bf16 %v2985_v48, %v2981_v45  ;;  %v2987_v51 = vpop.f32.mrb[15].mxu0  ;;  %v13171_v45 = vld [vmem:[%s13575_s9 + $0x7b4] ss:$8 sps:$4 sm:$0xff]   ;;  %v14228_v48 = vpop.permute.xlu0 %6489 }
 0x3ea   : > { %v12635_v52 = vpack.c.bf16 %v2987_v51, %v2983_v46  ;;  %v11722_v46 = vld [vmem:[%s13675_s4 + $0xd0] sm:$0xff]  ;;  %v11738_v51 = vld [vmem:[%s13675_s4 + $0x100] sm:$0xff] }
 0x3eb   : > { %8004 = vperm.xlu0 %12768, %v11722_v46  }
 0x3ec   : > { %12636 = vmatprep.subr.bf16.mxu0 %v12635_v52  ;;  %v13175_v52 = vld [vmem:[%s13575_s9 + $0x7c0] ss:$8 sps:$4 sm:$0xff]  }
 0x3ed   : > { %12638 = vmatpush1.bf16.msra.mxu0 %v12637_v50  ;;  %v13177_v50 = vld [vmem:[%s13575_s9 + $0x7c4] ss:$8 sps:$4 sm:$0xff]  }
 0x3ee   : > { %12640 = vmatprep.subr.bf16.mxu0 %v12639_v32  ;;  %v13106_v32 = vld [vmem:[%s13575_s9 + $0x700] ss:$8 sps:$4 sm:$0xff]  }
 0x3ef   : > { %8176 = vperm.xlu0 %12768, %v11738_v51   ;;  %v11790_v51 = vld [vmem:[%s15323_s2 + $0xd0] sm:$0xff] }
 0x3f0   : > { %10877 = vmatmul.mubr.msk.f32.vlgmr.msra.gmra.mrb[4].mxu0 %vm1663_vm0, %v10876_v55  ;;  %v14234_v55 = vpop.permute.xlu0 %6384 }
 0x3f1   : > { %12642 = vmatpush1.bf16.msra.mxu0 %v12641_v30  ;;  %3373 = vmatprep.mubr.f32.mxu0 %v15286_v40  ;;  %v13117_v30 = vld [vmem:[%s13575_s9 + $0x724] ss:$8 sps:$4 sm:$0xff]  }
 0x3f2   : > { %3575 = vmatprep.subr.bf16.mxu0 %v13108_v56  ;;  %v11731_v56 = vld [vmem:[%s13675_s4 + $0xf0] sm:$0xff] }
 0x3f3   : > { %8095 = vperm.xlu0 %12768, %v11731_v56   ;;  %v11796_v56 = vld [vmem:[%s15323_s2 + $0xf0] sm:$0xff] }
 0x3f8   : > { %10943 = vmatmul.mubr.msk.f32.vlgmr.msra.gmra.mrb[4].mxu0 %vm1663_vm0, %v10942_v59  ;;  %v14240_v59 = vpop.permute.xlu0 %6604 }
 0x3f9   : > { %3576 = vmatpush1.bf16.msra.mxu0 %v13106_v32  ;;  %3607 = vmatprep.mubr.bf16.mxu0 %v13802_v24  ;;  %v13121_v24 = vld [vmem:[%s13575_s9 + $0x730] ss:$8 sps:$4 sm:$0xff]  }
 0x3fa   : > { %3577 = vmatprep.subr.bf16.mxu0 %v13111_v60  ;;  %v11740_v32 = vld [vmem:[%s13675_s4 + $0x110] sm:$0xff]  ;;  %v13187_v60 = vld [vmem:[%s13575_s9 + $0x7e0] ss:$8 sps:$4 sm:$0xff]  }
 0x3fb   : > { %8186 = vperm.xlu0 %12768, %v11740_v32  }
 0x3fc   : > { %v14246_v63 = vpop.permute.xlu0 %6499 }
 0x3fd   : > { %3578 = vmatpush1.bf16.msra.mxu0 %v13109_v26  ;;  %v7264_v26 = vld [vmem:[%s15320_s26] sm:$0xff] }
 0x3fe   : > { %3579 = vmatprep.subr.bf16.mxu0 %v13117_v30  ;;  %v13193_v30 = vld [vmem:[%s13575_s9 + $0x7f0] ss:$8 sps:$4 sm:$0xff]  }
 0x3ff   : > { %8204 = vperm.xlu0 %12768, %v7264_v26  }
 0x400   : > { %v14251_v3 = vpop.permute.xlu0 %6719 }
 0x401   : > { %3580 = vmatpush1.bf16.msra.mxu0 %v13115_v0  ;;  %v7266_v0 = vld [vmem:[%s15320_s26 + $0x10] sm:$0xff]  ;;  %15324 = vst [vmem:[#allocation25_spill] sm:$0xff] %v14251_v3 }
 0x402   : > { %3581 = vmatprep.subr.bf16.mxu0 %v13123_v2  ;;  %v7274_v2 = vld [vmem:[%s15321_s28 + $0x10] sm:$0xff] }
 0x403   : > { %8214 = vperm.xlu0 %12768, %v7266_v0   ;;  %v8377_v0 = vld [vmem:[%s15333_s7 + $0x10] sm:$0xff] }
 0x405   : > { %3582 = vmatpush1.bf16.msra.mxu0 %v13121_v24  ;;  %v7272_v24 = vld [vmem:[%s15321_s28] sm:$0xff] }
 0x406   : > { %3583 = vmatprep.subr.bf16.mxu0 %v13129_v5  ;;  %v14255_v5 = vpop.permute.xlu0 %6614 }
 0x407   : > { %8238 = vperm.xlu0 %12768, %v7274_v2  }
 0x409   : > { %3584 = vmatpush1.bf16.msra.mxu0 %v13127_v7  ;;  %v8549_v7 = vld [vmem:[%s15323_s2] sm:$0xff] }
 0x40a   : > { %3585 = vmatprep.subr.bf16.mxu0 %v13135_v9  ;;  %v14259_v9 = vpop.permute.xlu0 %6834 }
 0x40b   : > { %8228 = vperm.xlu0 %12768, %v7272_v24   ;;  %15325 = vst [vmem:[#allocation26_spill] sm:$0xff] %v14259_v9  ;;  %v9408_v24 = vld [vmem:[%s15352_s15 + $0x10] sm:$0xff]  ;;  %v9405_v9 = vld [vmem:[%s15339_s11 + $0x8] sm:$0xff] }
 0x40d   : > { %3586 = vmatpush1.bf16.msra.mxu0 %v13133_v11  ;;  %v11764_v11 = vld [vmem:[%s15323_s2 + $0x40] sm:$0xff] }
 0x40e   : > { %3587 = vmatprep.subr.bf16.mxu0 %v13141_v13  ;;  %v14262_v10 = vpop.permute.xlu0 %6729  ;;  %v8551_v13 = vld [vmem:[%s15323_s2 + $0x10] sm:$0xff] }
 0x40f   : > { %8389 = vperm.xlu0 %12768, %v8373_v6  }
 0x411   : > { %3588 = vmatpush1.bf16.msra.mxu0 %v13139_v15  ;;  %v11760_v15 = vld [vmem:[%s15323_s2 + $0x30] sm:$0xff] }
 0x412   : > { %3589 = vmatprep.subr.bf16.mxu0 %v13147_v17  ;;  %v14266_v14 = vpop.permute.xlu0 %6949 }
 0x413   : > { %8555 = vperm.xlu0 %12768, %v8549_v7   ;;  %15326 = vst [vmem:[#allocation27_spill] sm:$0xff] %v14266_v14  ;;  %v9412_v7 = vld [vmem:[%s13750_s13] sm:$0xff]  ;;  %v11789_v14 = vld [vmem:[%s15323_s2 + $0xc8] sm:$0xff] }
 0x415   : > { %3590 = vmatpush1.bf16.msra.mxu0 %v13145_v19  ;;  %v11766_v19 = vld [vmem:[%s15323_s2 + $0x50] sm:$0xff] }
 0x416   : > { %3591 = vmatprep.subr.bf16.mxu0 %v13153_v21  ;;  %v14269_v17 = vpop.permute.xlu0 %6844 }
 0x417   : > { %15327 = vst [vmem:[#allocation28_spill] sm:$0xff] %v14269_v17 }
 0x419   : > { %3592 = vmatpush1.bf16.msra.mxu0 %v13151_v23 }
 0x41a   : > { %3593 = vmatprep.subr.bf16.mxu0 %v13159_v29  ;;  %v14273_v21 = vpop.permute.xlu0 %7064  ;;  %v11772_v29 = vld [vmem:[%s15323_s2 + $0x70] sm:$0xff] }
 0x41b   : > { %15328 = vst [vmem:[#allocation29_spill] sm:$0xff] %v14273_v21  ;;  %v11771_v21 = vld [vmem:[%s15323_s2 + $0x68] sm:$0xff] }
 0x41d   : > { %3594 = vmatpush1.bf16.msra.mxu0 %v13157_v34 }
 0x41e   : > { %3595 = vmatprep.subr.bf16.mxu0 %v13165_v38  ;;  %v14276_v23 = vpop.permute.xlu0 %6959  ;;  %v11778_v38 = vld [vmem:[%s15323_s2 + $0x90] sm:$0xff] }
 0x41f   : > { %15329 = vst [vmem:[#allocation30_spill] sm:$0xff] %v14276_v23 }
 0x421   : > { %3596 = vmatpush1.bf16.msra.mxu0 %v13163_v42  ;;  %v11788_v42 = vld [vmem:[%s15323_s2 + $0xc0] sm:$0xff] }
 0x422   : > { %3597 = vmatprep.subr.bf16.mxu0 %v13171_v45  ;;  %v14280_v34 = vpop.permute.xlu0 %7074  ;;  %v11784_v45 = vld [vmem:[%s15323_s2 + $0xb0] sm:$0xff] }
 0x423   : > { %15330 = vst [vmem:[#allocation31_spill] sm:$0xff] %v14280_v34  ;;  %v11777_v34 = vld [vmem:[%s15323_s2 + $0x88] sm:$0xff] }
 0x425   : > { %3598 = vmatpush1.bf16.msra.mxu0 %v13169_v47  ;;  %v11794_v47 = vld [vmem:[%s15323_s2 + $0xe0] sm:$0xff] }
 0x426   : > { %3599 = vmatprep.subr.bf16.mxu0 %v13177_v50  ;;  %v14283_v39 = vpop.permute.xlu0 %7092 }
 0x427   : > { %15331 = vst [vmem:[#allocation32_spill] sm:$0xff] %v14283_v39  ;;  %v7275_v39 = vld [vmem:[%s15321_s28 + $0x18] sm:$0xff] }
 0x429   : > { %3600 = vmatpush1.bf16.msra.mxu0 %v13175_v52  ;;  %v11800_v52 = vld [vmem:[%s15323_s2 + $0x100] sm:$0xff] }
 0x42a   : > { %3601 = vmatprep.subr.bf16.mxu0 %v13183_v53  ;;  %v14287_v46 = vpop.permute.xlu0 %7102 }
 0x42b   : > { %15332 = vst [vmem:[#allocation33_spill] sm:$0xff] %v14287_v46 }
 0x42d   : > { %3602 = vmatpush1.bf16.msra.mxu0 %v13181_v57 }
 0x42e   : > { %3603 = vmatprep.subr.bf16.mxu0 %v13189_v27  ;;  %v14290_v50 = vpop.permute.xlu0 %7126  ;;  %v11802_v27 = vld [vmem:[%s15323_s2 + $0x110] sm:$0xff] }
 0x42f   : > { %15334 = vst [vmem:[#allocation34_spill] sm:$0xff] %v14290_v50  ;;  %v11741_v50 = vld [vmem:[%s13675_s4 + $0x118] sm:$0xff] }
 0x431   : > { %3604 = vmatpush1.bf16.msra.mxu0 %v13187_v60  ;;  %v8375_v60 = vld [vmem:[%s15333_s7] sm:$0xff] }
 0x432   : > { %3605 = vmatprep.subr.bf16.mxu0 %v13195_v61  ;;  %v14294_v53 = vpop.permute.xlu0 %7116  ;;  %v14303_v61 = vpop.f32.mrb[16].mxu1 }
 0x433   : > { %15335 = vst [vmem:[#allocation35_spill] sm:$0xff] %v14294_v53  ;;  %v14305_v26 = vpop.f32.mrb[17].mxu1  ;;  %v13229_v53 = vld [vmem:[%s15363_s0 + $0xb0] sm:$0xff]  }
 0x435   : > { %3606 = vmatpush1.bf16.msra.mxu0 %v13193_v30  ;;  %v14307_v30 = vpop.f32.mrb[18].mxu1 }
 0x436   : > { %v14297_v57 = vpop.permute.xlu0 %7278  ;;  %v14314_v6 = vpop.f32.mrb[19].mxu1 }
 0x437   : > { %15336 = vst [vmem:[#allocation36_spill] sm:$0xff] %v14297_v57  ;;  %v13217_v57 = vld [vmem:[%s15363_s0 + $0x98] sm:$0xff]  }
 0x438   : > { %3608 = vmatmul.mubr.bf16.vlgmr.msra.gmra.mrb[16].mxu0 %v13843_v62  ;;  %v11758_v62 = vld [vmem:[%s15323_s2 + $0x20] sm:$0xff] }
 0x439   : > { %3687 = vmatprep.mubr.f32.mxu0 %v15286_v40  ;;  %8633 = vperm.xlu0 %12768, %v11758_v62   ;;  %v8385_v62 = vld [vmem:[%s15337_s10 + $0x10] sm:$0xff] }
 0x43a   : > { %v14300_v32 = vpop.permute.xlu0 %7452 }
 0x43b   : > { %15338 = vst [vmem:[#allocation37_spill] sm:$0xff] %v14300_v32  ;;  %v13208_v32 = vld [vmem:[%s15363_s0 + $0x8] sm:$0xff]  }
 0x43d   : > { %8715 = vperm.xlu0 %12768, %v11764_v11   ;;  %v8383_v11 = vld [vmem:[%s15337_s10] sm:$0xff] }
 0x43e   : > { %v14310_v2 = vpop.permute.xlu0 %7539 }
 0x43f   : > { %15341 = vst [vmem:[#allocation38_spill] sm:$0xff] %v14310_v2  ;;  %v13207_v2 = vld [vmem:[%s15363_s0 + $0xc8] sm:$0xff]  }
 0x441   : > { %8565 = vperm.xlu0 %12768, %v8551_v13  }
 0x442   : > { %v14320_v13 = vpop.permute.xlu0 %7630 }
 0x443   : > { %15342 = vst [vmem:[#allocation39_spill] sm:$0xff] %v14320_v13  ;;  %v13204_v13 = vld [vmem:[%s15363_s0] sm:$0xff]  }
 0x445   : > { %8643 = vperm.xlu0 %12768, %v11760_v15   ;;  %v9404_v15 = vld [vmem:[%s15339_s11] sm:$0xff] }
 0x449   : > { %8797 = vperm.xlu0 %12768, %v11770_v18   ;;  %v14323_v18 = vpop.permute.xlu0 %7462 }
 0x44a   : > { %15343 = vst [vmem:[#allocation40_spill] sm:$0xff] %v14323_v18  ;;  %v11723_v18 = vld [vmem:[%s13675_s4 + $0xd8] sm:$0xff] }
 0x44d   : > { %8725 = vperm.xlu0 %12768, %v11766_v19   ;;  %v9576_v19 = vld [vmem:[%s15340_s16] sm:$0xff] }
 0x451   : > { %8879 = vperm.xlu0 %12768, %v11776_v22   ;;  %v11820_v22 = vld [vmem:[%s15340_s16 + $0x20] sm:$0xff] }
 0x455   : > { %8807 = vperm.xlu0 %12768, %v11772_v29   ;;  %v14327_v29 = vpop.permute.xlu0 %7549 }
 0x456   : > { %15344 = vst [vmem:[#allocation41_spill] sm:$0xff] %v14327_v29  ;;  %v13209_v29 = vld [vmem:[%s15363_s0 + $0x88] sm:$0xff]  }
 0x459   : > { %8961 = vperm.xlu0 %12768, %v11782_v33   ;;  %v11826_v33 = vld [vmem:[%s15340_s16 + $0x40] sm:$0xff] }
 0x45d   : > { %8889 = vperm.xlu0 %12768, %v11778_v38   ;;  %v14330_v38 = vpop.permute.xlu0 %7721 }
 0x45e   : > { %15345 = vst [vmem:[#allocation42_spill] sm:$0xff] %v14330_v38  ;;  %v13202_v38 = vld [vmem:[%s15363_s0 + $0x40] sm:$0xff]  }
 0x461   : > { %9043 = vperm.xlu0 %12768, %v11788_v42   ;;  %v9578_v42 = vld [vmem:[%s15340_s16 + $0x10] sm:$0xff] }
 0x465   : > { %8971 = vperm.xlu0 %12768, %v11784_v45   ;;  %v11822_v45 = vld [vmem:[%s15340_s16 + $0x30] sm:$0xff] }
 0x469   : > { %9125 = vperm.xlu0 %12768, %v11794_v47   ;;  %v14334_v47 = vpop.permute.xlu0 %7640 }
 0x46a   : > { %15346 = vst [vmem:[#allocation43_spill] sm:$0xff] %v14334_v47  ;;  %v13205_v47 = vld [vmem:[%s15363_s0 + $0x80] sm:$0xff]  }
 0x46d   : > { %9053 = vperm.xlu0 %12768, %v11790_v51   ;;  %v11832_v51 = vld [vmem:[%s15340_s16 + $0x60] sm:$0xff] }
 0x471   : > { %9207 = vperm.xlu0 %12768, %v11800_v52   ;;  %v14337_v52 = vpop.permute.xlu0 %7812 }
 0x472   : > { %15347 = vst [vmem:[#allocation44_spill] sm:$0xff] %v14337_v52 }
 0x475   : > { %9135 = vperm.xlu0 %12768, %v11796_v56   ;;  %v11828_v56 = vld [vmem:[%s15340_s16 + $0x50] sm:$0xff] }
 0x479   : > { %9217 = vperm.xlu0 %12768, %v11802_v27   ;;  %v11838_v27 = vld [vmem:[%s15340_s16 + $0x80] sm:$0xff] }
 0x47d   : > { %9235 = vperm.xlu0 %12768, %v8375_v60   ;;  %v14341_v60 = vpop.permute.xlu0 %7731 }
 0x47e   : > { %15348 = vst [vmem:[#allocation45_spill] sm:$0xff] %v14341_v60  ;;  %v13203_v60 = vld [vmem:[%s15363_s0 + $0xc0] sm:$0xff]  }
 0x47f   : > { %11896 = vmatprep.subr.bf16.mxu1 %v13203_v60  ;;  %v13211_v60 = vld [vmem:[%s15363_s0 + $0xd0] sm:$0xff]  }
 0x480   : > { %11897 = vmatpush3.bf16.msra.mxu1 %v13205_v47  ;;  %v13212_v47 = vld [vmem:[%s15363_s0 + $0x10] sm:$0xff]  }
 0x481   : > { %9245 = vperm.xlu0 %12768, %v8377_v0   ;;  %v11834_v0 = vld [vmem:[%s15340_s16 + $0x70] sm:$0xff]  ;;  %11898 = vmatprep.subr.bf16.mxu1 %v13207_v2  ;;  %v13214_v2 = vld [vmem:[%s15363_s0 + $0x58] sm:$0xff]  }
 0x484   : > { %11899 = vmatpush3.bf16.msra.mxu1 %v13209_v29  ;;  %v13216_v29 = vld [vmem:[%s15363_s0 + $0x18] sm:$0xff]  }
 0x485   : > { %9269 = vperm.xlu0 %12768, %v8385_v62   ;;  %v14344_v62 = vpop.permute.xlu0 %7903  ;;  %11900 = vmatprep.subr.bf16.mxu1 %v13211_v60  ;;  %v13218_v60 = vld [vmem:[%s15363_s0 + $0x60] sm:$0xff]  }
 0x486   : > { %15349 = vst [vmem:[#allocation46_spill] sm:$0xff] %v14344_v62  ;;  %v11703_v62 = vld [vmem:[%s13675_s4 + $0x88] sm:$0xff] }
 0x489   : > { %9259 = vperm.xlu0 %12768, %v8383_v11   ;;  %v11844_v11 = vld [vmem:[%s15340_s16 + $0xa0] sm:$0xff] }
 0x48d   : > { %9416 = vperm.xlu0 %12768, %v9404_v15   ;;  %v11840_v15 = vld [vmem:[%s15340_s16 + $0x90] sm:$0xff] }
 0x491   : > { %9582 = vperm.xlu0 %12768, %v9576_v19   ;;  %v14348_v19 = vpop.permute.xlu0 %7822 }
 0x492   : > { %15350 = vst [vmem:[#allocation47_spill] sm:$0xff] %v14348_v19 }
 0x495   : > { %9660 = vperm.xlu0 %12768, %v11820_v22   ;;  %v11850_v22 = vld [vmem:[%s15340_s16 + $0xc0] sm:$0xff] }
 0x499   : > { %9742 = vperm.xlu0 %12768, %v11826_v33   ;;  %v14351_v33 = vpop.permute.xlu0 %7994 }
 0x49a   : > { %15351 = vst [vmem:[#allocation48_spill] sm:$0xff] %v14351_v33 }
 0x49d   : > { %9592 = vperm.xlu0 %12768, %v9578_v42   ;;  %v11846_v42 = vld [vmem:[%s15340_s16 + $0xb0] sm:$0xff] }
 0x4a1   : > { %9670 = vperm.xlu0 %12768, %v11822_v45   ;;  %v11856_v45 = vld [vmem:[%s15340_s16 + $0xe0] sm:$0xff] }
 0x4a5   : > { %9824 = vperm.xlu0 %12768, %v11832_v51   ;;  %v14355_v51 = vpop.permute.xlu0 %7913 }
 0x4a6   : > { %15353 = vst [vmem:[#allocation49_spill] sm:$0xff] %v14355_v51  ;;  %v11712_v51 = vld [vmem:[%s13675_s4 + $0xa8] sm:$0xff] }
 0x4a9   : > { %9752 = vperm.xlu0 %12768, %v11828_v56   ;;  %v11852_v56 = vld [vmem:[%s15340_s16 + $0xd0] sm:$0xff] }
 0x4ad   : > { %9906 = vperm.xlu0 %12768, %v11838_v27   ;;  %v14358_v27 = vpop.permute.xlu0 %8085 }
 0x4ae   : > { %15354 = vst [vmem:[#allocation50_spill] sm:$0xff] %v14358_v27 }
 0x4b1   : > { %9834 = vperm.xlu0 %12768, %v11834_v0   ;;  %v11862_v0 = vld [vmem:[%s15340_s16 + $0x100] sm:$0xff] }
 0x4b5   : > { %9988 = vperm.xlu0 %12768, %v11844_v11   ;;  %v11858_v11 = vld [vmem:[%s15340_s16 + $0xf0] sm:$0xff] }
 0x4b9   : > { %9916 = vperm.xlu0 %12768, %v11840_v15   ;;  %v14362_v15 = vpop.permute.xlu0 %8004 }
 0x4ba   : > { %15355 = vst [vmem:[#allocation51_spill] sm:$0xff] %v14362_v15  ;;  %v11687_v15 = vld [vmem:[%s13675_s4 + $0x58] sm:$0xff] }
 0x4bd   : > { %10070 = vperm.xlu0 %12768, %v11850_v22   ;;  %v11864_v22 = vld [vmem:[%s15340_s16 + $0x110] sm:$0xff]  ;;  %v14365_v40 = vpop.permute.xlu0 %8176 }
 0x4be   : > { %15356 = vst [vmem:[#allocation52_spill] sm:$0xff] %v14365_v40 }
 0x4c1   : > { %9998 = vperm.xlu0 %12768, %v11846_v42   ;;  %v9406_v42 = vld [vmem:[%s15352_s15] sm:$0xff] }
 0x4c5   : > { %10152 = vperm.xlu0 %12768, %v11856_v45   ;;  %v14369_v45 = vpop.permute.xlu0 %8095 }
 0x4c6   : > { %15357 = vst [vmem:[#allocation53_spill] sm:$0xff] %v14369_v45  ;;  %v11694_v45 = vld [vmem:[%s13675_s4 + $0x68] sm:$0xff] }
 0x4c9   : > { %10080 = vperm.xlu0 %12768, %v11852_v56   ;;  %v14372_v56 = vpop.permute.xlu0 %8186 }
 0x4ca   : > { %15358 = vst [vmem:[#allocation54_spill] sm:$0xff] %v14372_v56 }
 0x4cd   : > { %10234 = vperm.xlu0 %12768, %v11862_v0  }
 0x4d1   : > { %10162 = vperm.xlu0 %12768, %v11858_v11  }
 0x4d5   : > { %10244 = vperm.xlu0 %12768, %v11864_v22  }
 0x4d9   : > { %10262 = vperm.xlu0 %12768, %v9406_v42   ;;  %v11008_v42 = vld [vmem:[%s13595_s25 + $0x38] sm:$0xff] }
 0x4dd   : > { %10272 = vperm.xlu0 %12768, %v9408_v24   ;;  %v15359_v24 = vpack.c.bf16 %v14314_v6, %v14305_v26  ;;  %v4305_v26 = vld [vmem:[%s13615_s14 + $0x8] sm:$0xff]  ;;  %v11146_v6 = vld [vmem:[%s13615_s14 + $0x18] sm:$0xff] }
 0x4e1   : > { %10286 = vperm.xlu0 %12768, %v9412_v7   ;;  %v15360_v7 = vpack.c.bf16 %v14307_v30, %v14303_v61  ;;  %v11196_v61 = vld [vmem:[%s13615_s14 + $0x28] sm:$0xff]  ;;  %v11246_v30 = vld [vmem:[%s13615_s14 + $0x38] sm:$0xff] }
 0x50b   : > { %v3609_v0 = vpop.f32.mrb[16].mxu0 }
 0x50c   : > { %v3611_v27 = vpop.f32.mrb[17].mxu0 }
 0x50d   : > { %v3613_v11 = vpop.f32.mrb[18].mxu0 }
 0x50e   : > { %v12645_v33 = vpack.c.bf16 %v3613_v11, %v3609_v0  ;;  %v3615_v40 = vpop.f32.mrb[19].mxu0  ;;  %v15361_v0 = vmov 0.0   ;;  %v11346_v11 = vld [vmem:[%s13615_s14 + $0x58] sm:$0xff] }
 0x50f   : > { %v12643_v22 = vpack.c.bf16 %v3615_v40, %v3611_v27  ;;  %v11074_v40 = vld [vmem:[%s13595_s25 + $0x40] sm:$0xff]  ;;  %v11296_v27 = vld [vmem:[%s13615_s14 + $0x48] sm:$0xff] }
 0x511   : > { %12644 = vmatprep.subr.bf16.mxu0 %v12643_v22  ;;  %v11396_v22 = vld [vmem:[%s13615_s14 + $0x68] sm:$0xff] }
 0x512   : > { %12646 = vmatpush1.bf16.msra.mxu0 %v12645_v33  ;;  %v4304_v33 = vld [vmem:[%s13615_s14] sm:$0xff] }
 0x513   : > { %12648 = vmatprep.subr.bf16.mxu0 %v15359_v24  ;;  %4308 = vperm.xlu1 %12769, %v4304_v33   ;;  %v11496_v24 = vld [vmem:[%s13615_s14 + $0x88] sm:$0xff] }
 0x514   : > { %v6143_v33 = vld [vmem:[%s13645_s20 + $0x8] sm:$0xff] }
 0x515   : > { %11009 = vmatmul.mubr.msk.f32.vlgmr.msra.gmra.mrb[4].mxu0 %vm1663_vm0, %v11008_v42  ;;  %v11446_v42 = vld [vmem:[%s13615_s14 + $0x78] sm:$0xff] }
 0x516   : > { %12650 = vmatpush1.bf16.msra.mxu0 %v15360_v7  ;;  %4001 = vmatprep.mubr.f32.mxu0 %v15361_v0  ;;  %v4034_v7 = vld [vmem:[%s13620_s19 + $0x8] sm:$0xff] }
 0x517   : > { %4313 = vperm.xlu1 %12769, %v4305_v26   ;;  %v11526_v26 = vld [vmem:[%s13645_s20 + $0x28] sm:$0xff] }
 0x51b   : > { %4498 = vperm.xlu1 %12769, %v11146_v6   ;;  %v11544_v6 = vld [vmem:[%s13645_s20 + $0x48] sm:$0xff] }
 0x51d   : > { %11075 = vmatmul.mubr.msk.f32.vlgmr.msra.gmra.mrb[4].mxu0 %vm1663_vm0, %v11074_v40  ;;  %v5934_v40 = vld [vmem:[%s13640_s12 + $0x8] sm:$0xff] }
 0x51e   : > { %4112 = vmatprep.mubr.f32.mxu0 %v15361_v0  ;;  %v4038_v0 = vld [vmem:[%s13630_s30 + $0x8] sm:$0xff] }
 0x51f   : > { %4685 = vperm.xlu1 %12769, %v11196_v61   ;;  %v6145_v61 = vld [vmem:[%s13645_s20 + $0x18] sm:$0xff] }
 0x523   : > { %4872 = vperm.xlu1 %12769, %v11246_v30   ;;  %v11528_v30 = vld [vmem:[%s13645_s20 + $0x38] sm:$0xff] }
 0x527   : > { %5059 = vperm.xlu1 %12769, %v11296_v27   ;;  %v11562_v27 = vld [vmem:[%s13645_s20 + $0x68] sm:$0xff] }
 0x52b   : > { %5246 = vperm.xlu1 %12769, %v11346_v11   ;;  %v11546_v11 = vld [vmem:[%s13645_s20 + $0x58] sm:$0xff] }
 0x52f   : > { %5433 = vperm.xlu1 %12769, %v11396_v22   ;;  %v11580_v22 = vld [vmem:[%s13645_s20 + $0x88] sm:$0xff] }
 0x533   : > { %5620 = vperm.xlu1 %12769, %v11446_v42   ;;  %v11564_v42 = vld [vmem:[%s13645_s20 + $0x78] sm:$0xff] }
 0x537   : > { %5807 = vperm.xlu1 %12769, %v11496_v24   ;;  %v11598_v24 = vld [vmem:[%s13645_s20 + $0xa8] sm:$0xff] }
 0x53b   : > { %5821 = vperm.xlu1 %12769, %v4034_v7   ;;  %v11582_v7 = vld [vmem:[%s13645_s20 + $0x98] sm:$0xff] }
 0x53f   : > { %5833 = vperm.xlu1 %12769, %v4038_v0  }
 0x543   : > { %5954 = vperm.xlu1 %12769, %v5934_v40   ;;  %v11616_v40 = vld [vmem:[%s13645_s20 + $0xc8] sm:$0xff] }
 0x547   : > { %6153 = vperm.xlu1 %12769, %v6143_v33  }
 0x54b   : > { %6264 = vperm.xlu1 %12769, %v11526_v26  }
 0x54f   : > { %6379 = vperm.xlu1 %12769, %v11544_v6  }
 0x553   : > { %6163 = vperm.xlu1 %12769, %v6145_v61  }
 0x557   : > { %6274 = vperm.xlu1 %12769, %v11528_v30  }
 0x55b   : > { %6494 = vperm.xlu1 %12769, %v11562_v27   ;;  %v11600_v27 = vld [vmem:[%s13645_s20 + $0xb8] sm:$0xff] }
 0x55f   : > { %6389 = vperm.xlu1 %12769, %v11546_v11   ;;  %v11634_v11 = vld [vmem:[%s13645_s20 + $0xe8] sm:$0xff] }
 0x563   : > { %6609 = vperm.xlu1 %12769, %v11580_v22   ;;  %v11618_v22 = vld [vmem:[%s13645_s20 + $0xd8] sm:$0xff] }
 0x567   : > { %6504 = vperm.xlu1 %12769, %v11564_v42  }
 0x56b   : > { %6724 = vperm.xlu1 %12769, %v11598_v24  }
 0x56f   : > { %6619 = vperm.xlu1 %12769, %v11582_v7  }
 0x573   : > { %6839 = vperm.xlu1 %12769, %v11616_v40   ;;  %v11636_v40 = vld [vmem:[%s13645_s20 + $0xf8] sm:$0xff] }
 0x577   : > { %6734 = vperm.xlu1 %12769, %v11600_v27  }
 0x57b   : > { %6954 = vperm.xlu1 %12769, %v11634_v11  }
 0x57f   : > { %6849 = vperm.xlu1 %12769, %v11618_v22  }
 0x5f0   : > { %v4003_v0 = vpop.f32.mrb[4].mxu0 }
 0x5f1   : > { %v4015_v33 = vadd.f32 %v14136_v35, %v4003_v0  ;;  %v4005_v26 = vpop.f32.mrb[5].mxu0  ;;  %v11652_v0 = vld [vmem:[%s13645_s20 + $0x108] sm:$0xff] }
 0x5f2   : > { %v4016_v6 = vadd.f32 %v14136_v35, %v4005_v26  ;;  %7069 = vperm.xlu1 %12769, %v11652_v0   ;;  %v11654_v26 = vld [vmem:[%s13645_s20 + $0x118] sm:$0xff] }
 0x5f3   : > { %v11076_v61 = vmul.f32 -1.442695, %v4015_v33 }
 0x5f4   : > { %v11077_v30 = vmul.f32 -1.442695, %v4016_v6 }
 0x5f5   : > { %13391 = vpow2.f32 %v11076_v61 }
 0x5f6   : > { %13393 = vpow2.f32 %v11077_v30  ;;  %6964 = vperm.xlu1 %12769, %v11636_v40   ;;  %v5936_v30 = vld [vmem:[%s13650_s27 + $0x8] sm:$0xff] }
 0x5f7   : > { %v7263_v40 = vld [vmem:[%s13670_s6 + $0x8] sm:$0xff] }
 0x5fa   : > { %7079 = vperm.xlu1 %12769, %v11654_v26  }
 0x5fe   : > { %7097 = vperm.xlu1 %12769, %v5936_v30  }
 0x5ff   : > { %v13392_v42 = vpop.eup %13391 }
 0x600   : > { %v13394_v24 = vpop.eup %13393  ;;  %v4023_v7 = vadd.f32 1.0, %v13392_v42  ;;  %v4031_v42 = vld [vmem:[%s15362_s18] sm:$0xff]  ;;  %s15398_s18 = sld [smem:[#allocation8_spill]] }
 0x601   : > { %v4024_v35 = vadd.f32 1.0, %v13394_v24  ;;  %v5938_v24 = vld [vmem:[%s13650_s27 + $0x18] sm:$0xff] }
 0x602   : > { %13395 = vrcp.f32 %v4023_v7  ;;  %v14428_v7 = vpop.permute.xlu1 %4308  ;;  %7107 = vperm.xlu1 %12769, %v5938_v24   ;;  %v11685_v24 = vld [vmem:[%s13675_s4 + $0x48] sm:$0xff] }
 0x603   : > { %13397 = vrcp.f32 %v4024_v35 }
 0x606   : > { %v14431_v0 = vpop.permute.xlu1 %4313 }
 0x60a   : > { %v14434_v35 = vpop.permute.xlu1 %4498 }
 0x60c   : > { %v13396_v61 = vpop.eup %13395 }
 0x60d   : > { %v13398_v27 = vpop.eup %13397  ;;  %v14422_v22 = vmul.f32 %v13396_v61, %v4015_v33  ;;  %v5944_v33 = vld [vmem:[%s13660_s21 + $0x8] sm:$0xff] }
 0x60e   : > { %v14420_v11 = vmul.f32 %v13398_v27, %v4016_v6  ;;  %v5946_v6 = vld [vmem:[%s13660_s21 + $0x18] sm:$0xff]  ;;  %v14437_v26 = vpop.permute.xlu1 %4685  ;;  %v7447_v61 = vld [vmem:[%s13675_s4 + $0x8] sm:$0xff] }
 0x60f   : > { %7131 = vperm.xlu1 %12769, %v5946_v6   ;;  %v11676_v27 = vld [vmem:[%s13675_s4 + $0x28] sm:$0xff] }
 0x610   : > { %4048 = vmatprep.subr.mxu0 %v14420_v11 }
 0x611   : > { %4049 = vmatpush1.msra.mxu0 %v14422_v22 }
 0x612   : > { %11078 = vmatmul.mubr.msk.f32.vlgmr.msra.gmra.mrb[6].mxu0 %vm4044_vm1, %v4031_v42  ;;  %v14440_v30 = vpop.permute.xlu1 %4872  ;;  %11874 = vmatprep.subr.bf16.mxu0 %v13202_v38 }
 0x613   : > { %7121 = vperm.xlu1 %12769, %v5944_v33   ;;  %v7449_v33 = vld [vmem:[%s13675_s4 + $0x18] sm:$0xff]  ;;  %11875 = vmatpush3.bf16.msra.mxu0 %v13204_v13  ;;  %v13210_v13 = vld [vmem:[%s15363_s0 + $0x50] sm:$0xff]  }
 0x616   : > { %v14443_v42 = vpop.permute.xlu1 %5059 }
 0x617   : > { %7283 = vperm.xlu1 %12769, %v7263_v40   ;;  %v11678_v40 = vld [vmem:[%s13675_s4 + $0x38] sm:$0xff] }
 0x61a   : > { %v14446_v6 = vpop.permute.xlu1 %5246 }
 0x61b   : > { %7457 = vperm.xlu1 %12769, %v7447_v61  }
 0x61e   : > { %v14449_v56 = vpop.permute.xlu1 %5433 }
 0x61f   : > { %7544 = vperm.xlu1 %12769, %v11676_v27  }
 0x622   : > { %v14453_v61 = vpop.permute.xlu1 %5620 }
 0x623   : > { %7635 = vperm.xlu1 %12769, %v11685_v24   ;;  %v11696_v24 = vld [vmem:[%s13675_s4 + $0x78] sm:$0xff] }
 0x626   : > { %v14456_v27 = vpop.permute.xlu1 %5807 }
 0x627   : > { %7467 = vperm.xlu1 %12769, %v7449_v33  }
 0x62a   : > { %v14460_v33 = vpop.permute.xlu1 %5821 }
 0x62b   : > { %7554 = vperm.xlu1 %12769, %v11678_v40  }
 0x62e   : > { %v14463_v40 = vpop.permute.xlu1 %5833 }
 0x62f   : > { %7726 = vperm.xlu1 %12769, %v11694_v45   ;;  %v11705_v45 = vld [vmem:[%s13675_s4 + $0x98] sm:$0xff] }
 0x632   : > { %v14467_v52 = vpop.permute.xlu1 %5954 }
 0x633   : > { %7645 = vperm.xlu1 %12769, %v11687_v15   ;;  %v11721_v15 = vld [vmem:[%s13675_s4 + $0xc8] sm:$0xff] }
 0x636   : > { %v14470_v19 = vpop.permute.xlu1 %6153 }
 0x637   : > { %7817 = vperm.xlu1 %12769, %v11703_v62   ;;  %v11714_v62 = vld [vmem:[%s13675_s4 + $0xb8] sm:$0xff] }
 0x63b   : > { %7736 = vperm.xlu1 %12769, %v11696_v24   ;;  %v14472_v24 = vpop.permute.xlu1 %6264 }
 0x63f   : > { %7908 = vperm.xlu1 %12769, %v11712_v51   ;;  %v14474_v51 = vpop.permute.xlu1 %6379 }
 0x643   : > { %7827 = vperm.xlu1 %12769, %v11705_v45   ;;  %v14478_v45 = vpop.permute.xlu1 %6163 }
 0x647   : > { %7999 = vperm.xlu1 %12769, %v11721_v15   ;;  %v11730_v15 = vld [vmem:[%s13675_s4 + $0xe8] sm:$0xff]  ;;  %v14488_v38 = vpop.permute.xlu1 %6274 }
 0x64b   : > { %7918 = vperm.xlu1 %12769, %v11714_v62   ;;  %v13206_v62 = vld [vmem:[%s15363_s0 + $0x48] sm:$0xff]  }
 0x64c   : > { %11876 = vmatprep.subr.bf16.mxu0 %v13206_v62  ;;  %v11739_v62 = vld [vmem:[%s13675_s4 + $0x108] sm:$0xff] }
 0x64d   : > { %11877 = vmatpush3.bf16.msra.mxu0 %v13208_v32  ;;  %v14497_v32 = vpop.permute.xlu1 %6494 }
 0x64e   : > { %11878 = vmatprep.subr.bf16.mxu0 %v13210_v13  ;;  %v11732_v13 = vld [vmem:[%s13675_s4 + $0xf8] sm:$0xff] }
 0x64f   : > { %8090 = vperm.xlu1 %12769, %v11730_v15   ;;  %v13213_v15 = vld [vmem:[%s15363_s0 + $0x90] sm:$0xff]  }
 0x650   : > { %11901 = vmatpush3.bf16.msra.mxu1 %v13213_v15  ;;  %v13220_v15 = vld [vmem:[%s15363_s0 + $0x20] sm:$0xff]  }
 0x651   : > { %11879 = vmatpush3.bf16.msra.mxu0 %v13212_v47  ;;  %v13219_v47 = vld [vmem:[%s15363_s0 + $0xe0] sm:$0xff]  }
 0x652   : > { %11880 = vmatprep.subr.bf16.mxu0 %v13214_v2  ;;  %v14507_v2 = vpop.permute.xlu1 %6389 }
 0x653   : > { %8009 = vperm.xlu1 %12769, %v11723_v18   ;;  %v13215_v18 = vld [vmem:[%s15363_s0 + $0xd8] sm:$0xff]  }
 0x654   : > { %11902 = vmatprep.subr.bf16.mxu1 %v13215_v18  ;;  %v13222_v18 = vld [vmem:[%s15363_s0 + $0x68] sm:$0xff]  }
 0x655   : > { %11881 = vmatpush3.bf16.msra.mxu0 %v13216_v29  ;;  %11903 = vmatpush3.bf16.msra.mxu1 %v13217_v57  ;;  %v13223_v29 = vld [vmem:[%s15363_s0 + $0xe8] sm:$0xff]  }
 0x656   : > { %11882 = vmatprep.subr.bf16.mxu0 %v13218_v60  ;;  %11904 = vmatprep.subr.bf16.mxu1 %v13219_v47  ;;  %v13224_v57 = vld [vmem:[%s15363_s0 + $0x28] sm:$0xff]   ;;  %v13227_v47 = vld [vmem:[%s15363_s0 + $0xf0] sm:$0xff]  }
 0x657   : > { %8181 = vperm.xlu1 %12769, %v11739_v62   ;;  %v13221_v62 = vld [vmem:[%s15363_s0 + $0xa0] sm:$0xff]   ;;  %v7265_v60 = vld [vmem:[%s15320_s26 + $0x8] sm:$0xff] }
 0x659   : > { %11883 = vmatpush3.bf16.msra.mxu0 %v13220_v15  ;;  %11905 = vmatpush3.bf16.msra.mxu1 %v13221_v62  ;;  %v14516_v15 = vpop.permute.xlu1 %6609  ;;  %v13228_v62 = vld [vmem:[%s15363_s0 + $0x30] sm:$0xff]  }
 0x65a   : > { %11884 = vmatprep.subr.bf16.mxu0 %v13222_v18  ;;  %11906 = vmatprep.subr.bf16.mxu1 %v13223_v29  ;;  %15364 = vst [vmem:[#allocation55_spill] sm:$0xff] %v14516_v15  ;;  %v7267_v18 = vld [vmem:[%s15320_s26 + $0x18] sm:$0xff]  ;;  %v4035_v15 = vld [vmem:[%s15397_s24] sm:$0xff] }
 0x65b   : > { %8100 = vperm.xlu1 %12769, %v11732_v13   ;;  %v13225_v13 = vld [vmem:[%s15363_s0 + $0xa8] sm:$0xff]   ;;  %v13230_v29 = vld [vmem:[%s15363_s0 + $0x78] sm:$0xff]  }
 0x65d   : > { %11885 = vmatpush3.bf16.msra.mxu0 %v13224_v57  ;;  %11907 = vmatpush3.bf16.msra.mxu1 %v13225_v13  ;;  %v13231_v57 = vld [vmem:[%s15363_s0 + $0xf8] sm:$0xff]   ;;  %v14526_v46 = vpop.permute.xlu1 %6504 }
 0x65e   : > { %11908 = vmatprep.subr.bf16.mxu1 %v13227_v47  ;;  %v13233_v13 = vld [vmem:[%s15363_s0 + $0xb8] sm:$0xff]   ;;  %v13235_v47 = vld [vmem:[%s15363_s0 + $0x1c0] sm:$0xff]  }
 0x65f   : > { %8191 = vperm.xlu1 %12769, %v11741_v50   ;;  %v13226_v50 = vld [vmem:[%s15363_s0 + $0x70] sm:$0xff]  }
 0x660   : > { %11886 = vmatprep.subr.bf16.mxu0 %v13226_v50  ;;  %v13234_v50 = vld [vmem:[%s15363_s0 + $0x140] sm:$0xff]  }
 0x661   : > { %11887 = vmatpush3.bf16.msra.mxu0 %v13228_v62  ;;  %11909 = vmatpush3.bf16.msra.mxu1 %v13229_v53  ;;  %v7273_v53 = vld [vmem:[%s15321_s28 + $0x8] sm:$0xff]  ;;  %v14531_v62 = vpop.permute.xlu1 %6724 }
 0x662   : > { %11888 = vmatprep.subr.bf16.mxu0 %v13230_v29  ;;  %11910 = vmatprep.subr.bf16.mxu1 %v13231_v57  ;;  %15365 = vst [vmem:[#allocation56_spill] sm:$0xff] %v14531_v62  ;;  %v8550_v29 = vld [vmem:[%s15323_s2 + $0x8] sm:$0xff] }
 0x663   : > { %8209 = vperm.xlu1 %12769, %v7265_v60   ;;  %v13232_v60 = vld [vmem:[%s15363_s0 + $0x38] sm:$0xff]  }
 0x665   : > { %11889 = vmatpush3.bf16.msra.mxu0 %v13232_v60  ;;  %11911 = vmatpush3.bf16.msra.mxu1 %v13233_v13  ;;  %v14535_v57 = vpop.permute.xlu1 %6619  ;;  %v11765_v13 = vld [vmem:[%s15323_s2 + $0x48] sm:$0xff] }
 0x666   : > { %11918 = vmatprep.subr.bf16.mxu0 %v13234_v50  ;;  %11940 = vmatprep.subr.bf16.mxu1 %v13235_v47  ;;  %15366 = vst [vmem:[#allocation57_spill] sm:$0xff] %v14535_v57  ;;  %v8552_v50 = vld [vmem:[%s15323_s2 + $0x18] sm:$0xff] }
 0x667   : > { %8219 = vperm.xlu1 %12769, %v7267_v18   ;;  %v8374_v18 = vld [vmem:[%s15322_s1 + $0x8] sm:$0xff]  ;;  %s15400_s1 = sld [smem:[#allocation9_spill]] }
 0x669   : > { %v14538_v60 = vpop.permute.xlu1 %6839 }
 0x66a   : > { %15367 = vst [vmem:[#allocation58_spill] sm:$0xff] %v14538_v60  ;;  %v11773_v60 = vld [vmem:[%s15323_s2 + $0x78] sm:$0xff] }
 0x66b   : > { %8243 = vperm.xlu1 %12769, %v7275_v39   ;;  %v11759_v39 = vld [vmem:[%s15323_s2 + $0x28] sm:$0xff] }
 0x66d   : > { %v14542_v47 = vpop.permute.xlu1 %6734 }
 0x66e   : > { %15368 = vst [vmem:[#allocation59_spill] sm:$0xff] %v14542_v47 }
 0x66f   : > { %8233 = vperm.xlu1 %12769, %v7273_v53   ;;  %v11761_v53 = vld [vmem:[%s15323_s2 + $0x38] sm:$0xff] }
 0x673   : > { %8394 = vperm.xlu1 %12769, %v8374_v18   ;;  %v14545_v18 = vpop.permute.xlu1 %6954 }
 0x674   : > { %15369 = vst [vmem:[#allocation60_spill] sm:$0xff] %v14545_v18  ;;  %v11779_v18 = vld [vmem:[%s15323_s2 + $0x98] sm:$0xff] }
 0x677   : > { %8560 = vperm.xlu1 %12769, %v8550_v29   ;;  %v14548_v29 = vpop.permute.xlu1 %6849 }
 0x678   : > { %15370 = vst [vmem:[#allocation61_spill] sm:$0xff] %v14548_v29  ;;  %v11803_v29 = vld [vmem:[%s15323_s2 + $0x118] sm:$0xff] }
 0x67b   : > { %8638 = vperm.xlu1 %12769, %v11759_v39   ;;  %v11767_v39 = vld [vmem:[%s15323_s2 + $0x58] sm:$0xff] }
 0x67f   : > { %8720 = vperm.xlu1 %12769, %v11765_v13   ;;  %v14552_v13 = vpop.permute.xlu1 %7069 }
 0x680   : > { %15371 = vst [vmem:[#allocation62_spill] sm:$0xff] %v14552_v13  ;;  %v11795_v13 = vld [vmem:[%s15323_s2 + $0xe8] sm:$0xff] }
 0x683   : > { %8570 = vperm.xlu1 %12769, %v8552_v50   ;;  %v11783_v50 = vld [vmem:[%s15323_s2 + $0xa8] sm:$0xff] }
 0x687   : > { %8648 = vperm.xlu1 %12769, %v11761_v53   ;;  %v14556_v53 = vpop.permute.xlu1 %6964 }
 0x688   : > { %15372 = vst [vmem:[#allocation63_spill] sm:$0xff] %v14556_v53  ;;  %v11791_v53 = vld [vmem:[%s15323_s2 + $0xd8] sm:$0xff] }
 0x68b   : > { %8802 = vperm.xlu1 %12769, %v11771_v21   ;;  %v14559_v21 = vpop.permute.xlu1 %7079 }
 0x68c   : > { %15373 = vst [vmem:[#allocation64_spill] sm:$0xff] %v14559_v21  ;;  %v11797_v21 = vld [vmem:[%s15323_s2 + $0xf8] sm:$0xff] }
 0x68f   : > { %8730 = vperm.xlu1 %12769, %v11767_v39   ;;  %v11785_v39 = vld [vmem:[%s15323_s2 + $0xb8] sm:$0xff] }
 0x693   : > { %8884 = vperm.xlu1 %12769, %v11777_v34   ;;  %v14563_v34 = vpop.permute.xlu1 %7097 }
 0x694   : > { %15374 = vst [vmem:[#allocation65_spill] sm:$0xff] %v14563_v34 }
 0x697   : > { %8812 = vperm.xlu1 %12769, %v11773_v60   ;;  %v14566_v60 = vpop.permute.xlu1 %7107 }
 0x698   : > { %15375 = vst [vmem:[#allocation66_spill] sm:$0xff] %v14566_v60 }
 0x69b   : > { %8966 = vperm.xlu1 %12769, %v11783_v50   ;;  %v14569_v50 = vpop.permute.xlu1 %7131 }
 0x69c   : > { %15376 = vst [vmem:[#allocation67_spill] sm:$0xff] %v14569_v50  ;;  %v8384_v50 = vld [vmem:[%s15337_s10 + $0x8] sm:$0xff] }
 0x69f   : > { %8894 = vperm.xlu1 %12769, %v11779_v18   ;;  %v11801_v18 = vld [vmem:[%s15323_s2 + $0x108] sm:$0xff]  ;;  %s15467_s2 = sld [smem:[#allocation14_spill]] }
 0x6a3   : > { %9048 = vperm.xlu1 %12769, %v11789_v14   ;;  %v14573_v14 = vpop.permute.xlu1 %7121 }
 0x6a4   : > { %15377 = vst [vmem:[#allocation68_spill] sm:$0xff] %v14573_v14 }
 0x6a7   : > { %8976 = vperm.xlu1 %12769, %v11785_v39   ;;  %v8376_v39 = vld [vmem:[%s15333_s7 + $0x8] sm:$0xff]  ;;  %v14577_v34 = vpop.permute.xlu1 %7283 }
 0x6a8   : > { %15378 = vst [vmem:[#allocation69_spill] sm:$0xff] %v14577_v34 }
 0x6ab   : > { %9130 = vperm.xlu1 %12769, %v11795_v13   ;;  %v8378_v13 = vld [vmem:[%s15333_s7 + $0x18] sm:$0xff]  ;;  %v14580_v60 = vpop.permute.xlu1 %7457 }
 0x6ac   : > { %15379 = vst [vmem:[#allocation70_spill] sm:$0xff] %v14580_v60 }
 0x6af   : > { %9058 = vperm.xlu1 %12769, %v11791_v53   ;;  %v8386_v53 = vld [vmem:[%s15337_s10 + $0x18] sm:$0xff] }
 0x6b3   : > { %9212 = vperm.xlu1 %12769, %v11801_v18   ;;  %v14584_v18 = vpop.permute.xlu1 %7544 }
 0x6b4   : > { %15380 = vst [vmem:[#allocation71_spill] sm:$0xff] %v14584_v18  ;;  %v11821_v18 = vld [vmem:[%s15340_s16 + $0x28] sm:$0xff] }
 0x6b7   : > { %9140 = vperm.xlu1 %12769, %v11797_v21  }
 0x6bb   : > { %9222 = vperm.xlu1 %12769, %v11803_v29  }
 0x6bf   : > { %9240 = vperm.xlu1 %12769, %v8376_v39  }
 0x6c3   : > { %9250 = vperm.xlu1 %12769, %v8378_v13   ;;  %v14589_v13 = vpop.permute.xlu1 %7635 }
 0x6c4   : > { %15381 = vst [vmem:[#allocation72_spill] sm:$0xff] %v14589_v13 }
 0x6c7   : > { %9274 = vperm.xlu1 %12769, %v8386_v53   ;;  %v9577_v53 = vld [vmem:[%s15340_s16 + $0x8] sm:$0xff]  ;;  %v14593_v60 = vpop.permute.xlu1 %7467 }
 0x6c8   : > { %15382 = vst [vmem:[#allocation73_spill] sm:$0xff] %v14593_v60 }
 0x6cb   : > { %9264 = vperm.xlu1 %12769, %v8384_v50   ;;  %v11827_v50 = vld [vmem:[%s15340_s16 + $0x48] sm:$0xff]  ;;  %v14596_v62 = vpop.permute.xlu1 %7554 }
 0x6cc   : > { %15383 = vst [vmem:[#allocation74_spill] sm:$0xff] %v14596_v62 }
 0x6cf   : > { %9421 = vperm.xlu1 %12769, %v9405_v9   ;;  %v9579_v9 = vld [vmem:[%s15340_s16 + $0x18] sm:$0xff] }
 0x6d3   : > { %9587 = vperm.xlu1 %12769, %v9577_v53  }
 0x6d7   : > { %9665 = vperm.xlu1 %12769, %v11821_v18   ;;  %v11833_v18 = vld [vmem:[%s15340_s16 + $0x68] sm:$0xff] }
 0x6db   : > { %9747 = vperm.xlu1 %12769, %v11827_v50  }
 0x6df   : > { %9597 = vperm.xlu1 %12769, %v9579_v9   ;;  %v13236_v9 = vld [vmem:[%s15363_s0 + $0x100] sm:$0xff]  }
 0x6e5   : > { %v4114_v14 = vpop.f32.mrb[6].mxu0 }
 0x6e6   : > { %v4115_v21 = vadd.f32 %v4114_v14, %v14139_v37  ;;  %v4116_v29 = vpop.f32.mrb[7].mxu0 }
 0x6e7   : > { %v4117_v34 = vadd.f32 %v4116_v29, %v14139_v37 }
 0x6e8   : > { %v11079_v39 = vmul.f32 -1.442695, %v4115_v21 }
 0x6e9   : > { %v11080_v23 = vmul.f32 -1.442695, %v4117_v34 }
 0x6ea   : > { %13399 = vpow2.f32 %v11079_v39  ;;  %v14600_v39 = vpop.permute.xlu1 %7726 }
 0x6eb   : > { %13401 = vpow2.f32 %v11080_v23  ;;  %v11823_v23 = vld [vmem:[%s15340_s16 + $0x38] sm:$0xff]  ;;  %15384 = vst [vmem:[#allocation75_spill] sm:$0xff] %v14600_v39  ;;  %v13237_v39 = vld [vmem:[%s15363_s0 + $0x180] sm:$0xff]  }
 0x6ec   : > { %9675 = vperm.xlu1 %12769, %v11823_v23  }
 0x6ee   : > { %v14603_v13 = vpop.permute.xlu1 %7645 }
 0x6ef   : > { %15385 = vst [vmem:[#allocation76_spill] sm:$0xff] %v14603_v13 }
 0x6f0   : > { %9829 = vperm.xlu1 %12769, %v11833_v18   ;;  %v13241_v18 = vld [vmem:[%s15363_s0 + $0x188] sm:$0xff]  }
 0x6f4   : > { %v13400_v14 = vpop.eup %13399 }
 0x6f5   : > { %v13402_v37 = vpop.eup %13401  ;;  %v4125_v29 = vadd.f32 1.0, %v13400_v14 }
 0x6f6   : > { %v4126_v17 = vadd.f32 1.0, %v13402_v37 }
 0x6f7   : > { %13403 = vrcp.f32 %v4125_v29  ;;  %v11829_v29 = vld [vmem:[%s15340_s16 + $0x58] sm:$0xff] }
 0x6f8   : > { %13405 = vrcp.f32 %v4126_v17  ;;  %9757 = vperm.xlu1 %12769, %v11829_v29   ;;  %v11835_v29 = vld [vmem:[%s15340_s16 + $0x78] sm:$0xff] }
 0x701   : > { %v13404_v53 = vpop.eup %13403 }
 0x702   : > { %v13406_v14 = vpop.eup %13405  ;;  %v4131_v37 = vmul.f32 %v13404_v53, %v4115_v21  ;;  %v13239_v21 = vld [vmem:[%s15363_s0 + $0x1c8] sm:$0xff]  }
 0x703   : > { %v4132_v50 = vmul.f32 %v13406_v14, %v4117_v34  ;;  %v13238_v34 = vld [vmem:[%s15363_s0 + $0x148] sm:$0xff]   ;;  %v13242_v14 = vld [vmem:[%s15363_s0 + $0x150] sm:$0xff]  }
 0x704   : > { %v14612_v23 = vpack.c.bf16 %v4131_v37, %v14422_v22  ;;  %v13240_v22 = vld [vmem:[%s15363_s0 + $0x108] sm:$0xff]   ;;  %v13243_v37 = vld [vmem:[%s15363_s0 + $0x1d0] sm:$0xff]  }
 0x705   : > { %v14607_v17 = vpack.c.bf16 %v4132_v50, %v14420_v11  ;;  %v14620_v11 = vpop.permute.xlu1 %7817  ;;  %v11839_v53 = vld [vmem:[%s15340_s16 + $0x88] sm:$0xff]  ;;  %v13245_v50 = vld [vmem:[%s15363_s0 + $0x190] sm:$0xff]  }
 0x706   : > { %15386 = vst [vmem:[#allocation77_spill] sm:$0xff] %v14620_v11  ;;  %9911 = vperm.xlu1 %12769, %v11839_v53   ;;  %v13247_v11 = vld [vmem:[%s15363_s0 + $0x1d8] sm:$0xff]   ;;  %v13251_v53 = vld [vmem:[%s15363_s0 + $0x1e0] sm:$0xff]  }
 0x707   : > { %4295 = vmatprep.mubr.bf16.mxu0 %v14607_v17  ;;  %4479 = vmatprep.mubr.bf16.mxu1 %v14607_v17 }
 0x708   : > { %4296 = vmatmul.mubr.bf16.vlgmr.msra.gmra.mrb[20].mxu0 %v14612_v23  ;;  %4480 = vmatmul.mubr.bf16.vlgmr.msra.gmra.mrb[20].mxu1 %v14612_v23 }
 0x709   : > { %11919 = vmatpush3.bf16.msra.mxu0 %v13236_v9  ;;  %11941 = vmatpush3.bf16.msra.mxu1 %v13237_v39  ;;  %v13244_v39 = vld [vmem:[%s15363_s0 + $0x110] sm:$0xff]   ;;  %v13246_v9 = vld [vmem:[%s15363_s0 + $0x158] sm:$0xff]   ;;  %v14634_v13 = vpop.permute.xlu1 %7736 }
 0x70a   : > { %4666 = vmatprep.mubr.bf16.mxu0 %v14607_v17  ;;  %4853 = vmatprep.mubr.bf16.mxu1 %v14607_v17  ;;  %15387 = vst [vmem:[#allocation78_spill] sm:$0xff] %v14634_v13 }
 0x70b   : > { %11920 = vmatprep.subr.bf16.mxu0 %v13238_v34  ;;  %11942 = vmatprep.subr.bf16.mxu1 %v13239_v21  ;;  %v13248_v34 = vld [vmem:[%s15363_s0 + $0x118] sm:$0xff]  }
 0x70c   : > { %9839 = vperm.xlu1 %12769, %v11835_v29   ;;  %v13249_v21 = vld [vmem:[%s15363_s0 + $0x198] sm:$0xff]   ;;  %v13254_v29 = vld [vmem:[%s15363_s0 + $0x168] sm:$0xff]  }
 0x70d   : > { %11921 = vmatpush3.bf16.msra.mxu0 %v13240_v22  ;;  %11943 = vmatpush3.bf16.msra.mxu1 %v13241_v18  ;;  %v11845_v22 = vld [vmem:[%s15340_s16 + $0xa8] sm:$0xff]  ;;  %v13250_v18 = vld [vmem:[%s15363_s0 + $0x160] sm:$0xff]  }
 0x70e   : > { %11922 = vmatprep.subr.bf16.mxu0 %v13242_v14  ;;  %11944 = vmatprep.subr.bf16.mxu1 %v13243_v37  ;;  %v14641_v14 = vpop.permute.xlu1 %7908  ;;  %v13252_v37 = vld [vmem:[%s15363_s0 + $0x120] sm:$0xff]  }
 0x70f   : > { %15388 = vst [vmem:[#allocation79_spill] sm:$0xff] %v14641_v14  ;;  %v13259_v14 = vld [vmem:[%s15363_s0 + $0x1f0] sm:$0xff]  }
 0x710   : > { %9993 = vperm.xlu1 %12769, %v11845_v22   ;;  %v13257_v22 = vld [vmem:[%s15363_s0 + $0x1a8] sm:$0xff]  }
 0x711   : > { %11923 = vmatpush3.bf16.msra.mxu0 %v13244_v39  ;;  %11945 = vmatpush3.bf16.msra.mxu1 %v13245_v50  ;;  %v13253_v39 = vld [vmem:[%s15363_s0 + $0x1a0] sm:$0xff]   ;;  %v11841_v50 = vld [vmem:[%s15340_s16 + $0x98] sm:$0xff] }
 0x712   : > { %11924 = vmatprep.subr.bf16.mxu0 %v13246_v9  ;;  %11946 = vmatprep.subr.bf16.mxu1 %v13247_v11  ;;  %v13255_v11 = vld [vmem:[%s15363_s0 + $0x1e8] sm:$0xff]  }
 0x713   : > { %v13256_v9 = vld [vmem:[%s15363_s0 + $0x128] sm:$0xff]  }
 0x714   : > { %9921 = vperm.xlu1 %12769, %v11841_v50   ;;  %v13262_v50 = vld [vmem:[%s15363_s0 + $0x178] sm:$0xff]  }
 0x715   : > { %11925 = vmatpush3.bf16.msra.mxu0 %v13248_v34  ;;  %11947 = vmatpush3.bf16.msra.mxu1 %v13249_v21  ;;  %v11851_v34 = vld [vmem:[%s15340_s16 + $0xc8] sm:$0xff]  ;;  %v13258_v21 = vld [vmem:[%s15363_s0 + $0x170] sm:$0xff]  }
 0x716   : > { %11926 = vmatprep.subr.bf16.mxu0 %v13250_v18  ;;  %11948 = vmatprep.subr.bf16.mxu1 %v13251_v53  ;;  %v14653_v18 = vpop.permute.xlu1 %7827  ;;  %v13260_v53 = vld [vmem:[%s15363_s0 + $0x130] sm:$0xff]  }
 0x717   : > { %15389 = vst [vmem:[#allocation80_spill] sm:$0xff] %v14653_v18  ;;  %v13266_v18 = vld [vmem:[%s15363_s0 + $0x240] sm:$0xff]  }
 0x718   : > { %10075 = vperm.xlu1 %12769, %v11851_v34   ;;  %v13264_v34 = vld [vmem:[%s15363_s0 + $0x138] sm:$0xff]  }
 0x719   : > { %11927 = vmatpush3.bf16.msra.mxu0 %v13252_v37  ;;  %11949 = vmatpush3.bf16.msra.mxu1 %v13253_v39  ;;  %v13261_v37 = vld [vmem:[%s15363_s0 + $0x1b0] sm:$0xff]   ;;  %v11847_v39 = vld [vmem:[%s15340_s16 + $0xb8] sm:$0xff] }
 0x71a   : > { %11928 = vmatprep.subr.bf16.mxu0 %v13254_v29  ;;  %11950 = vmatprep.subr.bf16.mxu1 %v13255_v11  ;;  %v13263_v29 = vld [vmem:[%s15363_s0 + $0x1f8] sm:$0xff]   ;;  %v14660_v11 = vpop.permute.xlu1 %7999 }
 0x71b   : > { %15390 = vst [vmem:[#allocation81_spill] sm:$0xff] %v14660_v11  ;;  %v13271_v11 = vld [vmem:[%s15363_s0 + $0x2c8] sm:$0xff]  }
 0x71c   : > { %10003 = vperm.xlu1 %12769, %v11847_v39   ;;  %v13270_v39 = vld [vmem:[%s15363_s0 + $0x248] sm:$0xff]  }
 0x71d   : > { %11929 = vmatpush3.bf16.msra.mxu0 %v13256_v9  ;;  %11951 = vmatpush3.bf16.msra.mxu1 %v13257_v22  ;;  %v13265_v9 = vld [vmem:[%s15363_s0 + $0x1b8] sm:$0xff]   ;;  %v11857_v22 = vld [vmem:[%s15340_s16 + $0xe8] sm:$0xff] }
 0x71e   : > { %11930 = vmatprep.subr.bf16.mxu0 %v13258_v21  ;;  %11952 = vmatprep.subr.bf16.mxu1 %v13259_v14  ;;  %v13267_v21 = vld [vmem:[%s15363_s0 + $0x2c0] sm:$0xff]  }
 0x71f   : > { %v13268_v14 = vld [vmem:[%s15363_s0 + $0x200] sm:$0xff]  }
 0x720   : > { %10157 = vperm.xlu1 %12769, %v11857_v22  }
 0x721   : > { %11931 = vmatpush3.bf16.msra.mxu0 %v13260_v53  ;;  %11953 = vmatpush3.bf16.msra.mxu1 %v13261_v37  ;;  %v13269_v53 = vld [vmem:[%s15363_s0 + $0x280] sm:$0xff]   ;;  %v14669_v37 = vpop.permute.xlu1 %7918 }
 0x722   : > { %11932 = vmatprep.subr.bf16.mxu0 %v13262_v50  ;;  %11954 = vmatprep.subr.bf16.mxu1 %v13263_v29  ;;  %15391 = vst [vmem:[#allocation82_spill] sm:$0xff] %v14669_v37  ;;  %v13272_v50 = vld [vmem:[%s15363_s0 + $0x208] sm:$0xff]   ;;  %v11853_v29 = vld [vmem:[%s15340_s16 + $0xd8] sm:$0xff] }
 0x723   : > { %v13278_v37 = vld [vmem:[%s15363_s0 + $0x258] sm:$0xff]  }
 0x724   : > { %10085 = vperm.xlu1 %12769, %v11853_v29   ;;  %v11859_v29 = vld [vmem:[%s15340_s16 + $0xf8] sm:$0xff] }
 0x725   : > { %11933 = vmatpush3.bf16.msra.mxu0 %v13264_v34  ;;  %11955 = vmatpush3.bf16.msra.mxu1 %v13265_v9  ;;  %v13274_v34 = vld [vmem:[%s15363_s0 + $0x250] sm:$0xff]   ;;  %v14682_v22 = vpop.permute.xlu1 %8090 }
 0x726   : > { %11962 = vmatprep.subr.bf16.mxu0 %v13266_v18  ;;  %11984 = vmatprep.subr.bf16.mxu1 %v13267_v21  ;;  %v13273_v18 = vld [vmem:[%s15363_s0 + $0x288] sm:$0xff]   ;;  %v13275_v9 = vld [vmem:[%s15363_s0 + $0x2d0] sm:$0xff]   ;;  %15392 = vst [vmem:[#allocation83_spill] sm:$0xff] %v14682_v22  ;;  %v13282_v22 = vld [vmem:[%s15363_s0 + $0x260] sm:$0xff]  }
 0x727   : > { %v13276_v21 = vld [vmem:[%s15363_s0 + $0x210] sm:$0xff]  }
 0x728   : > { %4667 = vmatmul.mubr.bf16.vlgmr.msra.gmra.mrb[24].mxu0 %v14612_v23  ;;  %4854 = vmatmul.mubr.bf16.vlgmr.msra.gmra.mrb[24].mxu1 %v14612_v23 }
 0x729   : > { %11963 = vmatpush3.bf16.msra.mxu0 %v13268_v14  ;;  %5040 = vmatprep.mubr.bf16.mxu0 %v14607_v17  ;;  %v11863_v14 = vld [vmem:[%s15340_s16 + $0x108] sm:$0xff] }
 0x72a   : > { %11985 = vmatpush3.bf16.msra.mxu1 %v13269_v53  ;;  %5227 = vmatprep.mubr.bf16.mxu1 %v14607_v17  ;;  %v13277_v53 = vld [vmem:[%s15363_s0 + $0x290] sm:$0xff]  }
 0x72b   : > { %11964 = vmatprep.subr.bf16.mxu0 %v13270_v39  ;;  %11986 = vmatprep.subr.bf16.mxu1 %v13271_v11  ;;  %v13279_v39 = vld [vmem:[%s15363_s0 + $0x2d8] sm:$0xff]  }
 0x72c   : > { %10239 = vperm.xlu1 %12769, %v11863_v14   ;;  %v13280_v11 = vld [vmem:[%s15363_s0 + $0x218] sm:$0xff]   ;;  %v13285_v14 = vld [vmem:[%s15363_s0 + $0x2a0] sm:$0xff]  }
 0x72d   : > { %11965 = vmatpush3.bf16.msra.mxu0 %v13272_v50  ;;  %v13281_v50 = vld [vmem:[%s15363_s0 + $0x298] sm:$0xff]  }
 0x72e   : > { %11987 = vmatpush3.bf16.msra.mxu1 %v13273_v18  ;;  %11966 = vmatprep.subr.bf16.mxu0 %v13274_v34  ;;  %v14693_v18 = vpop.permute.xlu1 %8009  ;;  %v13283_v34 = vld [vmem:[%s15363_s0 + $0x2e0] sm:$0xff]  }
 0x72f   : > { %11988 = vmatprep.subr.bf16.mxu1 %v13275_v9  ;;  %15393 = vst [vmem:[#allocation84_spill] sm:$0xff] %v14693_v18  ;;  %v13284_v9 = vld [vmem:[%s15363_s0 + $0x220] sm:$0xff]  }
 0x730   : > { %10167 = vperm.xlu1 %12769, %v11859_v29   ;;  %v13289_v29 = vld [vmem:[%s15363_s0 + $0x2a8] sm:$0xff]  }
 0x731   : > { %11967 = vmatpush3.bf16.msra.mxu0 %v13276_v21  ;;  %v11865_v21 = vld [vmem:[%s15340_s16 + $0x118] sm:$0xff] }
 0x732   : > { %11989 = vmatpush3.bf16.msra.mxu1 %v13277_v53  ;;  %11968 = vmatprep.subr.bf16.mxu0 %v13278_v37  ;;  %v13286_v53 = vld [vmem:[%s15363_s0 + $0x268] sm:$0xff]   ;;  %v14701_v18 = vpop.permute.xlu1 %8181 }
 0x733   : > { %11990 = vmatprep.subr.bf16.mxu1 %v13279_v39  ;;  %v13287_v37 = vld [vmem:[%s15363_s0 + $0x2e8] sm:$0xff]   ;;  %15394 = vst [vmem:[#allocation85_spill] sm:$0xff] %v14701_v18  ;;  %v13294_v18 = vld [vmem:[%s15363_s0 + $0x278] sm:$0xff]  }
 0x734   : > { %10249 = vperm.xlu1 %12769, %v11865_v21   ;;  %v13288_v39 = vld [vmem:[%s15363_s0 + $0x228] sm:$0xff]   ;;  %v9409_v21 = vld [vmem:[%s15352_s15 + $0x18] sm:$0xff] }
 0x735   : > { %11969 = vmatpush3.bf16.msra.mxu0 %v13280_v11  ;;  %v9407_v11 = vld [vmem:[%s15352_s15 + $0x8] sm:$0xff] }
 0x736   : > { %11991 = vmatpush3.bf16.msra.mxu1 %v13281_v50  ;;  %11970 = vmatprep.subr.bf16.mxu0 %v13282_v22  ;;  %v13290_v50 = vld [vmem:[%s15363_s0 + $0x270] sm:$0xff]  }
 0x737   : > { %11992 = vmatprep.subr.bf16.mxu1 %v13283_v34  ;;  %v13291_v22 = vld [vmem:[%s15363_s0 + $0x2f0] sm:$0xff]  }
 0x738   : > { %10267 = vperm.xlu1 %12769, %v9407_v11   ;;  %v13292_v34 = vld [vmem:[%s15363_s0 + $0x230] sm:$0xff]   ;;  %v13297_v11 = vld [vmem:[%s15363_s0 + $0x2b8] sm:$0xff]  }
 0x739   : > { %11971 = vmatpush3.bf16.msra.mxu0 %v13284_v9  ;;  %v13293_v9 = vld [vmem:[%s15363_s0 + $0x2b0] sm:$0xff]  }
 0x73a   : > { %11993 = vmatpush3.bf16.msra.mxu1 %v13285_v14  ;;  %11972 = vmatprep.subr.bf16.mxu0 %v13286_v53  ;;  %v14712_v14 = vpop.permute.xlu1 %8100  ;;  %v13295_v53 = vld [vmem:[%s15363_s0 + $0x2f8] sm:$0xff]  }
 0x73b   : > { %11994 = vmatprep.subr.bf16.mxu1 %v13287_v37  ;;  %15395 = vst [vmem:[#allocation86_spill] sm:$0xff] %v14712_v14  ;;  %v13296_v37 = vld [vmem:[%s15363_s0 + $0x238] sm:$0xff]  }
 0x73c   : > { %10277 = vperm.xlu1 %12769, %v9409_v21   ;;  %v13302_v21 = vld [vmem:[%s15363_s0 + $0x348] sm:$0xff]  }
 0x73d   : > { %11973 = vmatpush3.bf16.msra.mxu0 %v13288_v39  ;;  %v9413_v39 = vld [vmem:[%s13750_s13 + $0x8] sm:$0xff] }
 0x73e   : > { %11995 = vmatpush3.bf16.msra.mxu1 %v13289_v29  ;;  %11974 = vmatprep.subr.bf16.mxu0 %v13290_v50  ;;  %v13298_v29 = vld [vmem:[%s15363_s0 + $0x340] sm:$0xff]   ;;  %v14720_v13 = vpop.permute.xlu1 %8191 }
 0x73f   : > { %11996 = vmatprep.subr.bf16.mxu1 %v13291_v22  ;;  %v13299_v50 = vld [vmem:[%s15363_s0 + $0x3c0] sm:$0xff]   ;;  %15396 = vst [vmem:[#allocation87_spill] sm:$0xff] %v14720_v13 }
 0x740   : > { %10291 = vperm.xlu1 %12769, %v9413_v39   ;;  %v13300_v22 = vld [vmem:[%s15363_s0 + $0x300] sm:$0xff]   ;;  %v13307_v39 = vld [vmem:[%s15363_s0 + $0x3d0] sm:$0xff]  }
 0x741   : > { %11975 = vmatpush3.bf16.msra.mxu0 %v13292_v34  ;;  %v13301_v34 = vld [vmem:[%s15363_s0 + $0x380] sm:$0xff]  }
 0x742   : > { %11997 = vmatpush3.bf16.msra.mxu1 %v13293_v9  ;;  %11976 = vmatprep.subr.bf16.mxu0 %v13294_v18  ;;  %v13303_v18 = vld [vmem:[%s15363_s0 + $0x3c8] sm:$0xff]  }
 0x743   : > { %11998 = vmatprep.subr.bf16.mxu1 %v13295_v53  ;;  %v13304_v9 = vld [vmem:[%s15363_s0 + $0x308] sm:$0xff]  }
 0x744   : > { %v13305_v53 = vld [vmem:[%s15363_s0 + $0x388] sm:$0xff]  }
 0x745   : > { %11977 = vmatpush3.bf16.msra.mxu0 %v13296_v37  ;;  %v13306_v37 = vld [vmem:[%s15363_s0 + $0x350] sm:$0xff]  }
 0x746   : > { %11999 = vmatpush3.bf16.msra.mxu1 %v13297_v11  ;;  %12006 = vmatprep.subr.bf16.mxu0 %v13298_v29  ;;  %v13308_v11 = vld [vmem:[%s15363_s0 + $0x310] sm:$0xff]  }
 0x747   : > { %12028 = vmatprep.subr.bf16.mxu1 %v13299_v50  ;;  %v13309_v29 = vld [vmem:[%s15363_s0 + $0x390] sm:$0xff]   ;;  %v13310_v50 = vld [vmem:[%s15363_s0 + $0x358] sm:$0xff]  }
 0x748   : > { %5041 = vmatmul.mubr.bf16.vlgmr.msra.gmra.mrb[28].mxu0 %v14612_v23 }
 0x749   : > { %5228 = vmatmul.mubr.bf16.vlgmr.msra.gmra.mrb[28].mxu1 %v14612_v23  ;;  %12007 = vmatpush3.bf16.msra.mxu0 %v13300_v22  ;;  %v13311_v22 = vld [vmem:[%s15363_s0 + $0x3d8] sm:$0xff]  }
 0x74a   : > { %5414 = vmatprep.mubr.bf16.mxu0 %v14607_v17  ;;  %12029 = vmatpush3.bf16.msra.mxu1 %v13301_v34  ;;  %v13312_v34 = vld [vmem:[%s15363_s0 + $0x318] sm:$0xff]  }
 0x74b   : > { %5601 = vmatprep.mubr.bf16.mxu1 %v14607_v17  ;;  %12008 = vmatprep.subr.bf16.mxu0 %v13302_v21  ;;  %v13313_v21 = vld [vmem:[%s15363_s0 + $0x398] sm:$0xff]  }
 0x74c   : > { %12030 = vmatprep.subr.bf16.mxu1 %v13303_v18  ;;  %v13314_v18 = vld [vmem:[%s15363_s0 + $0x360] sm:$0xff]  }
 0x74d   : > { %12009 = vmatpush3.bf16.msra.mxu0 %v13304_v9  ;;  %v13315_v9 = vld [vmem:[%s15363_s0 + $0x3e0] sm:$0xff]  }
 0x74e   : > { %12031 = vmatpush3.bf16.msra.mxu1 %v13305_v53  ;;  %12010 = vmatprep.subr.bf16.mxu0 %v13306_v37  ;;  %v13316_v53 = vld [vmem:[%s15363_s0 + $0x320] sm:$0xff]  }
 0x74f   : > { %12032 = vmatprep.subr.bf16.mxu1 %v13307_v39  ;;  %v13317_v37 = vld [vmem:[%s15363_s0 + $0x3a0] sm:$0xff]   ;;  %v13318_v39 = vld [vmem:[%s15363_s0 + $0x368] sm:$0xff]  }
 0x751   : > { %12011 = vmatpush3.bf16.msra.mxu0 %v13308_v11  ;;  %v13319_v11 = vld [vmem:[%s15363_s0 + $0x3e8] sm:$0xff]  }
 0x752   : > { %12033 = vmatpush3.bf16.msra.mxu1 %v13309_v29  ;;  %12012 = vmatprep.subr.bf16.mxu0 %v13310_v50  ;;  %v13320_v29 = vld [vmem:[%s15363_s0 + $0x328] sm:$0xff]  }
 0x753   : > { %12034 = vmatprep.subr.bf16.mxu1 %v13311_v22  ;;  %v13321_v50 = vld [vmem:[%s15363_s0 + $0x3a8] sm:$0xff]   ;;  %v13322_v22 = vld [vmem:[%s15363_s0 + $0x370] sm:$0xff]  }
 0x755   : > { %12013 = vmatpush3.bf16.msra.mxu0 %v13312_v34  ;;  %v13323_v34 = vld [vmem:[%s15363_s0 + $0x3f0] sm:$0xff]  }
 0x756   : > { %12035 = vmatpush3.bf16.msra.mxu1 %v13313_v21  ;;  %12014 = vmatprep.subr.bf16.mxu0 %v13314_v18  ;;  %v13324_v21 = vld [vmem:[%s15363_s0 + $0x330] sm:$0xff]  }
 0x757   : > { %12036 = vmatprep.subr.bf16.mxu1 %v13315_v9  ;;  %v13325_v18 = vld [vmem:[%s15363_s0 + $0x3b0] sm:$0xff]   ;;  %v13326_v9 = vld [vmem:[%s15363_s0 + $0x378] sm:$0xff]  }
 0x759   : > { %12015 = vmatpush3.bf16.msra.mxu0 %v13316_v53  ;;  %v13327_v53 = vld [vmem:[%s15363_s0 + $0x3f8] sm:$0xff]  }
 0x75a   : > { %12037 = vmatpush3.bf16.msra.mxu1 %v13317_v37  ;;  %12016 = vmatprep.subr.bf16.mxu0 %v13318_v39  ;;  %v13328_v37 = vld [vmem:[%s15363_s0 + $0x338] sm:$0xff]  }
 0x75b   : > { %12038 = vmatprep.subr.bf16.mxu1 %v13319_v11  ;;  %v13329_v39 = vld [vmem:[%s15363_s0 + $0x3b8] sm:$0xff]   ;;  %v13330_v11 = vld [vmem:[%s15363_s0 + $0x440] sm:$0xff]  }
 0x75d   : > { %12017 = vmatpush3.bf16.msra.mxu0 %v13320_v29  ;;  %v13331_v29 = vld [vmem:[%s15363_s0 + $0x400] sm:$0xff]  }
 0x75e   : > { %12039 = vmatpush3.bf16.msra.mxu1 %v13321_v50  ;;  %12018 = vmatprep.subr.bf16.mxu0 %v13322_v22  ;;  %v13332_v50 = vld [vmem:[%s15363_s0 + $0x448] sm:$0xff]  }
 0x75f   : > { %12040 = vmatprep.subr.bf16.mxu1 %v13323_v34  ;;  %v13333_v22 = vld [vmem:[%s15363_s0 + $0x408] sm:$0xff]   ;;  %v13334_v34 = vld [vmem:[%s15363_s0 + $0x450] sm:$0xff]  }
 0x761   : > { %12019 = vmatpush3.bf16.msra.mxu0 %v13324_v21  ;;  %v13335_v21 = vld [vmem:[%s15363_s0 + $0x410] sm:$0xff]  }
 0x762   : > { %12041 = vmatpush3.bf16.msra.mxu1 %v13325_v18  ;;  %12020 = vmatprep.subr.bf16.mxu0 %v13326_v9  ;;  %v13336_v18 = vld [vmem:[%s15363_s0 + $0x458] sm:$0xff]  }
 0x763   : > { %12042 = vmatprep.subr.bf16.mxu1 %v13327_v53  ;;  %v13337_v9 = vld [vmem:[%s15363_s0 + $0x418] sm:$0xff]   ;;  %v13338_v53 = vld [vmem:[%s15363_s0 + $0x460] sm:$0xff]  }
 0x765   : > { %12021 = vmatpush3.bf16.msra.mxu0 %v13328_v37  ;;  %v13339_v37 = vld [vmem:[%s15363_s0 + $0x420] sm:$0xff]  }
 0x766   : > { %12043 = vmatpush3.bf16.msra.mxu1 %v13329_v39  ;;  %12050 = vmatprep.subr.bf16.mxu0 %v13330_v11  ;;  %v13340_v39 = vld [vmem:[%s15363_s0 + $0x468] sm:$0xff]   ;;  %v13342_v11 = vld [vmem:[%s15363_s0 + $0x470] sm:$0xff]  }
 0x768   : > { %5415 = vmatmul.mubr.bf16.vlgmr.msra.gmra.mrb[32].mxu0 %v14612_v23 }
 0x769   : > { %5602 = vmatmul.mubr.bf16.vlgmr.msra.gmra.mrb[32].mxu1 %v14612_v23  ;;  %12051 = vmatpush3.bf16.msra.mxu0 %v13331_v29  ;;  %v13343_v29 = vld [vmem:[%s15363_s0 + $0x430] sm:$0xff]  }
 0x76a   : > { %5788 = vmatprep.mubr.bf16.mxu0 %v14607_v17  ;;  %12052 = vmatprep.subr.bf16.mxu0 %v13332_v50  ;;  %v13341_v17 = vld [vmem:[%s15363_s0 + $0x428] sm:$0xff]   ;;  %v13344_v50 = vld [vmem:[%s15363_s0 + $0x478] sm:$0xff]  }
 0x76b   : > { %12261 = vmatprep.mubr.msk.f32.mxu1 %vm1663_vm0, %v4035_v15 }
 0x76d   : > { %12053 = vmatpush3.bf16.msra.mxu0 %v13333_v22  ;;  %v13345_v22 = vld [vmem:[%s15363_s0 + $0x438] sm:$0xff]   ;;  %s15399_s0 = sld [smem:[#allocation4_spill]] }
 0x76e   : > { %12054 = vmatprep.subr.bf16.mxu0 %v13334_v34 }
 0x771   : > { %12055 = vmatpush3.bf16.msra.mxu0 %v13335_v21 }
 0x772   : > { %12056 = vmatprep.subr.bf16.mxu0 %v13336_v18 }
 0x775   : > { %12057 = vmatpush3.bf16.msra.mxu0 %v13337_v9 }
 0x776   : > { %12058 = vmatprep.subr.bf16.mxu0 %v13338_v53 }
 0x779   : > { %12059 = vmatpush3.bf16.msra.mxu0 %v13339_v37 }
 0x77a   : > { %12060 = vmatprep.subr.bf16.mxu0 %v13340_v39 }
 0x77d   : > { %12061 = vmatpush3.bf16.msra.mxu0 %v13341_v17 }
 0x77e   : > { %12062 = vmatprep.subr.bf16.mxu0 %v13342_v11 }
 0x781   : > { %12063 = vmatpush3.bf16.msra.mxu0 %v13343_v29 }
 0x782   : > { %12064 = vmatprep.subr.bf16.mxu0 %v13344_v50 }
 0x785   : > { %12065 = vmatpush3.bf16.msra.mxu0 %v13345_v22 }
 0x788   : > { %5789 = vmatmul.mubr.bf16.vlgmr.msra.gmra.mrb[36].mxu0 %v14612_v23 }
 0x7db   : > { %v11890_v34 = vpop.f32.mrb[20].mxu0  ;;  %v11912_v21 = vpop.f32.mrb[20].mxu1 }
 0x7dc   : > { %v11891_v18 = vpop.f32.mrb[21].mxu0  ;;  %v11913_v9 = vpop.f32.mrb[21].mxu1 }
 0x7dd   : > { %v11892_v53 = vadd.f32 %v11891_v18, %v11890_v34  ;;  %v11914_v37 = vadd.f32 %v11913_v9, %v11912_v21  ;;  %v11893_v13 = vpop.f32.mrb[22].mxu0  ;;  %v11915_v39 = vpop.f32.mrb[22].mxu1 }
 0x7de   : > { %v11894_v14 = vpop.f32.mrb[23].mxu0  ;;  %v11916_v17 = vpop.f32.mrb[23].mxu1 }
 0x7df   : > { %v4316_v11 = vmul.f32 %v11892_v53, %v14428_v7  ;;  %v4501_v29 = vmul.f32 %v11914_v37, %v14143_v41  ;;  %v11895_v62 = vadd.f32 %v11894_v14, %v11893_v13  ;;  %v11917_v50 = vadd.f32 %v11916_v17, %v11915_v39 }
 0x7e1   : > { %v4503_v22 = vadd.f32 %v4501_v29, %v4316_v11  ;;  %v4317_v23 = vmul.f32 %v11895_v62, %v14431_v0  ;;  %v4502_v60 = vmul.f32 %v11917_v50, %v14434_v35 }
 0x7e3   : > { %v4504_v47 = vadd.f32 %v4502_v60, %v4317_v23 }
 0x7fb   : > { %v11934_v34 = vpop.f32.mrb[24].mxu0  ;;  %v11956_v21 = vpop.f32.mrb[24].mxu1 }
 0x7fc   : > { %v11935_v18 = vpop.f32.mrb[25].mxu0  ;;  %v11957_v9 = vpop.f32.mrb[25].mxu1 }
 0x7fd   : > { %v11936_v3 = vadd.f32 %v11935_v18, %v11934_v34  ;;  %v11958_v57 = vadd.f32 %v11957_v9, %v11956_v21  ;;  %v11937_v7 = vpop.f32.mrb[26].mxu0  ;;  %v11959_v53 = vpop.f32.mrb[26].mxu1 }
 0x7fe   : > { %v11938_v41 = vpop.f32.mrb[27].mxu0  ;;  %v11960_v13 = vpop.f32.mrb[27].mxu1 }
 0x7ff   : > { %v4688_v14 = vmul.f32 %v11936_v3, %v14146_v43  ;;  %v11939_v37 = vadd.f32 %v11938_v41, %v11937_v7  ;;  %v11961_v0 = vadd.f32 %v11960_v13, %v11959_v53  ;;  %v4875_v35 = vmul.f32 %v11958_v57, %v14150_v49 }
 0x801   : > { %v4690_v62 = vadd.f32 %v4688_v14, %v4503_v22  ;;  %v4689_v60 = vmul.f32 %v11939_v37, %v14437_v26  ;;  %v4876_v17 = vmul.f32 %v11961_v0, %v14440_v30 }
 0x803   : > { %v4877_v15 = vadd.f32 %v4875_v35, %v4690_v62  ;;  %v4691_v39 = vadd.f32 %v4689_v60, %v4504_v47 }
 0x805   : > { %v4878_v11 = vadd.f32 %v4876_v17, %v4691_v39 }
 0x81b   : > { %v11978_v29 = vpop.f32.mrb[28].mxu0 }
 0x81c   : > { %v12000_v50 = vpop.f32.mrb[28].mxu1  ;;  %v11979_v23 = vpop.f32.mrb[29].mxu0 }
 0x81d   : > { %v11980_v34 = vadd.f32 %v11979_v23, %v11978_v29  ;;  %v12001_v21 = vpop.f32.mrb[29].mxu1  ;;  %v11981_v18 = vpop.f32.mrb[30].mxu0 }
 0x81e   : > { %v12002_v9 = vadd.f32 %v12001_v21, %v12000_v50  ;;  %v12003_v43 = vpop.f32.mrb[30].mxu1  ;;  %v11982_v3 = vpop.f32.mrb[31].mxu0 }
 0x81f   : > { %v5062_v22 = vmul.f32 %v11980_v34, %v14153_v54  ;;  %v11983_v7 = vadd.f32 %v11982_v3, %v11981_v18  ;;  %v12004_v49 = vpop.f32.mrb[31].mxu1 }
 0x820   : > { %v12005_v57 = vadd.f32 %v12004_v49, %v12003_v43  ;;  %v5249_v47 = vmul.f32 %v12002_v9, %v14162_v58 }
 0x821   : > { %v5064_v26 = vadd.f32 %v5062_v22, %v4877_v15  ;;  %v5063_v30 = vmul.f32 %v11983_v7, %v14443_v42 }
 0x822   : > { %v5250_v13 = vmul.f32 %v12005_v57, %v14446_v6 }
 0x823   : > { %v5251_v53 = vadd.f32 %v5249_v47, %v5064_v26  ;;  %v5065_v41 = vadd.f32 %v5063_v30, %v4878_v11 }
 0x825   : > { %v5252_v14 = vadd.f32 %v5250_v13, %v5065_v41  ;;  %v5931_v41 = vld [vmem:[%s15398_s18] sm:$0xff] }
 0x83b   : > { %v12022_v37 = vpop.f32.mrb[32].mxu0 }
 0x83c   : > { %v12044_v0 = vpop.f32.mrb[32].mxu1  ;;  %v12023_v62 = vpop.f32.mrb[33].mxu0 }
 0x83d   : > { %v12024_v35 = vadd.f32 %v12023_v62, %v12022_v37  ;;  %v12045_v60 = vpop.f32.mrb[33].mxu1  ;;  %v12025_v39 = vpop.f32.mrb[34].mxu0 }
 0x83e   : > { %v12046_v54 = vadd.f32 %v12045_v60, %v12044_v0  ;;  %v12047_v17 = vpop.f32.mrb[34].mxu1  ;;  %v12026_v29 = vpop.f32.mrb[35].mxu0 }
 0x83f   : > { %v5436_v15 = vmul.f32 %v12024_v35, %v14169_v31  ;;  %v12027_v50 = vadd.f32 %v12026_v29, %v12025_v39  ;;  %v12048_v58 = vpop.f32.mrb[35].mxu1  ;;  %v13346_v29 = vld [vmem:[%s15399_s0] sm:$0xff]  }
 0x840   : > { %v12049_v23 = vadd.f32 %v12048_v58, %v12047_v17  ;;  %v5623_v11 = vmul.f32 %v12046_v54, %v14178_v28  ;;  %v5932_v17 = vld [vmem:[%s15398_s18 + $0x8] sm:$0xff] }
 0x841   : > { %v5438_v42 = vadd.f32 %v5436_v15, %v5251_v53  ;;  %v5437_v6 = vmul.f32 %v12027_v50, %v14449_v56  ;;  %v4036_v53 = vld [vmem:[%s15397_s24 + $0x8] sm:$0xff]  ;;  %v13347_v15 = vld [vmem:[%s15399_s0 + $0x20] sm:$0xff]  }
 0x842   : > { %v5624_v18 = vmul.f32 %v12049_v23, %v14453_v61  ;;  %12283 = vmatprep.subr.bf16.mxu0 %v13347_v15  ;;  %v13348_v50 = vld [vmem:[%s15399_s0 + $0x8] sm:$0xff]   ;;  %v13350_v23 = vld [vmem:[%s15399_s0 + $0x10] sm:$0xff]  }
 0x843   : > { %v5625_v34 = vadd.f32 %v5623_v11, %v5438_v42  ;;  %v5439_v21 = vadd.f32 %v5437_v6, %v5252_v14  ;;  %12284 = vmatpush3.bf16.msra.mxu0 %v13347_v15  ;;  %v13349_v58 = vld [vmem:[%s15399_s0 + $0x28] sm:$0xff]   ;;  %v13351_v42 = vld [vmem:[%s15399_s0 + $0x30] sm:$0xff]   ;;  %v13352_v11 = vld [vmem:[%s15399_s0 + $0x18] sm:$0xff]  }
 0x844   : > { %12285 = vmatprep.subr.bf16.mxu0 %v13349_v58  ;;  %v13353_v6 = vld [vmem:[%s15399_s0 + $0x38] sm:$0xff]  }
 0x845   : > { %v5626_v9 = vadd.f32 %v5624_v18, %v5439_v21  ;;  %v13355_v21 = vld [vmem:[%s15399_s0 + $0x60] sm:$0xff]   ;;  %v13376_v15 = vld [vmem:[%s15399_s0 + $0xd8] sm:$0xff]  }
 0x847   : > { %12286 = vmatpush3.bf16.msra.mxu0 %v13349_v58  ;;  %v13378_v58 = vld [vmem:[%s15399_s0 + $0x100] sm:$0xff]  }
 0x848   : > { %12287 = vmatprep.subr.bf16.mxu0 %v13351_v42 }
 0x84b   : > { %12288 = vmatpush3.bf16.msra.mxu0 %v13351_v42  ;;  %v13380_v42 = vld [vmem:[%s15399_s0 + $0x110] sm:$0xff]  }
 0x84c   : > { %12289 = vmatprep.subr.bf16.mxu0 %v13353_v6 }
 0x84f   : > { %12290 = vmatpush3.bf16.msra.mxu0 %v13353_v6  ;;  %v5939_v6 = vld [vmem:[%s15400_s1] sm:$0xff] }
 0x850   : > { %12307 = vmatprep.subr.bf16.mxu0 %v13355_v21 }
 0x85b   : > { %v12066_v43 = vpop.f32.mrb[36].mxu0 }
 0x85c   : > { %v12067_v3 = vpop.f32.mrb[37].mxu0 }
 0x85d   : > { %v12068_v22 = vadd.f32 %v12067_v3, %v12066_v43  ;;  %v12069_v7 = vpop.f32.mrb[38].mxu0 }
 0x85e   : > { %v12070_v31 = vpop.f32.mrb[39].mxu0 }
 0x85f   : > { %v5810_v49 = vmul.f32 %v12068_v22, %v14183_v1  ;;  %v12071_v57 = vadd.f32 %v12070_v31, %v12069_v7 }
 0x861   : > { %v5812_v26 = vadd.f32 %v5810_v49, %v5625_v34  ;;  %v5811_v28 = vmul.f32 %v12071_v57, %v14456_v27  ;;  %v13354_v34 = vld [vmem:[%s15399_s0 + $0x40] sm:$0xff]  }
 0x863   : > { %v5813_v47 = vadd.f32 %v5811_v28, %v5626_v9  ;;  %v5824_v56 = vadd.f32 %v14188_v4, %v5812_v26 }
 0x865   : > { %v5825_v30 = vadd.f32 %v14460_v33, %v5813_v47 }
 0x867   : > { %v12651_v61 = vpack.c.bf16 %v5825_v30, %v5824_v56 }
 0x869   : > { %12652 = vmatprep.subr.bf16.mxu1 %v12651_v61 }
 0x86a   : > { %12654 = vmatpush3.bf16.msra.mxu1 %v12651_v61  ;;  %v13357_v61 = vld [vmem:[%s15399_s0 + $0x68] sm:$0xff]  }
 0x86d   : > { %12262 = vmatmul.mubr.msk.f32.vlgmr.msra.gmra.mrb[36].mxu1 %vm1663_vm0, %v4036_v53  ;;  %v13358_v53 = vld [vmem:[%s15399_s0 + $0x50] sm:$0xff]  }
 0x86e   : > { %12268 = vmatprep.mubr.msk.f32.mxu1 %vm1663_vm0, %v5931_v41  ;;  %v13359_v41 = vld [vmem:[%s15399_s0 + $0x70] sm:$0xff]  }
 0x940   : > { %v12263_v13 = vpop.f32.mrb[36].mxu1 }
 0x941   : > { %v5914_v1 = vadd.f32 %v12263_v13, %v14463_v40  ;;  %v5908_v14 = vpop.f32.mrb[37].mxu1  ;;  %v13360_v13 = vld [vmem:[%s15399_s0 + $0x58] sm:$0xff]  }
 0x942   : > { %v5909_v27 = vadd.f32 %v5908_v14, %v14193_v8  ;;  %v13362_v14 = vld [vmem:[%s15399_s0 + $0x80] sm:$0xff]  }
 0x943   : > { %v11500_v37 = vmul.f32 -1.442695, %v5914_v1 }
 0x944   : > { %v11499_v0 = vmul.f32 -1.442695, %v5909_v27 }
 0x945   : > { %13407 = vpow2.f32 %v11500_v37  ;;  %v13364_v37 = vld [vmem:[%s15399_s0 + $0x88] sm:$0xff]  }
 0x946   : > { %13409 = vpow2.f32 %v11499_v0  ;;  %v13365_v0 = vld [vmem:[%s15399_s0 + $0xa8] sm:$0xff]  }
 0x94f   : > { %v13408_v4 = vpop.eup %13407 }
 0x950   : > { %v13410_v33 = vpop.eup %13409  ;;  %v5924_v62 = vadd.f32 1.0, %v13408_v4  ;;  %v13366_v4 = vld [vmem:[%s15399_s0 + $0x90] sm:$0xff]  }
 0x951   : > { %v5923_v35 = vadd.f32 1.0, %v13410_v33  ;;  %v13367_v33 = vld [vmem:[%s15399_s0 + $0xb0] sm:$0xff]  }
 0x952   : > { %13411 = vrcp.f32 %v5924_v62  ;;  %v13368_v62 = vld [vmem:[%s15399_s0 + $0x98] sm:$0xff]  }
 0x953   : > { %13413 = vrcp.f32 %v5923_v35  ;;  %v13369_v35 = vld [vmem:[%s15399_s0 + $0xb8] sm:$0xff]  }
 0x95c   : > { %v13412_v60 = vpop.eup %13411 }
 0x95d   : > { %v13414_v39 = vpop.eup %13413  ;;  %v5930_v54 = vmul.f32 %v13412_v60, %v5914_v1  ;;  %v13361_v1 = vld [vmem:[%s15399_s0 + $0x78] sm:$0xff]   ;;  %v13370_v60 = vld [vmem:[%s15399_s0 + $0xc0] sm:$0xff]  }
 0x95e   : > { %v5929_v40 = vmul.f32 %v13414_v39, %v5909_v27  ;;  %v13363_v27 = vld [vmem:[%s15399_s0 + $0xa0] sm:$0xff]  }
 0x95f   : > { %v13371_v39 = vld [vmem:[%s15399_s0 + $0xe0] sm:$0xff]  }
 0x960   : > { %v14804_v8 = vpack.c.bf16 %v5930_v54, %v5929_v40  ;;  %v13372_v54 = vld [vmem:[%s15399_s0 + $0xc8] sm:$0xff]  }
 0x961   : > { %v13373_v40 = vld [vmem:[%s15399_s0 + $0xe8] sm:$0xff]  }
 0x962   : > { %12656 = vmatprep.subr.bf16.mxu1 %v14804_v8  ;;  %12291 = vmatprep.mubr.msk.bf16.mxu0 %vm6086_vm2, %v14804_v8 }
 0x963   : > { %12658 = vmatpush3.bf16.msra.mxu1 %v14804_v8 }
 0x964   : > { %12271 = vmatprep.subr.bf16.mxu1 %v13346_v29 }
 0x966   : > { %12269 = vmatmul.mubr.msk.f32.vlgmr.msra.gmra.mrb[38].mxu1 %vm1663_vm0, %v5932_v17  ;;  %v13374_v17 = vld [vmem:[%s15399_s0 + $0xd0] sm:$0xff]  }
 0x967   : > { %12279 = vmatprep.mubr.msk.bf16.mxu1 %vm6086_vm2, %v14804_v8  ;;  %12272 = vmatpush3.bf16.msra.mxu1 %v13346_v29  ;;  %v13375_v29 = vld [vmem:[%s15399_s0 + $0xf0] sm:$0xff]  }
 0x968   : > { %12273 = vmatprep.subr.bf16.mxu1 %v13348_v50 }
 0x96b   : > { %12274 = vmatpush3.bf16.msra.mxu1 %v13348_v50  ;;  %v13377_v50 = vld [vmem:[%s15399_s0 + $0xf8] sm:$0xff]  }
 0x96c   : > { %12275 = vmatprep.subr.bf16.mxu1 %v13350_v23 }
 0x96f   : > { %12276 = vmatpush3.bf16.msra.mxu1 %v13350_v23  ;;  %v13379_v23 = vld [vmem:[%s15399_s0 + $0x108] sm:$0xff]  }
 0x970   : > { %12277 = vmatprep.subr.bf16.mxu1 %v13352_v11 }
 0x973   : > { %12278 = vmatpush3.bf16.msra.mxu1 %v13352_v11  ;;  %v13381_v11 = vld [vmem:[%s15399_s0 + $0x118] sm:$0xff]  }
 0x974   : > { %12295 = vmatprep.subr.bf16.mxu1 %v13354_v34 }
 0xa39   : > { %v12270_v18 = vpop.f32.mrb[38].mxu1 }
 0xa3a   : > { %v6035_v9 = vadd.f32 %v12270_v18, %v14467_v52  ;;  %v6029_v43 = vpop.f32.mrb[39].mxu1 }
 0xa3b   : > { %v6030_v3 = vadd.f32 %v6029_v43, %v14198_v12  ;;  %v13356_v12 = vld [vmem:[%s15399_s0 + $0x48] sm:$0xff]   ;;  %s15420_s0 = sld [smem:[#allocation10_spill]] }
 0xa3c   : > { %v11504_v22 = vmul.f32 -1.442695, %v6035_v9 }
 0xa3d   : > { %v11503_v7 = vmul.f32 -1.442695, %v6030_v3 }
 0xa3e   : > { %13415 = vpow2.f32 %v11504_v22 }
 0xa3f   : > { %13417 = vpow2.f32 %v11503_v7 }
 0xa48   : > { %v13416_v31 = vpop.eup %13415 }
 0xa49   : > { %v13418_v49 = vpop.eup %13417  ;;  %v6045_v57 = vadd.f32 1.0, %v13416_v31 }
 0xa4a   : > { %v6044_v26 = vadd.f32 1.0, %v13418_v49 }
 0xa4b   : > { %13419 = vrcp.f32 %v6045_v57 }
 0xa4c   : > { %13421 = vrcp.f32 %v6044_v26 }
 0xa55   : > { %v13420_v28 = vpop.eup %13419 }
 0xa56   : > { %v13422_v47 = vpop.eup %13421  ;;  %v6051_v52 = vmul.f32 %v13420_v28, %v6035_v9 }
 0xa57   : > { %v6050_v56 = vmul.f32 %v13422_v47, %v6030_v3 }
 0xa59   : > { %v14826_v30 = vpack.c.bf16 %v6051_v52, %v6050_v56 }
 0xa5b   : > { %12280 = vmatmul.mubr.msk.bf16.vlgmr.msra.gmra.mrb[40].mxu1 %vm6086_vm2, %v14826_v30  ;;  %12292 = vmatmul.mubr.msk.bf16.vlgmr.msra.gmra.mrb[40].mxu0 %vm6086_vm2, %v14826_v30 }
 0xa5c   : > { %12296 = vmatpush3.bf16.msra.mxu1 %v13354_v34  ;;  %12308 = vmatpush3.bf16.msra.mxu0 %v13355_v21 }
 0xa5d   : > { %12303 = vmatprep.mubr.msk.bf16.mxu1 %vm6086_vm2, %v14804_v8  ;;  %12315 = vmatprep.mubr.msk.bf16.mxu0 %vm6086_vm2, %v14804_v8 }
 0xa5e   : > { %12297 = vmatprep.subr.bf16.mxu1 %v13356_v12  ;;  %12309 = vmatprep.subr.bf16.mxu0 %v13357_v61 }
 0xa60   : > { %12298 = vmatpush3.bf16.msra.mxu1 %v13356_v12  ;;  %12310 = vmatpush3.bf16.msra.mxu0 %v13357_v61 }
 0xa61   : > { %12299 = vmatprep.subr.bf16.mxu1 %v13358_v53  ;;  %12311 = vmatprep.subr.bf16.mxu0 %v13359_v41 }
 0xa64   : > { %12300 = vmatpush3.bf16.msra.mxu1 %v13358_v53  ;;  %12312 = vmatpush3.bf16.msra.mxu0 %v13359_v41 }
 0xa65   : > { %12301 = vmatprep.subr.bf16.mxu1 %v13360_v13  ;;  %12313 = vmatprep.subr.bf16.mxu0 %v13361_v1 }
 0xa68   : > { %12302 = vmatpush3.bf16.msra.mxu1 %v13360_v13  ;;  %12314 = vmatpush3.bf16.msra.mxu0 %v13361_v1 }
 0xa69   : > { %12319 = vmatprep.subr.bf16.mxu1 %v13362_v14  ;;  %12331 = vmatprep.subr.bf16.mxu0 %v13363_v27 }
 0xa6b   : > { %12304 = vmatmul.mubr.msk.bf16.vlgmr.msra.gmra.mrb[44].mxu1 %vm6086_vm2, %v14826_v30  ;;  %12316 = vmatmul.mubr.msk.bf16.vlgmr.msra.gmra.mrb[44].mxu0 %vm6086_vm2, %v14826_v30 }
 0xa6c   : > { %12320 = vmatpush3.bf16.msra.mxu1 %v13362_v14  ;;  %12327 = vmatprep.mubr.msk.bf16.mxu1 %vm6086_vm2, %v14804_v8 }
 0xa6d   : > { %12332 = vmatpush3.bf16.msra.mxu0 %v13363_v27  ;;  %12339 = vmatprep.mubr.msk.bf16.mxu0 %vm6086_vm2, %v14804_v8 }
 0xa6e   : > { %12321 = vmatprep.subr.bf16.mxu1 %v13364_v37  ;;  %12333 = vmatprep.subr.bf16.mxu0 %v13365_v0 }
 0xa70   : > { %12322 = vmatpush3.bf16.msra.mxu1 %v13364_v37 }
 0xa71   : > { %12334 = vmatpush3.bf16.msra.mxu0 %v13365_v0  ;;  %12323 = vmatprep.subr.bf16.mxu1 %v13366_v4 }
 0xa72   : > { %12335 = vmatprep.subr.bf16.mxu0 %v13367_v33 }
 0xa74   : > { %12324 = vmatpush3.bf16.msra.mxu1 %v13366_v4 }
 0xa75   : > { %12336 = vmatpush3.bf16.msra.mxu0 %v13367_v33  ;;  %12325 = vmatprep.subr.bf16.mxu1 %v13368_v62 }
 0xa76   : > { %12337 = vmatprep.subr.bf16.mxu0 %v13369_v35 }
 0xa78   : > { %12326 = vmatpush3.bf16.msra.mxu1 %v13368_v62 }
 0xa79   : > { %12338 = vmatpush3.bf16.msra.mxu0 %v13369_v35  ;;  %12343 = vmatprep.subr.bf16.mxu1 %v13370_v60 }
 0xa7a   : > { %12355 = vmatprep.subr.bf16.mxu0 %v13371_v39 }
 0xa7b   : > { %12328 = vmatmul.mubr.msk.bf16.vlgmr.msra.gmra.mrb[48].mxu1 %vm6086_vm2, %v14826_v30 }
 0xa7c   : > { %12340 = vmatmul.mubr.msk.bf16.vlgmr.msra.gmra.mrb[48].mxu0 %vm6086_vm2, %v14826_v30  ;;  %12344 = vmatpush3.bf16.msra.mxu1 %v13370_v60 }
 0xa7d   : > { %12351 = vmatprep.mubr.msk.bf16.mxu1 %vm6086_vm2, %v14804_v8  ;;  %12356 = vmatpush3.bf16.msra.mxu0 %v13371_v39 }
 0xa7e   : > { %12363 = vmatprep.mubr.msk.bf16.mxu0 %vm6086_vm2, %v14804_v8  ;;  %12345 = vmatprep.subr.bf16.mxu1 %v13372_v54 }
 0xa7f   : > { %12357 = vmatprep.subr.bf16.mxu0 %v13373_v40 }
 0xa80   : > { %12346 = vmatpush3.bf16.msra.mxu1 %v13372_v54 }
 0xa81   : > { %12358 = vmatpush3.bf16.msra.mxu0 %v13373_v40  ;;  %12347 = vmatprep.subr.bf16.mxu1 %v13374_v17 }
 0xa82   : > { %12359 = vmatprep.subr.bf16.mxu0 %v13375_v29 }
 0xa84   : > { %12348 = vmatpush3.bf16.msra.mxu1 %v13374_v17 }
 0xa85   : > { %12360 = vmatpush3.bf16.msra.mxu0 %v13375_v29  ;;  %12349 = vmatprep.subr.bf16.mxu1 %v13376_v15 }
 0xa86   : > { %12361 = vmatprep.subr.bf16.mxu0 %v13377_v50 }
 0xa88   : > { %12350 = vmatpush3.bf16.msra.mxu1 %v13376_v15 }
 0xa89   : > { %12362 = vmatpush3.bf16.msra.mxu0 %v13377_v50  ;;  %12367 = vmatprep.subr.bf16.mxu1 %v13378_v58  ;;  %v15401_v50 = vld [vmem:[#allocation57_spill] sm:$0xff] }
 0xa8b   : > { %12352 = vmatmul.mubr.msk.bf16.vlgmr.msra.gmra.mrb[52].mxu1 %vm6086_vm2, %v14826_v30 }
 0xa8c   : > { %12364 = vmatmul.mubr.msk.bf16.vlgmr.msra.gmra.mrb[52].mxu0 %vm6086_vm2, %v14826_v30  ;;  %12368 = vmatpush3.bf16.msra.mxu1 %v13378_v58 }
 0xa8d   : > { %12375 = vmatprep.mubr.msk.bf16.mxu1 %vm6086_vm2, %v14804_v8  ;;  %12369 = vmatprep.subr.bf16.mxu1 %v13379_v23 }
 0xa8e   : > { %12387 = vmatprep.mubr.msk.f32.mxu0 %vm7134_vm3, %v5939_v6  ;;  %v15403_v6 = vld [vmem:[#allocation55_spill] sm:$0xff] }
 0xa90   : > { %12370 = vmatpush3.bf16.msra.mxu1 %v13379_v23 }
 0xa91   : > { %12371 = vmatprep.subr.bf16.mxu1 %v13380_v42 }
 0xa94   : > { %12372 = vmatpush3.bf16.msra.mxu1 %v13380_v42 }
 0xa95   : > { %12373 = vmatprep.subr.bf16.mxu1 %v13381_v11 }
 0xa98   : > { %12374 = vmatpush3.bf16.msra.mxu1 %v13381_v11 }
 0xa9b   : > { %12376 = vmatmul.mubr.msk.bf16.vlgmr.msra.gmra.mrb[56].mxu1 %vm6086_vm2, %v14826_v30 }
 0xb2e   : > { %v12281_v34 = vpop.f32.mrb[40].mxu1  ;;  %v12293_v21 = vpop.f32.mrb[40].mxu0 }
 0xb2f   : > { %v6168_v18 = vmul.f32 %v12281_v34, %v14218_v36  ;;  %v6279_v8 = vmul.f32 %v12293_v21, %v14223_v44  ;;  %v6127_v9 = vpop.f32.mrb[41].mxu1  ;;  %v6237_v43 = vpop.f32.mrb[41].mxu0 }
 0xb30   : > { %v6166_v3 = vmul.f32 %v14203_v16, %v6127_v9  ;;  %v6277_v22 = vmul.f32 %v14208_v20, %v6237_v43  ;;  %v12282_v7 = vpop.f32.mrb[42].mxu1  ;;  %v12294_v31 = vpop.f32.mrb[42].mxu0 }
 0xb31   : > { %v6283_v49 = vadd.f32 %v6279_v8, %v6168_v18  ;;  %v6169_v57 = vmul.f32 %v12282_v7, %v14478_v45  ;;  %v6280_v26 = vmul.f32 %v12294_v31, %v14488_v38  ;;  %v6130_v28 = vpop.f32.mrb[43].mxu1  ;;  %v6240_v47 = vpop.f32.mrb[43].mxu0  ;;  %v15404_v8 = vld [vmem:[#allocation59_spill] sm:$0xff] }
 0xb32   : > { %v6281_v52 = vadd.f32 %v6277_v22, %v6166_v3  ;;  %v6167_v36 = vmul.f32 %v14470_v19, %v6130_v28  ;;  %v6278_v44 = vmul.f32 %v14472_v24, %v6240_v47  ;;  %v15405_v3 = vld [vmem:[#allocation56_spill] sm:$0xff]  ;;  %v15407_v47 = vld [vmem:[#allocation26_spill] sm:$0xff] }
 0xb33   : > { %v6284_v56 = vadd.f32 %v6280_v26, %v6169_v57 }
 0xb34   : > { %v6282_v30 = vadd.f32 %v6278_v44, %v6167_v36 }
 0xb3e   : > { %v12305_v12 = vpop.f32.mrb[44].mxu1  ;;  %v12317_v16 = vpop.f32.mrb[44].mxu0 }
 0xb3f   : > { %v6394_v20 = vmul.f32 %v12305_v12, %v14234_v55  ;;  %v6352_v61 = vpop.f32.mrb[45].mxu1  ;;  %v6467_v53 = vpop.f32.mrb[45].mxu0  ;;  %v6509_v1 = vmul.f32 %v12317_v16, %v14246_v63  ;;  %v15409_v16 = vld [vmem:[#allocation61_spill] sm:$0xff] }
 0xb40   : > { %v6392_v41 = vmul.f32 %v14213_v25, %v6352_v61  ;;  %v12306_v45 = vpop.f32.mrb[46].mxu1  ;;  %v12318_v13 = vpop.f32.mrb[46].mxu0  ;;  %v6507_v37 = vmul.f32 %v14228_v48, %v6467_v53 }
 0xb41   : > { %v6398_v38 = vadd.f32 %v6394_v20, %v6283_v49  ;;  %v6395_v14 = vmul.f32 %v12306_v45, %v14507_v2  ;;  %v6355_v19 = vpop.f32.mrb[47].mxu1  ;;  %v6470_v27 = vpop.f32.mrb[47].mxu0  ;;  %v6510_v33 = vmul.f32 %v12318_v13, %v14526_v46  ;;  %v15406_v49 = vld [vmem:[#allocation28_spill] sm:$0xff]  ;;  %v15410_v45 = vld [vmem:[#allocation27_spill] sm:$0xff] }
 0xb42   : > { %v6396_v24 = vadd.f32 %v6392_v41, %v6281_v52  ;;  %v6393_v0 = vmul.f32 %v14474_v51, %v6355_v19  ;;  %v6508_v35 = vmul.f32 %v14497_v32, %v6470_v27  ;;  %v15402_v32 = vld [vmem:[#allocation25_spill] sm:$0xff] }
 0xb43   : > { %v6513_v4 = vadd.f32 %v6509_v1, %v6398_v38  ;;  %v6399_v55 = vadd.f32 %v6395_v14, %v6284_v56  ;;  %v15411_v38 = vld [vmem:[#allocation58_spill] sm:$0xff] }
 0xb44   : > { %v6511_v62 = vadd.f32 %v6507_v37, %v6396_v24  ;;  %v6397_v25 = vadd.f32 %v6393_v0, %v6282_v30  ;;  %v15408_v30 = vld [vmem:[#allocation30_spill] sm:$0xff]  ;;  %v15412_v24 = vld [vmem:[#allocation63_spill] sm:$0xff] }
 0xb45   : > { %v6514_v60 = vadd.f32 %v6510_v33, %v6399_v55  ;;  %v15413_v55 = vld [vmem:[#allocation60_spill] sm:$0xff] }
 0xb46   : > { %v6512_v39 = vadd.f32 %v6508_v35, %v6397_v25 }
 0xb4e   : > { %v12329_v63 = vpop.f32.mrb[48].mxu1 }
 0xb4f   : > { %v6624_v2 = vmul.f32 %v12329_v63, %v14255_v5  ;;  %v12341_v54 = vpop.f32.mrb[48].mxu0  ;;  %v6582_v40 = vpop.f32.mrb[49].mxu1 }
 0xb50   : > { %v6622_v17 = vmul.f32 %v14240_v59, %v6582_v40  ;;  %v6697_v48 = vpop.f32.mrb[49].mxu0  ;;  %v12330_v29 = vpop.f32.mrb[50].mxu1  ;;  %v6739_v15 = vmul.f32 %v12341_v54, %v14262_v10 }
 0xb51   : > { %v6628_v51 = vadd.f32 %v6624_v2, %v6513_v4  ;;  %v6625_v46 = vmul.f32 %v12330_v29, %v15401_v50  ;;  %v12342_v58 = vpop.f32.mrb[50].mxu0  ;;  %v6585_v23 = vpop.f32.mrb[51].mxu1  ;;  %v6737_v11 = vmul.f32 %v15402_v32, %v6697_v48  ;;  %v15415_v2 = vld [vmem:[#allocation29_spill] sm:$0xff]  ;;  %v15416_v48 = vld [vmem:[#allocation64_spill] sm:$0xff]  ;;  %v15417_v50 = vld [vmem:[#allocation62_spill] sm:$0xff] }
 0xb52   : > { %v6626_v42 = vadd.f32 %v6622_v17, %v6511_v62  ;;  %v6623_v34 = vmul.f32 %v15403_v6, %v6585_v23  ;;  %v6700_v21 = vpop.f32.mrb[51].mxu0  ;;  %v6740_v9 = vmul.f32 %v12342_v58, %v15404_v8 }
 0xb53   : > { %v6743_v5 = vadd.f32 %v6739_v15, %v6628_v51  ;;  %v6629_v18 = vadd.f32 %v6625_v46, %v6514_v60  ;;  %v6738_v22 = vmul.f32 %v15405_v3, %v6700_v21  ;;  %v15414_v60 = vld [vmem:[#allocation31_spill] sm:$0xff] }
 0xb54   : > { %v6741_v59 = vadd.f32 %v6737_v11, %v6626_v42  ;;  %v6627_v43 = vadd.f32 %v6623_v34, %v6512_v39  ;;  %v15418_v42 = vld [vmem:[#allocation33_spill] sm:$0xff]  ;;  %v15419_v11 = vld [vmem:[#allocation66_spill] sm:$0xff]  ;;  %v15421_v34 = vld [vmem:[#allocation32_spill] sm:$0xff] }
 0xb55   : > { %v6744_v7 = vadd.f32 %v6740_v9, %v6629_v18  ;;  %v5942_v3 = vld [vmem:[%s15400_s1 + $0x18] sm:$0xff] }
 0xb56   : > { %v6742_v10 = vadd.f32 %v6738_v22, %v6627_v43  ;;  %v5941_v43 = vld [vmem:[%s15400_s1 + $0x10] sm:$0xff]  ;;  %v7260_v22 = vld [vmem:[%s15420_s0] sm:$0xff] }
 0xb57   : > { %12397 = vmatprep.mubr.msk.f32.mxu1 %vm1663_vm0, %v7260_v22 }
 0xb5e   : > { %v12353_v31 = vpop.f32.mrb[52].mxu1 }
 0xb5f   : > { %v6854_v57 = vmul.f32 %v12353_v31, %v15406_v49  ;;  %v12365_v26 = vpop.f32.mrb[52].mxu0  ;;  %v6812_v28 = vpop.f32.mrb[53].mxu1 }
 0xb60   : > { %v6852_v52 = vmul.f32 %v15407_v47, %v6812_v28  ;;  %v6927_v36 = vpop.f32.mrb[53].mxu0  ;;  %v12354_v44 = vpop.f32.mrb[54].mxu1  ;;  %v6969_v12 = vmul.f32 %v12365_v26, %v15408_v30  ;;  %v15426_v30 = vld [vmem:[#allocation34_spill] sm:$0xff] }
 0xb61   : > { %v6858_v56 = vadd.f32 %v6854_v57, %v6743_v5  ;;  %v6855_v20 = vmul.f32 %v12354_v44, %v15409_v16  ;;  %v12366_v61 = vpop.f32.mrb[54].mxu0  ;;  %v6815_v53 = vpop.f32.mrb[55].mxu1  ;;  %v6967_v13 = vmul.f32 %v15410_v45, %v6927_v36  ;;  %v15422_v5 = vld [vmem:[#allocation65_spill] sm:$0xff]  ;;  %v15424_v57 = vld [vmem:[#allocation35_spill] sm:$0xff] }
 0xb62   : > { %v6856_v41 = vadd.f32 %v6852_v52, %v6741_v59  ;;  %v6853_v1 = vmul.f32 %v15411_v38, %v6815_v53  ;;  %v6930_v14 = vpop.f32.mrb[55].mxu0  ;;  %v6970_v37 = vmul.f32 %v12366_v61, %v15412_v24  ;;  %v5940_v59 = vld [vmem:[%s15400_s1 + $0x8] sm:$0xff]  ;;  %v15425_v36 = vld [vmem:[#allocation67_spill] sm:$0xff]  ;;  %s15427_s1 = sld [smem:[#allocation5_spill]] }
 0xb63   : > { %v6973_v19 = vadd.f32 %v6969_v12, %v6858_v56  ;;  %v6859_v27 = vadd.f32 %v6855_v20, %v6744_v7  ;;  %v6968_v33 = vmul.f32 %v15413_v55, %v6930_v14 }
 0xb64   : > { %v6971_v0 = vadd.f32 %v6967_v13, %v6856_v41  ;;  %v6857_v4 = vadd.f32 %v6853_v1, %v6742_v10  ;;  %v15423_v10 = vld [vmem:[#allocation68_spill] sm:$0xff] }
 0xb65   : > { %v6974_v62 = vadd.f32 %v6970_v37, %v6859_v27 }
 0xb66   : > { %v6972_v25 = vadd.f32 %v6968_v33, %v6857_v4 }
 0xb6e   : > { %v12377_v35 = vpop.f32.mrb[56].mxu1 }
 0xb6f   : > { %v7084_v39 = vmul.f32 %v12377_v35, %v15414_v60  ;;  %v7042_v63 = vpop.f32.mrb[57].mxu1  ;;  %v7261_v35 = vld [vmem:[%s15420_s0 + $0x8] sm:$0xff]  ;;  %v14949_v60 = vld [vmem:[%s15427_s1] sm:$0xff]   ;;  %s15430_s0 = sld [smem:[#allocation12_spill]] }
 0xb70   : > { %v7082_v54 = vmul.f32 %v15415_v2, %v7042_v63  ;;  %v12378_v40 = vpop.f32.mrb[58].mxu1  ;;  %v14959_v63 = vld [vmem:[%s15427_s1 + $0x10] sm:$0xff]   ;;  %v14962_v2 = vld [vmem:[%s15427_s1 + $0x18] sm:$0xff]  }
 0xb71   : > { %v7088_v17 = vadd.f32 %v7084_v39, %v6973_v19  ;;  %v7085_v29 = vmul.f32 %v12378_v40, %v15416_v48  ;;  %v7045_v51 = vpop.f32.mrb[59].mxu1  ;;  %v14952_v39 = vld [vmem:[%s15427_s1 + $0x8] sm:$0xff]  }
 0xb72   : > { %v7086_v15 = vadd.f32 %v7082_v54, %v6971_v0  ;;  %v7083_v46 = vmul.f32 %v15417_v50, %v7045_v51  ;;  %v15428_v40 = vld [vmem:[#allocation69_spill] sm:$0xff] }
 0xb73   : > { %v7089_v58 = vadd.f32 %v7085_v29, %v6974_v62  ;;  %v7112_v32 = vadd.f32 %v15418_v42, %v7088_v17  ;;  %v15429_v29 = vld [vmem:[#allocation36_spill] sm:$0xff] }
 0xb74   : > { %v7087_v23 = vadd.f32 %v7083_v46, %v6972_v25  ;;  %v7110_v21 = vadd.f32 %v15421_v34, %v7086_v15 }
 0xb75   : > { %v7113_v6 = vadd.f32 %v15419_v11, %v7089_v58 }
 0xb76   : > { %v7111_v18 = vadd.f32 %v15422_v5, %v7087_v23  ;;  %v14969_v5 = vld [vmem:[%s15427_s1 + $0x20] sm:$0xff]  }
 0xb77   : > { %v12663_v8 = vpack.c.bf16 %v7113_v6, %v7112_v32 }
 0xb78   : > { %v12659_v9 = vpack.c.bf16 %v7111_v18, %v7110_v21  ;;  %v14972_v18 = vld [vmem:[%s15427_s1 + $0x28] sm:$0xff]  }
 0xb7a   : > { %12660 = vmatprep.subr.bf16.mxu0 %v12659_v9 }
 0xb7b   : > { %12662 = vmatpush3.bf16.msra.mxu0 %v12659_v9  ;;  %v14988_v9 = vld [vmem:[%s15427_s1 + $0x38] sm:$0xff]  }
 0xb7c   : > { %12664 = vmatprep.subr.bf16.mxu0 %v12663_v8 }
 0xb7f   : > { %12666 = vmatpush3.bf16.msra.mxu0 %v12663_v8  ;;  %v14985_v8 = vld [vmem:[%s15427_s1 + $0x30] sm:$0xff]  }
 0xb80   : > { %12400 = vmatprep.subr.bf16.mxu0 %v14949_v60 }
 0xb82   : > { %12388 = vmatmul.mubr.msk.f32.vlgmr.msra.gmra.mrb[56].mxu0 %vm7134_vm3, %v5940_v59  ;;  %v15001_v59 = vld [vmem:[%s15427_s1 + $0x40] sm:$0xff]  }
 0xb83   : > { %12390 = vmatprep.mubr.msk.f32.mxu0 %vm7134_vm3, %v5941_v43  ;;  %12401 = vmatpush3.bf16.msra.mxu0 %v14949_v60  ;;  %v7268_v43 = vld [vmem:[%s15430_s0] sm:$0xff] }
 0xb84   : > { %12412 = vmatprep.subr.bf16.mxu0 %v14959_v63 }
 0xb86   : > { %12391 = vmatmul.mubr.msk.f32.gmra.mrb[58].mxu0 %vm7134_vm3, %v5942_v3 }
 0xc55   : > { %v12389_v7 = vpop.f32.mrb[56].mxu0 }
 0xc56   : > { %v7219_v31 = vadd.f32 %v12389_v7, %v15423_v10  ;;  %v7213_v49 = vpop.f32.mrb[57].mxu0  ;;  %v15431_v7 = vld [vmem:[#allocation40_spill] sm:$0xff] }
 0xc57   : > { %v7214_v26 = vadd.f32 %v7213_v49, %v15424_v57 }
 0xc58   : > { %v11660_v28 = vmul.f32 -1.442695, %v7219_v31 }
 0xc59   : > { %v11659_v47 = vmul.f32 -1.442695, %v7214_v26  ;;  %v12392_v52 = vpop.f32.mrb[58].mxu0 }
 0xc5a   : > { %13423 = vpow2.f32 %v11660_v28  ;;  %v7229_v44 = vadd.f32 %v12392_v52, %v15425_v36  ;;  %v7223_v56 = vpop.f32.mrb[59].mxu0  ;;  %v15433_v28 = vld [vmem:[#allocation37_spill] sm:$0xff]  ;;  %v15434_v52 = vld [vmem:[#allocation38_spill] sm:$0xff] }
 0xc5b   : > { %13425 = vpow2.f32 %v11659_v47  ;;  %v7224_v12 = vadd.f32 %v7223_v56, %v15426_v30 }
 0xc5c   : > { %v11662_v16 = vmul.f32 -1.442695, %v7229_v44 }
 0xc5d   : > { %v11661_v20 = vmul.f32 -1.442695, %v7224_v12 }
 0xc5e   : > { %13427 = vpow2.f32 %v11662_v16 }
 0xc5f   : > { %13429 = vpow2.f32 %v11661_v20  ;;  %v15436_v20 = vld [vmem:[#allocation74_spill] sm:$0xff] }
 0xc64   : > { %v13424_v61 = vpop.eup %13423 }
 0xc65   : > { %v13426_v53 = vpop.eup %13425  ;;  %v7245_v41 = vadd.f32 1.0, %v13424_v61 }
 0xc66   : > { %v7244_v45 = vadd.f32 1.0, %v13426_v53 }
 0xc67   : > { %13431 = vrcp.f32 %v7245_v41 }
 0xc68   : > { %v13428_v13 = vpop.eup %13427  ;;  %13433 = vrcp.f32 %v7244_v45 }
 0xc69   : > { %v13430_v38 = vpop.eup %13429  ;;  %v7247_v1 = vadd.f32 1.0, %v13428_v13  ;;  %v15437_v13 = vld [vmem:[#allocation70_spill] sm:$0xff] }
 0xc6a   : > { %v7246_v14 = vadd.f32 1.0, %v13430_v38 }
 0xc6b   : > { %13435 = vrcp.f32 %v7247_v1  ;;  %v15438_v1 = vld [vmem:[#allocation71_spill] sm:$0xff] }
 0xc6c   : > { %13437 = vrcp.f32 %v7246_v14 }
 0xc71   : > { %v13432_v19 = vpop.eup %13431 }
 0xc72   : > { %v13434_v27 = vpop.eup %13433  ;;  %v7257_v24 = vmul.f32 %v13432_v19, %v7219_v31  ;;  %v15432_v31 = vld [vmem:[#allocation41_spill] sm:$0xff] }
 0xc73   : > { %v7256_v37 = vmul.f32 %v13434_v27, %v7214_v26 }
 0xc75   : > { %v13436_v0 = vpop.eup %13435  ;;  %v14940_v4 = vpack.c.bf16 %v7257_v24, %v7256_v37 }
 0xc76   : > { %v13438_v55 = vpop.eup %13437  ;;  %v7259_v33 = vmul.f32 %v13436_v0, %v7229_v44  ;;  %v15439_v0 = vld [vmem:[#allocation43_spill] sm:$0xff] }
 0xc77   : > { %v7258_v62 = vmul.f32 %v13438_v55, %v7224_v12  ;;  %12402 = vmatprep.mubr.msk.bf16.mxu0 %vm1663_vm0, %v14940_v4  ;;  %v15435_v12 = vld [vmem:[#allocation73_spill] sm:$0xff] }
 0xc79   : > { %v12667_v25 = vpack.c.bf16 %v7259_v33, %v7258_v62  ;;  %v15440_v62 = vld [vmem:[#allocation39_spill] sm:$0xff] }
 0xc7b   : > { %12668 = vmatprep.subr.bf16.mxu1 %v12667_v25 }
 0xc7c   : > { %12670 = vmatpush3.bf16.msra.mxu1 %v12667_v25 }
 0xc7d   : > { %12406 = vmatprep.subr.bf16.mxu1 %v14952_v39 }
 0xc7f   : > { %12398 = vmatmul.mubr.msk.f32.vlgmr.msra.gmra.mrb[60].mxu1 %vm1663_vm0, %v7261_v35 }
 0xc80   : > { %12408 = vmatprep.mubr.msk.bf16.mxu1 %vm1663_vm0, %v14940_v4  ;;  %12407 = vmatpush3.bf16.msra.mxu1 %v14952_v39 }
 0xc81   : > { %12418 = vmatprep.subr.bf16.mxu1 %v14962_v2 }
 0xd52   : > { %v12399_v54 = vpop.f32.mrb[60].mxu1 }
 0xd53   : > { %v7364_v17 = vadd.f32 %v12399_v54, %v15428_v40  ;;  %v7358_v48 = vpop.f32.mrb[61].mxu1 }
 0xd54   : > { %v7359_v51 = vadd.f32 %v7358_v48, %v15429_v29  ;;  %v15442_v29 = vld [vmem:[#allocation76_spill] sm:$0xff] }
 0xd55   : > { %v11666_v15 = vmul.f32 -1.442695, %v7364_v17 }
 0xd56   : > { %v11665_v50 = vmul.f32 -1.442695, %v7359_v51 }
 0xd57   : > { %13439 = vpow2.f32 %v11666_v15 }
 0xd58   : > { %13441 = vpow2.f32 %v11665_v50 }
 0xd61   : > { %v13440_v46 = vpop.eup %13439 }
 0xd62   : > { %v13442_v58 = vpop.eup %13441  ;;  %v7374_v23 = vadd.f32 1.0, %v13440_v46 }
 0xd63   : > { %v7373_v42 = vadd.f32 1.0, %v13442_v58  ;;  %v15443_v58 = vld [vmem:[#allocation42_spill] sm:$0xff] }
 0xd64   : > { %13443 = vrcp.f32 %v7374_v23 }
 0xd65   : > { %13445 = vrcp.f32 %v7373_v42  ;;  %v15444_v42 = vld [vmem:[#allocation72_spill] sm:$0xff] }
 0xd6e   : > { %v13444_v32 = vpop.eup %13443 }
 0xd6f   : > { %v13446_v11 = vpop.eup %13445  ;;  %v7380_v6 = vmul.f32 %v13444_v32, %v7364_v17  ;;  %v15441_v17 = vld [vmem:[#allocation45_spill] sm:$0xff] }
 0xd70   : > { %v7379_v34 = vmul.f32 %v13446_v11, %v7359_v51 }
 0xd72   : > { %v7382_v21 = vpack.c.bf16 %v7380_v6, %v7379_v34  ;;  %v15445_v34 = vld [vmem:[#allocation78_spill] sm:$0xff] }
 0xd74   : > { %12403 = vmatmul.mubr.msk.bf16.vlgmr.msra.gmra.mrb[60].mxu0 %vm1663_vm0, %v7382_v21  ;;  %12409 = vmatmul.mubr.msk.bf16.vlgmr.msra.gmra.mrb[64].mxu1 %vm1663_vm0, %v7382_v21 }
 0xd75   : > { %12414 = vmatprep.mubr.msk.bf16.mxu0 %vm1663_vm0, %v14940_v4  ;;  %12420 = vmatprep.mubr.msk.bf16.mxu1 %vm1663_vm0, %v14940_v4 }
 0xd76   : > { %12413 = vmatpush3.bf16.msra.mxu0 %v14959_v63  ;;  %12419 = vmatpush3.bf16.msra.mxu1 %v14962_v2 }
 0xd77   : > { %12424 = vmatprep.subr.bf16.mxu0 %v14969_v5  ;;  %12430 = vmatprep.subr.bf16.mxu1 %v14972_v18 }
 0xd7c   : > { %12415 = vmatmul.mubr.msk.bf16.vlgmr.msra.gmra.mrb[64].mxu0 %vm1663_vm0, %v7382_v21  ;;  %12421 = vmatmul.mubr.msk.bf16.vlgmr.msra.gmra.mrb[68].mxu1 %vm1663_vm0, %v7382_v21 }
 0xd7d   : > { %12426 = vmatprep.mubr.msk.bf16.mxu0 %vm1663_vm0, %v14940_v4  ;;  %12432 = vmatprep.mubr.msk.bf16.mxu1 %vm1663_vm0, %v14940_v4 }
 0xd7e   : > { %12425 = vmatpush3.bf16.msra.mxu0 %v14969_v5  ;;  %12431 = vmatpush3.bf16.msra.mxu1 %v14972_v18 }
 0xd7f   : > { %12436 = vmatprep.subr.bf16.mxu0 %v14985_v8  ;;  %12442 = vmatprep.subr.bf16.mxu1 %v14988_v9 }
 0xd84   : > { %12427 = vmatmul.mubr.msk.bf16.vlgmr.msra.gmra.mrb[68].mxu0 %vm1663_vm0, %v7382_v21  ;;  %12433 = vmatmul.mubr.msk.bf16.vlgmr.msra.gmra.mrb[72].mxu1 %vm1663_vm0, %v7382_v21 }
 0xd85   : > { %12438 = vmatprep.mubr.msk.bf16.mxu0 %vm1663_vm0, %v14940_v4  ;;  %12444 = vmatprep.mubr.msk.bf16.mxu1 %vm1663_vm0, %v14940_v4 }
 0xd86   : > { %12437 = vmatpush3.bf16.msra.mxu0 %v14985_v8  ;;  %12443 = vmatpush3.bf16.msra.mxu1 %v14988_v9 }
 0xd87   : > { %12448 = vmatprep.subr.bf16.mxu0 %v15001_v59 }
 0xd8c   : > { %12439 = vmatmul.mubr.msk.bf16.vlgmr.msra.gmra.mrb[72].mxu0 %vm1663_vm0, %v7382_v21  ;;  %12445 = vmatmul.mubr.msk.bf16.vlgmr.msra.gmra.mrb[76].mxu1 %vm1663_vm0, %v7382_v21 }
 0xd8d   : > { %12450 = vmatprep.mubr.msk.bf16.mxu0 %vm1663_vm0, %v14940_v4  ;;  %12449 = vmatpush3.bf16.msra.mxu0 %v15001_v59 }
 0xd8e   : > { %12462 = vmatprep.mubr.msk.f32.mxu1 %vm7134_vm3, %v7268_v43 }
 0xd94   : > { %12451 = vmatmul.mubr.msk.bf16.vlgmr.msra.gmra.mrb[76].mxu0 %vm1663_vm0, %v7382_v21 }
 0xe47   : > { %v12404_v3 = vpop.f32.mrb[60].mxu0  ;;  %v12410_v22 = vpop.f32.mrb[64].mxu1 }
 0xe48   : > { %v7472_v10 = vmul.f32 %v12404_v3, %v15431_v7  ;;  %v7559_v49 = vmul.f32 %v12410_v22, %v15432_v31  ;;  %v7431_v57 = vpop.f32.mrb[61].mxu0  ;;  %v7517_v26 = vpop.f32.mrb[65].mxu1  ;;  %v15446_v22 = vld [vmem:[#allocation75_spill] sm:$0xff] }
 0xe49   : > { %v7470_v47 = vmul.f32 %v15433_v28, %v7431_v57  ;;  %v7557_v36 = vmul.f32 %v15434_v52, %v7517_v26  ;;  %v12405_v44 = vpop.f32.mrb[62].mxu0  ;;  %v12411_v56 = vpop.f32.mrb[66].mxu1  ;;  %v15447_v26 = vld [vmem:[#allocation47_spill] sm:$0xff] }
 0xe4a   : > { %v7563_v30 = vadd.f32 %v7559_v49, %v7472_v10  ;;  %v7473_v16 = vmul.f32 %v12405_v44, %v15435_v12  ;;  %v7560_v61 = vmul.f32 %v12411_v56, %v15436_v20  ;;  %v7434_v53 = vpop.f32.mrb[63].mxu0  ;;  %v7520_v41 = vpop.f32.mrb[67].mxu1 }
 0xe4b   : > { %v7561_v45 = vadd.f32 %v7557_v36, %v7470_v47  ;;  %v7471_v38 = vmul.f32 %v15437_v13, %v7434_v53  ;;  %v7558_v14 = vmul.f32 %v15438_v1, %v7520_v41  ;;  %v15448_v36 = vld [vmem:[#allocation44_spill] sm:$0xff] }
 0xe4c   : > { %v7564_v19 = vadd.f32 %v7560_v61, %v7473_v16  ;;  %v15449_v16 = vld [vmem:[#allocation49_spill] sm:$0xff]  ;;  %v15450_v61 = vld [vmem:[#allocation80_spill] sm:$0xff] }
 0xe4d   : > { %v7562_v27 = vadd.f32 %v7558_v14, %v7471_v38  ;;  %v15451_v38 = vld [vmem:[#allocation46_spill] sm:$0xff]  ;;  %v15452_v14 = vld [vmem:[#allocation77_spill] sm:$0xff] }
 0xe4f   : > { %v12416_v24 = vpop.f32.mrb[64].mxu0  ;;  %v12422_v37 = vpop.f32.mrb[68].mxu1 }
 0xe50   : > { %v7650_v4 = vmul.f32 %v12416_v24, %v15439_v0  ;;  %v7608_v55 = vpop.f32.mrb[65].mxu0  ;;  %v7699_v33 = vpop.f32.mrb[69].mxu1  ;;  %v7741_v48 = vmul.f32 %v12422_v37, %v15441_v17  ;;  %v15453_v37 = vld [vmem:[#allocation82_spill] sm:$0xff]  ;;  %v15455_v17 = vld [vmem:[#allocation51_spill] sm:$0xff] }
 0xe51   : > { %v7648_v25 = vmul.f32 %v15440_v62, %v7608_v55  ;;  %v12417_v35 = vpop.f32.mrb[66].mxu0  ;;  %v12423_v54 = vpop.f32.mrb[70].mxu1  ;;  %v7739_v23 = vmul.f32 %v15443_v58, %v7699_v33  ;;  %v15454_v33 = vld [vmem:[#allocation79_spill] sm:$0xff] }
 0xe52   : > { %v7654_v40 = vadd.f32 %v7650_v4, %v7563_v30  ;;  %v7651_v51 = vmul.f32 %v12417_v35, %v15442_v29  ;;  %v7611_v15 = vpop.f32.mrb[67].mxu0  ;;  %v7702_v50 = vpop.f32.mrb[71].mxu1  ;;  %v7742_v21 = vmul.f32 %v12423_v54, %v15445_v34 }
 0xe53   : > { %v7652_v46 = vadd.f32 %v7648_v25, %v7561_v45  ;;  %v7649_v32 = vmul.f32 %v15444_v42, %v7611_v15  ;;  %v7740_v7 = vmul.f32 %v15446_v22, %v7702_v50  ;;  %v15456_v15 = vld [vmem:[#allocation48_spill] sm:$0xff]  ;;  %v15457_v42 = vld [vmem:[#allocation53_spill] sm:$0xff] }
 0xe54   : > { %v7745_v11 = vadd.f32 %v7741_v48, %v7654_v40  ;;  %v7655_v6 = vadd.f32 %v7651_v51, %v7564_v19 }
 0xe55   : > { %v7743_v43 = vadd.f32 %v7739_v23, %v7652_v46  ;;  %v7653_v3 = vadd.f32 %v7649_v32, %v7562_v27 }
 0xe56   : > { %v7746_v10 = vadd.f32 %v7742_v21, %v7655_v6 }
 0xe57   : > { %v7744_v31 = vadd.f32 %v7740_v7, %v7653_v3  ;;  %v12428_v49 = vpop.f32.mrb[68].mxu0  ;;  %v12434_v57 = vpop.f32.mrb[72].mxu1  ;;  %v15459_v3 = vld [vmem:[#allocation50_spill] sm:$0xff]  ;;  %v15460_v7 = vld [vmem:[#allocation81_spill] sm:$0xff] }
 0xe58   : > { %v7832_v28 = vmul.f32 %v12428_v49, %v15447_v26  ;;  %v7790_v47 = vpop.f32.mrb[69].mxu0  ;;  %v7881_v52 = vpop.f32.mrb[73].mxu1  ;;  %v7923_v20 = vmul.f32 %v12434_v57, %v15449_v16  ;;  %v15461_v57 = vld [vmem:[#allocation86_spill] sm:$0xff] }
 0xe59   : > { %v7830_v44 = vmul.f32 %v15448_v36, %v7790_v47  ;;  %v12429_v56 = vpop.f32.mrb[70].mxu0  ;;  %v12435_v30 = vpop.f32.mrb[74].mxu1  ;;  %v7921_v1 = vmul.f32 %v15451_v38, %v7881_v52  ;;  %v15462_v52 = vld [vmem:[#allocation83_spill] sm:$0xff] }
 0xe5a   : > { %v7836_v12 = vadd.f32 %v7832_v28, %v7745_v11  ;;  %v7833_v53 = vmul.f32 %v12429_v56, %v15450_v61  ;;  %v7793_v41 = vpop.f32.mrb[71].mxu0  ;;  %v7884_v45 = vpop.f32.mrb[75].mxu1  ;;  %v7924_v0 = vmul.f32 %v12435_v30, %v15453_v37  ;;  %v15458_v11 = vld [vmem:[#allocation84_spill] sm:$0xff] }
 0xe5b   : > { %v7834_v13 = vadd.f32 %v7830_v44, %v7743_v43  ;;  %v7831_v19 = vmul.f32 %v15452_v14, %v7793_v41  ;;  %v7922_v62 = vmul.f32 %v15454_v33, %v7884_v45  ;;  %v8205_v44 = vpop.permute.xlu0 %8204  ;;  %v8210_v30 = vpop.permute.xlu1 %8209  ;;  %v15464_v41 = vld [vmem:[#allocation52_spill] sm:$0xff] }
 0xe5c   : > { %v7927_v27 = vadd.f32 %v7923_v20, %v7836_v12  ;;  %v7837_v24 = vadd.f32 %v7833_v53, %v7746_v10  ;;  %v15463_v20 = vld [vmem:[#allocation54_spill] sm:$0xff] }
 0xe5d   : > { %v7925_v4 = vadd.f32 %v7921_v1, %v7834_v13  ;;  %v7835_v55 = vadd.f32 %v7831_v19, %v7744_v31  ;;  %v15465_v1 = vld [vmem:[#allocation87_spill] sm:$0xff] }
 0xe5e   : > { %v7928_v25 = vadd.f32 %v7924_v0, %v7837_v24  ;;  %v15466_v24 = vld [vmem:[#allocation85_spill] sm:$0xff] }
 0xe5f   : > { %v7926_v35 = vadd.f32 %v7922_v62, %v7835_v55  ;;  %v12440_v54 = vpop.f32.mrb[72].mxu0  ;;  %v12446_v40 = vpop.f32.mrb[76].mxu1 }
 0xe60   : > { %v8014_v48 = vmul.f32 %v12440_v54, %v15455_v17  ;;  %v7972_v29 = vpop.f32.mrb[73].mxu0  ;;  %v8063_v51 = vpop.f32.mrb[77].mxu1  ;;  %v8105_v32 = vmul.f32 %v12446_v40, %v15457_v42 }
 0xe61   : > { %v8012_v50 = vmul.f32 %v15456_v15, %v7972_v29  ;;  %v12441_v46 = vpop.f32.mrb[74].mxu0  ;;  %v12447_v58 = vpop.f32.mrb[78].mxu1  ;;  %v8103_v22 = vmul.f32 %v15459_v3, %v8063_v51  ;;  %v7270_v29 = vld [vmem:[%s15430_s0 + $0x10] sm:$0xff]  ;;  %v7271_v51 = vld [vmem:[%s15430_s0 + $0x18] sm:$0xff]  ;;  %v8371_v15 = vld [vmem:[%s15467_s2] sm:$0xff] }
 0xe62   : > { %v8018_v23 = vadd.f32 %v8014_v48, %v7927_v27  ;;  %v8015_v6 = vmul.f32 %v12441_v46, %v15458_v11  ;;  %v7975_v34 = vpop.f32.mrb[75].mxu0  ;;  %v8066_v21 = vpop.f32.mrb[79].mxu1  ;;  %v8106_v26 = vmul.f32 %v12447_v58, %v15461_v57  ;;  %v7269_v48 = vld [vmem:[%s15430_s0 + $0x8] sm:$0xff]  ;;  %12472 = vmatprep.mubr.msk.f32.mxu0 %vm1663_vm0, %v8371_v15  ;;  %s15468_s0 = sld [smem:[#allocation18_spill]] }
 0xe63   : > { %v8016_v43 = vadd.f32 %v8012_v50, %v7925_v4  ;;  %v8013_v10 = vmul.f32 %v15460_v7, %v7975_v34  ;;  %v8104_v36 = vmul.f32 %v15462_v52, %v8066_v21  ;;  %v8215_v4 = vpop.permute.xlu0 %8214  ;;  %v8220_v55 = vpop.permute.xlu1 %8219 }
 0xe64   : > { %v8109_v31 = vadd.f32 %v8105_v32, %v8018_v23  ;;  %v8019_v49 = vadd.f32 %v8015_v6, %v7928_v25 }
 0xe65   : > { %v8107_v28 = vadd.f32 %v8103_v22, %v8016_v43  ;;  %v8017_v47 = vadd.f32 %v8013_v10, %v7926_v35 }
 0xe66   : > { %v8110_v56 = vadd.f32 %v8106_v26, %v8019_v49 }
 0xe67   : > { %v8108_v12 = vadd.f32 %v8104_v36, %v8017_v47  ;;  %v12452_v16 = vpop.f32.mrb[76].mxu0  ;;  %v8244_v50 = vpop.permute.xlu1 %8243 }
 0xe68   : > { %v8196_v61 = vmul.f32 %v12452_v16, %v15463_v20  ;;  %v8154_v53 = vpop.f32.mrb[77].mxu0  ;;  %v8239_v46 = vpop.permute.xlu0 %8238 }
 0xe69   : > { %v8194_v45 = vmul.f32 %v15464_v41, %v8154_v53  ;;  %v12453_v13 = vpop.f32.mrb[78].mxu0 }
 0xe6a   : > { %v8200_v38 = vadd.f32 %v8196_v61, %v8109_v31  ;;  %v8197_v14 = vmul.f32 %v12453_v13, %v15465_v1  ;;  %v8157_v19 = vpop.f32.mrb[79].mxu0 }
 0xe6b   : > { %v8198_v27 = vadd.f32 %v8194_v45, %v8107_v28  ;;  %v8195_v37 = vmul.f32 %v15466_v24, %v8157_v19  ;;  %v8234_v58 = vpop.permute.xlu1 %8233 }
 0xe6c   : > { %v8201_v0 = vadd.f32 %v8197_v14, %v8110_v56  ;;  %v8224_v62 = vadd.f32 %v8215_v4, %v8200_v38  ;;  %v8229_v42 = vpop.permute.xlu0 %8228  ;;  %v8372_v38 = vld [vmem:[%s15467_s2 + $0x8] sm:$0xff]  ;;  %s15469_s2 = sld [smem:[#allocation20_spill]] }
 0xe6d   : > { %v8199_v33 = vadd.f32 %v8195_v37, %v8108_v12  ;;  %v8222_v35 = vadd.f32 %v8205_v44, %v8198_v27 }
 0xe6e   : > { %v8225_v25 = vadd.f32 %v8220_v55, %v8201_v0 }
 0xe6f   : > { %v8223_v54 = vadd.f32 %v8210_v30, %v8199_v33  ;;  %v8395_v1 = vpop.permute.xlu1 %8394 }
 0xe70   : > { %v12675_v40 = vpack.c.bf16 %v8225_v25, %v8224_v62  ;;  %v8390_v19 = vpop.permute.xlu0 %8389 }
 0xe71   : > { %v12671_v17 = vpack.c.bf16 %v8223_v54, %v8222_v35 }
 0xe73   : > { %12672 = vmatprep.subr.bf16.mxu1 %v12671_v17 }
 0xe74   : > { %12674 = vmatpush3.bf16.msra.mxu1 %v12671_v17 }
 0xe75   : > { %12676 = vmatprep.subr.bf16.mxu1 %v12675_v40 }
 0xe78   : > { %12678 = vmatpush3.bf16.msra.mxu1 %v12675_v40 }
 0xe79   : > { %12475 = vmatprep.subr.bf16.mxu1 %v14949_v60 }
 0xe7b   : > { %12463 = vmatmul.mubr.msk.f32.vlgmr.msra.gmra.mrb[62].mxu1 %vm7134_vm3, %v7269_v48 }
 0xe7c   : > { %12465 = vmatprep.mubr.msk.f32.mxu1 %vm7134_vm3, %v7270_v29  ;;  %12476 = vmatpush3.bf16.msra.mxu1 %v14949_v60  ;;  %v8556_v29 = vpop.permute.xlu0 %8555 }
 0xe7d   : > { %12487 = vmatprep.subr.bf16.mxu1 %v14959_v63 }
 0xe7f   : > { %12466 = vmatmul.mubr.msk.f32.gmra.mrb[80].mxu1 %vm7134_vm3, %v7271_v51  ;;  %v8561_v51 = vpop.permute.xlu1 %8560 }
 0xe80   : > { %v8634_v15 = vpop.permute.xlu0 %8633 }
 0xf4e   : > { %v12464_v23 = vpop.f32.mrb[62].mxu1 }
 0xf4f   : > { %v8330_v32 = vadd.f32 %v12464_v23, %v8234_v58  ;;  %v8324_v11 = vpop.f32.mrb[63].mxu1  ;;  %v8716_v58 = vpop.permute.xlu0 %8715 }
 0xf50   : > { %v8325_v6 = vadd.f32 %v8324_v11, %v8229_v42 }
 0xf51   : > { %v11747_v34 = vmul.f32 -1.442695, %v8330_v32 }
 0xf52   : > { %v11746_v21 = vmul.f32 -1.442695, %v8325_v6  ;;  %v12467_v43 = vpop.f32.mrb[80].mxu1 }
 0xf53   : > { %13447 = vpow2.f32 %v11747_v34  ;;  %v8340_v3 = vadd.f32 %v12467_v43, %v8244_v50  ;;  %v8334_v22 = vpop.f32.mrb[81].mxu1  ;;  %v8639_v50 = vpop.permute.xlu1 %8638 }
 0xf54   : > { %13449 = vpow2.f32 %v11746_v21  ;;  %v8335_v7 = vadd.f32 %v8334_v22, %v8239_v46  ;;  %v8379_v46 = vld [vmem:[%s15468_s0] sm:$0xff]  ;;  %v8566_v42 = vpop.permute.xlu0 %8565 }
 0xf55   : > { %v11749_v10 = vmul.f32 -1.442695, %v8340_v3 }
 0xf56   : > { %v11748_v31 = vmul.f32 -1.442695, %v8335_v7 }
 0xf57   : > { %13451 = vpow2.f32 %v11749_v10  ;;  %v8721_v23 = vpop.permute.xlu1 %8720 }
 0xf58   : > { %13453 = vpow2.f32 %v11748_v31  ;;  %v8644_v11 = vpop.permute.xlu0 %8643 }
 0xf5c   : > { %v8798_v34 = vpop.permute.xlu0 %8797 }
 0xf5d   : > { %v13448_v49 = vpop.eup %13447 }
 0xf5e   : > { %v13450_v57 = vpop.eup %13449  ;;  %v8356_v26 = vadd.f32 1.0, %v13448_v49 }
 0xf5f   : > { %v8355_v28 = vadd.f32 1.0, %v13450_v57 }
 0xf60   : > { %13455 = vrcp.f32 %v8356_v26  ;;  %v8726_v43 = vpop.permute.xlu0 %8725 }
 0xf61   : > { %v13452_v47 = vpop.eup %13451  ;;  %13457 = vrcp.f32 %v8355_v28 }
 0xf62   : > { %v13454_v52 = vpop.eup %13453  ;;  %v8358_v36 = vadd.f32 1.0, %v13452_v47 }
 0xf63   : > { %v8357_v44 = vadd.f32 1.0, %v13454_v52 }
 0xf64   : > { %13459 = vrcp.f32 %v8358_v36  ;;  %v15104_v22 = vpop.permute.xlu0 %8879 }
 0xf65   : > { %13461 = vrcp.f32 %v8357_v44 }
 0xf68   : > { %v8808_v10 = vpop.permute.xlu0 %8807 }
 0xf6a   : > { %v13456_v56 = vpop.eup %13455 }
 0xf6b   : > { %v13458_v30 = vpop.eup %13457  ;;  %v8368_v12 = vmul.f32 %v13456_v56, %v8330_v32  ;;  %v8571_v32 = vpop.permute.xlu1 %8570 }
 0xf6c   : > { %v8367_v16 = vmul.f32 %v13458_v30, %v8325_v6  ;;  %v15108_v49 = vpop.permute.xlu0 %8961 }
 0xf6e   : > { %v13460_v20 = vpop.eup %13459  ;;  %v8492_v61 = vpack.c.bf16 %v8368_v12, %v8367_v16 }
 0xf6f   : > { %v13462_v53 = vpop.eup %13461  ;;  %v8370_v41 = vmul.f32 %v13460_v20, %v8340_v3  ;;  %v8649_v6 = vpop.permute.xlu1 %8648 }
 0xf70   : > { %v8369_v45 = vmul.f32 %v13462_v53, %v8335_v7  ;;  %12477 = vmatprep.mubr.msk.bf16.mxu1 %vm1663_vm0, %v8492_v61  ;;  %v8890_v26 = vpop.permute.xlu0 %8889 }
 0xf72   : > { %v12679_v13 = vpack.c.bf16 %v8370_v41, %v8369_v45 }
 0xf73   : > { %v8803_v21 = vpop.permute.xlu1 %8802 }
 0xf74   : > { %12680 = vmatprep.subr.bf16.mxu0 %v12679_v13  ;;  %v15114_v47 = vpop.permute.xlu0 %9043 }
 0xf75   : > { %12682 = vmatpush3.bf16.msra.mxu0 %v12679_v13 }
 0xf76   : > { %12481 = vmatprep.subr.bf16.mxu0 %v14952_v39 }
 0xf77   : > { %v8731_v3 = vpop.permute.xlu1 %8730 }
 0xf78   : > { %12473 = vmatmul.mubr.msk.f32.vlgmr.msra.gmra.mrb[80].mxu0 %vm1663_vm0, %v8372_v38  ;;  %v15118_v36 = vpop.permute.xlu0 %8971 }
 0xf79   : > { %12483 = vmatprep.mubr.msk.bf16.mxu0 %vm1663_vm0, %v8492_v61  ;;  %12482 = vmatpush3.bf16.msra.mxu0 %v14952_v39 }
 0xf7a   : > { %12493 = vmatprep.subr.bf16.mxu0 %v14962_v2 }
 0xf7b   : > { %v15106_v7 = vpop.permute.xlu1 %8884 }
 0xf7c   : > { %v15122_v56 = vpop.permute.xlu0 %9125 }
 0xf7f   : > { %v8813_v31 = vpop.permute.xlu1 %8812 }
 0xf80   : > { %v15126_v12 = vpop.permute.xlu0 %9053 }
 0xf83   : > { %v15110_v57 = vpop.permute.xlu1 %8966 }
 0xf87   : > { %v15112_v28 = vpop.permute.xlu1 %8894 }
 0xf8b   : > { %v15116_v52 = vpop.permute.xlu1 %9048 }
 0xf8f   : > { %v15120_v44 = vpop.permute.xlu1 %8976 }
 0xf93   : > { %v15124_v30 = vpop.permute.xlu1 %9130 }
 0xf97   : > { %v15128_v16 = vpop.permute.xlu1 %9058 }
0x104b   : > { %v12474_v14 = vpop.f32.mrb[80].mxu0 }
0x104c   : > { %v8475_v27 = vadd.f32 %v12474_v14, %v8395_v1  ;;  %v8469_v24 = vpop.f32.mrb[81].mxu0 }
0x104d   : > { %v8470_v37 = vadd.f32 %v8469_v24, %v8390_v19 }
0x104e   : > { %v11753_v0 = vmul.f32 -1.442695, %v8475_v27 }
0x104f   : > { %v11752_v4 = vmul.f32 -1.442695, %v8470_v37 }
0x1050   : > { %13463 = vpow2.f32 %v11753_v0 }
0x1051   : > { %13465 = vpow2.f32 %v11752_v4 }
0x105a   : > { %v13464_v55 = vpop.eup %13463 }
0x105b   : > { %v13466_v33 = vpop.eup %13465  ;;  %v8485_v62 = vadd.f32 1.0, %v13464_v55 }
0x105c   : > { %v8484_v25 = vadd.f32 1.0, %v13466_v33 }
0x105d   : > { %13467 = vrcp.f32 %v8485_v62 }
0x105e   : > { %13469 = vrcp.f32 %v8484_v25 }
0x1067   : > { %v13468_v35 = vpop.eup %13467 }
0x1068   : > { %v13470_v54 = vpop.eup %13469  ;;  %v8491_v40 = vmul.f32 %v13468_v35, %v8475_v27 }
0x1069   : > { %v8490_v17 = vmul.f32 %v13470_v54, %v8470_v37  ;;  %v15130_v54 = vpop.permute.xlu0 %9207 }
0x106b   : > { %v8493_v48 = vpack.c.bf16 %v8491_v40, %v8490_v17  ;;  %v15132_v40 = vpop.permute.xlu1 %9212 }
0x106d   : > { %12478 = vmatmul.mubr.msk.bf16.vlgmr.msra.gmra.mrb[84].mxu1 %vm1663_vm0, %v8493_v48  ;;  %12484 = vmatmul.mubr.msk.bf16.vlgmr.msra.gmra.mrb[84].mxu0 %vm1663_vm0, %v8493_v48 }
0x106e   : > { %12489 = vmatprep.mubr.msk.bf16.mxu1 %vm1663_vm0, %v8492_v61  ;;  %12495 = vmatprep.mubr.msk.bf16.mxu0 %vm1663_vm0, %v8492_v61 }
0x106f   : > { %12488 = vmatpush3.bf16.msra.mxu1 %v14959_v63  ;;  %12494 = vmatpush3.bf16.msra.mxu0 %v14962_v2 }
0x1070   : > { %12499 = vmatprep.subr.bf16.mxu1 %v14969_v5  ;;  %12505 = vmatprep.subr.bf16.mxu0 %v14972_v18 }
0x1075   : > { %12490 = vmatmul.mubr.msk.bf16.vlgmr.msra.gmra.mrb[88].mxu1 %vm1663_vm0, %v8493_v48  ;;  %12496 = vmatmul.mubr.msk.bf16.vlgmr.msra.gmra.mrb[88].mxu0 %vm1663_vm0, %v8493_v48 }
0x1076   : > { %12501 = vmatprep.mubr.msk.bf16.mxu1 %vm1663_vm0, %v8492_v61  ;;  %12507 = vmatprep.mubr.msk.bf16.mxu0 %vm1663_vm0, %v8492_v61 }
0x1077   : > { %12500 = vmatpush3.bf16.msra.mxu1 %v14969_v5  ;;  %12506 = vmatpush3.bf16.msra.mxu0 %v14972_v18 }
0x1078   : > { %12511 = vmatprep.subr.bf16.mxu1 %v14985_v8  ;;  %12517 = vmatprep.subr.bf16.mxu0 %v14988_v9 }
0x107d   : > { %12502 = vmatmul.mubr.msk.bf16.vlgmr.msra.gmra.mrb[92].mxu1 %vm1663_vm0, %v8493_v48  ;;  %12508 = vmatmul.mubr.msk.bf16.vlgmr.msra.gmra.mrb[92].mxu0 %vm1663_vm0, %v8493_v48 }
0x107e   : > { %12513 = vmatprep.mubr.msk.bf16.mxu1 %vm1663_vm0, %v8492_v61  ;;  %12519 = vmatprep.mubr.msk.bf16.mxu0 %vm1663_vm0, %v8492_v61 }
0x107f   : > { %12512 = vmatpush3.bf16.msra.mxu1 %v14985_v8  ;;  %12518 = vmatpush3.bf16.msra.mxu0 %v14988_v9 }
0x1080   : > { %12523 = vmatprep.subr.bf16.mxu1 %v15001_v59 }
0x1085   : > { %12514 = vmatmul.mubr.msk.bf16.vlgmr.msra.gmra.mrb[96].mxu1 %vm1663_vm0, %v8493_v48  ;;  %12520 = vmatmul.mubr.msk.bf16.vlgmr.msra.gmra.mrb[96].mxu0 %vm1663_vm0, %v8493_v48 }
0x1086   : > { %12525 = vmatprep.mubr.msk.bf16.mxu1 %vm1663_vm0, %v8492_v61  ;;  %12524 = vmatpush3.bf16.msra.mxu1 %v15001_v59 }
0x1087   : > { %12537 = vmatprep.mubr.msk.f32.mxu0 %vm7134_vm3, %v8379_v46 }
0x108d   : > { %12526 = vmatmul.mubr.msk.bf16.vlgmr.msra.gmra.mrb[100].mxu1 %vm1663_vm0, %v8493_v48 }
0x1140   : > { %v12479_v20 = vpop.f32.mrb[84].mxu1  ;;  %v12485_v61 = vpop.f32.mrb[84].mxu0 }
0x1141   : > { %v8575_v53 = vmul.f32 %v12479_v20, %v8566_v42  ;;  %v8653_v41 = vmul.f32 %v12485_v61, %v8644_v11  ;;  %v8534_v45 = vpop.f32.mrb[85].mxu1  ;;  %v8611_v13 = vpop.f32.mrb[85].mxu0 }
0x1142   : > { %v8573_v38 = vmul.f32 %v8556_v29, %v8534_v45  ;;  %v8651_v1 = vmul.f32 %v8634_v15, %v8611_v13  ;;  %v12480_v14 = vpop.f32.mrb[86].mxu1  ;;  %v12486_v19 = vpop.f32.mrb[86].mxu0 }
0x1143   : > { %v8657_v27 = vadd.f32 %v8653_v41, %v8575_v53  ;;  %v8576_v24 = vmul.f32 %v12480_v14, %v8571_v32  ;;  %v8654_v37 = vmul.f32 %v12486_v19, %v8649_v6  ;;  %v8537_v0 = vpop.f32.mrb[87].mxu1  ;;  %v8614_v4 = vpop.f32.mrb[87].mxu0 }
0x1144   : > { %v8655_v55 = vadd.f32 %v8651_v1, %v8573_v38  ;;  %v8574_v33 = vmul.f32 %v8561_v51, %v8537_v0  ;;  %v8652_v62 = vmul.f32 %v8639_v50, %v8614_v4 }
0x1145   : > { %v8658_v25 = vadd.f32 %v8654_v37, %v8576_v24  ;;  %v9141_v37 = vpop.permute.xlu1 %9140 }
0x1146   : > { %v8656_v35 = vadd.f32 %v8652_v62, %v8574_v33 }
0x1148   : > { %v12491_v17 = vpop.f32.mrb[88].mxu1  ;;  %v12497_v48 = vpop.f32.mrb[88].mxu0 }
0x1149   : > { %v8735_v29 = vmul.f32 %v12491_v17, %v8726_v43  ;;  %v8693_v15 = vpop.f32.mrb[89].mxu1  ;;  %v8775_v46 = vpop.f32.mrb[89].mxu0  ;;  %v8817_v20 = vmul.f32 %v12497_v48, %v8808_v10 }
0x114a   : > { %v8733_v42 = vmul.f32 %v8716_v58, %v8693_v15  ;;  %v12492_v11 = vpop.f32.mrb[90].mxu1  ;;  %v12498_v32 = vpop.f32.mrb[90].mxu0  ;;  %v8815_v41 = vmul.f32 %v8798_v34, %v8775_v46 }
0x114b   : > { %v8739_v6 = vadd.f32 %v8735_v29, %v8657_v27  ;;  %v8736_v61 = vmul.f32 %v12492_v11, %v8731_v3  ;;  %v8696_v53 = vpop.f32.mrb[91].mxu1  ;;  %v8778_v51 = vpop.f32.mrb[91].mxu0  ;;  %v8818_v1 = vmul.f32 %v12498_v32, %v8813_v31 }
0x114c   : > { %v8737_v50 = vadd.f32 %v8733_v42, %v8655_v55  ;;  %v8734_v45 = vmul.f32 %v8721_v23, %v8696_v53  ;;  %v8816_v24 = vmul.f32 %v8803_v21, %v8778_v51  ;;  %v9136_v43 = vpop.permute.xlu0 %9135 }
0x114d   : > { %v8821_v13 = vadd.f32 %v8817_v20, %v8739_v6  ;;  %v8740_v38 = vadd.f32 %v8736_v61, %v8658_v25  ;;  %v9223_v6 = vpop.permute.xlu1 %9222 }
0x114e   : > { %v8819_v14 = vadd.f32 %v8815_v41, %v8737_v50  ;;  %v8738_v19 = vadd.f32 %v8734_v45, %v8656_v35 }
0x114f   : > { %v8822_v0 = vadd.f32 %v8818_v1, %v8740_v38 }
0x1150   : > { %v8820_v58 = vadd.f32 %v8816_v24, %v8738_v19  ;;  %v12503_v4 = vpop.f32.mrb[92].mxu1  ;;  %v12509_v33 = vpop.f32.mrb[92].mxu0 }
0x1151   : > { %v8899_v27 = vmul.f32 %v12503_v4, %v8890_v26  ;;  %v8857_v10 = vpop.f32.mrb[93].mxu1  ;;  %v8939_v3 = vpop.f32.mrb[93].mxu0  ;;  %v8981_v25 = vmul.f32 %v12509_v33, %v15118_v36 }
0x1152   : > { %v8897_v62 = vmul.f32 %v15104_v22, %v8857_v10  ;;  %v12504_v55 = vpop.f32.mrb[94].mxu1  ;;  %v12510_v34 = vpop.f32.mrb[94].mxu0  ;;  %v8979_v48 = vmul.f32 %v15108_v49, %v8939_v3 }
0x1153   : > { %v8903_v23 = vadd.f32 %v8899_v27, %v8821_v13  ;;  %v8900_v31 = vmul.f32 %v12504_v55, %v15112_v28  ;;  %v8860_v35 = vpop.f32.mrb[95].mxu1  ;;  %v8942_v21 = vpop.f32.mrb[95].mxu0  ;;  %v8982_v46 = vmul.f32 %v12510_v34, %v15120_v44 }
0x1154   : > { %v8901_v17 = vadd.f32 %v8897_v62, %v8819_v14  ;;  %v8898_v29 = vmul.f32 %v15106_v7, %v8860_v35  ;;  %v8980_v11 = vmul.f32 %v15110_v57, %v8942_v21  ;;  %v9218_v32 = vpop.permute.xlu0 %9217  ;;  %v9241_v10 = vpop.permute.xlu1 %9240 }
0x1155   : > { %v8985_v15 = vadd.f32 %v8981_v25, %v8903_v23  ;;  %v8904_v26 = vadd.f32 %v8900_v31, %v8822_v0 }
0x1156   : > { %v8983_v42 = vadd.f32 %v8979_v48, %v8901_v17  ;;  %v8902_v22 = vadd.f32 %v8898_v29, %v8820_v58 }
0x1157   : > { %v8986_v36 = vadd.f32 %v8982_v46, %v8904_v26  ;;  %v8380_v46 = vld [vmem:[%s15468_s0 + $0x8] sm:$0xff] }
0x1158   : > { %v8984_v20 = vadd.f32 %v8980_v11, %v8902_v22  ;;  %v12515_v28 = vpop.f32.mrb[96].mxu1  ;;  %v12521_v61 = vpop.f32.mrb[96].mxu0  ;;  %v9402_v22 = vld [vmem:[%s15469_s2] sm:$0xff] }
0x1159   : > { %v9063_v53 = vmul.f32 %v12515_v28, %v15126_v12  ;;  %v9021_v51 = vpop.f32.mrb[97].mxu1  ;;  %v9103_v49 = vpop.f32.mrb[97].mxu0  ;;  %v9145_v44 = vmul.f32 %v12521_v61, %v9136_v43  ;;  %12547 = vmatprep.mubr.msk.f32.mxu1 %vm1663_vm0, %v9402_v22 }
0x115a   : > { %v9061_v7 = vmul.f32 %v15114_v47, %v9021_v51  ;;  %v12516_v50 = vpop.f32.mrb[98].mxu1  ;;  %v12522_v41 = vpop.f32.mrb[98].mxu0  ;;  %v9143_v14 = vmul.f32 %v15122_v56, %v9103_v49 }
0x115b   : > { %v9067_v45 = vadd.f32 %v9063_v53, %v8985_v15  ;;  %v9064_v13 = vmul.f32 %v12516_v50, %v15128_v16  ;;  %v9024_v38 = vpop.f32.mrb[99].mxu1  ;;  %v9106_v57 = vpop.f32.mrb[99].mxu0  ;;  %v9146_v12 = vmul.f32 %v12522_v41, %v9141_v37 }
0x115c   : > { %v9065_v1 = vadd.f32 %v9061_v7, %v8983_v42  ;;  %v9062_v19 = vmul.f32 %v15116_v52, %v9024_v38  ;;  %v9144_v47 = vmul.f32 %v15124_v30, %v9106_v57  ;;  %v9236_v33 = vpop.permute.xlu0 %9235  ;;  %v9251_v35 = vpop.permute.xlu1 %9250  ;;  %v8381_v42 = vld [vmem:[%s15468_s0 + $0x10] sm:$0xff] }
0x115d   : > { %v9149_v24 = vadd.f32 %v9145_v44, %v9067_v45  ;;  %v9068_v0 = vadd.f32 %v9064_v13, %v8986_v36 }
0x115e   : > { %v9147_v58 = vadd.f32 %v9143_v14, %v9065_v1  ;;  %v9066_v4 = vadd.f32 %v9062_v19, %v8984_v20 }
0x115f   : > { %v9150_v27 = vadd.f32 %v9146_v12, %v9068_v0 }
0x1160   : > { %v9148_v43 = vadd.f32 %v9144_v47, %v9066_v4  ;;  %v12527_v3 = vpop.f32.mrb[100].mxu1  ;;  %v9246_v30 = vpop.permute.xlu0 %9245 }
0x1161   : > { %v9227_v16 = vmul.f32 %v12527_v3, %v9218_v32  ;;  %v9185_v62 = vpop.f32.mrb[101].mxu1  ;;  %v9275_v11 = vpop.permute.xlu1 %9274 }
0x1162   : > { %v9225_v55 = vmul.f32 %v15130_v54, %v9185_v62  ;;  %v12528_v34 = vpop.f32.mrb[102].mxu1 }
0x1163   : > { %v9231_v56 = vadd.f32 %v9227_v16, %v9149_v24  ;;  %v9228_v23 = vmul.f32 %v12528_v34, %v9223_v6  ;;  %v9188_v52 = vpop.f32.mrb[103].mxu1  ;;  %v9403_v16 = vld [vmem:[%s15469_s2 + $0x8] sm:$0xff] }
0x1164   : > { %v9229_v25 = vadd.f32 %v9225_v55, %v9147_v58  ;;  %v9226_v37 = vmul.f32 %v15132_v40, %v9188_v52  ;;  %v8382_v40 = vld [vmem:[%s15468_s0 + $0x18] sm:$0xff]  ;;  %v9270_v32 = vpop.permute.xlu0 %9269  ;;  %s15470_s0 = sld [smem:[#allocation24_spill]] }
0x1165   : > { %v9232_v31 = vadd.f32 %v9228_v23, %v9150_v27  ;;  %v9255_v17 = vadd.f32 %v9246_v30, %v9231_v56  ;;  %v9265_v6 = vpop.permute.xlu1 %9264 }
0x1166   : > { %v9230_v21 = vadd.f32 %v9226_v37, %v9148_v43  ;;  %v9253_v29 = vadd.f32 %v9236_v33, %v9229_v25 }
0x1167   : > { %v9256_v48 = vadd.f32 %v9251_v35, %v9232_v31 }
0x1168   : > { %v9254_v15 = vadd.f32 %v9241_v10, %v9230_v21  ;;  %v9260_v20 = vpop.permute.xlu0 %9259 }
0x1169   : > { %v12687_v54 = vpack.c.bf16 %v9256_v48, %v9255_v17  ;;  %v9422_v62 = vpop.permute.xlu1 %9421 }
0x116a   : > { %v12683_v26 = vpack.c.bf16 %v9254_v15, %v9253_v29  ;;  %v13507_v15 = vld [vmem:[%s15427_s1 + $0x10] sm:$0xff]   ;;  %v9410_v22 = vld [vmem:[%s15470_s0] sm:$0xff] }
0x116c   : > { %12684 = vmatprep.subr.bf16.mxu0 %v12683_v26  ;;  %v9417_v34 = vpop.permute.xlu0 %9416 }
0x116d   : > { %12686 = vmatpush3.bf16.msra.mxu0 %v12683_v26  ;;  %v13509_v26 = vld [vmem:[%s15427_s1 + $0x20] sm:$0xff]  }
0x116e   : > { %12688 = vmatprep.subr.bf16.mxu0 %v12687_v54 }
0x1171   : > { %12690 = vmatpush3.bf16.msra.mxu0 %v12687_v54  ;;  %v13508_v54 = vld [vmem:[%s15427_s1 + $0x18] sm:$0xff]  }
0x1172   : > { %12550 = vmatprep.subr.bf16.mxu0 %v14949_v60 }
0x1174   : > { %12538 = vmatmul.mubr.msk.f32.vlgmr.msra.gmra.mrb[82].mxu0 %vm7134_vm3, %v8380_v46  ;;  %v13510_v46 = vld [vmem:[%s15427_s1 + $0x28] sm:$0xff]  }
0x1175   : > { %12540 = vmatprep.mubr.msk.f32.mxu0 %vm7134_vm3, %v8381_v42  ;;  %12551 = vmatpush3.bf16.msra.mxu0 %v14949_v60 }
0x1176   : > { %12562 = vmatprep.subr.bf16.mxu0 %v14959_v63 }
0x1178   : > { %12541 = vmatmul.mubr.msk.f32.gmra.mrb[100].mxu0 %vm7134_vm3, %v8382_v40 }
0x1247   : > { %v12539_v36 = vpop.f32.mrb[82].mxu0 }
0x1248   : > { %v9361_v28 = vadd.f32 %v12539_v36, %v9265_v6  ;;  %v9355_v61 = vpop.f32.mrb[83].mxu0 }
0x1249   : > { %v9356_v53 = vadd.f32 %v9355_v61, %v9260_v20 }
0x124a   : > { %v11809_v51 = vmul.f32 -1.442695, %v9361_v28 }
0x124b   : > { %v11808_v49 = vmul.f32 -1.442695, %v9356_v53  ;;  %v12542_v7 = vpop.f32.mrb[100].mxu0 }
0x124c   : > { %13471 = vpow2.f32 %v11809_v51  ;;  %v9371_v60 = vadd.f32 %v12542_v7, %v9275_v11  ;;  %v9365_v50 = vpop.f32.mrb[101].mxu0 }
0x124d   : > { %13473 = vpow2.f32 %v11808_v49  ;;  %v9366_v63 = vadd.f32 %v9365_v50, %v9270_v32 }
0x124e   : > { %v11811_v41 = vmul.f32 -1.442695, %v9371_v60 }
0x124f   : > { %v11810_v45 = vmul.f32 -1.442695, %v9366_v63 }
0x1250   : > { %13475 = vpow2.f32 %v11811_v41 }
0x1251   : > { %13477 = vpow2.f32 %v11810_v45 }
0x1256   : > { %v13472_v44 = vpop.eup %13471 }
0x1257   : > { %v13474_v13 = vpop.eup %13473  ;;  %v9387_v38 = vadd.f32 1.0, %v13472_v44 }
0x1258   : > { %v9386_v57 = vadd.f32 1.0, %v13474_v13 }
0x1259   : > { %13479 = vrcp.f32 %v9387_v38 }
0x125a   : > { %v13476_v1 = vpop.eup %13475  ;;  %13481 = vrcp.f32 %v9386_v57 }
0x125b   : > { %v13478_v14 = vpop.eup %13477  ;;  %v9389_v19 = vadd.f32 1.0, %v13476_v1 }
0x125c   : > { %v9388_v24 = vadd.f32 1.0, %v13478_v14 }
0x125d   : > { %13483 = vrcp.f32 %v9389_v19 }
0x125e   : > { %13485 = vrcp.f32 %v9388_v24 }
0x1263   : > { %v13480_v0 = vpop.eup %13479 }
0x1264   : > { %v13482_v12 = vpop.eup %13481  ;;  %v9399_v58 = vmul.f32 %v13480_v0, %v9361_v28 }
0x1265   : > { %v9398_v4 = vmul.f32 %v13482_v12, %v9356_v53 }
0x1267   : > { %v13484_v47 = vpop.eup %13483  ;;  %v15160_v33 = vpack.c.bf16 %v9399_v58, %v9398_v4 }
0x1268   : > { %v13486_v27 = vpop.eup %13485  ;;  %v9401_v10 = vmul.f32 %v13484_v47, %v9371_v60 }
0x1269   : > { %v9400_v43 = vmul.f32 %v13486_v27, %v9366_v63  ;;  %12552 = vmatprep.mubr.msk.bf16.mxu0 %vm1663_vm0, %v15160_v33 }
0x126b   : > { %v12691_v3 = vpack.c.bf16 %v9401_v10, %v9400_v43 }
0x126d   : > { %12692 = vmatprep.subr.bf16.mxu1 %v12691_v3 }
0x126e   : > { %12694 = vmatpush3.bf16.msra.mxu1 %v12691_v3 }
0x126f   : > { %12556 = vmatprep.subr.bf16.mxu1 %v14952_v39 }
0x1271   : > { %12548 = vmatmul.mubr.msk.f32.vlgmr.msra.gmra.mrb[82].mxu1 %vm1663_vm0, %v9403_v16 }
0x1272   : > { %12558 = vmatprep.mubr.msk.bf16.mxu1 %vm1663_vm0, %v15160_v33  ;;  %12557 = vmatpush3.bf16.msra.mxu1 %v14952_v39 }
0x1273   : > { %12568 = vmatprep.subr.bf16.mxu1 %v14962_v2 }
0x1344   : > { %v12549_v55 = vpop.f32.mrb[82].mxu1 }
0x1345   : > { %v9502_v56 = vadd.f32 %v12549_v55, %v9422_v62  ;;  %v9496_v23 = vpop.f32.mrb[83].mxu1 }
0x1346   : > { %v9497_v52 = vadd.f32 %v9496_v23, %v9417_v34 }
0x1347   : > { %v11815_v25 = vmul.f32 -1.442695, %v9502_v56 }
0x1348   : > { %v11814_v37 = vmul.f32 -1.442695, %v9497_v52 }
0x1349   : > { %13487 = vpow2.f32 %v11815_v25 }
0x134a   : > { %13489 = vpow2.f32 %v11814_v37 }
0x1353   : > { %v13488_v31 = vpop.eup %13487 }
0x1354   : > { %v13490_v30 = vpop.eup %13489  ;;  %v9512_v35 = vadd.f32 1.0, %v13488_v31 }
0x1355   : > { %v9511_v21 = vadd.f32 1.0, %v13490_v30 }
0x1356   : > { %13491 = vrcp.f32 %v9512_v35 }
0x1357   : > { %13493 = vrcp.f32 %v9511_v21 }
0x1360   : > { %v13492_v39 = vpop.eup %13491 }
0x1361   : > { %v13494_v2 = vpop.eup %13493  ;;  %v9518_v17 = vmul.f32 %v13492_v39, %v9502_v56 }
0x1362   : > { %v9517_v48 = vmul.f32 %v13494_v2, %v9497_v52 }
0x1364   : > { %v9520_v29 = vpack.c.bf16 %v9518_v17, %v9517_v48 }
0x1366   : > { %12553 = vmatmul.mubr.msk.bf16.vlgmr.msra.gmra.mrb[104].mxu0 %vm1663_vm0, %v9520_v29  ;;  %12559 = vmatmul.mubr.msk.bf16.vlgmr.msra.gmra.mrb[104].mxu1 %vm1663_vm0, %v9520_v29 }
0x1367   : > { %12564 = vmatprep.mubr.msk.bf16.mxu0 %vm1663_vm0, %v15160_v33  ;;  %12570 = vmatprep.mubr.msk.bf16.mxu1 %vm1663_vm0, %v15160_v33 }
0x1368   : > { %12563 = vmatpush3.bf16.msra.mxu0 %v13507_v15  ;;  %12569 = vmatpush3.bf16.msra.mxu1 %v13508_v54 }
0x1369   : > { %12574 = vmatprep.subr.bf16.mxu0 %v14969_v5  ;;  %12580 = vmatprep.subr.bf16.mxu1 %v14972_v18  ;;  %v13511_v5 = vld [vmem:[%s15427_s1 + $0x30] sm:$0xff]   ;;  %v13512_v18 = vld [vmem:[%s15427_s1 + $0x38] sm:$0xff]  }
0x136e   : > { %12565 = vmatmul.mubr.msk.bf16.vlgmr.msra.gmra.mrb[108].mxu0 %vm1663_vm0, %v9520_v29  ;;  %12571 = vmatmul.mubr.msk.bf16.vlgmr.msra.gmra.mrb[108].mxu1 %vm1663_vm0, %v9520_v29 }
0x136f   : > { %12576 = vmatprep.mubr.msk.bf16.mxu0 %vm1663_vm0, %v15160_v33  ;;  %12582 = vmatprep.mubr.msk.bf16.mxu1 %vm1663_vm0, %v15160_v33 }
0x1370   : > { %12575 = vmatpush3.bf16.msra.mxu0 %v13509_v26  ;;  %12581 = vmatpush3.bf16.msra.mxu1 %v13510_v46 }
0x1371   : > { %12586 = vmatprep.subr.bf16.mxu0 %v14985_v8  ;;  %12592 = vmatprep.subr.bf16.mxu1 %v14988_v9  ;;  %v9583_v8 = vpop.permute.xlu0 %9582  ;;  %v9588_v9 = vpop.permute.xlu1 %9587 }
0x1375   : > { %v9661_v42 = vpop.permute.xlu0 %9660  ;;  %v9666_v40 = vpop.permute.xlu1 %9665 }
0x1376   : > { %12577 = vmatmul.mubr.msk.bf16.vlgmr.msra.gmra.mrb[112].mxu0 %vm1663_vm0, %v9520_v29  ;;  %12583 = vmatmul.mubr.msk.bf16.vlgmr.msra.gmra.mrb[112].mxu1 %vm1663_vm0, %v9520_v29 }
0x1377   : > { %12588 = vmatprep.mubr.msk.bf16.mxu0 %vm1663_vm0, %v15160_v33  ;;  %12594 = vmatprep.mubr.msk.bf16.mxu1 %vm1663_vm0, %v15160_v33 }
0x1378   : > { %12587 = vmatpush3.bf16.msra.mxu0 %v13511_v5  ;;  %12593 = vmatpush3.bf16.msra.mxu1 %v13512_v18 }
0x1379   : > { %12598 = vmatprep.subr.bf16.mxu0 %v15001_v59  ;;  %v9743_v11 = vpop.permute.xlu0 %9742  ;;  %v9748_v32 = vpop.permute.xlu1 %9747 }
0x137d   : > { %v9593_v6 = vpop.permute.xlu0 %9592  ;;  %v9598_v36 = vpop.permute.xlu1 %9597 }
0x137e   : > { %12589 = vmatmul.mubr.msk.bf16.vlgmr.msra.gmra.mrb[116].mxu0 %vm1663_vm0, %v9520_v29  ;;  %12595 = vmatmul.mubr.msk.bf16.vlgmr.msra.gmra.mrb[116].mxu1 %vm1663_vm0, %v9520_v29 }
0x137f   : > { %12600 = vmatprep.mubr.msk.bf16.mxu0 %vm1663_vm0, %v15160_v33  ;;  %12599 = vmatpush3.bf16.msra.mxu0 %v15001_v59 }
0x1380   : > { %12612 = vmatprep.mubr.msk.f32.mxu1 %vm7134_vm3, %v9410_v22 }
0x1381   : > { %v9671_v20 = vpop.permute.xlu0 %9670  ;;  %v9676_v28 = vpop.permute.xlu1 %9675 }
0x1385   : > { %v9825_v61 = vpop.permute.xlu0 %9824  ;;  %v9830_v53 = vpop.permute.xlu1 %9829 }
0x1386   : > { %12601 = vmatmul.mubr.msk.bf16.vlgmr.msra.gmra.mrb[120].mxu0 %vm1663_vm0, %v9520_v29 }
0x1389   : > { %v9753_v51 = vpop.permute.xlu0 %9752  ;;  %v9758_v49 = vpop.permute.xlu1 %9757 }
0x138d   : > { %v15208_v59 = vpop.permute.xlu0 %9906  ;;  %v15210_v7 = vpop.permute.xlu1 %9911 }
0x1391   : > { %v9835_v60 = vpop.permute.xlu0 %9834  ;;  %v9840_v50 = vpop.permute.xlu1 %9839 }
0x1395   : > { %v15212_v63 = vpop.permute.xlu0 %9988  ;;  %v15214_v41 = vpop.permute.xlu1 %9993 }
0x1399   : > { %v9917_v45 = vpop.permute.xlu0 %9916  ;;  %v15216_v44 = vpop.permute.xlu1 %9921 }
0x139d   : > { %v15218_v13 = vpop.permute.xlu0 %10070  ;;  %v15220_v38 = vpop.permute.xlu1 %10075 }
0x13a1   : > { %v15222_v57 = vpop.permute.xlu0 %9998  ;;  %v15224_v1 = vpop.permute.xlu1 %10003 }
0x13a5   : > { %v15226_v14 = vpop.permute.xlu0 %10152  ;;  %v15228_v19 = vpop.permute.xlu1 %10157 }
0x13a9   : > { %v15230_v24 = vpop.permute.xlu0 %10080  ;;  %v15232_v0 = vpop.permute.xlu1 %10085 }
0x13ad   : > { %v15234_v35 = vpop.permute.xlu0 %10234  ;;  %v15236_v21 = vpop.permute.xlu1 %10239 }
0x1439   : > { %v12554_v12 = vpop.f32.mrb[104].mxu0  ;;  %v12560_v58 = vpop.f32.mrb[104].mxu1 }
0x143a   : > { %v9602_v4 = vmul.f32 %v12554_v12, %v9593_v6  ;;  %v9680_v47 = vmul.f32 %v12560_v58, %v9671_v20  ;;  %v9561_v33 = vpop.f32.mrb[105].mxu0  ;;  %v9638_v27 = vpop.f32.mrb[105].mxu1 }
0x143b   : > { %v9600_v10 = vmul.f32 %v9583_v8, %v9561_v33  ;;  %v9678_v43 = vmul.f32 %v9661_v42, %v9638_v27  ;;  %v12555_v3 = vpop.f32.mrb[106].mxu0  ;;  %v12561_v16 = vpop.f32.mrb[106].mxu1 }
0x143c   : > { %v9684_v62 = vadd.f32 %v9680_v47, %v9602_v4  ;;  %v9603_v55 = vmul.f32 %v12555_v3, %v9598_v36  ;;  %v9681_v34 = vmul.f32 %v12561_v16, %v9676_v28  ;;  %v9564_v56 = vpop.f32.mrb[107].mxu0  ;;  %v9641_v23 = vpop.f32.mrb[107].mxu1 }
0x143d   : > { %v9682_v52 = vadd.f32 %v9678_v43, %v9600_v10  ;;  %v9601_v25 = vmul.f32 %v9588_v9, %v9564_v56  ;;  %v9679_v37 = vmul.f32 %v9666_v40, %v9641_v23  ;;  %v10168_v4 = vpop.permute.xlu1 %10167 }
0x143e   : > { %v9685_v31 = vadd.f32 %v9681_v34, %v9603_v55 }
0x143f   : > { %v9683_v30 = vadd.f32 %v9679_v37, %v9601_v25 }
0x1441   : > { %v12566_v39 = vpop.f32.mrb[108].mxu0  ;;  %v12572_v2 = vpop.f32.mrb[108].mxu1 }
0x1442   : > { %v9762_v17 = vmul.f32 %v12566_v39, %v9753_v51  ;;  %v9720_v48 = vpop.f32.mrb[109].mxu0  ;;  %v9802_v29 = vpop.f32.mrb[109].mxu1  ;;  %v9844_v5 = vmul.f32 %v12572_v2, %v9835_v60 }
0x1443   : > { %v9760_v15 = vmul.f32 %v9743_v11, %v9720_v48  ;;  %v12567_v54 = vpop.f32.mrb[110].mxu0  ;;  %v12573_v26 = vpop.f32.mrb[110].mxu1  ;;  %v9842_v40 = vmul.f32 %v9825_v61, %v9802_v29 }
0x1444   : > { %v9766_v46 = vadd.f32 %v9762_v17, %v9684_v62  ;;  %v9763_v18 = vmul.f32 %v12567_v54, %v9758_v49  ;;  %v9723_v8 = vpop.f32.mrb[111].mxu0  ;;  %v9805_v9 = vpop.f32.mrb[111].mxu1  ;;  %v9845_v20 = vmul.f32 %v12573_v26, %v9840_v50 }
0x1445   : > { %v9764_v42 = vadd.f32 %v9760_v15, %v9682_v52  ;;  %v9761_v22 = vmul.f32 %v9748_v32, %v9723_v8  ;;  %v9843_v58 = vmul.f32 %v9830_v53, %v9805_v9  ;;  %v10163_v51 = vpop.permute.xlu0 %10162 }
0x1446   : > { %v9848_v6 = vadd.f32 %v9844_v5, %v9766_v46  ;;  %v9767_v36 = vadd.f32 %v9763_v18, %v9685_v31 }
0x1447   : > { %v9846_v28 = vadd.f32 %v9842_v40, %v9764_v42  ;;  %v9765_v12 = vadd.f32 %v9761_v22, %v9683_v30  ;;  %v10250_v30 = vpop.permute.xlu1 %10249 }
0x1448   : > { %v9849_v47 = vadd.f32 %v9845_v20, %v9767_v36 }
0x1449   : > { %v9847_v11 = vadd.f32 %v9843_v58, %v9765_v12  ;;  %v12578_v33 = vpop.f32.mrb[112].mxu0  ;;  %v12584_v27 = vpop.f32.mrb[112].mxu1 }
0x144a   : > { %v9926_v10 = vmul.f32 %v12578_v33, %v9917_v45  ;;  %v9884_v60 = vpop.f32.mrb[113].mxu0  ;;  %v9966_v49 = vpop.f32.mrb[113].mxu1  ;;  %v10008_v16 = vmul.f32 %v12584_v27, %v15222_v57 }
0x144b   : > { %v9924_v43 = vmul.f32 %v15208_v59, %v9884_v60  ;;  %v12579_v3 = vpop.f32.mrb[114].mxu0  ;;  %v12585_v61 = vpop.f32.mrb[114].mxu1  ;;  %v10006_v34 = vmul.f32 %v15212_v63, %v9966_v49 }
0x144c   : > { %v9930_v32 = vadd.f32 %v9926_v10, %v9848_v6  ;;  %v9927_v50 = vmul.f32 %v12579_v3, %v15216_v44  ;;  %v9887_v62 = vpop.f32.mrb[115].mxu0  ;;  %v9969_v53 = vpop.f32.mrb[115].mxu1  ;;  %v10009_v52 = vmul.f32 %v12585_v61, %v15224_v1 }
0x144d   : > { %v9928_v55 = vadd.f32 %v9924_v43, %v9846_v28  ;;  %v9925_v56 = vmul.f32 %v15210_v7, %v9887_v62  ;;  %v10007_v37 = vmul.f32 %v15214_v41, %v9969_v53  ;;  %v10245_v31 = vpop.permute.xlu0 %10244  ;;  %v10268_v20 = vpop.permute.xlu1 %10267 }
0x144e   : > { %v10012_v23 = vadd.f32 %v10008_v16, %v9930_v32  ;;  %v9931_v45 = vadd.f32 %v9927_v50, %v9849_v47 }
0x144f   : > { %v10010_v25 = vadd.f32 %v10006_v34, %v9928_v55  ;;  %v9929_v59 = vadd.f32 %v9925_v56, %v9847_v11 }
0x1450   : > { %v10013_v57 = vadd.f32 %v10009_v52, %v9931_v45 }
0x1451   : > { %v10011_v39 = vadd.f32 %v10007_v37, %v9929_v59  ;;  %v12590_v44 = vpop.f32.mrb[116].mxu0  ;;  %v12596_v2 = vpop.f32.mrb[116].mxu1 }
0x1452   : > { %v10090_v17 = vmul.f32 %v12590_v44, %v15230_v24  ;;  %v10048_v48 = vpop.f32.mrb[117].mxu0  ;;  %v10130_v63 = vpop.f32.mrb[117].mxu1  ;;  %v10172_v1 = vmul.f32 %v12596_v2, %v10163_v51  ;;  %v10390_v2 = vld [vmem:[%s13755_s3 + $0x8] sm:$0xff] }
0x1453   : > { %v10088_v7 = vmul.f32 %v15218_v13, %v10048_v48  ;;  %v12591_v29 = vpop.f32.mrb[118].mxu0  ;;  %v12597_v15 = vpop.f32.mrb[118].mxu1  ;;  %v10170_v18 = vmul.f32 %v15226_v14, %v10130_v63  ;;  %v10389_v63 = vld [vmem:[%s13755_s3] sm:$0xff] }
0x1454   : > { %v10094_v54 = vadd.f32 %v10090_v17, %v10012_v23  ;;  %v10091_v26 = vmul.f32 %v12591_v29, %v15232_v0  ;;  %v10051_v46 = vpop.f32.mrb[119].mxu0  ;;  %v10133_v41 = vpop.f32.mrb[119].mxu1  ;;  %v10173_v24 = vmul.f32 %v12597_v15, %v10168_v4 }
0x1455   : > { %v10092_v5 = vadd.f32 %v10088_v7, %v10010_v25  ;;  %v10089_v8 = vmul.f32 %v15220_v38, %v10051_v46  ;;  %v10171_v13 = vmul.f32 %v15228_v19, %v10133_v41  ;;  %v10263_v6 = vpop.permute.xlu0 %10262  ;;  %v10278_v19 = vpop.permute.xlu1 %10277 }
0x1456   : > { %v10176_v9 = vadd.f32 %v10172_v1, %v10094_v54  ;;  %v10095_v42 = vadd.f32 %v10091_v26, %v10013_v57 }
0x1457   : > { %v10174_v40 = vadd.f32 %v10170_v18, %v10092_v5  ;;  %v10093_v22 = vadd.f32 %v10089_v8, %v10011_v39 }
0x1458   : > { %v10177_v36 = vadd.f32 %v10173_v24, %v10095_v42  ;;  %v10391_v42 = vld [vmem:[#allocation2] sm:$0x1] }
0x1459   : > { %v10175_v28 = vadd.f32 %v10171_v13, %v10093_v22  ;;  %v12602_v12 = vpop.f32.mrb[120].mxu0  ;;  %v10273_v10 = vpop.permute.xlu0 %10272 }
0x145a   : > { %v10254_v0 = vmul.f32 %v12602_v12, %v10245_v31  ;;  %v10212_v58 = vpop.f32.mrb[121].mxu0  ;;  %v10292_v50 = vpop.permute.xlu1 %10291 }
0x145b   : > { %v10252_v51 = vmul.f32 %v15234_v35, %v10212_v58  ;;  %v12603_v47 = vpop.f32.mrb[122].mxu0  ;;  %v9411_v35 = vld [vmem:[%s15470_s0 + $0x8] sm:$0xff]  ;;  %s1180_s0 = scalar_lea.vmem %s13763_s17, %s15472_s23 }
0x145c   : > { %v10258_v14 = vadd.f32 %v10254_v0, %v10176_v9  ;;  %v10255_v11 = vmul.f32 %v12603_v47, %v10250_v30  ;;  %v10215_v38 = vpop.f32.mrb[123].mxu0 }
0x145d   : > { %v10256_v33 = vadd.f32 %v10252_v51, %v10174_v40  ;;  %v10253_v4 = vmul.f32 %v15236_v21, %v10215_v38  ;;  %v10287_v21 = vpop.permute.xlu0 %10286 }
0x145e   : > { %v10259_v27 = vadd.f32 %v10255_v11, %v10177_v36  ;;  %v10282_v49 = vadd.f32 %v10273_v10, %v10258_v14 }
0x145f   : > { %v10257_v60 = vadd.f32 %v10253_v4, %v10175_v28  ;;  %v10280_v3 = vadd.f32 %v10263_v6, %v10256_v33 }
0x1460   : > { %v10283_v43 = vadd.f32 %v10278_v19, %v10259_v27 }
0x1461   : > { %v10281_v61 = vadd.f32 %v10268_v20, %v10257_v60 }
0x1462   : > { %v12699_v32 = vpack.c.bf16 %v10283_v43, %v10282_v49 }
0x1463   : > { %v12695_v16 = vpack.c.bf16 %v10281_v61, %v10280_v3 }
0x1465   : > { %12696 = vmatprep.subr.bf16.mxu1 %v12695_v16 }
0x1466   : > { %12698 = vmatpush3.bf16.msra.mxu1 %v12695_v16 }
0x1467   : > { %12700 = vmatprep.subr.bf16.mxu1 %v12699_v32 }
0x146a   : > { %12702 = vmatpush3.bf16.msra.mxu1 %v12699_v32 }
0x146d   : > { %12613 = vmatmul.mubr.msk.f32.vlgmr.msra.gmra.mrb[120].mxu1 %vm7134_vm3, %v9411_v35 }
0x1540   : > { %v12614_v62 = vpop.f32.mrb[120].mxu1 }
0x1541   : > { %v10372_v53 = vadd.f32 %v12614_v62, %v10292_v50  ;;  %v10366_v55 = vpop.f32.mrb[121].mxu1 }
0x1542   : > { %v10367_v34 = vadd.f32 %v10366_v55, %v10287_v21 }
0x1543   : > { %v11869_v56 = vmul.f32 -1.442695, %v10372_v53 }
0x1544   : > { %v11868_v23 = vmul.f32 -1.442695, %v10367_v34 }
0x1545   : > { %13495 = vpow2.f32 %v11869_v56 }
0x1546   : > { %13497 = vpow2.f32 %v11868_v23 }
0x154f   : > { %v13496_v45 = vpop.eup %13495 }
0x1550   : > { %v13498_v52 = vpop.eup %13497  ;;  %v10382_v25 = vadd.f32 1.0, %v13496_v45 }
0x1551   : > { %v10381_v59 = vadd.f32 1.0, %v13498_v52 }
0x1552   : > { %13499 = vrcp.f32 %v10382_v25 }
0x1553   : > { %13501 = vrcp.f32 %v10381_v59 }
0x155c   : > { %v13500_v37 = vpop.eup %13499 }
0x155d   : > { %v13502_v31 = vpop.eup %13501  ;;  %v10388_v30 = vmul.f32 %v13500_v37, %v10372_v53 }
0x155e   : > { %v10387_v57 = vmul.f32 %v13502_v31, %v10367_v34 }
0x155f   : > { %v10395_v39 = vsel %vm1663_vm0, %v10388_v30, 0.0 }
0x1560   : > { %10396 = vadd.xlane.f32.xlu1 %v10395_v39  ;;  %v10392_v44 = vsel %vm1663_vm0, %v10387_v57, 0.0 }
0x1561   : > { %10393 = vadd.xlane.f32.xlu0 %v10392_v44 }
0x15ed   : > { %v10397_v17 = vpop.xlane.xlu1 %10396 }
0x15ee   : > { %v10400_v48 = vmul.f32 0.0625, %v10397_v17  ;;  %v10394_v7 = vpop.xlane.xlu0 %10393 }
0x15ef   : > { %v10399_v29 = vmul.f32 0.0625, %v10394_v7 }
0x15f0   : > { %v10402_v15 = vmul.f32 %v10400_v48, %v10390_v2 }
0x15f1   : > { %v10401_v54 = vmul.f32 %v10399_v29, %v10389_v63 }
0x15f2   : > { %v10405_v1 = vsel %vm10403_vm4, %v10402_v15, 0.0 }
0x15f3   : > { %v10404_v26 = vsel %vm10403_vm4, %v10401_v54, 0.0 }
0x15f4   : > { %v10406_v46 = vadd.f32 %v10405_v1, %v10404_v26 }
0x15f6   : > { %v10407_v41 = vrot.slane %v10406_v46, 4 }
0x15f8   : > { %v10408_v5 = vadd.f32 %v10407_v41, %v10406_v46 }
0x15fa   : > { %v10409_v18 = vrot.slane %v10408_v5, 2 }
0x15fc   : > { %v10410_v8 = vadd.f32 %v10409_v18, %v10408_v5 }
0x15fe   : > { %v10411_v9 = vrot.slane %v10410_v8, 1 }
0x1600   : > { %v10412_v24 = vadd.f32 %v10411_v9, %v10410_v8 }
0x1602   : > { %v10413_v40 = vadd.f32 %v10412_v24, %v10391_v42 }
0x1604   : > { %v11870_v22 = vmul.f32 -1.442695, %v10413_v40 }
0x1606   : > { %13503 = vpow2.f32 %v11870_v22 }
0x1610   : > { %v13504_v13 = vpop.eup %13503 }
0x1611   : > { %v10417_v6 = vadd.f32 1.0, %v13504_v13 }
0x1613   : > { %13505 = vrcp.f32 %v10417_v6 }
0x161d   : > { %v13506_v36 = vpop.eup %13505 }
0x161e   : > { %10421 = vst.msk [vmem:[%s1180_s0] sm:$0x1] %vm10420_vm5, %v13506_v36 }
0x161f PF: > { %s91_s22 = sadd.s32 1, %s13519_s22  }
0x1620   : > { %p88_p4 = scmp.ge.s32.totalorder %s91_s22, 4  }
0x1622   :  { %90 = sbr.rel (!%p88_p4) target bundleno = 68 (0x44), region = 325 }

</bundles_post_ra>
